<compile_context>
chip_gen: v6e
topology: v6e:2x2x1
jax: 0.10.0
libtpu: 0.0.40
codegen_flags: <defaults>
</compile_context>

<pallas_src>
import jax
import jax.numpy as jnp
from jax import lax
from jax.experimental import pallas as pl
from jax.experimental.pallas import tpu as pltpu

INPUT_SIZE = 80
HIDDEN = 256
NUM_CLASSES = 10
K_PAD = 128          # input feature dim padded to one lane tile
N_PAD = 128          # classifier output padded to one lane tile
NEG_BIG = -1e30      # pad-lane logit bias -> exp underflows to exactly 0


def lstm_clf_kernel(x_ref, wih_ref, b_ref, whh_hbm, wclf_ref, bclf_ref,
                    out_ref, xg_ref, whh_ref, whh_sem):
    """Full LSTM over time + last-step Linear + Softmax, all in one kernel.

    x_ref:    (T*Bp, 128)   bf16  time-major, batch padded to Bp, K padded
    wih_ref:  (128, 4*256)  bf16  W_ih transposed (zero rows 80..128)
    b_ref:    (1, 4*256)    f32   b_ih + b_hh
    whh_hbm:  (256, 4*256)  bf16  W_hh transposed, left in HBM (manual DMA)
    wclf_ref: (256, 128)    f32   classifier weight transposed, zero-padded
    bclf_ref: (1, 128)      f32   classifier bias, -1e30 on pad lanes
    out_ref:  (Bp, 128)     f32   softmax probabilities (cols 10.. are 0)
    xg_ref:   (T*Bp, 4*256) f32   VMEM scratch: precomputed input projection
    whh_ref:  (256, 4*256)  bf16  VMEM scratch: resident recurrent weights
    whh_sem:  DMA semaphore
    """
    H = HIDDEN
    Bp = out_ref.shape[0]
    T = x_ref.shape[0] // Bp

    # Kick off the W_hh copy immediately; it is not needed until step 0 of the
    # recurrence, so it hides behind the input projection below.
    whh_cp = pltpu.make_async_copy(whh_hbm, whh_ref, whh_sem)
    whh_cp.start()

    # ---- Hoisted input projection, chunked per timestep (bias folded in) ----
    for t in range(T):
        row = t * Bp
        xg_ref[pl.ds(row, Bp), :] = (
            jnp.dot(x_ref[pl.ds(row, Bp), :], wih_ref[...],
                    preferred_element_type=jnp.float32)
            + b_ref[...])                                          # (Bp, 4H)

    whh_cp.wait()

    # ---- Recurrence: h, c carried as loop values (vregs), fully unrolled ----
    def step(t, carry):
        h, c = carry
        row = pl.multiple_of(t * Bp, Bp)
        xg_t = xg_ref[pl.ds(row, Bp), :]                           # (Bp, 4H)
        h_bf = h.astype(jnp.bfloat16)
        # Four (256,256) per-gate dots; activation of gate k overlaps the MXU
        # work on gate k+1.  Accumulation and elementwise math stay f32.
        gi = xg_t[:, 0 * H:1 * H] + jnp.dot(
            h_bf, whh_ref[:, 0 * H:1 * H], preferred_element_type=jnp.float32)
        i = jax.nn.sigmoid(gi)
        gf = xg_t[:, 1 * H:2 * H] + jnp.dot(
            h_bf, whh_ref[:, 1 * H:2 * H], preferred_element_type=jnp.float32)
        f = jax.nn.sigmoid(gf)
        gg = xg_t[:, 2 * H:3 * H] + jnp.dot(
            h_bf, whh_ref[:, 2 * H:3 * H], preferred_element_type=jnp.float32)
        g = jnp.tanh(gg)
        go = xg_t[:, 3 * H:4 * H] + jnp.dot(
            h_bf, whh_ref[:, 3 * H:4 * H], preferred_element_type=jnp.float32)
        o = jax.nn.sigmoid(go)
        c_new = f * c + i * g
        h_new = o * jnp.tanh(c_new)
        return h_new, c_new

    h0 = jnp.zeros((Bp, H), jnp.float32)
    c0 = jnp.zeros((Bp, H), jnp.float32)
    h_last, _ = lax.fori_loop(0, T, step, (h0, c0), unroll=True)

    # ---- Classifier (f32, tiny epilogue) + softmax over 128 padded lanes ----
    logits = (jnp.dot(h_last, wclf_ref[...],
                      preferred_element_type=jnp.float32)
              + bclf_ref[...])                                     # (Bp, 128)
    m = jnp.max(logits, axis=1, keepdims=True)
    e = jnp.exp(logits - m)                 # pad lanes: exp(-1e30 - m) -> 0
    s = jnp.sum(e, axis=1, keepdims=True)
    out_ref[...] = e * pl.reciprocal(s, approx=True)


def model_forward(x_ncl, w_ih, w_hh, b_ih, b_hh, w_clf, b_clf):
    """x_ncl: (B, 80, T) float32 — mirrors the PyTorch module's input layout."""
    B = x_ncl.shape[0]
    T = x_ncl.shape[2]
    Bp = ((B + 7) // 8) * 8                      # pad batch to a sublane tile

    # input.transpose(-1, -2) -> (B, T, 80); time-major, batch padded, feature
    # dim padded to 128 lanes, flattened to (T*Bp, 128) so each timestep's
    # input projection is a clean full-tile MXU matmul.
    x_tbf = jnp.transpose(x_ncl, (2, 0, 1)).astype(jnp.float32)    # (T, B, 80)
    x_tbf = jnp.pad(x_tbf, ((0, 0), (0, Bp - B), (0, K_PAD - INPUT_SIZE)))
    x_flat = x_tbf.reshape(T * Bp, K_PAD).astype(jnp.bfloat16)     # (T*Bp,128)

    wih_t = jnp.zeros((K_PAD, 4 * HIDDEN), jnp.float32)
    wih_t = wih_t.at[:INPUT_SIZE, :].set(jnp.transpose(w_ih).astype(jnp.float32))
    wih_t = wih_t.astype(jnp.bfloat16)                             # (128, 4H)

    whh_t = jnp.transpose(w_hh).astype(jnp.bfloat16)               # (256, 4H)
    bias = (b_ih + b_hh).reshape(1, 4 * HIDDEN).astype(jnp.float32)

    wclf_t = jnp.zeros((HIDDEN, N_PAD), jnp.float32)
    wclf_t = wclf_t.at[:, :NUM_CLASSES].set(
        jnp.transpose(w_clf).astype(jnp.float32))                  # (256, 128)
    bclf = jnp.full((1, N_PAD), NEG_BIG, jnp.float32)
    bclf = bclf.at[0, :NUM_CLASSES].set(b_clf.astype(jnp.float32)) # (1, 128)

    vmem = pl.BlockSpec(memory_space=pltpu.MemorySpace.VMEM)
    any_spec = pl.BlockSpec(memory_space=pl.ANY)   # W_hh: manual DMA overlap

    out = pl.pallas_call(
        lstm_clf_kernel,
        out_shape=jax.ShapeDtypeStruct((Bp, N_PAD), jnp.float32),
        in_specs=[vmem, vmem, vmem, any_spec, vmem, vmem],
        out_specs=vmem,
        scratch_shapes=[
            pltpu.VMEM((T * Bp, 4 * HIDDEN), jnp.float32),   # hoisted x-proj
            pltpu.VMEM((HIDDEN, 4 * HIDDEN), jnp.bfloat16),  # resident W_hh
            pltpu.SemaphoreType.DMA(()),
        ],
    )(x_flat, wih_t, bias, whh_t, wclf_t, bclf)
    return out[:B, :NUM_CLASSES]


def reference_forward(x_ncl, w_ih, w_hh, b_ih, b_hh, w_clf, b_clf):
    """Pure-JAX f32 reference replicating torch.nn.LSTM semantics."""
    x = jnp.transpose(x_ncl, (0, 2, 1)).astype(jnp.float32)        # (B, T, 80)
    B, T, _ = x.shape
    H = HIDDEN

    def step(carry, x_t):
        h, c = carry
        gates = x_t @ w_ih.T + h @ w_hh.T + b_ih + b_hh
        i = jax.nn.sigmoid(gates[:, 0 * H:1 * H])
        f = jax.nn.sigmoid(gates[:, 1 * H:2 * H])
        g = jnp.tanh(gates[:, 2 * H:3 * H])
        o = jax.nn.sigmoid(gates[:, 3 * H:4 * H])
        c = f * c + i * g
        h = o * jnp.tanh(c)
        return (h, c), h

    init = (jnp.zeros((B, H), jnp.float32), jnp.zeros((B, H), jnp.float32))
    (h_last, _), _ = lax.scan(step, init, jnp.transpose(x, (1, 0, 2)))
    logits = h_last @ w_clf.T + b_clf
    return jax.nn.softmax(logits, axis=1)


if __name__ == "__main__":
    key = jax.random.PRNGKey(0)
    ks = jax.random.split(key, 7)

    B, T = 2, 8
    scale = 1.0 / jnp.sqrt(jnp.float32(HIDDEN))

    x = jax.random.normal(ks[0], (B, INPUT_SIZE, T), dtype=jnp.float32)
    w_ih = jax.random.uniform(ks[1], (4 * HIDDEN, INPUT_SIZE),
                              minval=-scale, maxval=scale, dtype=jnp.float32)
    w_hh = jax.random.uniform(ks[2], (4 * HIDDEN, HIDDEN),
                              minval=-scale, maxval=scale, dtype=jnp.float32)
    b_ih = jax.random.uniform(ks[3], (4 * HIDDEN,),
                              minval=-scale, maxval=scale, dtype=jnp.float32)
    b_hh = jax.random.uniform(ks[4], (4 * HIDDEN,),
                              minval=-scale, maxval=scale, dtype=jnp.float32)
    w_clf = jax.random.uniform(ks[5], (NUM_CLASSES, HIDDEN),
                               minval=-scale, maxval=scale, dtype=jnp.float32)
    b_clf = jax.random.uniform(ks[6], (NUM_CLASSES,),
                               minval=-scale, maxval=scale, dtype=jnp.float32)

    out = model_forward(x, w_ih, w_hh, b_ih, b_hh, w_clf, b_clf)
    out = jax.block_until_ready(out)

    ref = reference_forward(x, w_ih, w_hh, b_ih, b_hh, w_clf, b_clf)
    assert out.shape == (B, NUM_CLASSES)
    # bf16 MXU operands -> ~1e-2 tolerance vs. the pure-f32 reference.
    assert jnp.allclose(out, ref, atol=1e-2, rtol=1e-2), "mismatch vs reference"

    print("KERNEL_OK")
</pallas_src>

<mosaic_0001>
module attributes {stable_mosaic.version = 11 : i64} {
  func.func @lstm_clf_kernel(%arg0: memref<64x128xbf16, #tpu.memory_space<vmem>>, %arg1: memref<128x1024xbf16, #tpu.memory_space<vmem>>, %arg2: memref<1x1024xf32, #tpu.memory_space<vmem>>, %arg3: memref<256x1024xbf16, #tpu.memory_space<any>>, %arg4: memref<256x128xf32, #tpu.memory_space<vmem>>, %arg5: memref<1x128xf32, #tpu.memory_space<vmem>>, %arg6: memref<8x128xf32, #tpu.memory_space<vmem>>, %arg7: memref<64x1024xf32, #tpu.memory_space<vmem>>, %arg8: memref<256x1024xbf16, #tpu.memory_space<vmem>>, %arg9: memref<!tpu.dma_semaphore, #tpu.memory_space<semaphore_mem>>) attributes {dimension_semantics = [], scalar_prefetch = 0 : i64, scratch_operands = 3 : i64, tpu.core_type = #tpu.core_type<tc>} {
    tpu.enqueue_dma source(%arg3 : memref<256x1024xbf16, #tpu.memory_space<any>>) target(%arg8 : memref<256x1024xbf16, #tpu.memory_space<vmem>>) target_semaphore(%arg9 : memref<!tpu.dma_semaphore, #tpu.memory_space<semaphore_mem>>)
    %c0 = arith.constant 0 : index
    %c0_0 = arith.constant 0 : index
    %0 = vector.load %arg0[%c0, %c0_0] : memref<64x128xbf16, #tpu.memory_space<vmem>>, vector<8x128xbf16>
    %c0_1 = arith.constant 0 : index
    %c0_2 = arith.constant 0 : index
    %1 = vector.load %arg1[%c0_1, %c0_2] : memref<128x1024xbf16, #tpu.memory_space<vmem>>, vector<128x1024xbf16>
    %cst = arith.constant dense<0.000000e+00> : vector<8x1024xf32>
    %2 = tpu.matmul %0, %1, %cst {dimension_numbers = #tpu.dot_dimension_numbers<[1], [0], [0], [1], [0, 0, 1, 1], [], []>} : vector<8x128xbf16>, vector<128x1024xbf16>, vector<8x1024xf32> -> vector<8x1024xf32>
    %c0_3 = arith.constant 0 : index
    %c0_4 = arith.constant 0 : index
    %3 = vector.load %arg2[%c0_3, %c0_4] : memref<1x1024xf32, #tpu.memory_space<vmem>>, vector<1x1024xf32>
    %4 = vector.broadcast %3 : vector<1x1024xf32> to vector<8x1024xf32>
    %5 = arith.addf %2, %4 : vector<8x1024xf32>
    %c0_5 = arith.constant 0 : index
    %c0_6 = arith.constant 0 : index
    %6 = vector.load %arg7[%c0_5, %c0_6] : memref<64x1024xf32, #tpu.memory_space<vmem>>, vector<8x1024xf32>
    tpu.vector_store %arg7[%c0_5, %c0_6], %5 {strides = array<i32>} : memref<64x1024xf32, #tpu.memory_space<vmem>>, vector<8x1024xf32>,
    %c8 = arith.constant 8 : index
    %c0_7 = arith.constant 0 : index
    %7 = vector.load %arg0[%c8, %c0_7] : memref<64x128xbf16, #tpu.memory_space<vmem>>, vector<8x128xbf16>
    %c0_8 = arith.constant 0 : index
    %c0_9 = arith.constant 0 : index
    %8 = vector.load %arg1[%c0_8, %c0_9] : memref<128x1024xbf16, #tpu.memory_space<vmem>>, vector<128x1024xbf16>
    %cst_10 = arith.constant dense<0.000000e+00> : vector<8x1024xf32>
    %9 = tpu.matmul %7, %8, %cst_10 {dimension_numbers = #tpu.dot_dimension_numbers<[1], [0], [0], [1], [0, 0, 1, 1], [], []>} : vector<8x128xbf16>, vector<128x1024xbf16>, vector<8x1024xf32> -> vector<8x1024xf32>
    %c0_11 = arith.constant 0 : index
    %c0_12 = arith.constant 0 : index
    %10 = vector.load %arg2[%c0_11, %c0_12] : memref<1x1024xf32, #tpu.memory_space<vmem>>, vector<1x1024xf32>
    %11 = vector.broadcast %10 : vector<1x1024xf32> to vector<8x1024xf32>
    %12 = arith.addf %9, %11 : vector<8x1024xf32>
    %c8_13 = arith.constant 8 : index
    %c0_14 = arith.constant 0 : index
    %13 = vector.load %arg7[%c8_13, %c0_14] : memref<64x1024xf32, #tpu.memory_space<vmem>>, vector<8x1024xf32>
    tpu.vector_store %arg7[%c8_13, %c0_14], %12 {strides = array<i32>} : memref<64x1024xf32, #tpu.memory_space<vmem>>, vector<8x1024xf32>,
    %c16 = arith.constant 16 : index
    %c0_15 = arith.constant 0 : index
    %14 = vector.load %arg0[%c16, %c0_15] : memref<64x128xbf16, #tpu.memory_space<vmem>>, vector<8x128xbf16>
    %c0_16 = arith.constant 0 : index
    %c0_17 = arith.constant 0 : index
    %15 = vector.load %arg1[%c0_16, %c0_17] : memref<128x1024xbf16, #tpu.memory_space<vmem>>, vector<128x1024xbf16>
    %cst_18 = arith.constant dense<0.000000e+00> : vector<8x1024xf32>
    %16 = tpu.matmul %14, %15, %cst_18 {dimension_numbers = #tpu.dot_dimension_numbers<[1], [0], [0], [1], [0, 0, 1, 1], [], []>} : vector<8x128xbf16>, vector<128x1024xbf16>, vector<8x1024xf32> -> vector<8x1024xf32>
    %c0_19 = arith.constant 0 : index
    %c0_20 = arith.constant 0 : index
    %17 = vector.load %arg2[%c0_19, %c0_20] : memref<1x1024xf32, #tpu.memory_space<vmem>>, vector<1x1024xf32>
    %18 = vector.broadcast %17 : vector<1x1024xf32> to vector<8x1024xf32>
    %19 = arith.addf %16, %18 : vector<8x1024xf32>
    %c16_21 = arith.constant 16 : index
    %c0_22 = arith.constant 0 : index
    %20 = vector.load %arg7[%c16_21, %c0_22] : memref<64x1024xf32, #tpu.memory_space<vmem>>, vector<8x1024xf32>
    tpu.vector_store %arg7[%c16_21, %c0_22], %19 {strides = array<i32>} : memref<64x1024xf32, #tpu.memory_space<vmem>>, vector<8x1024xf32>,
    %c24 = arith.constant 24 : index
    %c0_23 = arith.constant 0 : index
    %21 = vector.load %arg0[%c24, %c0_23] : memref<64x128xbf16, #tpu.memory_space<vmem>>, vector<8x128xbf16>
    %c0_24 = arith.constant 0 : index
    %c0_25 = arith.constant 0 : index
    %22 = vector.load %arg1[%c0_24, %c0_25] : memref<128x1024xbf16, #tpu.memory_space<vmem>>, vector<128x1024xbf16>
    %cst_26 = arith.constant dense<0.000000e+00> : vector<8x1024xf32>
    %23 = tpu.matmul %21, %22, %cst_26 {dimension_numbers = #tpu.dot_dimension_numbers<[1], [0], [0], [1], [0, 0, 1, 1], [], []>} : vector<8x128xbf16>, vector<128x1024xbf16>, vector<8x1024xf32> -> vector<8x1024xf32>
    %c0_27 = arith.constant 0 : index
    %c0_28 = arith.constant 0 : index
    %24 = vector.load %arg2[%c0_27, %c0_28] : memref<1x1024xf32, #tpu.memory_space<vmem>>, vector<1x1024xf32>
    %25 = vector.broadcast %24 : vector<1x1024xf32> to vector<8x1024xf32>
    %26 = arith.addf %23, %25 : vector<8x1024xf32>
    %c24_29 = arith.constant 24 : index
    %c0_30 = arith.constant 0 : index
    %27 = vector.load %arg7[%c24_29, %c0_30] : memref<64x1024xf32, #tpu.memory_space<vmem>>, vector<8x1024xf32>
    tpu.vector_store %arg7[%c24_29, %c0_30], %26 {strides = array<i32>} : memref<64x1024xf32, #tpu.memory_space<vmem>>, vector<8x1024xf32>,
    %c32 = arith.constant 32 : index
    %c0_31 = arith.constant 0 : index
    %28 = vector.load %arg0[%c32, %c0_31] : memref<64x128xbf16, #tpu.memory_space<vmem>>, vector<8x128xbf16>
    %c0_32 = arith.constant 0 : index
    %c0_33 = arith.constant 0 : index
    %29 = vector.load %arg1[%c0_32, %c0_33] : memref<128x1024xbf16, #tpu.memory_space<vmem>>, vector<128x1024xbf16>
    %cst_34 = arith.constant dense<0.000000e+00> : vector<8x1024xf32>
    %30 = tpu.matmul %28, %29, %cst_34 {dimension_numbers = #tpu.dot_dimension_numbers<[1], [0], [0], [1], [0, 0, 1, 1], [], []>} : vector<8x128xbf16>, vector<128x1024xbf16>, vector<8x1024xf32> -> vector<8x1024xf32>
    %c0_35 = arith.constant 0 : index
    %c0_36 = arith.constant 0 : index
    %31 = vector.load %arg2[%c0_35, %c0_36] : memref<1x1024xf32, #tpu.memory_space<vmem>>, vector<1x1024xf32>
    %32 = vector.broadcast %31 : vector<1x1024xf32> to vector<8x1024xf32>
    %33 = arith.addf %30, %32 : vector<8x1024xf32>
    %c32_37 = arith.constant 32 : index
    %c0_38 = arith.constant 0 : index
    %34 = vector.load %arg7[%c32_37, %c0_38] : memref<64x1024xf32, #tpu.memory_space<vmem>>, vector<8x1024xf32>
    tpu.vector_store %arg7[%c32_37, %c0_38], %33 {strides = array<i32>} : memref<64x1024xf32, #tpu.memory_space<vmem>>, vector<8x1024xf32>,
    %c40 = arith.constant 40 : index
    %c0_39 = arith.constant 0 : index
    %35 = vector.load %arg0[%c40, %c0_39] : memref<64x128xbf16, #tpu.memory_space<vmem>>, vector<8x128xbf16>
    %c0_40 = arith.constant 0 : index
    %c0_41 = arith.constant 0 : index
    %36 = vector.load %arg1[%c0_40, %c0_41] : memref<128x1024xbf16, #tpu.memory_space<vmem>>, vector<128x1024xbf16>
    %cst_42 = arith.constant dense<0.000000e+00> : vector<8x1024xf32>
    %37 = tpu.matmul %35, %36, %cst_42 {dimension_numbers = #tpu.dot_dimension_numbers<[1], [0], [0], [1], [0, 0, 1, 1], [], []>} : vector<8x128xbf16>, vector<128x1024xbf16>, vector<8x1024xf32> -> vector<8x1024xf32>
    %c0_43 = arith.constant 0 : index
    %c0_44 = arith.constant 0 : index
    %38 = vector.load %arg2[%c0_43, %c0_44] : memref<1x1024xf32, #tpu.memory_space<vmem>>, vector<1x1024xf32>
    %39 = vector.broadcast %38 : vector<1x1024xf32> to vector<8x1024xf32>
    %40 = arith.addf %37, %39 : vector<8x1024xf32>
    %c40_45 = arith.constant 40 : index
    %c0_46 = arith.constant 0 : index
    %41 = vector.load %arg7[%c40_45, %c0_46] : memref<64x1024xf32, #tpu.memory_space<vmem>>, vector<8x1024xf32>
    tpu.vector_store %arg7[%c40_45, %c0_46], %40 {strides = array<i32>} : memref<64x1024xf32, #tpu.memory_space<vmem>>, vector<8x1024xf32>,
    %c48 = arith.constant 48 : index
    %c0_47 = arith.constant 0 : index
    %42 = vector.load %arg0[%c48, %c0_47] : memref<64x128xbf16, #tpu.memory_space<vmem>>, vector<8x128xbf16>
    %c0_48 = arith.constant 0 : index
    %c0_49 = arith.constant 0 : index
    %43 = vector.load %arg1[%c0_48, %c0_49] : memref<128x1024xbf16, #tpu.memory_space<vmem>>, vector<128x1024xbf16>
    %cst_50 = arith.constant dense<0.000000e+00> : vector<8x1024xf32>
    %44 = tpu.matmul %42, %43, %cst_50 {dimension_numbers = #tpu.dot_dimension_numbers<[1], [0], [0], [1], [0, 0, 1, 1], [], []>} : vector<8x128xbf16>, vector<128x1024xbf16>, vector<8x1024xf32> -> vector<8x1024xf32>
    %c0_51 = arith.constant 0 : index
    %c0_52 = arith.constant 0 : index
    %45 = vector.load %arg2[%c0_51, %c0_52] : memref<1x1024xf32, #tpu.memory_space<vmem>>, vector<1x1024xf32>
    %46 = vector.broadcast %45 : vector<1x1024xf32> to vector<8x1024xf32>
    %47 = arith.addf %44, %46 : vector<8x1024xf32>
    %c48_53 = arith.constant 48 : index
    %c0_54 = arith.constant 0 : index
    %48 = vector.load %arg7[%c48_53, %c0_54] : memref<64x1024xf32, #tpu.memory_space<vmem>>, vector<8x1024xf32>
    tpu.vector_store %arg7[%c48_53, %c0_54], %47 {strides = array<i32>} : memref<64x1024xf32, #tpu.memory_space<vmem>>, vector<8x1024xf32>,
    %c56 = arith.constant 56 : index
    %c0_55 = arith.constant 0 : index
    %49 = vector.load %arg0[%c56, %c0_55] : memref<64x128xbf16, #tpu.memory_space<vmem>>, vector<8x128xbf16>
    %c0_56 = arith.constant 0 : index
    %c0_57 = arith.constant 0 : index
    %50 = vector.load %arg1[%c0_56, %c0_57] : memref<128x1024xbf16, #tpu.memory_space<vmem>>, vector<128x1024xbf16>
    %cst_58 = arith.constant dense<0.000000e+00> : vector<8x1024xf32>
    %51 = tpu.matmul %49, %50, %cst_58 {dimension_numbers = #tpu.dot_dimension_numbers<[1], [0], [0], [1], [0, 0, 1, 1], [], []>} : vector<8x128xbf16>, vector<128x1024xbf16>, vector<8x1024xf32> -> vector<8x1024xf32>
    %c0_59 = arith.constant 0 : index
    %c0_60 = arith.constant 0 : index
    %52 = vector.load %arg2[%c0_59, %c0_60] : memref<1x1024xf32, #tpu.memory_space<vmem>>, vector<1x1024xf32>
    %53 = vector.broadcast %52 : vector<1x1024xf32> to vector<8x1024xf32>
    %54 = arith.addf %51, %53 : vector<8x1024xf32>
    %c56_61 = arith.constant 56 : index
    %c0_62 = arith.constant 0 : index
    %55 = vector.load %arg7[%c56_61, %c0_62] : memref<64x1024xf32, #tpu.memory_space<vmem>>, vector<8x1024xf32>
    tpu.vector_store %arg7[%c56_61, %c0_62], %54 {strides = array<i32>} : memref<64x1024xf32, #tpu.memory_space<vmem>>, vector<8x1024xf32>,
    tpu.wait_dma2 semaphore(%arg9 : memref<!tpu.dma_semaphore, #tpu.memory_space<semaphore_mem>>) src(%arg3 : memref<256x1024xbf16, #tpu.memory_space<any>>) dst(%arg8 : memref<256x1024xbf16, #tpu.memory_space<vmem>>)
    %cst_63 = arith.constant 0.000000e+00 : f32
    %56 = vector.broadcast %cst_63 : f32 to vector<8x256xf32>
    %cst_64 = arith.constant 0.000000e+00 : f32
    %57 = vector.broadcast %cst_64 : f32 to vector<8x256xf32>
    %c0_i32 = arith.constant 0 : i32
    %c8_i32 = arith.constant 8 : i32
    %58 = arith.muli %c0_i32, %c8_i32 : i32
    %59 = tpu.assume_multiple %58, 8 : i32
    %60 = arith.index_cast %59 : i32 to index
    %c0_65 = arith.constant 0 : index
    %61 = vector.load %arg7[%60, %c0_65] : memref<64x1024xf32, #tpu.memory_space<vmem>>, vector<8x1024xf32>
    %62 = arith.truncf %56 : vector<8x256xf32> to vector<8x256xbf16>
    %63 = vector.extract_strided_slice %61 {offsets = [0, 0], sizes = [8, 256], strides = [1, 1]} : vector<8x1024xf32> to vector<8x256xf32>
    %c0_66 = arith.constant 0 : index
    %c0_67 = arith.constant 0 : index
    %64 = vector.load %arg8[%c0_66, %c0_67] : memref<256x1024xbf16, #tpu.memory_space<vmem>>, vector<256x256xbf16>
    %cst_68 = arith.constant dense<0.000000e+00> : vector<8x256xf32>
    %65 = tpu.matmul %62, %64, %cst_68 {dimension_numbers = #tpu.dot_dimension_numbers<[1], [0], [0], [1], [0, 0, 1, 1], [], []>} : vector<8x256xbf16>, vector<256x256xbf16>, vector<8x256xf32> -> vector<8x256xf32>
    %66 = arith.addf %63, %65 : vector<8x256xf32>
    %67 = arith.negf %66 : vector<8x256xf32>
    %68 = math.exp %67 : vector<8x256xf32>
    %cst_69 = arith.constant 1.000000e+00 : f32
    %69 = vector.broadcast %cst_69 : f32 to vector<8x256xf32>
    %70 = arith.addf %69, %68 : vector<8x256xf32>
    %71 = arith.divf %69, %70 : vector<8x256xf32>
    %72 = vector.extract_strided_slice %61 {offsets = [0, 256], sizes = [8, 256], strides = [1, 1]} : vector<8x1024xf32> to vector<8x256xf32>
    %c0_70 = arith.constant 0 : index
    %c256 = arith.constant 256 : index
    %73 = vector.load %arg8[%c0_70, %c256] : memref<256x1024xbf16, #tpu.memory_space<vmem>>, vector<256x256xbf16>
    %cst_71 = arith.constant dense<0.000000e+00> : vector<8x256xf32>
    %74 = tpu.matmul %62, %73, %cst_71 {dimension_numbers = #tpu.dot_dimension_numbers<[1], [0], [0], [1], [0, 0, 1, 1], [], []>} : vector<8x256xbf16>, vector<256x256xbf16>, vector<8x256xf32> -> vector<8x256xf32>
    %75 = arith.addf %72, %74 : vector<8x256xf32>
    %76 = arith.negf %75 : vector<8x256xf32>
    %77 = math.exp %76 : vector<8x256xf32>
    %cst_72 = arith.constant 1.000000e+00 : f32
    %78 = vector.broadcast %cst_72 : f32 to vector<8x256xf32>
    %79 = arith.addf %78, %77 : vector<8x256xf32>
    %80 = arith.divf %78, %79 : vector<8x256xf32>
    %81 = vector.extract_strided_slice %61 {offsets = [0, 512], sizes = [8, 256], strides = [1, 1]} : vector<8x1024xf32> to vector<8x256xf32>
    %c0_73 = arith.constant 0 : index
    %c512 = arith.constant 512 : index
    %82 = vector.load %arg8[%c0_73, %c512] : memref<256x1024xbf16, #tpu.memory_space<vmem>>, vector<256x256xbf16>
    %cst_74 = arith.constant dense<0.000000e+00> : vector<8x256xf32>
    %83 = tpu.matmul %62, %82, %cst_74 {dimension_numbers = #tpu.dot_dimension_numbers<[1], [0], [0], [1], [0, 0, 1, 1], [], []>} : vector<8x256xbf16>, vector<256x256xbf16>, vector<8x256xf32> -> vector<8x256xf32>
    %84 = arith.addf %81, %83 : vector<8x256xf32>
    %85 = math.tanh %84 : vector<8x256xf32>
    %86 = vector.extract_strided_slice %61 {offsets = [0, 768], sizes = [8, 256], strides = [1, 1]} : vector<8x1024xf32> to vector<8x256xf32>
    %c0_75 = arith.constant 0 : index
    %c768 = arith.constant 768 : index
    %87 = vector.load %arg8[%c0_75, %c768] : memref<256x1024xbf16, #tpu.memory_space<vmem>>, vector<256x256xbf16>
    %cst_76 = arith.constant dense<0.000000e+00> : vector<8x256xf32>
    %88 = tpu.matmul %62, %87, %cst_76 {dimension_numbers = #tpu.dot_dimension_numbers<[1], [0], [0], [1], [0, 0, 1, 1], [], []>} : vector<8x256xbf16>, vector<256x256xbf16>, vector<8x256xf32> -> vector<8x256xf32>
    %89 = arith.addf %86, %88 : vector<8x256xf32>
    %90 = arith.negf %89 : vector<8x256xf32>
    %91 = math.exp %90 : vector<8x256xf32>
    %cst_77 = arith.constant 1.000000e+00 : f32
    %92 = vector.broadcast %cst_77 : f32 to vector<8x256xf32>
    %93 = arith.addf %92, %91 : vector<8x256xf32>
    %94 = arith.divf %92, %93 : vector<8x256xf32>
    %95 = arith.mulf %80, %57 : vector<8x256xf32>
    %96 = arith.mulf %71, %85 : vector<8x256xf32>
    %97 = arith.addf %95, %96 : vector<8x256xf32>
    %98 = math.tanh %97 : vector<8x256xf32>
    %99 = arith.mulf %94, %98 : vector<8x256xf32>
    %c1_i32 = arith.constant 1 : i32
    %c8_i32_78 = arith.constant 8 : i32
    %100 = arith.muli %c1_i32, %c8_i32_78 : i32
    %101 = tpu.assume_multiple %100, 8 : i32
    %102 = arith.index_cast %101 : i32 to index
    %c0_79 = arith.constant 0 : index
    %103 = vector.load %arg7[%102, %c0_79] : memref<64x1024xf32, #tpu.memory_space<vmem>>, vector<8x1024xf32>
    %104 = arith.truncf %99 : vector<8x256xf32> to vector<8x256xbf16>
    %105 = vector.extract_strided_slice %103 {offsets = [0, 0], sizes = [8, 256], strides = [1, 1]} : vector<8x1024xf32> to vector<8x256xf32>
    %c0_80 = arith.constant 0 : index
    %c0_81 = arith.constant 0 : index
    %106 = vector.load %arg8[%c0_80, %c0_81] : memref<256x1024xbf16, #tpu.memory_space<vmem>>, vector<256x256xbf16>
    %cst_82 = arith.constant dense<0.000000e+00> : vector<8x256xf32>
    %107 = tpu.matmul %104, %106, %cst_82 {dimension_numbers = #tpu.dot_dimension_numbers<[1], [0], [0], [1], [0, 0, 1, 1], [], []>} : vector<8x256xbf16>, vector<256x256xbf16>, vector<8x256xf32> -> vector<8x256xf32>
    %108 = arith.addf %105, %107 : vector<8x256xf32>
    %109 = arith.negf %108 : vector<8x256xf32>
    %110 = math.exp %109 : vector<8x256xf32>
    %cst_83 = arith.constant 1.000000e+00 : f32
    %111 = vector.broadcast %cst_83 : f32 to vector<8x256xf32>
    %112 = arith.addf %111, %110 : vector<8x256xf32>
    %113 = arith.divf %111, %112 : vector<8x256xf32>
    %114 = vector.extract_strided_slice %103 {offsets = [0, 256], sizes = [8, 256], strides = [1, 1]} : vector<8x1024xf32> to vector<8x256xf32>
    %c0_84 = arith.constant 0 : index
    %c256_85 = arith.constant 256 : index
    %115 = vector.load %arg8[%c0_84, %c256_85] : memref<256x1024xbf16, #tpu.memory_space<vmem>>, vector<256x256xbf16>
    %cst_86 = arith.constant dense<0.000000e+00> : vector<8x256xf32>
    %116 = tpu.matmul %104, %115, %cst_86 {dimension_numbers = #tpu.dot_dimension_numbers<[1], [0], [0], [1], [0, 0, 1, 1], [], []>} : vector<8x256xbf16>, vector<256x256xbf16>, vector<8x256xf32> -> vector<8x256xf32>
    %117 = arith.addf %114, %116 : vector<8x256xf32>
    %118 = arith.negf %117 : vector<8x256xf32>
    %119 = math.exp %118 : vector<8x256xf32>
    %cst_87 = arith.constant 1.000000e+00 : f32
    %120 = vector.broadcast %cst_87 : f32 to vector<8x256xf32>
    %121 = arith.addf %120, %119 : vector<8x256xf32>
    %122 = arith.divf %120, %121 : vector<8x256xf32>
    %123 = vector.extract_strided_slice %103 {offsets = [0, 512], sizes = [8, 256], strides = [1, 1]} : vector<8x1024xf32> to vector<8x256xf32>
    %c0_88 = arith.constant 0 : index
    %c512_89 = arith.constant 512 : index
    %124 = vector.load %arg8[%c0_88, %c512_89] : memref<256x1024xbf16, #tpu.memory_space<vmem>>, vector<256x256xbf16>
    %cst_90 = arith.constant dense<0.000000e+00> : vector<8x256xf32>
    %125 = tpu.matmul %104, %124, %cst_90 {dimension_numbers = #tpu.dot_dimension_numbers<[1], [0], [0], [1], [0, 0, 1, 1], [], []>} : vector<8x256xbf16>, vector<256x256xbf16>, vector<8x256xf32> -> vector<8x256xf32>
    %126 = arith.addf %123, %125 : vector<8x256xf32>
    %127 = math.tanh %126 : vector<8x256xf32>
    %128 = vector.extract_strided_slice %103 {offsets = [0, 768], sizes = [8, 256], strides = [1, 1]} : vector<8x1024xf32> to vector<8x256xf32>
    %c0_91 = arith.constant 0 : index
    %c768_92 = arith.constant 768 : index
    %129 = vector.load %arg8[%c0_91, %c768_92] : memref<256x1024xbf16, #tpu.memory_space<vmem>>, vector<256x256xbf16>
    %cst_93 = arith.constant dense<0.000000e+00> : vector<8x256xf32>
    %130 = tpu.matmul %104, %129, %cst_93 {dimension_numbers = #tpu.dot_dimension_numbers<[1], [0], [0], [1], [0, 0, 1, 1], [], []>} : vector<8x256xbf16>, vector<256x256xbf16>, vector<8x256xf32> -> vector<8x256xf32>
    %131 = arith.addf %128, %130 : vector<8x256xf32>
    %132 = arith.negf %131 : vector<8x256xf32>
    %133 = math.exp %132 : vector<8x256xf32>
    %cst_94 = arith.constant 1.000000e+00 : f32
    %134 = vector.broadcast %cst_94 : f32 to vector<8x256xf32>
    %135 = arith.addf %134, %133 : vector<8x256xf32>
    %136 = arith.divf %134, %135 : vector<8x256xf32>
    %137 = arith.mulf %122, %97 : vector<8x256xf32>
    %138 = arith.mulf %113, %127 : vector<8x256xf32>
    %139 = arith.addf %137, %138 : vector<8x256xf32>
    %140 = math.tanh %139 : vector<8x256xf32>
    %141 = arith.mulf %136, %140 : vector<8x256xf32>
    %c2_i32 = arith.constant 2 : i32
    %c8_i32_95 = arith.constant 8 : i32
    %142 = arith.muli %c2_i32, %c8_i32_95 : i32
    %143 = tpu.assume_multiple %142, 8 : i32
    %144 = arith.index_cast %143 : i32 to index
    %c0_96 = arith.constant 0 : index
    %145 = vector.load %arg7[%144, %c0_96] : memref<64x1024xf32, #tpu.memory_space<vmem>>, vector<8x1024xf32>
    %146 = arith.truncf %141 : vector<8x256xf32> to vector<8x256xbf16>
    %147 = vector.extract_strided_slice %145 {offsets = [0, 0], sizes = [8, 256], strides = [1, 1]} : vector<8x1024xf32> to vector<8x256xf32>
    %c0_97 = arith.constant 0 : index
    %c0_98 = arith.constant 0 : index
    %148 = vector.load %arg8[%c0_97, %c0_98] : memref<256x1024xbf16, #tpu.memory_space<vmem>>, vector<256x256xbf16>
    %cst_99 = arith.constant dense<0.000000e+00> : vector<8x256xf32>
    %149 = tpu.matmul %146, %148, %cst_99 {dimension_numbers = #tpu.dot_dimension_numbers<[1], [0], [0], [1], [0, 0, 1, 1], [], []>} : vector<8x256xbf16>, vector<256x256xbf16>, vector<8x256xf32> -> vector<8x256xf32>
    %150 = arith.addf %147, %149 : vector<8x256xf32>
    %151 = arith.negf %150 : vector<8x256xf32>
    %152 = math.exp %151 : vector<8x256xf32>
    %cst_100 = arith.constant 1.000000e+00 : f32
    %153 = vector.broadcast %cst_100 : f32 to vector<8x256xf32>
    %154 = arith.addf %153, %152 : vector<8x256xf32>
    %155 = arith.divf %153, %154 : vector<8x256xf32>
    %156 = vector.extract_strided_slice %145 {offsets = [0, 256], sizes = [8, 256], strides = [1, 1]} : vector<8x1024xf32> to vector<8x256xf32>
    %c0_101 = arith.constant 0 : index
    %c256_102 = arith.constant 256 : index
    %157 = vector.load %arg8[%c0_101, %c256_102] : memref<256x1024xbf16, #tpu.memory_space<vmem>>, vector<256x256xbf16>
    %cst_103 = arith.constant dense<0.000000e+00> : vector<8x256xf32>
    %158 = tpu.matmul %146, %157, %cst_103 {dimension_numbers = #tpu.dot_dimension_numbers<[1], [0], [0], [1], [0, 0, 1, 1], [], []>} : vector<8x256xbf16>, vector<256x256xbf16>, vector<8x256xf32> -> vector<8x256xf32>
    %159 = arith.addf %156, %158 : vector<8x256xf32>
    %160 = arith.negf %159 : vector<8x256xf32>
    %161 = math.exp %160 : vector<8x256xf32>
    %cst_104 = arith.constant 1.000000e+00 : f32
    %162 = vector.broadcast %cst_104 : f32 to vector<8x256xf32>
    %163 = arith.addf %162, %161 : vector<8x256xf32>
    %164 = arith.divf %162, %163 : vector<8x256xf32>
    %165 = vector.extract_strided_slice %145 {offsets = [0, 512], sizes = [8, 256], strides = [1, 1]} : vector<8x1024xf32> to vector<8x256xf32>
    %c0_105 = arith.constant 0 : index
    %c512_106 = arith.constant 512 : index
    %166 = vector.load %arg8[%c0_105, %c512_106] : memref<256x1024xbf16, #tpu.memory_space<vmem>>, vector<256x256xbf16>
    %cst_107 = arith.constant dense<0.000000e+00> : vector<8x256xf32>
    %167 = tpu.matmul %146, %166, %cst_107 {dimension_numbers = #tpu.dot_dimension_numbers<[1], [0], [0], [1], [0, 0, 1, 1], [], []>} : vector<8x256xbf16>, vector<256x256xbf16>, vector<8x256xf32> -> vector<8x256xf32>
    %168 = arith.addf %165, %167 : vector<8x256xf32>
    %169 = math.tanh %168 : vector<8x256xf32>
    %170 = vector.extract_strided_slice %145 {offsets = [0, 768], sizes = [8, 256], strides = [1, 1]} : vector<8x1024xf32> to vector<8x256xf32>
    %c0_108 = arith.constant 0 : index
    %c768_109 = arith.constant 768 : index
    %171 = vector.load %arg8[%c0_108, %c768_109] : memref<256x1024xbf16, #tpu.memory_space<vmem>>, vector<256x256xbf16>
    %cst_110 = arith.constant dense<0.000000e+00> : vector<8x256xf32>
    %172 = tpu.matmul %146, %171, %cst_110 {dimension_numbers = #tpu.dot_dimension_numbers<[1], [0], [0], [1], [0, 0, 1, 1], [], []>} : vector<8x256xbf16>, vector<256x256xbf16>, vector<8x256xf32> -> vector<8x256xf32>
    %173 = arith.addf %170, %172 : vector<8x256xf32>
    %174 = arith.negf %173 : vector<8x256xf32>
    %175 = math.exp %174 : vector<8x256xf32>
    %cst_111 = arith.constant 1.000000e+00 : f32
    %176 = vector.broadcast %cst_111 : f32 to vector<8x256xf32>
    %177 = arith.addf %176, %175 : vector<8x256xf32>
    %178 = arith.divf %176, %177 : vector<8x256xf32>
    %179 = arith.mulf %164, %139 : vector<8x256xf32>
    %180 = arith.mulf %155, %169 : vector<8x256xf32>
    %181 = arith.addf %179, %180 : vector<8x256xf32>
    %182 = math.tanh %181 : vector<8x256xf32>
    %183 = arith.mulf %178, %182 : vector<8x256xf32>
    %c3_i32 = arith.constant 3 : i32
    %c8_i32_112 = arith.constant 8 : i32
    %184 = arith.muli %c3_i32, %c8_i32_112 : i32
    %185 = tpu.assume_multiple %184, 8 : i32
    %186 = arith.index_cast %185 : i32 to index
    %c0_113 = arith.constant 0 : index
    %187 = vector.load %arg7[%186, %c0_113] : memref<64x1024xf32, #tpu.memory_space<vmem>>, vector<8x1024xf32>
    %188 = arith.truncf %183 : vector<8x256xf32> to vector<8x256xbf16>
    %189 = vector.extract_strided_slice %187 {offsets = [0, 0], sizes = [8, 256], strides = [1, 1]} : vector<8x1024xf32> to vector<8x256xf32>
    %c0_114 = arith.constant 0 : index
    %c0_115 = arith.constant 0 : index
    %190 = vector.load %arg8[%c0_114, %c0_115] : memref<256x1024xbf16, #tpu.memory_space<vmem>>, vector<256x256xbf16>
    %cst_116 = arith.constant dense<0.000000e+00> : vector<8x256xf32>
    %191 = tpu.matmul %188, %190, %cst_116 {dimension_numbers = #tpu.dot_dimension_numbers<[1], [0], [0], [1], [0, 0, 1, 1], [], []>} : vector<8x256xbf16>, vector<256x256xbf16>, vector<8x256xf32> -> vector<8x256xf32>
    %192 = arith.addf %189, %191 : vector<8x256xf32>
    %193 = arith.negf %192 : vector<8x256xf32>
    %194 = math.exp %193 : vector<8x256xf32>
    %cst_117 = arith.constant 1.000000e+00 : f32
    %195 = vector.broadcast %cst_117 : f32 to vector<8x256xf32>
    %196 = arith.addf %195, %194 : vector<8x256xf32>
    %197 = arith.divf %195, %196 : vector<8x256xf32>
    %198 = vector.extract_strided_slice %187 {offsets = [0, 256], sizes = [8, 256], strides = [1, 1]} : vector<8x1024xf32> to vector<8x256xf32>
    %c0_118 = arith.constant 0 : index
    %c256_119 = arith.constant 256 : index
    %199 = vector.load %arg8[%c0_118, %c256_119] : memref<256x1024xbf16, #tpu.memory_space<vmem>>, vector<256x256xbf16>
    %cst_120 = arith.constant dense<0.000000e+00> : vector<8x256xf32>
    %200 = tpu.matmul %188, %199, %cst_120 {dimension_numbers = #tpu.dot_dimension_numbers<[1], [0], [0], [1], [0, 0, 1, 1], [], []>} : vector<8x256xbf16>, vector<256x256xbf16>, vector<8x256xf32> -> vector<8x256xf32>
    %201 = arith.addf %198, %200 : vector<8x256xf32>
    %202 = arith.negf %201 : vector<8x256xf32>
    %203 = math.exp %202 : vector<8x256xf32>
    %cst_121 = arith.constant 1.000000e+00 : f32
    %204 = vector.broadcast %cst_121 : f32 to vector<8x256xf32>
    %205 = arith.addf %204, %203 : vector<8x256xf32>
    %206 = arith.divf %204, %205 : vector<8x256xf32>
    %207 = vector.extract_strided_slice %187 {offsets = [0, 512], sizes = [8, 256], strides = [1, 1]} : vector<8x1024xf32> to vector<8x256xf32>
    %c0_122 = arith.constant 0 : index
    %c512_123 = arith.constant 512 : index
    %208 = vector.load %arg8[%c0_122, %c512_123] : memref<256x1024xbf16, #tpu.memory_space<vmem>>, vector<256x256xbf16>
    %cst_124 = arith.constant dense<0.000000e+00> : vector<8x256xf32>
    %209 = tpu.matmul %188, %208, %cst_124 {dimension_numbers = #tpu.dot_dimension_numbers<[1], [0], [0], [1], [0, 0, 1, 1], [], []>} : vector<8x256xbf16>, vector<256x256xbf16>, vector<8x256xf32> -> vector<8x256xf32>
    %210 = arith.addf %207, %209 : vector<8x256xf32>
    %211 = math.tanh %210 : vector<8x256xf32>
    %212 = vector.extract_strided_slice %187 {offsets = [0, 768], sizes = [8, 256], strides = [1, 1]} : vector<8x1024xf32> to vector<8x256xf32>
    %c0_125 = arith.constant 0 : index
    %c768_126 = arith.constant 768 : index
    %213 = vector.load %arg8[%c0_125, %c768_126] : memref<256x1024xbf16, #tpu.memory_space<vmem>>, vector<256x256xbf16>
    %cst_127 = arith.constant dense<0.000000e+00> : vector<8x256xf32>
    %214 = tpu.matmul %188, %213, %cst_127 {dimension_numbers = #tpu.dot_dimension_numbers<[1], [0], [0], [1], [0, 0, 1, 1], [], []>} : vector<8x256xbf16>, vector<256x256xbf16>, vector<8x256xf32> -> vector<8x256xf32>
    %215 = arith.addf %212, %214 : vector<8x256xf32>
    %216 = arith.negf %215 : vector<8x256xf32>
    %217 = math.exp %216 : vector<8x256xf32>
    %cst_128 = arith.constant 1.000000e+00 : f32
    %218 = vector.broadcast %cst_128 : f32 to vector<8x256xf32>
    %219 = arith.addf %218, %217 : vector<8x256xf32>
    %220 = arith.divf %218, %219 : vector<8x256xf32>
    %221 = arith.mulf %206, %181 : vector<8x256xf32>
    %222 = arith.mulf %197, %211 : vector<8x256xf32>
    %223 = arith.addf %221, %222 : vector<8x256xf32>
    %224 = math.tanh %223 : vector<8x256xf32>
    %225 = arith.mulf %220, %224 : vector<8x256xf32>
    %c4_i32 = arith.constant 4 : i32
    %c8_i32_129 = arith.constant 8 : i32
    %226 = arith.muli %c4_i32, %c8_i32_129 : i32
    %227 = tpu.assume_multiple %226, 8 : i32
    %228 = arith.index_cast %227 : i32 to index
    %c0_130 = arith.constant 0 : index
    %229 = vector.load %arg7[%228, %c0_130] : memref<64x1024xf32, #tpu.memory_space<vmem>>, vector<8x1024xf32>
    %230 = arith.truncf %225 : vector<8x256xf32> to vector<8x256xbf16>
    %231 = vector.extract_strided_slice %229 {offsets = [0, 0], sizes = [8, 256], strides = [1, 1]} : vector<8x1024xf32> to vector<8x256xf32>
    %c0_131 = arith.constant 0 : index
    %c0_132 = arith.constant 0 : index
    %232 = vector.load %arg8[%c0_131, %c0_132] : memref<256x1024xbf16, #tpu.memory_space<vmem>>, vector<256x256xbf16>
    %cst_133 = arith.constant dense<0.000000e+00> : vector<8x256xf32>
    %233 = tpu.matmul %230, %232, %cst_133 {dimension_numbers = #tpu.dot_dimension_numbers<[1], [0], [0], [1], [0, 0, 1, 1], [], []>} : vector<8x256xbf16>, vector<256x256xbf16>, vector<8x256xf32> -> vector<8x256xf32>
    %234 = arith.addf %231, %233 : vector<8x256xf32>
    %235 = arith.negf %234 : vector<8x256xf32>
    %236 = math.exp %235 : vector<8x256xf32>
    %cst_134 = arith.constant 1.000000e+00 : f32
    %237 = vector.broadcast %cst_134 : f32 to vector<8x256xf32>
    %238 = arith.addf %237, %236 : vector<8x256xf32>
    %239 = arith.divf %237, %238 : vector<8x256xf32>
    %240 = vector.extract_strided_slice %229 {offsets = [0, 256], sizes = [8, 256], strides = [1, 1]} : vector<8x1024xf32> to vector<8x256xf32>
    %c0_135 = arith.constant 0 : index
    %c256_136 = arith.constant 256 : index
    %241 = vector.load %arg8[%c0_135, %c256_136] : memref<256x1024xbf16, #tpu.memory_space<vmem>>, vector<256x256xbf16>
    %cst_137 = arith.constant dense<0.000000e+00> : vector<8x256xf32>
    %242 = tpu.matmul %230, %241, %cst_137 {dimension_numbers = #tpu.dot_dimension_numbers<[1], [0], [0], [1], [0, 0, 1, 1], [], []>} : vector<8x256xbf16>, vector<256x256xbf16>, vector<8x256xf32> -> vector<8x256xf32>
    %243 = arith.addf %240, %242 : vector<8x256xf32>
    %244 = arith.negf %243 : vector<8x256xf32>
    %245 = math.exp %244 : vector<8x256xf32>
    %cst_138 = arith.constant 1.000000e+00 : f32
    %246 = vector.broadcast %cst_138 : f32 to vector<8x256xf32>
    %247 = arith.addf %246, %245 : vector<8x256xf32>
    %248 = arith.divf %246, %247 : vector<8x256xf32>
    %249 = vector.extract_strided_slice %229 {offsets = [0, 512], sizes = [8, 256], strides = [1, 1]} : vector<8x1024xf32> to vector<8x256xf32>
    %c0_139 = arith.constant 0 : index
    %c512_140 = arith.constant 512 : index
    %250 = vector.load %arg8[%c0_139, %c512_140] : memref<256x1024xbf16, #tpu.memory_space<vmem>>, vector<256x256xbf16>
    %cst_141 = arith.constant dense<0.000000e+00> : vector<8x256xf32>
    %251 = tpu.matmul %230, %250, %cst_141 {dimension_numbers = #tpu.dot_dimension_numbers<[1], [0], [0], [1], [0, 0, 1, 1], [], []>} : vector<8x256xbf16>, vector<256x256xbf16>, vector<8x256xf32> -> vector<8x256xf32>
    %252 = arith.addf %249, %251 : vector<8x256xf32>
    %253 = math.tanh %252 : vector<8x256xf32>
    %254 = vector.extract_strided_slice %229 {offsets = [0, 768], sizes = [8, 256], strides = [1, 1]} : vector<8x1024xf32> to vector<8x256xf32>
    %c0_142 = arith.constant 0 : index
    %c768_143 = arith.constant 768 : index
    %255 = vector.load %arg8[%c0_142, %c768_143] : memref<256x1024xbf16, #tpu.memory_space<vmem>>, vector<256x256xbf16>
    %cst_144 = arith.constant dense<0.000000e+00> : vector<8x256xf32>
    %256 = tpu.matmul %230, %255, %cst_144 {dimension_numbers = #tpu.dot_dimension_numbers<[1], [0], [0], [1], [0, 0, 1, 1], [], []>} : vector<8x256xbf16>, vector<256x256xbf16>, vector<8x256xf32> -> vector<8x256xf32>
    %257 = arith.addf %254, %256 : vector<8x256xf32>
    %258 = arith.negf %257 : vector<8x256xf32>
    %259 = math.exp %258 : vector<8x256xf32>
    %cst_145 = arith.constant 1.000000e+00 : f32
    %260 = vector.broadcast %cst_145 : f32 to vector<8x256xf32>
    %261 = arith.addf %260, %259 : vector<8x256xf32>
    %262 = arith.divf %260, %261 : vector<8x256xf32>
    %263 = arith.mulf %248, %223 : vector<8x256xf32>
    %264 = arith.mulf %239, %253 : vector<8x256xf32>
    %265 = arith.addf %263, %264 : vector<8x256xf32>
    %266 = math.tanh %265 : vector<8x256xf32>
    %267 = arith.mulf %262, %266 : vector<8x256xf32>
    %c5_i32 = arith.constant 5 : i32
    %c8_i32_146 = arith.constant 8 : i32
    %268 = arith.muli %c5_i32, %c8_i32_146 : i32
    %269 = tpu.assume_multiple %268, 8 : i32
    %270 = arith.index_cast %269 : i32 to index
    %c0_147 = arith.constant 0 : index
    %271 = vector.load %arg7[%270, %c0_147] : memref<64x1024xf32, #tpu.memory_space<vmem>>, vector<8x1024xf32>
    %272 = arith.truncf %267 : vector<8x256xf32> to vector<8x256xbf16>
    %273 = vector.extract_strided_slice %271 {offsets = [0, 0], sizes = [8, 256], strides = [1, 1]} : vector<8x1024xf32> to vector<8x256xf32>
    %c0_148 = arith.constant 0 : index
    %c0_149 = arith.constant 0 : index
    %274 = vector.load %arg8[%c0_148, %c0_149] : memref<256x1024xbf16, #tpu.memory_space<vmem>>, vector<256x256xbf16>
    %cst_150 = arith.constant dense<0.000000e+00> : vector<8x256xf32>
    %275 = tpu.matmul %272, %274, %cst_150 {dimension_numbers = #tpu.dot_dimension_numbers<[1], [0], [0], [1], [0, 0, 1, 1], [], []>} : vector<8x256xbf16>, vector<256x256xbf16>, vector<8x256xf32> -> vector<8x256xf32>
    %276 = arith.addf %273, %275 : vector<8x256xf32>
    %277 = arith.negf %276 : vector<8x256xf32>
    %278 = math.exp %277 : vector<8x256xf32>
    %cst_151 = arith.constant 1.000000e+00 : f32
    %279 = vector.broadcast %cst_151 : f32 to vector<8x256xf32>
    %280 = arith.addf %279, %278 : vector<8x256xf32>
    %281 = arith.divf %279, %280 : vector<8x256xf32>
    %282 = vector.extract_strided_slice %271 {offsets = [0, 256], sizes = [8, 256], strides = [1, 1]} : vector<8x1024xf32> to vector<8x256xf32>
    %c0_152 = arith.constant 0 : index
    %c256_153 = arith.constant 256 : index
    %283 = vector.load %arg8[%c0_152, %c256_153] : memref<256x1024xbf16, #tpu.memory_space<vmem>>, vector<256x256xbf16>
    %cst_154 = arith.constant dense<0.000000e+00> : vector<8x256xf32>
    %284 = tpu.matmul %272, %283, %cst_154 {dimension_numbers = #tpu.dot_dimension_numbers<[1], [0], [0], [1], [0, 0, 1, 1], [], []>} : vector<8x256xbf16>, vector<256x256xbf16>, vector<8x256xf32> -> vector<8x256xf32>
    %285 = arith.addf %282, %284 : vector<8x256xf32>
    %286 = arith.negf %285 : vector<8x256xf32>
    %287 = math.exp %286 : vector<8x256xf32>
    %cst_155 = arith.constant 1.000000e+00 : f32
    %288 = vector.broadcast %cst_155 : f32 to vector<8x256xf32>
    %289 = arith.addf %288, %287 : vector<8x256xf32>
    %290 = arith.divf %288, %289 : vector<8x256xf32>
    %291 = vector.extract_strided_slice %271 {offsets = [0, 512], sizes = [8, 256], strides = [1, 1]} : vector<8x1024xf32> to vector<8x256xf32>
    %c0_156 = arith.constant 0 : index
    %c512_157 = arith.constant 512 : index
    %292 = vector.load %arg8[%c0_156, %c512_157] : memref<256x1024xbf16, #tpu.memory_space<vmem>>, vector<256x256xbf16>
    %cst_158 = arith.constant dense<0.000000e+00> : vector<8x256xf32>
    %293 = tpu.matmul %272, %292, %cst_158 {dimension_numbers = #tpu.dot_dimension_numbers<[1], [0], [0], [1], [0, 0, 1, 1], [], []>} : vector<8x256xbf16>, vector<256x256xbf16>, vector<8x256xf32> -> vector<8x256xf32>
    %294 = arith.addf %291, %293 : vector<8x256xf32>
    %295 = math.tanh %294 : vector<8x256xf32>
    %296 = vector.extract_strided_slice %271 {offsets = [0, 768], sizes = [8, 256], strides = [1, 1]} : vector<8x1024xf32> to vector<8x256xf32>
    %c0_159 = arith.constant 0 : index
    %c768_160 = arith.constant 768 : index
    %297 = vector.load %arg8[%c0_159, %c768_160] : memref<256x1024xbf16, #tpu.memory_space<vmem>>, vector<256x256xbf16>
    %cst_161 = arith.constant dense<0.000000e+00> : vector<8x256xf32>
    %298 = tpu.matmul %272, %297, %cst_161 {dimension_numbers = #tpu.dot_dimension_numbers<[1], [0], [0], [1], [0, 0, 1, 1], [], []>} : vector<8x256xbf16>, vector<256x256xbf16>, vector<8x256xf32> -> vector<8x256xf32>
    %299 = arith.addf %296, %298 : vector<8x256xf32>
    %300 = arith.negf %299 : vector<8x256xf32>
    %301 = math.exp %300 : vector<8x256xf32>
    %cst_162 = arith.constant 1.000000e+00 : f32
    %302 = vector.broadcast %cst_162 : f32 to vector<8x256xf32>
    %303 = arith.addf %302, %301 : vector<8x256xf32>
    %304 = arith.divf %302, %303 : vector<8x256xf32>
    %305 = arith.mulf %290, %265 : vector<8x256xf32>
    %306 = arith.mulf %281, %295 : vector<8x256xf32>
    %307 = arith.addf %305, %306 : vector<8x256xf32>
    %308 = math.tanh %307 : vector<8x256xf32>
    %309 = arith.mulf %304, %308 : vector<8x256xf32>
    %c6_i32 = arith.constant 6 : i32
    %c8_i32_163 = arith.constant 8 : i32
    %310 = arith.muli %c6_i32, %c8_i32_163 : i32
    %311 = tpu.assume_multiple %310, 8 : i32
    %312 = arith.index_cast %311 : i32 to index
    %c0_164 = arith.constant 0 : index
    %313 = vector.load %arg7[%312, %c0_164] : memref<64x1024xf32, #tpu.memory_space<vmem>>, vector<8x1024xf32>
    %314 = arith.truncf %309 : vector<8x256xf32> to vector<8x256xbf16>
    %315 = vector.extract_strided_slice %313 {offsets = [0, 0], sizes = [8, 256], strides = [1, 1]} : vector<8x1024xf32> to vector<8x256xf32>
    %c0_165 = arith.constant 0 : index
    %c0_166 = arith.constant 0 : index
    %316 = vector.load %arg8[%c0_165, %c0_166] : memref<256x1024xbf16, #tpu.memory_space<vmem>>, vector<256x256xbf16>
    %cst_167 = arith.constant dense<0.000000e+00> : vector<8x256xf32>
    %317 = tpu.matmul %314, %316, %cst_167 {dimension_numbers = #tpu.dot_dimension_numbers<[1], [0], [0], [1], [0, 0, 1, 1], [], []>} : vector<8x256xbf16>, vector<256x256xbf16>, vector<8x256xf32> -> vector<8x256xf32>
    %318 = arith.addf %315, %317 : vector<8x256xf32>
    %319 = arith.negf %318 : vector<8x256xf32>
    %320 = math.exp %319 : vector<8x256xf32>
    %cst_168 = arith.constant 1.000000e+00 : f32
    %321 = vector.broadcast %cst_168 : f32 to vector<8x256xf32>
    %322 = arith.addf %321, %320 : vector<8x256xf32>
    %323 = arith.divf %321, %322 : vector<8x256xf32>
    %324 = vector.extract_strided_slice %313 {offsets = [0, 256], sizes = [8, 256], strides = [1, 1]} : vector<8x1024xf32> to vector<8x256xf32>
    %c0_169 = arith.constant 0 : index
    %c256_170 = arith.constant 256 : index
    %325 = vector.load %arg8[%c0_169, %c256_170] : memref<256x1024xbf16, #tpu.memory_space<vmem>>, vector<256x256xbf16>
    %cst_171 = arith.constant dense<0.000000e+00> : vector<8x256xf32>
    %326 = tpu.matmul %314, %325, %cst_171 {dimension_numbers = #tpu.dot_dimension_numbers<[1], [0], [0], [1], [0, 0, 1, 1], [], []>} : vector<8x256xbf16>, vector<256x256xbf16>, vector<8x256xf32> -> vector<8x256xf32>
    %327 = arith.addf %324, %326 : vector<8x256xf32>
    %328 = arith.negf %327 : vector<8x256xf32>
    %329 = math.exp %328 : vector<8x256xf32>
    %cst_172 = arith.constant 1.000000e+00 : f32
    %330 = vector.broadcast %cst_172 : f32 to vector<8x256xf32>
    %331 = arith.addf %330, %329 : vector<8x256xf32>
    %332 = arith.divf %330, %331 : vector<8x256xf32>
    %333 = vector.extract_strided_slice %313 {offsets = [0, 512], sizes = [8, 256], strides = [1, 1]} : vector<8x1024xf32> to vector<8x256xf32>
    %c0_173 = arith.constant 0 : index
    %c512_174 = arith.constant 512 : index
    %334 = vector.load %arg8[%c0_173, %c512_174] : memref<256x1024xbf16, #tpu.memory_space<vmem>>, vector<256x256xbf16>
    %cst_175 = arith.constant dense<0.000000e+00> : vector<8x256xf32>
    %335 = tpu.matmul %314, %334, %cst_175 {dimension_numbers = #tpu.dot_dimension_numbers<[1], [0], [0], [1], [0, 0, 1, 1], [], []>} : vector<8x256xbf16>, vector<256x256xbf16>, vector<8x256xf32> -> vector<8x256xf32>
    %336 = arith.addf %333, %335 : vector<8x256xf32>
    %337 = math.tanh %336 : vector<8x256xf32>
    %338 = vector.extract_strided_slice %313 {offsets = [0, 768], sizes = [8, 256], strides = [1, 1]} : vector<8x1024xf32> to vector<8x256xf32>
    %c0_176 = arith.constant 0 : index
    %c768_177 = arith.constant 768 : index
    %339 = vector.load %arg8[%c0_176, %c768_177] : memref<256x1024xbf16, #tpu.memory_space<vmem>>, vector<256x256xbf16>
    %cst_178 = arith.constant dense<0.000000e+00> : vector<8x256xf32>
    %340 = tpu.matmul %314, %339, %cst_178 {dimension_numbers = #tpu.dot_dimension_numbers<[1], [0], [0], [1], [0, 0, 1, 1], [], []>} : vector<8x256xbf16>, vector<256x256xbf16>, vector<8x256xf32> -> vector<8x256xf32>
    %341 = arith.addf %338, %340 : vector<8x256xf32>
    %342 = arith.negf %341 : vector<8x256xf32>
    %343 = math.exp %342 : vector<8x256xf32>
    %cst_179 = arith.constant 1.000000e+00 : f32
    %344 = vector.broadcast %cst_179 : f32 to vector<8x256xf32>
    %345 = arith.addf %344, %343 : vector<8x256xf32>
    %346 = arith.divf %344, %345 : vector<8x256xf32>
    %347 = arith.mulf %332, %307 : vector<8x256xf32>
    %348 = arith.mulf %323, %337 : vector<8x256xf32>
    %349 = arith.addf %347, %348 : vector<8x256xf32>
    %350 = math.tanh %349 : vector<8x256xf32>
    %351 = arith.mulf %346, %350 : vector<8x256xf32>
    %c7_i32 = arith.constant 7 : i32
    %c8_i32_180 = arith.constant 8 : i32
    %352 = arith.muli %c7_i32, %c8_i32_180 : i32
    %353 = tpu.assume_multiple %352, 8 : i32
    %354 = arith.index_cast %353 : i32 to index
    %c0_181 = arith.constant 0 : index
    %355 = vector.load %arg7[%354, %c0_181] : memref<64x1024xf32, #tpu.memory_space<vmem>>, vector<8x1024xf32>
    %356 = arith.truncf %351 : vector<8x256xf32> to vector<8x256xbf16>
    %357 = vector.extract_strided_slice %355 {offsets = [0, 0], sizes = [8, 256], strides = [1, 1]} : vector<8x1024xf32> to vector<8x256xf32>
    %c0_182 = arith.constant 0 : index
    %c0_183 = arith.constant 0 : index
    %358 = vector.load %arg8[%c0_182, %c0_183] : memref<256x1024xbf16, #tpu.memory_space<vmem>>, vector<256x256xbf16>
    %cst_184 = arith.constant dense<0.000000e+00> : vector<8x256xf32>
    %359 = tpu.matmul %356, %358, %cst_184 {dimension_numbers = #tpu.dot_dimension_numbers<[1], [0], [0], [1], [0, 0, 1, 1], [], []>} : vector<8x256xbf16>, vector<256x256xbf16>, vector<8x256xf32> -> vector<8x256xf32>
    %360 = arith.addf %357, %359 : vector<8x256xf32>
    %361 = arith.negf %360 : vector<8x256xf32>
    %362 = math.exp %361 : vector<8x256xf32>
    %cst_185 = arith.constant 1.000000e+00 : f32
    %363 = vector.broadcast %cst_185 : f32 to vector<8x256xf32>
    %364 = arith.addf %363, %362 : vector<8x256xf32>
    %365 = arith.divf %363, %364 : vector<8x256xf32>
    %366 = vector.extract_strided_slice %355 {offsets = [0, 256], sizes = [8, 256], strides = [1, 1]} : vector<8x1024xf32> to vector<8x256xf32>
    %c0_186 = arith.constant 0 : index
    %c256_187 = arith.constant 256 : index
    %367 = vector.load %arg8[%c0_186, %c256_187] : memref<256x1024xbf16, #tpu.memory_space<vmem>>, vector<256x256xbf16>
    %cst_188 = arith.constant dense<0.000000e+00> : vector<8x256xf32>
    %368 = tpu.matmul %356, %367, %cst_188 {dimension_numbers = #tpu.dot_dimension_numbers<[1], [0], [0], [1], [0, 0, 1, 1], [], []>} : vector<8x256xbf16>, vector<256x256xbf16>, vector<8x256xf32> -> vector<8x256xf32>
    %369 = arith.addf %366, %368 : vector<8x256xf32>
    %370 = arith.negf %369 : vector<8x256xf32>
    %371 = math.exp %370 : vector<8x256xf32>
    %cst_189 = arith.constant 1.000000e+00 : f32
    %372 = vector.broadcast %cst_189 : f32 to vector<8x256xf32>
    %373 = arith.addf %372, %371 : vector<8x256xf32>
    %374 = arith.divf %372, %373 : vector<8x256xf32>
    %375 = vector.extract_strided_slice %355 {offsets = [0, 512], sizes = [8, 256], strides = [1, 1]} : vector<8x1024xf32> to vector<8x256xf32>
    %c0_190 = arith.constant 0 : index
    %c512_191 = arith.constant 512 : index
    %376 = vector.load %arg8[%c0_190, %c512_191] : memref<256x1024xbf16, #tpu.memory_space<vmem>>, vector<256x256xbf16>
    %cst_192 = arith.constant dense<0.000000e+00> : vector<8x256xf32>
    %377 = tpu.matmul %356, %376, %cst_192 {dimension_numbers = #tpu.dot_dimension_numbers<[1], [0], [0], [1], [0, 0, 1, 1], [], []>} : vector<8x256xbf16>, vector<256x256xbf16>, vector<8x256xf32> -> vector<8x256xf32>
    %378 = arith.addf %375, %377 : vector<8x256xf32>
    %379 = math.tanh %378 : vector<8x256xf32>
    %380 = vector.extract_strided_slice %355 {offsets = [0, 768], sizes = [8, 256], strides = [1, 1]} : vector<8x1024xf32> to vector<8x256xf32>
    %c0_193 = arith.constant 0 : index
    %c768_194 = arith.constant 768 : index
    %381 = vector.load %arg8[%c0_193, %c768_194] : memref<256x1024xbf16, #tpu.memory_space<vmem>>, vector<256x256xbf16>
    %cst_195 = arith.constant dense<0.000000e+00> : vector<8x256xf32>
    %382 = tpu.matmul %356, %381, %cst_195 {dimension_numbers = #tpu.dot_dimension_numbers<[1], [0], [0], [1], [0, 0, 1, 1], [], []>} : vector<8x256xbf16>, vector<256x256xbf16>, vector<8x256xf32> -> vector<8x256xf32>
    %383 = arith.addf %380, %382 : vector<8x256xf32>
    %384 = arith.negf %383 : vector<8x256xf32>
    %385 = math.exp %384 : vector<8x256xf32>
    %cst_196 = arith.constant 1.000000e+00 : f32
    %386 = vector.broadcast %cst_196 : f32 to vector<8x256xf32>
    %387 = arith.addf %386, %385 : vector<8x256xf32>
    %388 = arith.divf %386, %387 : vector<8x256xf32>
    %389 = arith.mulf %374, %349 : vector<8x256xf32>
    %390 = arith.mulf %365, %379 : vector<8x256xf32>
    %391 = arith.addf %389, %390 : vector<8x256xf32>
    %392 = math.tanh %391 : vector<8x256xf32>
    %393 = arith.mulf %388, %392 : vector<8x256xf32>
    %c8_i32_197 = arith.constant 8 : i32
    %c0_198 = arith.constant 0 : index
    %c0_199 = arith.constant 0 : index
    %394 = vector.load %arg4[%c0_198, %c0_199] : memref<256x128xf32, #tpu.memory_space<vmem>>, vector<256x128xf32>
    %cst_200 = arith.constant dense<0.000000e+00> : vector<8x128xf32>
    %395 = tpu.matmul %393, %394, %cst_200 {dimension_numbers = #tpu.dot_dimension_numbers<[1], [0], [0], [1], [0, 0, 1, 1], [], []>} : vector<8x256xf32>, vector<256x128xf32>, vector<8x128xf32> -> vector<8x128xf32>
    %c0_201 = arith.constant 0 : index
    %c0_202 = arith.constant 0 : index
    %396 = vector.load %arg5[%c0_201, %c0_202] : memref<1x128xf32, #tpu.memory_space<vmem>>, vector<1x128xf32>
    %397 = vector.broadcast %396 : vector<1x128xf32> to vector<8x128xf32>
    %398 = arith.addf %395, %397 : vector<8x128xf32>
    %cst_203 = arith.constant dense<0xFF800000> : vector<8xf32>
    %399 = vector.multi_reduction <maximumf>, %398, %cst_203 [1] : vector<8x128xf32> to vector<8xf32>
    %400 = vector.shape_cast %399 : vector<8xf32> to vector<8x1xf32>
    %401 = vector.broadcast %400 : vector<8x1xf32> to vector<8x128xf32>
    %402 = arith.subf %398, %401 : vector<8x128xf32>
    %403 = math.exp %402 : vector<8x128xf32>
    %cst_204 = arith.constant dense<0.000000e+00> : vector<8xf32>
    %404 = vector.multi_reduction <add>, %403, %cst_204 [1] : vector<8x128xf32> to vector<8xf32>
    %405 = vector.shape_cast %404 : vector<8xf32> to vector<8x1xf32>
    %406 = tpu.reciprocal %405 {approx = true} : vector<8x1xf32> -> vector<8x1xf32>
    %407 = vector.broadcast %406 : vector<8x1xf32> to vector<8x128xf32>
    %408 = arith.mulf %403, %407 : vector<8x128xf32>
    %c0_205 = arith.constant 0 : index
    %c0_206 = arith.constant 0 : index
    %409 = vector.load %arg6[%c0_205, %c0_206] : memref<8x128xf32, #tpu.memory_space<vmem>>, vector<8x128xf32>
    tpu.vector_store %arg6[%c0_205, %c0_206], %408 {strides = array<i32>} : memref<8x128xf32, #tpu.memory_space<vmem>>, vector<8x128xf32>,
    return
  }
}

</mosaic_0001>

<bundles_post_ra>
// kernel: tpu_custom_call.1
= control target key start
LH: loop header
LB: loop body
LE: loop exit
PB: predicated region body
PF: predicated region fallthrough
CT: control target
= control target key end

     0   :  { %11 = vsyncpa [#allocation6], 0  ;;  %s11547_s0 = inlined_call_operand.hbm [shape: bf16[64,128], index: 0, kind: input, shape index: {}]   ;;  %s11548_s1 = inlined_call_operand.hbm [shape: bf16[128,1024], index: 1, kind: input, shape index: {}]   ;;  %s11549_s2 = inlined_call_operand.hbm [shape: f32[1,1024], index: 2, kind: input, shape index: {}]   ;;  %s11550_s3 = inlined_call_operand.hbm [shape: bf16[256,1024], index: 3, kind: input, shape index: {}]   ;;  %s11551_s4 = inlined_call_operand.hbm [shape: f32[256,128], index: 4, kind: input, shape index: {}]   ;;  %s11552_s5 = inlined_call_operand.vmem [shape: f32[1,128], index: 5, kind: input, shape index: {}]   ;;  %s11553_s6 = inlined_call_operand.hbm [shape: f32[8,128], index: 6, kind: output, shape index: {}]  }
   0x1   :  { %12 = vsyncpa [#allocation9], 0 }
   0x2   :  { %13 = vsyncpa [#allocation12], 0 }
   0x3   :  { %14 = vsyncpa [#allocation7], 0  ;;  %s8790_s21 = smov [#allocation8]  }
   0x4   :  { %s32_s22 = sshll.u32 %s8790_s21, 4  ;;  %s33_s22 = int_to_ptr.vmem [resolvable:$true] %s32_s22 }
   0x5   :  { %s8668_s23 = scalar_lea.vmem %s33_s22, 8192  ;;  %p8673_p1 = scmp.lt.s32.totalorder %s33_s22, %s33_s22 }
   0x6   :  { %p8669_p0 = scmp.ne.s32.totalorder %s33_s22, %s8668_s23  ;;  %p8674_p2 = scmp.lt.s32.totalorder %s8668_s23, %s8668_s23 }
   0x8   :  { %p8675_p3 = por %p8674_p2, %p8673_p1 }
   0xa   :  { %p8676_p4 = pnand %p8675_p3, %p8669_p0 }
   0xc   :  { %8679 = shalt.err (!%p8676_p4)
}
   0xd   :  { %s8791_s24 = smov 512   ;;  %s8792_s25 = smov 32  }
   0xe   :  { %38 = dma.hbm_to_vmem [thread:$0]  %s11548_s1, 8192, %s33_s22, [#allocation9], %s8791_s24, %s8791_s24, %s8792_s25  }
   0xf   :  { %s8793_s28 = smov [#allocation5]  }
  0x10   :  { %s20_s29 = sshll.u32 %s8793_s28, 4  ;;  %s21_s29 = int_to_ptr.vmem [resolvable:$true] %s20_s29 }
  0x11   :  { %s8688_s30 = scalar_lea.vmem %s21_s29, 512  ;;  %p8693_p6 = scmp.lt.s32.totalorder %s21_s29, %s21_s29 }
  0x12   :  { %p8689_p5 = scmp.ne.s32.totalorder %s21_s29, %s8688_s30  ;;  %p8694_p7 = scmp.lt.s32.totalorder %s8688_s30, %s8688_s30 }
  0x14   :  { %p8695_p8 = por %p8694_p7, %p8693_p6 }
  0x16   :  { %p8696_p9 = pnand %p8695_p8, %p8689_p5 }
  0x18   :  { %8699 = shalt.err (!%p8696_p9)
}
  0x19   :  { %s8794_s7 = smov 64   ;;  %s8795_s8 = smov 4  }
  0x1a   :  { %26 = dma.hbm_to_vmem [thread:$0]  %s11547_s0, 512, %s21_s29, [#allocation6], %s8794_s7, %s8794_s7, %s8795_s8  }
  0x1b   :  { %s8796_s11 = smov [#allocation10]   ;;  %s8797_s13 = smov [#allocation11]  }
  0x1c   :  { %s45_s12 = sshll.u32 %s8796_s11, 4  ;;  %s54_s1 = sshll.u32 %s8797_s13, 4  ;;  %s46_s12 = int_to_ptr.vmem [resolvable:$true] %s45_s12  ;;  %s55_s1 = int_to_ptr.vmem [resolvable:$true] %s54_s1 }
  0x1d   :  { %s8708_s14 = scalar_lea.vmem %s46_s12, 128  ;;  %p8713_p11 = scmp.lt.s32.totalorder %s46_s12, %s46_s12 }
  0x1e   :  { %p8709_p10 = scmp.ne.s32.totalorder %s46_s12, %s8708_s14  ;;  %p8714_p12 = scmp.lt.s32.totalorder %s8708_s14, %s8708_s14 }
  0x20   :  { %p8715_p13 = por %p8714_p12, %p8713_p11 }
  0x22   :  { %p8716_p0 = pnand %p8715_p13, %p8709_p10 }
  0x24   :  { %8719 = shalt.err (!%p8716_p0)
}
  0x25   :  { %48 = dma.hbm_to_vmem [thread:$0]  %s11549_s2, 128, %s46_s12, [#allocation9]  }
  0x26   :  { %s8728_s17 = scalar_lea.vmem %s55_s1, 4096  ;;  %p8733_p2 = scmp.lt.s32.totalorder %s55_s1, %s55_s1 }
  0x27   :  { %p8729_p1 = scmp.ne.s32.totalorder %s55_s1, %s8728_s17  ;;  %p8734_p3 = scmp.lt.s32.totalorder %s8728_s17, %s8728_s17 }
  0x29   :  { %p8735_p4 = por %p8734_p3, %p8733_p2 }
  0x2b   :  { %p8736_p5 = pnand %p8735_p4, %p8729_p1 }
  0x2d   :  { %8739 = shalt.err (!%p8736_p5)
}
  0x2e   :  { %s8798_s0 = smov 128   ;;  %s8799_s18 = smov 8  }
  0x2f   :  { %60 = dma.hbm_to_vmem [thread:$0]  %s11551_s4, 4096, %s55_s1, [#allocation12], %s8798_s0, %s8798_s0, %s8799_s18  }
  0x30   :  { %8780 = dma.done.wait [#allocation6], 512  }
  0x31   :  { %8781 = vsyncadd [#allocation6], 4294966784 }
  0x32   :  { %8782 = dma.done.wait [#allocation9], 8320  }
  0x33   :  { %8783 = vsyncadd [#allocation9], 4294958976 }
  0x34   :  { %8784 = dma.done.wait [#allocation12], 4096  }
  0x35   :  { %8785 = vsyncadd [#allocation12], 4294963200  ;;  %v11554_v0 = vmov 0   ;;  %v144_v1 = vld [vmem:[#allocation8 + $0x1c0] sm:$0xff]  ;;  %v145_v3 = vld [vmem:[#allocation8 + $0x1c8] sm:$0xff]  ;;  %s8801_s2 = smov [#allocation3]  }
  0x36   :  { %546 = vmatprep.mubr.bf16.mxu0 %v11554_v0  ;;  %587 = vmatprep.mubr.bf16.mxu1 %v11554_v0  ;;  %v148_v2 = vld [vmem:[#allocation8 + $0x1e0] sm:$0xff]  ;;  %v149_v5 = vld [vmem:[#allocation8 + $0x1e8] sm:$0xff]  ;;  %v146_v63 = vld [vmem:[#allocation8 + $0x1d0] sm:$0xff]  ;;  %s83_s4 = sshll.u32 %s8801_s2, 4  ;;  %s84_s4 = int_to_ptr.vmem [resolvable:$true] %s83_s4 }
  0x37   :  { %v8852_v4 = vcombine.high %v144_v1, %v148_v2  ;;  %v8854_v6 = vcombine.low %v144_v1, %v148_v2  ;;  %v136_v7 = vld [vmem:[#allocation8 + $0x180] sm:$0xff]  ;;  %v8856_v9 = vcombine.high %v145_v3, %v149_v5  ;;  %v8858_v10 = vcombine.low %v145_v3, %v149_v5  ;;  %v137_v12 = vld [vmem:[#allocation8 + $0x188] sm:$0xff]  ;;  %v150_v1 = vld [vmem:[#allocation8 + $0x1f0] sm:$0xff]  ;;  %s8748_s21 = scalar_lea.vmem %s84_s4, 16384  ;;  %p8753_p7 = scmp.lt.s32.totalorder %s84_s4, %s84_s4 }
  0x38   :  { %v140_v8 = vld [vmem:[#allocation8 + $0x1a0] sm:$0xff]  ;;  %v141_v13 = vld [vmem:[#allocation8 + $0x1a8] sm:$0xff]  ;;  %v147_v2 = vld [vmem:[#allocation8 + $0x1d8] sm:$0xff]  ;;  %p8749_p6 = scmp.ne.s32.totalorder %s84_s4, %s8748_s21  ;;  %p8754_p8 = scmp.lt.s32.totalorder %s8748_s21, %s8748_s21 }
  0x39   :  { %v8860_v11 = vcombine.high %v136_v7, %v140_v8  ;;  %v128_v14 = vld [vmem:[#allocation8 + $0x140] sm:$0xff]  ;;  %514 = vmatprep.subr.bf16.mxu0 %v8852_v4  ;;  %v8863_v15 = vcombine.high %v137_v12, %v141_v13  ;;  %v129_v17 = vld [vmem:[#allocation8 + $0x148] sm:$0xff]  ;;  %555 = vmatprep.subr.bf16.mxu1 %v8856_v9  ;;  %v8867_v19 = vcombine.low %v136_v7, %v140_v8  ;;  %v151_v3 = vld [vmem:[#allocation8 + $0x1f8] sm:$0xff] }
  0x3a   :  { %v132_v16 = vld [vmem:[#allocation8 + $0x160] sm:$0xff]  ;;  %v133_v18 = vld [vmem:[#allocation8 + $0x168] sm:$0xff]  ;;  %515 = vmatpush1.bf16.msra.mxu0 %v8854_v6  ;;  %556 = vmatpush1.bf16.msra.mxu1 %v8858_v10  ;;  %v8871_v20 = vcombine.low %v137_v12, %v141_v13  ;;  %v8945_v8 = vcombine.high %v146_v63, %v150_v1  ;;  %v8948_v12 = vcombine.high %v147_v2, %v151_v3  ;;  %v138_v13 = vld [vmem:[#allocation8 + $0x190] sm:$0xff]  ;;  %p8755_p9 = por %p8754_p8, %p8753_p7 }
  0x3b   :  { %516 = vmatprep.subr.bf16.mxu0 %v8860_v11  ;;  %v8873_v21 = vcombine.high %v128_v14, %v132_v16  ;;  %557 = vmatprep.subr.bf16.mxu1 %v8863_v15  ;;  %v8876_v22 = vcombine.high %v129_v17, %v133_v18  ;;  %v120_v23 = vld [vmem:[#allocation8 + $0x100] sm:$0xff]  ;;  %v121_v25 = vld [vmem:[#allocation8 + $0x108] sm:$0xff]  ;;  %v8879_v27 = vcombine.low %v128_v14, %v132_v16  ;;  %v142_v14 = vld [vmem:[#allocation8 + $0x1b0] sm:$0xff] }
  0x3c   :  { %v124_v24 = vld [vmem:[#allocation8 + $0x120] sm:$0xff]  ;;  %v125_v26 = vld [vmem:[#allocation8 + $0x128] sm:$0xff]  ;;  %v8883_v28 = vcombine.low %v129_v17, %v133_v18  ;;  %v139_v16 = vld [vmem:[#allocation8 + $0x198] sm:$0xff]  ;;  %p8756_p10 = pnand %p8755_p9, %p8749_p6 }
  0x3d   :  { %v8885_v29 = vcombine.high %v120_v23, %v124_v24  ;;  %v8888_v30 = vcombine.high %v121_v25, %v125_v26  ;;  %v112_v31 = vld [vmem:[#allocation8 + $0xc0] sm:$0xff]  ;;  %v113_v33 = vld [vmem:[#allocation8 + $0xc8] sm:$0xff]  ;;  %v8891_v35 = vcombine.low %v120_v23, %v124_v24  ;;  %v8895_v36 = vcombine.low %v121_v25, %v125_v26  ;;  %v143_v17 = vld [vmem:[#allocation8 + $0x1b8] sm:$0xff] }
  0x3e   :  { %517 = vmatpush1.bf16.msra.mxu0 %v8867_v19  ;;  %558 = vmatpush1.bf16.msra.mxu1 %v8871_v20  ;;  %v116_v32 = vld [vmem:[#allocation8 + $0xe0] sm:$0xff]  ;;  %v117_v34 = vld [vmem:[#allocation8 + $0xe8] sm:$0xff]  ;;  %v8953_v23 = vcombine.low %v146_v63, %v150_v1  ;;  %v8957_v24 = vcombine.low %v147_v2, %v151_v3  ;;  %v8959_v25 = vcombine.high %v138_v13, %v142_v14  ;;  %v114_v63 = vld [vmem:[#allocation8 + $0xd0] sm:$0xff] }
  0x3f   :  { %518 = vmatprep.subr.bf16.mxu0 %v8873_v21  ;;  %559 = vmatprep.subr.bf16.mxu1 %v8876_v22  ;;  %v8897_v37 = vcombine.high %v112_v31, %v116_v32  ;;  %v8900_v38 = vcombine.high %v113_v33, %v117_v34  ;;  %v104_v39 = vld [vmem:[#allocation8 + $0x80] sm:$0xff]  ;;  %v105_v41 = vld [vmem:[#allocation8 + $0x88] sm:$0xff]  ;;  %v8903_v43 = vcombine.low %v112_v31, %v116_v32  ;;  %v130_v31 = vld [vmem:[#allocation8 + $0x150] sm:$0xff] }
  0x40   :  { %v108_v40 = vld [vmem:[#allocation8 + $0xa0] sm:$0xff]  ;;  %v109_v42 = vld [vmem:[#allocation8 + $0xa8] sm:$0xff]  ;;  %v8907_v44 = vcombine.low %v113_v33, %v117_v34  ;;  %v8962_v26 = vcombine.high %v139_v16, %v143_v17  ;;  %v134_v32 = vld [vmem:[#allocation8 + $0x170] sm:$0xff] }
  0x41   :  { %v8909_v45 = vcombine.high %v104_v39, %v108_v40  ;;  %v8912_v46 = vcombine.high %v105_v41, %v109_v42  ;;  %v96_v47 = vld [vmem:[#allocation8 + $0x40] sm:$0xff]  ;;  %v97_v49 = vld [vmem:[#allocation8 + $0x48] sm:$0xff]  ;;  %v8915_v51 = vcombine.low %v104_v39, %v108_v40  ;;  %v8919_v52 = vcombine.low %v105_v41, %v109_v42  ;;  %v131_v33 = vld [vmem:[#allocation8 + $0x158] sm:$0xff] }
  0x42   :  { %519 = vmatpush1.bf16.msra.mxu0 %v8879_v27  ;;  %560 = vmatpush1.bf16.msra.mxu1 %v8883_v28  ;;  %v100_v48 = vld [vmem:[#allocation8 + $0x60] sm:$0xff]  ;;  %v101_v50 = vld [vmem:[#allocation8 + $0x68] sm:$0xff]  ;;  %v135_v34 = vld [vmem:[#allocation8 + $0x178] sm:$0xff]  ;;  %v8967_v39 = vcombine.low %v138_v13, %v142_v14  ;;  %v8971_v40 = vcombine.low %v139_v16, %v143_v17  ;;  %v8973_v41 = vcombine.high %v130_v31, %v134_v32 }
  0x43   :  { %520 = vmatprep.subr.bf16.mxu0 %v8885_v29  ;;  %561 = vmatprep.subr.bf16.mxu1 %v8888_v30  ;;  %v8921_v53 = vcombine.high %v96_v47, %v100_v48  ;;  %v8924_v54 = vcombine.high %v97_v49, %v101_v50  ;;  %v88_v55 = vld [vmem:[#allocation8] sm:$0xff]  ;;  %v89_v57 = vld [vmem:[#allocation8 + $0x8] sm:$0xff]  ;;  %v8927_v59 = vcombine.low %v96_v47, %v100_v48  ;;  %v122_v47 = vld [vmem:[#allocation8 + $0x110] sm:$0xff] }
  0x44   :  { %v92_v56 = vld [vmem:[#allocation8 + $0x20] sm:$0xff]  ;;  %v93_v58 = vld [vmem:[#allocation8 + $0x28] sm:$0xff]  ;;  %v8931_v60 = vcombine.low %v97_v49, %v101_v50  ;;  %11912 = vst [vmem:[#allocation23_spill] sm:$0xff] %v8967_v39  ;;  %v8976_v42 = vcombine.high %v131_v33, %v135_v34  ;;  %v126_v48 = vld [vmem:[#allocation8 + $0x130] sm:$0xff] }
  0x45   :  { %v8933_v61 = vcombine.high %v88_v55, %v92_v56  ;;  %v8936_v62 = vcombine.high %v89_v57, %v93_v58  ;;  %v8939_v5 = vcombine.low %v88_v55, %v92_v56  ;;  %v8943_v7 = vcombine.low %v89_v57, %v93_v58  ;;  %v8951_v18 = vld [vmem:[#allocation5] sm:$0xf]  ;;  %v123_v49 = vld [vmem:[#allocation8 + $0x118] sm:$0xff]  ;;  %v118_v1 = vld [vmem:[#allocation8 + $0xf0] sm:$0xff] }
  0x46   :  { %521 = vmatpush1.bf16.msra.mxu0 %v8891_v35  ;;  %562 = vmatpush1.bf16.msra.mxu1 %v8895_v36  ;;  %v127_v50 = vld [vmem:[#allocation8 + $0x138] sm:$0xff]  ;;  %v8981_v55 = vcombine.low %v130_v31, %v134_v32  ;;  %v8985_v56 = vcombine.low %v131_v33, %v135_v34  ;;  %v8987_v57 = vcombine.high %v122_v47, %v126_v48  ;;  %v106_v31 = vld [vmem:[#allocation8 + $0x90] sm:$0xff] }
  0x47   :  { %522 = vmatprep.subr.bf16.mxu0 %v8897_v37  ;;  %563 = vmatprep.subr.bf16.mxu1 %v8900_v38  ;;  %v8990_v58 = vcombine.high %v123_v49, %v127_v50  ;;  %v115_v2 = vld [vmem:[#allocation8 + $0xd8] sm:$0xff]  ;;  %v8993_v13 = vcombine.low %v122_v47, %v126_v48  ;;  %v8997_v14 = vcombine.low %v123_v49, %v127_v50  ;;  %v110_v32 = vld [vmem:[#allocation8 + $0xb0] sm:$0xff] }
  0x48   :  { %11913 = vst [vmem:[#allocation24_spill] sm:$0xff] %v8981_v55  ;;  %11914 = vst [vmem:[#allocation25_spill] sm:$0xff] %v8985_v56  ;;  %v119_v3 = vld [vmem:[#allocation8 + $0xf8] sm:$0xff]  ;;  %v8999_v16 = vcombine.high %v114_v63, %v118_v1  ;;  %v9005_v47 = vcombine.low %v114_v63, %v118_v1  ;;  %v9011_v49 = vcombine.high %v106_v31, %v110_v32 }
  0x49   :  { %11915 = vst [vmem:[#allocation26_spill] sm:$0xff] %v8987_v57  ;;  %11916 = vst [vmem:[#allocation27_spill] sm:$0xff] %v8990_v58  ;;  %v9002_v17 = vcombine.high %v115_v2, %v119_v3  ;;  %v107_v33 = vld [vmem:[#allocation8 + $0x98] sm:$0xff]  ;;  %v9009_v48 = vcombine.low %v115_v2, %v119_v3  ;;  %v9017_v63 = vcombine.low %v106_v31, %v110_v32 }
  0x4a   :  { %523 = vmatpush1.bf16.msra.mxu0 %v8903_v43  ;;  %564 = vmatpush1.bf16.msra.mxu1 %v8907_v44  ;;  %11917 = vst [vmem:[#allocation28_spill] sm:$0xff] %v8993_v13  ;;  %11918 = vst [vmem:[#allocation29_spill] sm:$0xff] %v8997_v14  ;;  %v111_v34 = vld [vmem:[#allocation8 + $0xb8] sm:$0xff] }
  0x4b   :  { %524 = vmatprep.subr.bf16.mxu0 %v8909_v45  ;;  %565 = vmatprep.subr.bf16.mxu1 %v8912_v46  ;;  %11919 = vst [vmem:[#allocation30_spill] sm:$0xff] %v8999_v16  ;;  %11920 = vst [vmem:[#allocation31_spill] sm:$0xff] %v9002_v17  ;;  %v9014_v50 = vcombine.high %v107_v33, %v111_v34  ;;  %v9021_v1 = vcombine.low %v107_v33, %v111_v34 }
  0x4d   :  { %11921 = vst [vmem:[#allocation32_spill] sm:$0xff] %v9014_v50 }
  0x4e   :  { %525 = vmatpush1.bf16.msra.mxu0 %v8915_v51  ;;  %566 = vmatpush1.bf16.msra.mxu1 %v8919_v52 }
  0x4f   :  { %526 = vmatprep.subr.bf16.mxu0 %v8921_v53  ;;  %567 = vmatprep.subr.bf16.mxu1 %v8924_v54 }
  0x52   :  { %527 = vmatpush1.bf16.msra.mxu0 %v8927_v59  ;;  %568 = vmatpush1.bf16.msra.mxu1 %v8931_v60 }
  0x53   :  { %528 = vmatprep.subr.bf16.mxu0 %v8933_v61  ;;  %569 = vmatprep.subr.bf16.mxu1 %v8936_v62 }
  0x56   :  { %529 = vmatpush1.bf16.msra.mxu0 %v8939_v5  ;;  %570 = vmatpush1.bf16.msra.mxu1 %v8943_v7 }
  0x57   :  { %596 = vmatprep.subr.bf16.mxu0 %v8945_v8  ;;  %637 = vmatprep.subr.bf16.mxu1 %v8948_v12 }
  0x59   :  { %547 = vmatmul.mubr.bf16.vlgmr.msra.gmra.mxu0 %v8951_v18  ;;  %588 = vmatmul.mubr.bf16.vlgmr.msra.gmra.mxu1 %v8951_v18 }
  0x5a   :  { %597 = vmatpush1.bf16.msra.mxu0 %v8953_v23  ;;  %638 = vmatpush1.bf16.msra.mxu1 %v8957_v24 }
  0x5b   :  { %598 = vmatprep.subr.bf16.mxu0 %v8959_v25  ;;  %639 = vmatprep.subr.bf16.mxu1 %v8962_v26 }
  0x5c   :  { %628 = vmatprep.mubr.bf16.mxu0 %v11554_v0  ;;  %669 = vmatprep.mubr.bf16.mxu1 %v11554_v0  ;;  %v98_v0 = vld [vmem:[#allocation8 + $0x50] sm:$0xff] }
  0x5e   :  { %599 = vmatpush1.bf16.msra.mxu0 %v8967_v39  ;;  %640 = vmatpush1.bf16.msra.mxu1 %v8971_v40 }
  0x5f   :  { %600 = vmatprep.subr.bf16.mxu0 %v8973_v41  ;;  %641 = vmatprep.subr.bf16.mxu1 %v8976_v42 }
  0x62   :  { %601 = vmatpush1.bf16.msra.mxu0 %v8981_v55  ;;  %642 = vmatpush1.bf16.msra.mxu1 %v8985_v56  ;;  %v103_v56 = vld [vmem:[#allocation8 + $0x78] sm:$0xff] }
  0x63   :  { %602 = vmatprep.subr.bf16.mxu0 %v8987_v57  ;;  %643 = vmatprep.subr.bf16.mxu1 %v8990_v58  ;;  %v102_v58 = vld [vmem:[#allocation8 + $0x70] sm:$0xff]  ;;  %v99_v57 = vld [vmem:[#allocation8 + $0x58] sm:$0xff] }
  0x64   :  { %v9023_v2 = vcombine.high %v98_v0, %v102_v58  ;;  %v9026_v3 = vcombine.high %v99_v57, %v103_v56  ;;  %v9029_v31 = vcombine.low %v98_v0, %v102_v58  ;;  %v9033_v32 = vcombine.low %v99_v57, %v103_v56  ;;  %v11923_v57 = vld [vmem:[#allocation25_spill] sm:$0xff]  ;;  %v11924_v58 = vld [vmem:[#allocation26_spill] sm:$0xff] }
  0x65   :  { %v11922_v56 = vmov 0  }
  0x66   :  { %603 = vmatpush1.bf16.msra.mxu0 %v8993_v13  ;;  %644 = vmatpush1.bf16.msra.mxu1 %v8997_v14  ;;  %v91_v14 = vld [vmem:[#allocation8 + $0x18] sm:$0xff] }
  0x67   :  { %604 = vmatprep.subr.bf16.mxu0 %v8999_v16  ;;  %645 = vmatprep.subr.bf16.mxu1 %v9002_v17  ;;  %v90_v17 = vld [vmem:[#allocation8 + $0x10] sm:$0xff]  ;;  %v95_v13 = vld [vmem:[#allocation8 + $0x38] sm:$0xff] }
  0x68   :  { %v94_v16 = vld [vmem:[#allocation8 + $0x30] sm:$0xff]  ;;  %v9038_v34 = vcombine.high %v91_v14, %v95_v13  ;;  %v9045_v0 = vcombine.low %v91_v14, %v95_v13  ;;  %v11926_v14 = vld [vmem:[#allocation28_spill] sm:$0xff] }
  0x69   :  { %v9035_v33 = vcombine.high %v90_v17, %v94_v16  ;;  %v11925_v13 = vld [vmem:[#allocation27_spill] sm:$0xff] }
  0x6a   :  { %605 = vmatpush1.bf16.msra.mxu0 %v9005_v47  ;;  %646 = vmatpush1.bf16.msra.mxu1 %v9009_v48 }
  0x6b   :  { %606 = vmatprep.subr.bf16.mxu0 %v9011_v49  ;;  %647 = vmatprep.subr.bf16.mxu1 %v9014_v50  ;;  %v9041_v50 = vcombine.low %v90_v17, %v94_v16  ;;  %v11927_v16 = vld [vmem:[#allocation29_spill] sm:$0xff]  ;;  %v11928_v17 = vld [vmem:[#allocation30_spill] sm:$0xff] }
  0x6e   :  { %607 = vmatpush1.bf16.msra.mxu0 %v9017_v63  ;;  %648 = vmatpush1.bf16.msra.mxu1 %v9021_v1 }
  0x6f   :  { %608 = vmatprep.subr.bf16.mxu0 %v9023_v2  ;;  %649 = vmatprep.subr.bf16.mxu1 %v9026_v3 }
  0x72   :  { %609 = vmatpush1.bf16.msra.mxu0 %v9029_v31  ;;  %650 = vmatpush1.bf16.msra.mxu1 %v9033_v32 }
  0x73   :  { %610 = vmatprep.subr.bf16.mxu0 %v9035_v33  ;;  %651 = vmatprep.subr.bf16.mxu1 %v9038_v34 }
  0x76   :  { %611 = vmatpush1.bf16.msra.mxu0 %v9041_v50  ;;  %652 = vmatpush1.bf16.msra.mxu1 %v9045_v0 }
  0x77   :  { %1113 = vmatprep.subr.bf16.mxu0 %v8852_v4  ;;  %1154 = vmatprep.subr.bf16.mxu1 %v8856_v9 }
  0x79   :  { %629 = vmatmul.mubr.bf16.vlgmr.msra.gmra.mxu0 %v8951_v18  ;;  %670 = vmatmul.mubr.bf16.vlgmr.msra.gmra.mxu1 %v8951_v18  ;;  %v686_v18 = vld [vmem:[#allocation5 + $0x4] sm:$0xf] }
  0x7a   :  { %1114 = vmatpush1.bf16.msra.mxu0 %v8854_v6  ;;  %1155 = vmatpush1.bf16.msra.mxu1 %v8858_v10 }
  0x7b   :  { %1115 = vmatprep.subr.bf16.mxu0 %v8860_v11  ;;  %1156 = vmatprep.subr.bf16.mxu1 %v8863_v15 }
  0x7c   :  { %1145 = vmatprep.mubr.bf16.mxu0 %v11922_v56  ;;  %1186 = vmatprep.mubr.bf16.mxu1 %v11922_v56 }
  0x7e   :  { %1116 = vmatpush1.bf16.msra.mxu0 %v8867_v19  ;;  %1157 = vmatpush1.bf16.msra.mxu1 %v8871_v20 }
  0x7f   :  { %1117 = vmatprep.subr.bf16.mxu0 %v8873_v21  ;;  %1158 = vmatprep.subr.bf16.mxu1 %v8876_v22 }
  0x82   :  { %1118 = vmatpush1.bf16.msra.mxu0 %v8879_v27  ;;  %1159 = vmatpush1.bf16.msra.mxu1 %v8883_v28 }
  0x83   :  { %1119 = vmatprep.subr.bf16.mxu0 %v8885_v29  ;;  %1160 = vmatprep.subr.bf16.mxu1 %v8888_v30 }
  0x86   :  { %1120 = vmatpush1.bf16.msra.mxu0 %v8891_v35  ;;  %1161 = vmatpush1.bf16.msra.mxu1 %v8895_v36 }
  0x87   :  { %1121 = vmatprep.subr.bf16.mxu0 %v8897_v37  ;;  %1162 = vmatprep.subr.bf16.mxu1 %v8900_v38 }
  0x8a   :  { %1122 = vmatpush1.bf16.msra.mxu0 %v8903_v43  ;;  %1163 = vmatpush1.bf16.msra.mxu1 %v8907_v44 }
  0x8b   :  { %1123 = vmatprep.subr.bf16.mxu0 %v8909_v45  ;;  %1164 = vmatprep.subr.bf16.mxu1 %v8912_v46 }
  0x8e   :  { %1124 = vmatpush1.bf16.msra.mxu0 %v8915_v51  ;;  %1165 = vmatpush1.bf16.msra.mxu1 %v8919_v52 }
  0x8f   :  { %1125 = vmatprep.subr.bf16.mxu0 %v8921_v53  ;;  %1166 = vmatprep.subr.bf16.mxu1 %v8924_v54 }
  0x92   :  { %1126 = vmatpush1.bf16.msra.mxu0 %v8927_v59  ;;  %1167 = vmatpush1.bf16.msra.mxu1 %v8931_v60 }
  0x93   :  { %1127 = vmatprep.subr.bf16.mxu0 %v8933_v61  ;;  %1168 = vmatprep.subr.bf16.mxu1 %v8936_v62 }
  0x96   :  { %1128 = vmatpush1.bf16.msra.mxu0 %v8939_v5  ;;  %1169 = vmatpush1.bf16.msra.mxu1 %v8943_v7 }
  0x97   :  { %1195 = vmatprep.subr.bf16.mxu0 %v8945_v8  ;;  %1236 = vmatprep.subr.bf16.mxu1 %v8948_v12 }
  0x99   :  { %1146 = vmatmul.mubr.bf16.vlgmr.msra.gmra.mxu0 %v686_v18  ;;  %1187 = vmatmul.mubr.bf16.vlgmr.msra.gmra.mxu1 %v686_v18 }
  0x9a   :  { %1196 = vmatpush1.bf16.msra.mxu0 %v8953_v23  ;;  %1237 = vmatpush1.bf16.msra.mxu1 %v8957_v24 }
  0x9b   :  { %1197 = vmatprep.subr.bf16.mxu0 %v8959_v25  ;;  %1238 = vmatprep.subr.bf16.mxu1 %v8962_v26 }
  0x9c   :  { %1227 = vmatprep.mubr.bf16.mxu0 %v11922_v56  ;;  %1268 = vmatprep.mubr.bf16.mxu1 %v11922_v56 }
  0x9e   :  { %1198 = vmatpush1.bf16.msra.mxu0 %v8967_v39  ;;  %1239 = vmatpush1.bf16.msra.mxu1 %v8971_v40  ;;  %v11929_v39 = vld [vmem:[#allocation31_spill] sm:$0xff] }
  0x9f   :  { %1199 = vmatprep.subr.bf16.mxu0 %v8973_v41  ;;  %1240 = vmatprep.subr.bf16.mxu1 %v8976_v42 }
  0xa2   :  { %1200 = vmatpush1.bf16.msra.mxu0 %v8981_v55  ;;  %1241 = vmatpush1.bf16.msra.mxu1 %v11923_v57  ;;  %v11930_v55 = vld [vmem:[#allocation32_spill] sm:$0xff] }
  0xa3   :  { %1201 = vmatprep.subr.bf16.mxu0 %v11924_v58  ;;  %1242 = vmatprep.subr.bf16.mxu1 %v11925_v13 }
  0xa6   :  { %1202 = vmatpush1.bf16.msra.mxu0 %v11926_v14  ;;  %1243 = vmatpush1.bf16.msra.mxu1 %v11927_v16 }
  0xa7   :  { %1203 = vmatprep.subr.bf16.mxu0 %v11928_v17  ;;  %1244 = vmatprep.subr.bf16.mxu1 %v11929_v39 }
  0xaa   :  { %1204 = vmatpush1.bf16.msra.mxu0 %v9005_v47  ;;  %1245 = vmatpush1.bf16.msra.mxu1 %v9009_v48 }
  0xab   :  { %1205 = vmatprep.subr.bf16.mxu0 %v9011_v49  ;;  %1246 = vmatprep.subr.bf16.mxu1 %v11930_v55 }
  0xae   :  { %1206 = vmatpush1.bf16.msra.mxu0 %v9017_v63  ;;  %1247 = vmatpush1.bf16.msra.mxu1 %v9021_v1 }
  0xaf   :  { %1207 = vmatprep.subr.bf16.mxu0 %v9023_v2  ;;  %1248 = vmatprep.subr.bf16.mxu1 %v9026_v3 }
  0xb2   :  { %1208 = vmatpush1.bf16.msra.mxu0 %v9029_v31  ;;  %1249 = vmatpush1.bf16.msra.mxu1 %v9033_v32 }
  0xb3   :  { %1209 = vmatprep.subr.bf16.mxu0 %v9035_v33  ;;  %1250 = vmatprep.subr.bf16.mxu1 %v9038_v34 }
  0xb6   :  { %1210 = vmatpush1.bf16.msra.mxu0 %v9041_v50  ;;  %1251 = vmatpush1.bf16.msra.mxu1 %v9045_v0 }
  0xb7   :  { %1712 = vmatprep.subr.bf16.mxu0 %v8852_v4  ;;  %1753 = vmatprep.subr.bf16.mxu1 %v8856_v9  ;;  %v1285_v4 = vld [vmem:[#allocation5 + $0x8] sm:$0xf]  ;;  %v11932_v9 = vld [vmem:[#allocation24_spill] sm:$0xff] }
  0xb9   :  { %1228 = vmatmul.mubr.bf16.vlgmr.msra.gmra.mxu0 %v686_v18  ;;  %1269 = vmatmul.mubr.bf16.vlgmr.msra.gmra.mxu1 %v686_v18 }
  0xba   :  { %1713 = vmatpush1.bf16.msra.mxu0 %v8854_v6  ;;  %1754 = vmatpush1.bf16.msra.mxu1 %v8858_v10  ;;  %v11931_v6 = vld [vmem:[#allocation23_spill] sm:$0xff]  ;;  %v1941_v10 = vld [vmem:[#allocation8 + $0x1c0] sm:$0xff] }
  0xbb   :  { %1714 = vmatprep.subr.bf16.mxu0 %v8860_v11  ;;  %1755 = vmatprep.subr.bf16.mxu1 %v8863_v15  ;;  %v1945_v11 = vld [vmem:[#allocation8 + $0x1e0] sm:$0xff]  ;;  %v1942_v15 = vld [vmem:[#allocation8 + $0x1c8] sm:$0xff] }
  0xbc   :  { %1744 = vmatprep.mubr.bf16.mxu0 %v11922_v56  ;;  %1785 = vmatprep.mubr.bf16.mxu1 %v11922_v56 }
  0xbe   :  { %1715 = vmatpush1.bf16.msra.mxu0 %v8867_v19  ;;  %1756 = vmatpush1.bf16.msra.mxu1 %v8871_v20  ;;  %v1946_v19 = vld [vmem:[#allocation8 + $0x1e8] sm:$0xff]  ;;  %v9185_v20 = vcombine.high %v1941_v10, %v1945_v11 }
  0xbf   :  { %1716 = vmatprep.subr.bf16.mxu0 %v8873_v21  ;;  %1757 = vmatprep.subr.bf16.mxu1 %v8876_v22  ;;  %v9188_v21 = vcombine.high %v1942_v15, %v1946_v19  ;;  %v1933_v22 = vld [vmem:[#allocation8 + $0x180] sm:$0xff] }
  0xc1   :  { %11933 = vst [vmem:[#allocation25_spill] sm:$0xff] %v9188_v21 }
  0xc2   :  { %1717 = vmatpush1.bf16.msra.mxu0 %v8879_v27  ;;  %1758 = vmatpush1.bf16.msra.mxu1 %v8883_v28  ;;  %v1937_v27 = vld [vmem:[#allocation8 + $0x1a0] sm:$0xff]  ;;  %v1934_v28 = vld [vmem:[#allocation8 + $0x188] sm:$0xff] }
  0xc3   :  { %1718 = vmatprep.subr.bf16.mxu0 %v8885_v29  ;;  %1759 = vmatprep.subr.bf16.mxu1 %v8888_v30  ;;  %v1938_v29 = vld [vmem:[#allocation8 + $0x1a8] sm:$0xff]  ;;  %v9191_v30 = vcombine.low %v1941_v10, %v1945_v11  ;;  %v1943_v11 = vld [vmem:[#allocation8 + $0x1d0] sm:$0xff] }
  0xc6   :  { %1719 = vmatpush1.bf16.msra.mxu0 %v8891_v35  ;;  %1760 = vmatpush1.bf16.msra.mxu1 %v8895_v36  ;;  %v9195_v35 = vcombine.low %v1942_v15, %v1946_v19  ;;  %v9197_v36 = vcombine.high %v1933_v22, %v1937_v27  ;;  %v1947_v15 = vld [vmem:[#allocation8 + $0x1f0] sm:$0xff]  ;;  %v1944_v19 = vld [vmem:[#allocation8 + $0x1d8] sm:$0xff] }
  0xc7   :  { %1720 = vmatprep.subr.bf16.mxu0 %v8897_v37  ;;  %1761 = vmatprep.subr.bf16.mxu1 %v8900_v38  ;;  %v9200_v37 = vcombine.high %v1934_v28, %v1938_v29  ;;  %v1925_v38 = vld [vmem:[#allocation8 + $0x140] sm:$0xff] }
  0xca   :  { %1721 = vmatpush1.bf16.msra.mxu0 %v8903_v43  ;;  %1762 = vmatpush1.bf16.msra.mxu1 %v8907_v44  ;;  %v1929_v43 = vld [vmem:[#allocation8 + $0x160] sm:$0xff]  ;;  %v1926_v44 = vld [vmem:[#allocation8 + $0x148] sm:$0xff] }
  0xcb   :  { %1722 = vmatprep.subr.bf16.mxu0 %v8909_v45  ;;  %1763 = vmatprep.subr.bf16.mxu1 %v8912_v46  ;;  %v1930_v45 = vld [vmem:[#allocation8 + $0x168] sm:$0xff]  ;;  %v9203_v46 = vcombine.low %v1933_v22, %v1937_v27  ;;  %v1948_v22 = vld [vmem:[#allocation8 + $0x1f8] sm:$0xff] }
  0xce   :  { %1723 = vmatpush1.bf16.msra.mxu0 %v8915_v51  ;;  %1764 = vmatpush1.bf16.msra.mxu1 %v8919_v52  ;;  %v9207_v51 = vcombine.low %v1934_v28, %v1938_v29  ;;  %v9209_v52 = vcombine.high %v1925_v38, %v1929_v43 }
  0xcf   :  { %1724 = vmatprep.subr.bf16.mxu0 %v8921_v53  ;;  %1765 = vmatprep.subr.bf16.mxu1 %v8924_v54  ;;  %v9212_v53 = vcombine.high %v1926_v44, %v1930_v45  ;;  %v1917_v54 = vld [vmem:[#allocation8 + $0x100] sm:$0xff] }
  0xd2   :  { %1725 = vmatpush1.bf16.msra.mxu0 %v8927_v59  ;;  %1766 = vmatpush1.bf16.msra.mxu1 %v8931_v60  ;;  %v1921_v59 = vld [vmem:[#allocation8 + $0x120] sm:$0xff]  ;;  %v1918_v60 = vld [vmem:[#allocation8 + $0x108] sm:$0xff] }
  0xd3   :  { %1726 = vmatprep.subr.bf16.mxu0 %v8933_v61  ;;  %1767 = vmatprep.subr.bf16.mxu1 %v8936_v62  ;;  %v1922_v61 = vld [vmem:[#allocation8 + $0x128] sm:$0xff]  ;;  %v9217_v62 = vcombine.low %v1925_v38, %v1929_v43  ;;  %v9286_v38 = vld [vmem:[#allocation10] sm:$0xff] }
  0xd6   :  { %1727 = vmatpush1.bf16.msra.mxu0 %v8939_v5  ;;  %1768 = vmatpush1.bf16.msra.mxu1 %v8943_v7  ;;  %v9221_v5 = vcombine.low %v1926_v44, %v1930_v45  ;;  %v9223_v7 = vcombine.high %v1917_v54, %v1921_v59  ;;  %v9289_v44 = vcombine.high %v1943_v11, %v1947_v15 }
  0xd7   :  { %1794 = vmatprep.subr.bf16.mxu0 %v8945_v8  ;;  %1835 = vmatprep.subr.bf16.mxu1 %v8948_v12  ;;  %v9226_v8 = vcombine.high %v1918_v60, %v1922_v61  ;;  %v1909_v12 = vld [vmem:[#allocation8 + $0xc0] sm:$0xff]  ;;  %v9292_v45 = vcombine.high %v1944_v19, %v1948_v22 }
  0xd9   :  { %1745 = vmatmul.mubr.bf16.vlgmr.msra.gmra.mxu0 %v1285_v4  ;;  %1786 = vmatmul.mubr.bf16.vlgmr.msra.gmra.mxu1 %v1285_v4  ;;  %11935 = vst [vmem:[#allocation27_spill] sm:$0xff] %v9292_v45 }
  0xda   :  { %1795 = vmatpush1.bf16.msra.mxu0 %v8953_v23  ;;  %1836 = vmatpush1.bf16.msra.mxu1 %v8957_v24  ;;  %v1913_v23 = vld [vmem:[#allocation8 + $0xe0] sm:$0xff]  ;;  %v1910_v24 = vld [vmem:[#allocation8 + $0xc8] sm:$0xff] }
  0xdb   :  { %1796 = vmatprep.subr.bf16.mxu0 %v8959_v25  ;;  %1837 = vmatprep.subr.bf16.mxu1 %v8962_v26  ;;  %v1914_v25 = vld [vmem:[#allocation8 + $0xe8] sm:$0xff]  ;;  %v9229_v26 = vcombine.low %v1917_v54, %v1921_v59  ;;  %v1935_v59 = vld [vmem:[#allocation8 + $0x190] sm:$0xff] }
  0xdc   :  { %1826 = vmatprep.mubr.bf16.mxu0 %v11922_v56  ;;  %1867 = vmatprep.mubr.bf16.mxu1 %v11922_v56 }
  0xde   :  { %1797 = vmatpush1.bf16.msra.mxu0 %v11931_v6  ;;  %1838 = vmatpush1.bf16.msra.mxu1 %v8971_v40  ;;  %v9235_v40 = vcombine.high %v1909_v12, %v1913_v23 }
  0xdf   :  { %1798 = vmatprep.subr.bf16.mxu0 %v8973_v41  ;;  %1839 = vmatprep.subr.bf16.mxu1 %v8976_v42  ;;  %v9238_v41 = vcombine.high %v1910_v24, %v1914_v25  ;;  %v1901_v42 = vld [vmem:[#allocation8 + $0x80] sm:$0xff] }
  0xe2   :  { %1799 = vmatpush1.bf16.msra.mxu0 %v11932_v9  ;;  %1840 = vmatpush1.bf16.msra.mxu1 %v11923_v57 }
  0xe3   :  { %1800 = vmatprep.subr.bf16.mxu0 %v11924_v58  ;;  %1841 = vmatprep.subr.bf16.mxu1 %v11925_v13  ;;  %v1885_v58 = vld [vmem:[#allocation8] sm:$0xff] }
  0xe4   :  { %v1889_v13 = vld [vmem:[#allocation8 + $0x20] sm:$0xff] }
  0xe5   :  { %v9273_v9 = vcombine.high %v1885_v58, %v1889_v13  ;;  %v9279_v27 = vcombine.low %v1885_v58, %v1889_v13  ;;  %v1928_v13 = vld [vmem:[#allocation8 + $0x158] sm:$0xff] }
  0xe6   :  { %1801 = vmatpush1.bf16.msra.mxu0 %v11926_v14  ;;  %1842 = vmatpush1.bf16.msra.mxu1 %v11927_v16  ;;  %v1886_v14 = vld [vmem:[#allocation8 + $0x8] sm:$0xff] }
  0xe7   :  { %1802 = vmatprep.subr.bf16.mxu0 %v11928_v17  ;;  %1843 = vmatprep.subr.bf16.mxu1 %v11929_v39  ;;  %v9233_v39 = vcombine.low %v1918_v60, %v1922_v61  ;;  %v1890_v16 = vld [vmem:[#allocation8 + $0x28] sm:$0xff]  ;;  %v1939_v60 = vld [vmem:[#allocation8 + $0x1b0] sm:$0xff] }
  0xe8   :  { %v9276_v10 = vcombine.high %v1886_v14, %v1890_v16  ;;  %v9284_v29 = vcombine.low %v1886_v14, %v1890_v16  ;;  %v1932_v14 = vld [vmem:[#allocation8 + $0x178] sm:$0xff] }
  0xea   :  { %1803 = vmatpush1.bf16.msra.mxu0 %v9005_v47  ;;  %1844 = vmatpush1.bf16.msra.mxu1 %v9009_v48  ;;  %v1902_v47 = vld [vmem:[#allocation8 + $0x88] sm:$0xff] }
  0xeb   :  { %1804 = vmatprep.subr.bf16.mxu0 %v9011_v49  ;;  %1845 = vmatprep.subr.bf16.mxu1 %v11930_v55  ;;  %v1905_v55 = vld [vmem:[#allocation8 + $0xa0] sm:$0xff]  ;;  %v1906_v48 = vld [vmem:[#allocation8 + $0xa8] sm:$0xff]  ;;  %v9241_v49 = vcombine.low %v1909_v12, %v1913_v23  ;;  %v1936_v12 = vld [vmem:[#allocation8 + $0x198] sm:$0xff] }
  0xec   :  { %v1940_v23 = vld [vmem:[#allocation8 + $0x1b8] sm:$0xff] }
  0xee   :  { %1805 = vmatpush1.bf16.msra.mxu0 %v9017_v63  ;;  %1846 = vmatpush1.bf16.msra.mxu1 %v9021_v1  ;;  %v9247_v63 = vcombine.high %v1901_v42, %v1905_v55  ;;  %v9250_v1 = vcombine.high %v1902_v47, %v1906_v48 }
  0xef   :  { %1806 = vmatprep.subr.bf16.mxu0 %v9023_v2  ;;  %1847 = vmatprep.subr.bf16.mxu1 %v9026_v3  ;;  %v1893_v2 = vld [vmem:[#allocation8 + $0x40] sm:$0xff] }
  0xf0   :  { %v1897_v3 = vld [vmem:[#allocation8 + $0x60] sm:$0xff] }
  0xf1   :  { %v9259_v18 = vcombine.high %v1893_v2, %v1897_v3  ;;  %v9265_v17 = vcombine.low %v1893_v2, %v1897_v3  ;;  %v9323_v3 = vcombine.high %v1936_v12, %v1940_v23 }
  0xf2   :  { %1807 = vmatpush1.bf16.msra.mxu0 %v9029_v31  ;;  %1848 = vmatpush1.bf16.msra.mxu1 %v9033_v32  ;;  %v1894_v31 = vld [vmem:[#allocation8 + $0x48] sm:$0xff] }
  0xf3   :  { %1808 = vmatprep.subr.bf16.mxu0 %v9035_v33  ;;  %1849 = vmatprep.subr.bf16.mxu1 %v9038_v34  ;;  %v1898_v32 = vld [vmem:[#allocation8 + $0x68] sm:$0xff]  ;;  %v9253_v33 = vcombine.low %v1901_v42, %v1905_v55  ;;  %v154_v34 = vlaneseq  ;;  %v9304_v42 = vcombine.low %v1943_v11, %v1947_v15  ;;  %11940 = vst [vmem:[#allocation32_spill] sm:$0xff] %v9323_v3 }
  0xf4   :  { %v9262_v57 = vcombine.high %v1894_v31, %v1898_v32  ;;  %v9271_v6 = vcombine.low %v1894_v31, %v1898_v32  ;;  %v1927_v31 = vld [vmem:[#allocation8 + $0x150] sm:$0xff]  ;;  %v9336_v15 = vcombine.low %v1935_v59, %v1939_v60 }
  0xf5   :  { %11936 = vst [vmem:[#allocation28_spill] sm:$0xff] %v9304_v42  ;;  %v1931_v32 = vld [vmem:[#allocation8 + $0x170] sm:$0xff] }
  0xf6   :  { %1809 = vmatpush1.bf16.msra.mxu0 %v9041_v50  ;;  %1850 = vmatpush1.bf16.msra.mxu1 %v9045_v0  ;;  %v9245_v50 = vcombine.low %v1910_v24, %v1914_v25  ;;  %v9257_v0 = vcombine.low %v1902_v47, %v1906_v48  ;;  %v9302_v25 = vld [vmem:[#allocation5 + $0xc] sm:$0xf]  ;;  %v9313_v47 = vcombine.low %v1944_v19, %v1948_v22 }
  0xf7   :  { %2311 = vmatprep.subr.bf16.mxu0 %v9185_v20  ;;  %2352 = vmatprep.subr.bf16.mxu1 %v9188_v21  ;;  %v9315_v48 = vcombine.high %v1935_v59, %v1939_v60  ;;  %11943 = vst [vmem:[#allocation33_spill] sm:$0xff] %v9336_v15  ;;  %v9351_v59 = vcombine.high %v1928_v13, %v1932_v14  ;;  %v1919_v60 = vld [vmem:[#allocation8 + $0x110] sm:$0xff] }
  0xf8   :  { %11937 = vst [vmem:[#allocation29_spill] sm:$0xff] %v9313_v47 }
  0xf9   :  { %1827 = vmatmul.mubr.bf16.vlgmr.msra.gmra.mxu0 %v1285_v4  ;;  %1868 = vmatmul.mubr.bf16.vlgmr.msra.gmra.mxu1 %v1285_v4  ;;  %v9267_v4 = vshrl.u32 %v154_v34, 7  ;;  %11938 = vst [vmem:[#allocation30_spill] sm:$0xff] %v9315_v48  ;;  %11947 = vst [vmem:[#allocation37_spill] sm:$0xff] %v9351_v59 }
  0xfa   :  { %2312 = vmatpush1.bf16.msra.mxu0 %v9191_v30  ;;  %2353 = vmatpush1.bf16.msra.mxu1 %v9195_v35 }
  0xfb   :  { %2313 = vmatprep.subr.bf16.mxu0 %v9197_v36  ;;  %2354 = vmatprep.subr.bf16.mxu1 %v9200_v37  ;;  %11934 = vst [vmem:[#allocation26_spill] sm:$0xff] %v9267_v4  ;;  %v11577_v28 = vsub.s32 0, %v9267_v4  ;;  %v11576_v43 = vsub.s32 2, %v9267_v4  ;;  %v11575_v54 = vsub.s32 1, %v9267_v4  ;;  %v11574_v61 = vsub.s32 3, %v9267_v4 }
  0xfc   :  { %2343 = vmatprep.mubr.bf16.mxu0 %v11922_v56  ;;  %2384 = vmatprep.mubr.bf16.mxu1 %v11922_v56 }
  0xfd   :  { %v9300_v24 = vrot.slane %v9286_v38, %v11577_v28  ;;  %v9310_v55 = vrot.slane %v9286_v38, %v11576_v43  ;;  %v9321_v2 = vrot.slane %v9286_v38, %v11575_v54  ;;  %v9329_v58 = vrot.slane %v9286_v38, %v11574_v61 }
  0xfe   :  { %2314 = vmatpush1.bf16.msra.mxu0 %v9203_v46  ;;  %2355 = vmatpush1.bf16.msra.mxu1 %v9207_v51  ;;  %v9343_v61 = vcombine.low %v1936_v12, %v1940_v23  ;;  %v9345_v54 = vcombine.high %v1927_v31, %v1931_v32  ;;  %v1920_v12 = vld [vmem:[#allocation8 + $0x118] sm:$0xff] }
  0xff   :  { %2315 = vmatprep.subr.bf16.mxu0 %v9209_v52  ;;  %2356 = vmatprep.subr.bf16.mxu1 %v9212_v53  ;;  %11939 = vst [vmem:[#allocation31_spill] sm:$0xff] %v9321_v2  ;;  %11941 = vst [vmem:[#allocation23_spill] sm:$0xff] %v9329_v58  ;;  %v1924_v23 = vld [vmem:[#allocation8 + $0x138] sm:$0xff] }
 0x100   :  { %11945 = vst [vmem:[#allocation35_spill] sm:$0xff] %v9345_v54 }
 0x102   :  { %2316 = vmatpush1.bf16.msra.mxu0 %v9217_v62  ;;  %2357 = vmatpush1.bf16.msra.mxu1 %v9221_v5 }
 0x103   :  { %2317 = vmatprep.subr.bf16.mxu0 %v9223_v7  ;;  %2358 = vmatprep.subr.bf16.mxu1 %v9226_v8 }
 0x106   :  { %2318 = vmatpush1.bf16.msra.mxu0 %v9229_v26  ;;  %2359 = vmatpush1.bf16.msra.mxu1 %v9233_v39 }
 0x107   :  { %2319 = vmatprep.subr.bf16.mxu0 %v9235_v40  ;;  %2360 = vmatprep.subr.bf16.mxu1 %v9238_v41 }
 0x10a   :  { %2320 = vmatpush1.bf16.msra.mxu0 %v9241_v49  ;;  %2361 = vmatpush1.bf16.msra.mxu1 %v9245_v50 }
 0x10b   :  { %2321 = vmatprep.subr.bf16.mxu0 %v9247_v63  ;;  %2362 = vmatprep.subr.bf16.mxu1 %v9250_v1 }
 0x10e   :  { %2322 = vmatpush1.bf16.msra.mxu0 %v9253_v33  ;;  %2363 = vmatpush1.bf16.msra.mxu1 %v9257_v0 }
 0x10f   :  { %2323 = vmatprep.subr.bf16.mxu0 %v9259_v18  ;;  %2364 = vmatprep.subr.bf16.mxu1 %v9262_v57 }
 0x112   :  { %2324 = vmatpush1.bf16.msra.mxu0 %v9265_v17  ;;  %2365 = vmatpush1.bf16.msra.mxu1 %v9271_v6 }
 0x113   :  { %2325 = vmatprep.subr.bf16.mxu0 %v9273_v9  ;;  %2366 = vmatprep.subr.bf16.mxu1 %v9276_v10 }
 0x116   :  { %2326 = vmatpush1.bf16.msra.mxu0 %v9279_v27  ;;  %2367 = vmatpush1.bf16.msra.mxu1 %v9284_v29 }
 0x117   :  { %2393 = vmatprep.subr.bf16.mxu0 %v9289_v44  ;;  %2434 = vmatprep.subr.bf16.mxu1 %v9292_v45 }
 0x119   :  { %v548_v34 = vpop.f32.mrf.mxu0  ;;  %2344 = vmatmul.mubr.bf16.vlgmr.msra.gmra.mxu0 %v9302_v25  ;;  %v589_v11 = vpop.f32.mrf.mxu1  ;;  %2385 = vmatmul.mubr.bf16.vlgmr.msra.gmra.mxu1 %v9302_v25 }
 0x11a   :  { %v9332_v16 = vadd.f32 %v548_v34, %v9300_v24  ;;  %2394 = vmatpush1.bf16.msra.mxu0 %v9304_v42  ;;  %v9339_v19 = vadd.f32 %v589_v11, %v9310_v55  ;;  %2435 = vmatpush1.bf16.msra.mxu1 %v9313_v47  ;;  %v1923_v11 = vld [vmem:[#allocation8 + $0x130] sm:$0xff] }
 0x11b   :  { %v550_v22 = vpop.f32.mrf.mxu0  ;;  %2395 = vmatprep.subr.bf16.mxu0 %v9315_v48  ;;  %v591_v43 = vpop.f32.mrf.mxu1  ;;  %2436 = vmatprep.subr.bf16.mxu1 %v9323_v3  ;;  %v9363_v3 = vcombine.low %v1928_v13, %v1932_v14 }
 0x11c   :  { %11942 = vst [vmem:[#allocation24_spill] sm:$0xff] %v9332_v16  ;;  %11944 = vst [vmem:[#allocation34_spill] sm:$0xff] %v9339_v19  ;;  %v9348_v34 = vadd.f32 %v550_v22, %v9321_v2  ;;  %2425 = vmatprep.mubr.bf16.mxu0 %v11922_v56  ;;  %v9355_v28 = vadd.f32 %v591_v43, %v9329_v58  ;;  %2466 = vmatprep.mubr.bf16.mxu1 %v11922_v56  ;;  %v1912_v58 = vld [vmem:[#allocation8 + $0xd8] sm:$0xff] }
 0x11d   :  { %v552_v19 = vpop.f32.mrf.mxu0  ;;  %v593_v16 = vpop.f32.mrf.mxu1  ;;  %v9359_v22 = vcombine.low %v1927_v31, %v1931_v32  ;;  %11950 = vst [vmem:[#allocation40_spill] sm:$0xff] %v9363_v3  ;;  %v9365_v2 = vcombine.high %v1919_v60, %v1923_v11  ;;  %v9371_v31 = vcombine.low %v1919_v60, %v1923_v11  ;;  %v9375_v32 = vcombine.low %v1920_v12, %v1924_v23 }
 0x11e   :  { %11946 = vst [vmem:[#allocation36_spill] sm:$0xff] %v9348_v34  ;;  %11948 = vst [vmem:[#allocation38_spill] sm:$0xff] %v9355_v28  ;;  %2396 = vmatpush1.bf16.msra.mxu0 %v9336_v15  ;;  %2437 = vmatpush1.bf16.msra.mxu1 %v9343_v61  ;;  %v9368_v19 = vcombine.high %v1920_v12, %v1924_v23  ;;  %v1911_v28 = vld [vmem:[#allocation8 + $0xd0] sm:$0xff]  ;;  %v1916_v15 = vld [vmem:[#allocation8 + $0xf8] sm:$0xff] }
 0x11f   :  { %11949 = vst [vmem:[#allocation39_spill] sm:$0xff] %v9359_v22  ;;  %v553_v34 = vpop.f32.mrf.mxu0  ;;  %2397 = vmatprep.subr.bf16.mxu0 %v9345_v54  ;;  %11951 = vst [vmem:[#allocation41_spill] sm:$0xff] %v9365_v2  ;;  %v594_v43 = vpop.f32.mrf.mxu1  ;;  %2438 = vmatprep.subr.bf16.mxu1 %v9351_v59  ;;  %v1915_v16 = vld [vmem:[#allocation8 + $0xf0] sm:$0xff]  ;;  %v9380_v14 = vcombine.high %v1912_v58, %v1916_v15  ;;  %v1904_v59 = vld [vmem:[#allocation8 + $0x98] sm:$0xff]  ;;  %v9387_v11 = vcombine.low %v1912_v58, %v1916_v15 }
 0x120   :  { %11952 = vst [vmem:[#allocation42_spill] sm:$0xff] %v9368_v19  ;;  %11953 = vst [vmem:[#allocation43_spill] sm:$0xff] %v9371_v31  ;;  %v9377_v13 = vcombine.high %v1911_v28, %v1915_v16  ;;  %v1903_v34 = vld [vmem:[#allocation8 + $0x90] sm:$0xff]  ;;  %v1908_v54 = vld [vmem:[#allocation8 + $0xb8] sm:$0xff]  ;;  %v9383_v60 = vcombine.low %v1911_v28, %v1915_v16 }
 0x121   :  { %11954 = vst [vmem:[#allocation44_spill] sm:$0xff] %v9375_v32  ;;  %11956 = vst [vmem:[#allocation46_spill] sm:$0xff] %v9380_v14  ;;  %v1907_v43 = vld [vmem:[#allocation8 + $0xb0] sm:$0xff]  ;;  %v9392_v23 = vcombine.high %v1904_v59, %v1908_v54  ;;  %v9399_v58 = vcombine.low %v1904_v59, %v1908_v54 }
 0x122   :  { %2398 = vmatpush1.bf16.msra.mxu0 %v9359_v22  ;;  %2439 = vmatpush1.bf16.msra.mxu1 %v9363_v3  ;;  %11955 = vst [vmem:[#allocation45_spill] sm:$0xff] %v9377_v13  ;;  %v9389_v12 = vcombine.high %v1903_v34, %v1907_v43  ;;  %v1896_v3 = vld [vmem:[#allocation8 + $0x58] sm:$0xff]  ;;  %v9395_v28 = vcombine.low %v1903_v34, %v1907_v43 }
 0x123   :  { %2399 = vmatprep.subr.bf16.mxu0 %v9365_v2  ;;  %2440 = vmatprep.subr.bf16.mxu1 %v9368_v19  ;;  %11958 = vst [vmem:[#allocation48_spill] sm:$0xff] %v9392_v23  ;;  %v1895_v19 = vld [vmem:[#allocation8 + $0x50] sm:$0xff]  ;;  %v1900_v22 = vld [vmem:[#allocation8 + $0x78] sm:$0xff]  ;;  %11960 = vst [vmem:[#allocation50_spill] sm:$0xff] %v9399_v58 }
 0x124   :  { %11957 = vst [vmem:[#allocation47_spill] sm:$0xff] %v9389_v12  ;;  %v1899_v2 = vld [vmem:[#allocation8 + $0x70] sm:$0xff]  ;;  %11959 = vst [vmem:[#allocation49_spill] sm:$0xff] %v9395_v28  ;;  %v9404_v16 = vcombine.high %v1896_v3, %v1900_v22  ;;  %v9411_v54 = vcombine.low %v1896_v3, %v1900_v22  ;;  %v11611_v3 = vsub.s32 6, %v9267_v4  ;;  %v11615_v22 = vsub.s32 5, %v9267_v4 }
 0x125   :  { %v9401_v15 = vcombine.high %v1895_v19, %v1899_v2  ;;  %v9407_v34 = vcombine.low %v1895_v19, %v1899_v2  ;;  %v11618_v19 = vsub.s32 7, %v9267_v4 }
 0x126   :  { %2400 = vmatpush1.bf16.msra.mxu0 %v9371_v31  ;;  %2441 = vmatpush1.bf16.msra.mxu1 %v9375_v32  ;;  %11961 = vst [vmem:[#allocation51_spill] sm:$0xff] %v9404_v16  ;;  %v1888_v32 = vld [vmem:[#allocation8 + $0x18] sm:$0xff] }
 0x127   :  { %2401 = vmatprep.subr.bf16.mxu0 %v9377_v13  ;;  %2442 = vmatprep.subr.bf16.mxu1 %v9380_v14  ;;  %v1887_v14 = vld [vmem:[#allocation8 + $0x10] sm:$0xff]  ;;  %v1892_v31 = vld [vmem:[#allocation8 + $0x38] sm:$0xff]  ;;  %11962 = vst [vmem:[#allocation52_spill] sm:$0xff] %v9407_v34 }
 0x128   :  { %v1891_v13 = vld [vmem:[#allocation8 + $0x30] sm:$0xff]  ;;  %v9416_v43 = vcombine.high %v1888_v32, %v1892_v31  ;;  %v9424_v2 = vcombine.low %v1888_v32, %v1892_v31  ;;  %v9440_v31 = vrot.slane %v9286_v38, %v11611_v3  ;;  %v9447_v32 = vrot.slane %v9286_v38, %v11615_v22 }
 0x129   :  { %v9413_v59 = vcombine.high %v1887_v14, %v1891_v13 }
 0x12a   :  { %2402 = vmatpush1.bf16.msra.mxu0 %v9383_v60  ;;  %2443 = vmatpush1.bf16.msra.mxu1 %v9387_v11  ;;  %11965 = vst [vmem:[#allocation55_spill] sm:$0xff] %v9424_v2 }
 0x12b   :  { %2403 = vmatprep.subr.bf16.mxu0 %v9389_v12  ;;  %2444 = vmatprep.subr.bf16.mxu1 %v9392_v23  ;;  %11963 = vst [vmem:[#allocation53_spill] sm:$0xff] %v9413_v59  ;;  %v9419_v23 = vcombine.low %v1887_v14, %v1891_v13 }
 0x12d   :  { %11964 = vst [vmem:[#allocation54_spill] sm:$0xff] %v9419_v23 }
 0x12e   :  { %2404 = vmatpush1.bf16.msra.mxu0 %v9395_v28  ;;  %2445 = vmatpush1.bf16.msra.mxu1 %v9399_v58  ;;  %v11610_v28 = vsub.s32 4, %v9267_v4 }
 0x12f   :  { %2405 = vmatprep.subr.bf16.mxu0 %v9401_v15  ;;  %2446 = vmatprep.subr.bf16.mxu1 %v9404_v16 }
 0x130   :  { %v9434_v13 = vrot.slane %v9286_v38, %v11610_v28  ;;  %v9453_v28 = vrot.slane %v9286_v38, %v11618_v19 }
 0x132   :  { %2406 = vmatpush1.bf16.msra.mxu0 %v9407_v34  ;;  %2447 = vmatpush1.bf16.msra.mxu1 %v9411_v54 }
 0x133   :  { %2407 = vmatprep.subr.bf16.mxu0 %v9413_v59  ;;  %2448 = vmatprep.subr.bf16.mxu1 %v9416_v43 }
 0x136   :  { %2408 = vmatpush1.bf16.msra.mxu0 %v9419_v23  ;;  %2449 = vmatpush1.bf16.msra.mxu1 %v9424_v2 }
 0x137   :  { %2910 = vmatprep.subr.bf16.mxu0 %v9185_v20  ;;  %2951 = vmatprep.subr.bf16.mxu1 %v9188_v21 }
 0x139   :  { %v630_v14 = vpop.f32.mrf.mxu0  ;;  %2426 = vmatmul.mubr.bf16.vlgmr.msra.gmra.mxu0 %v9302_v25  ;;  %v671_v2 = vpop.f32.mrf.mxu1  ;;  %2467 = vmatmul.mubr.bf16.vlgmr.msra.gmra.mxu1 %v9302_v25 }
 0x13a   :  { %v9456_v3 = vadd.f32 %v630_v14, %v9434_v13  ;;  %2911 = vmatpush1.bf16.msra.mxu0 %v9191_v30  ;;  %v9461_v21 = vadd.f32 %v671_v2, %v9440_v31  ;;  %2952 = vmatpush1.bf16.msra.mxu1 %v9195_v35 }
 0x13b   :  { %v632_v22 = vpop.f32.mrf.mxu0  ;;  %2912 = vmatprep.subr.bf16.mxu0 %v9197_v36  ;;  %v673_v38 = vpop.f32.mrf.mxu1  ;;  %2953 = vmatprep.subr.bf16.mxu1 %v9200_v37 }
 0x13c   :  { %11966 = vst [vmem:[#allocation56_spill] sm:$0xff] %v9456_v3  ;;  %11967 = vst [vmem:[#allocation57_spill] sm:$0xff] %v9461_v21  ;;  %v9466_v4 = vadd.f32 %v632_v22, %v9447_v32  ;;  %2942 = vmatprep.mubr.bf16.mxu0 %v11922_v56  ;;  %v9471_v25 = vadd.f32 %v673_v38, %v9453_v28  ;;  %2983 = vmatprep.mubr.bf16.mxu1 %v11922_v56 }
 0x13d   :  { %v634_v14 = vpop.f32.mrf.mxu0  ;;  %v675_v2 = vpop.f32.mrf.mxu1 }
 0x13e   :  { %11968 = vst [vmem:[#allocation58_spill] sm:$0xff] %v9466_v4  ;;  %11969 = vst [vmem:[#allocation59_spill] sm:$0xff] %v9471_v25  ;;  %2913 = vmatpush1.bf16.msra.mxu0 %v9203_v46  ;;  %2954 = vmatpush1.bf16.msra.mxu1 %v9207_v51  ;;  %v11972_v4 = vld [vmem:[#allocation31_spill] sm:$0xff] }
 0x13f   :  { %v635_v19 = vpop.f32.mrf.mxu0  ;;  %2914 = vmatprep.subr.bf16.mxu0 %v9209_v52  ;;  %v676_v22 = vpop.f32.mrf.mxu1  ;;  %2955 = vmatprep.subr.bf16.mxu1 %v9212_v53 }
 0x140   :  { %v2483_v19 = vld [vmem:[#allocation5 + $0x10] sm:$0xf] }
 0x142   :  { %2915 = vmatpush1.bf16.msra.mxu0 %v9217_v62  ;;  %2956 = vmatpush1.bf16.msra.mxu1 %v9221_v5 }
 0x143   :  { %2916 = vmatprep.subr.bf16.mxu0 %v9223_v7  ;;  %2957 = vmatprep.subr.bf16.mxu1 %v9226_v8 }
 0x146   :  { %2917 = vmatpush1.bf16.msra.mxu0 %v9229_v26  ;;  %2958 = vmatpush1.bf16.msra.mxu1 %v9233_v39 }
 0x147   :  { %2918 = vmatprep.subr.bf16.mxu0 %v9235_v40  ;;  %2959 = vmatprep.subr.bf16.mxu1 %v9238_v41 }
 0x14a   :  { %2919 = vmatpush1.bf16.msra.mxu0 %v9241_v49  ;;  %2960 = vmatpush1.bf16.msra.mxu1 %v9245_v50 }
 0x14b   :  { %2920 = vmatprep.subr.bf16.mxu0 %v9247_v63  ;;  %2961 = vmatprep.subr.bf16.mxu1 %v9250_v1 }
 0x14e   :  { %2921 = vmatpush1.bf16.msra.mxu0 %v9253_v33  ;;  %2962 = vmatpush1.bf16.msra.mxu1 %v9257_v0 }
 0x14f   :  { %2922 = vmatprep.subr.bf16.mxu0 %v9259_v18  ;;  %2963 = vmatprep.subr.bf16.mxu1 %v9262_v57 }
 0x152   :  { %2923 = vmatpush1.bf16.msra.mxu0 %v9265_v17  ;;  %2964 = vmatpush1.bf16.msra.mxu1 %v9271_v6 }
 0x153   :  { %2924 = vmatprep.subr.bf16.mxu0 %v9273_v9  ;;  %2965 = vmatprep.subr.bf16.mxu1 %v9276_v10 }
 0x156   :  { %2925 = vmatpush1.bf16.msra.mxu0 %v9279_v27  ;;  %2966 = vmatpush1.bf16.msra.mxu1 %v9284_v29 }
 0x157   :  { %2992 = vmatprep.subr.bf16.mxu0 %v9289_v44  ;;  %3033 = vmatprep.subr.bf16.mxu1 %v9292_v45  ;;  %v11974_v45 = vld [vmem:[#allocation32_spill] sm:$0xff] }
 0x159   :  { %v1147_v38 = vpop.f32.mrf.mxu0  ;;  %2943 = vmatmul.mubr.bf16.vlgmr.msra.gmra.mxu0 %v2483_v19  ;;  %v1188_v2 = vpop.f32.mrf.mxu1  ;;  %2984 = vmatmul.mubr.bf16.vlgmr.msra.gmra.mxu1 %v2483_v19 }
 0x15a   :  { %v9503_v14 = vadd.f32 %v1147_v38, %v9300_v24  ;;  %2993 = vmatpush1.bf16.msra.mxu0 %v9304_v42  ;;  %v9507_v22 = vadd.f32 %v1188_v2, %v9310_v55  ;;  %3034 = vmatpush1.bf16.msra.mxu1 %v9313_v47  ;;  %v11975_v38 = vld [vmem:[#allocation23_spill] sm:$0xff] }
 0x15b   :  { %v1149_v25 = vpop.f32.mrf.mxu0  ;;  %2994 = vmatprep.subr.bf16.mxu0 %v9315_v48  ;;  %v1190_v3 = vpop.f32.mrf.mxu1  ;;  %3035 = vmatprep.subr.bf16.mxu1 %v11974_v45  ;;  %v11978_v47 = vld [vmem:[#allocation35_spill] sm:$0xff] }
 0x15c   :  { %11970 = vst [vmem:[#allocation60_spill] sm:$0xff] %v9503_v14  ;;  %11971 = vst [vmem:[#allocation61_spill] sm:$0xff] %v9507_v22  ;;  %v9512_v21 = vadd.f32 %v1149_v25, %v11972_v4  ;;  %3024 = vmatprep.mubr.bf16.mxu0 %v11922_v56  ;;  %v9517_v14 = vadd.f32 %v1190_v3, %v11975_v38  ;;  %3065 = vmatprep.mubr.bf16.mxu1 %v11922_v56  ;;  %v11977_v22 = vld [vmem:[#allocation33_spill] sm:$0xff]  ;;  %v11980_v45 = vld [vmem:[#allocation39_spill] sm:$0xff] }
 0x15d   :  { %v1151_v42 = vpop.f32.mrf.mxu0  ;;  %v1192_v2 = vpop.f32.mrf.mxu1  ;;  %v11981_v4 = vld [vmem:[#allocation40_spill] sm:$0xff]  ;;  %v11982_v3 = vld [vmem:[#allocation41_spill] sm:$0xff] }
 0x15e   :  { %11973 = vst [vmem:[#allocation62_spill] sm:$0xff] %v9512_v21  ;;  %11976 = vst [vmem:[#allocation23_spill] sm:$0xff] %v9517_v14  ;;  %2995 = vmatpush1.bf16.msra.mxu0 %v11977_v22  ;;  %3036 = vmatpush1.bf16.msra.mxu1 %v9343_v61  ;;  %v11979_v21 = vld [vmem:[#allocation37_spill] sm:$0xff]  ;;  %v11983_v42 = vld [vmem:[#allocation42_spill] sm:$0xff] }
 0x15f   :  { %v1152_v48 = vpop.f32.mrf.mxu0  ;;  %2996 = vmatprep.subr.bf16.mxu0 %v11978_v47  ;;  %v1193_v25 = vpop.f32.mrf.mxu1  ;;  %3037 = vmatprep.subr.bf16.mxu1 %v11979_v21  ;;  %v11984_v14 = vld [vmem:[#allocation43_spill] sm:$0xff]  ;;  %v11985_v2 = vld [vmem:[#allocation44_spill] sm:$0xff]  ;;  %v11986_v22 = vld [vmem:[#allocation45_spill] sm:$0xff] }
 0x160   :  { %v11987_v48 = vld [vmem:[#allocation46_spill] sm:$0xff]  ;;  %v11988_v25 = vld [vmem:[#allocation48_spill] sm:$0xff] }
 0x162   :  { %2997 = vmatpush1.bf16.msra.mxu0 %v11980_v45  ;;  %3038 = vmatpush1.bf16.msra.mxu1 %v11981_v4  ;;  %v11989_v4 = vld [vmem:[#allocation49_spill] sm:$0xff] }
 0x163   :  { %2998 = vmatprep.subr.bf16.mxu0 %v11982_v3  ;;  %3039 = vmatprep.subr.bf16.mxu1 %v11983_v42 }
 0x166   :  { %2999 = vmatpush1.bf16.msra.mxu0 %v11984_v14  ;;  %3040 = vmatpush1.bf16.msra.mxu1 %v11985_v2 }
 0x167   :  { %3000 = vmatprep.subr.bf16.mxu0 %v11986_v22  ;;  %3041 = vmatprep.subr.bf16.mxu1 %v11987_v48 }
 0x16a   :  { %3001 = vmatpush1.bf16.msra.mxu0 %v9383_v60  ;;  %3042 = vmatpush1.bf16.msra.mxu1 %v9387_v11 }
 0x16b   :  { %3002 = vmatprep.subr.bf16.mxu0 %v9389_v12  ;;  %3043 = vmatprep.subr.bf16.mxu1 %v11988_v25  ;;  %v11990_v12 = vld [vmem:[#allocation55_spill] sm:$0xff] }
 0x16e   :  { %3003 = vmatpush1.bf16.msra.mxu0 %v11989_v4  ;;  %3044 = vmatpush1.bf16.msra.mxu1 %v9399_v58  ;;  %v11991_v4 = vld [vmem:[#allocation25_spill] sm:$0xff] }
 0x16f   :  { %3004 = vmatprep.subr.bf16.mxu0 %v9401_v15  ;;  %3045 = vmatprep.subr.bf16.mxu1 %v9404_v16 }
 0x172   :  { %3005 = vmatpush1.bf16.msra.mxu0 %v9407_v34  ;;  %3046 = vmatpush1.bf16.msra.mxu1 %v9411_v54 }
 0x173   :  { %3006 = vmatprep.subr.bf16.mxu0 %v9413_v59  ;;  %3047 = vmatprep.subr.bf16.mxu1 %v9416_v43 }
 0x176   :  { %3007 = vmatpush1.bf16.msra.mxu0 %v9419_v23  ;;  %3048 = vmatpush1.bf16.msra.mxu1 %v11990_v12 }
 0x177   :  { %3509 = vmatprep.subr.bf16.mxu0 %v9185_v20  ;;  %3550 = vmatprep.subr.bf16.mxu1 %v11991_v4 }
 0x179   :  { %v1229_v58 = vpop.f32.mrf.mxu0  ;;  %3025 = vmatmul.mubr.bf16.vlgmr.msra.gmra.mxu0 %v2483_v19  ;;  %v1270_v34 = vpop.f32.mrf.mxu1  ;;  %3066 = vmatmul.mubr.bf16.vlgmr.msra.gmra.mxu1 %v2483_v19 }
 0x17a   :  { %v9549_v16 = vadd.f32 %v1229_v58, %v9434_v13  ;;  %3510 = vmatpush1.bf16.msra.mxu0 %v9191_v30  ;;  %v9553_v59 = vadd.f32 %v1270_v34, %v9440_v31  ;;  %3551 = vmatpush1.bf16.msra.mxu1 %v9195_v35 }
 0x17b   :  { %v1231_v23 = vpop.f32.mrf.mxu0  ;;  %3511 = vmatprep.subr.bf16.mxu0 %v9197_v36  ;;  %v1272_v4 = vpop.f32.mrf.mxu1  ;;  %3552 = vmatprep.subr.bf16.mxu1 %v9200_v37  ;;  %v9591_v37 = vld [vmem:[#allocation5 + $0x14] sm:$0xf] }
 0x17c   :  { %11992 = vst [vmem:[#allocation35_spill] sm:$0xff] %v9549_v16  ;;  %11993 = vst [vmem:[#allocation37_spill] sm:$0xff] %v9553_v59  ;;  %v9558_v20 = vadd.f32 %v1231_v23, %v9447_v32  ;;  %3541 = vmatprep.mubr.bf16.mxu0 %v11922_v56  ;;  %v9563_v58 = vadd.f32 %v1272_v4, %v9453_v28  ;;  %3582 = vmatprep.mubr.bf16.mxu1 %v11922_v56  ;;  %v3735_v23 = vld [vmem:[#allocation8 + $0x1a8] sm:$0xff] }
 0x17d   :  { %v1233_v30 = vpop.f32.mrf.mxu0  ;;  %v1274_v34 = vpop.f32.mrf.mxu1 }
 0x17e   :  { %11994 = vst [vmem:[#allocation39_spill] sm:$0xff] %v9558_v20  ;;  %11995 = vst [vmem:[#allocation41_spill] sm:$0xff] %v9563_v58  ;;  %3512 = vmatpush1.bf16.msra.mxu0 %v9203_v46  ;;  %3553 = vmatpush1.bf16.msra.mxu1 %v9207_v51  ;;  %v11996_v46 = vld [vmem:[#allocation27_spill] sm:$0xff] }
 0x17f   :  { %v1234_v35 = vpop.f32.mrf.mxu0  ;;  %3513 = vmatprep.subr.bf16.mxu0 %v9209_v52  ;;  %v1275_v36 = vpop.f32.mrf.mxu1  ;;  %3554 = vmatprep.subr.bf16.mxu1 %v9212_v53 }
 0x182   :  { %3514 = vmatpush1.bf16.msra.mxu0 %v9217_v62  ;;  %3555 = vmatpush1.bf16.msra.mxu1 %v9221_v5  ;;  %v11998_v62 = vld [vmem:[#allocation28_spill] sm:$0xff] }
 0x183   :  { %3515 = vmatprep.subr.bf16.mxu0 %v9223_v7  ;;  %3556 = vmatprep.subr.bf16.mxu1 %v9226_v8  ;;  %v12000_v7 = vld [vmem:[#allocation29_spill] sm:$0xff] }
 0x186   :  { %3516 = vmatpush1.bf16.msra.mxu0 %v9229_v26  ;;  %3557 = vmatpush1.bf16.msra.mxu1 %v9233_v39  ;;  %v12001_v26 = vld [vmem:[#allocation30_spill] sm:$0xff]  ;;  %v12002_v39 = vld [vmem:[#allocation31_spill] sm:$0xff] }
 0x187   :  { %3517 = vmatprep.subr.bf16.mxu0 %v9235_v40  ;;  %3558 = vmatprep.subr.bf16.mxu1 %v9238_v41 }
 0x18a   :  { %3518 = vmatpush1.bf16.msra.mxu0 %v9241_v49  ;;  %3559 = vmatpush1.bf16.msra.mxu1 %v9245_v50  ;;  %v12004_v49 = vld [vmem:[#allocation32_spill] sm:$0xff] }
 0x18b   :  { %3519 = vmatprep.subr.bf16.mxu0 %v9247_v63  ;;  %3560 = vmatprep.subr.bf16.mxu1 %v9250_v1 }
 0x18e   :  { %3520 = vmatpush1.bf16.msra.mxu0 %v9253_v33  ;;  %3561 = vmatpush1.bf16.msra.mxu1 %v9257_v0  ;;  %v12006_v33 = vld [vmem:[#allocation33_spill] sm:$0xff] }
 0x18f   :  { %3521 = vmatprep.subr.bf16.mxu0 %v9259_v18  ;;  %3562 = vmatprep.subr.bf16.mxu1 %v9262_v57  ;;  %v12007_v57 = vld [vmem:[#allocation40_spill] sm:$0xff] }
 0x192   :  { %3522 = vmatpush1.bf16.msra.mxu0 %v9265_v17  ;;  %3563 = vmatpush1.bf16.msra.mxu1 %v9271_v6  ;;  %v12009_v17 = vld [vmem:[#allocation49_spill] sm:$0xff]  ;;  %v12010_v6 = vld [vmem:[#allocation50_spill] sm:$0xff] }
 0x193   :  { %3523 = vmatprep.subr.bf16.mxu0 %v9273_v9  ;;  %3564 = vmatprep.subr.bf16.mxu1 %v9276_v10  ;;  %v12011_v9 = vld [vmem:[#allocation51_spill] sm:$0xff]  ;;  %v3738_v10 = vld [vmem:[#allocation8 + $0x1c0] sm:$0xff] }
 0x196   :  { %3524 = vmatpush1.bf16.msra.mxu0 %v9279_v27  ;;  %3565 = vmatpush1.bf16.msra.mxu1 %v9284_v29  ;;  %v3742_v27 = vld [vmem:[#allocation8 + $0x1e0] sm:$0xff]  ;;  %v3739_v29 = vld [vmem:[#allocation8 + $0x1c8] sm:$0xff] }
 0x197   :  { %3591 = vmatprep.subr.bf16.mxu0 %v9289_v44  ;;  %3632 = vmatprep.subr.bf16.mxu1 %v11996_v46  ;;  %v3743_v44 = vld [vmem:[#allocation8 + $0x1e8] sm:$0xff]  ;;  %v9645_v19 = vcombine.low %v3738_v10, %v3742_v27  ;;  %v3714_v46 = vld [vmem:[#allocation8 + $0x100] sm:$0xff] }
 0x199   :  { %v1746_v51 = vpop.f32.mrf.mxu0  ;;  %3542 = vmatmul.mubr.bf16.vlgmr.msra.gmra.mxu0 %v9591_v37  ;;  %v1787_v53 = vpop.f32.mrf.mxu1  ;;  %3583 = vmatmul.mubr.bf16.vlgmr.msra.gmra.mxu1 %v9591_v37 }
 0x19a   :  { %v9598_v52 = vadd.f32 %v1746_v51, %v9300_v24  ;;  %3592 = vmatpush1.bf16.msra.mxu0 %v11998_v62  ;;  %v9603_v5 = vadd.f32 %v1787_v53, %v9310_v55  ;;  %3633 = vmatpush1.bf16.msra.mxu1 %v12000_v7  ;;  %v9639_v24 = vcombine.high %v3738_v10, %v3742_v27  ;;  %v3715_v62 = vld [vmem:[#allocation8 + $0x108] sm:$0xff] }
 0x19b   :  { %v1748_v8 = vpop.f32.mrf.mxu0  ;;  %3593 = vmatprep.subr.bf16.mxu0 %v12001_v26  ;;  %v1789_v41 = vpop.f32.mrf.mxu1  ;;  %3634 = vmatprep.subr.bf16.mxu1 %v12004_v49  ;;  %v9642_v55 = vcombine.high %v3739_v29, %v3743_v44  ;;  %v3719_v7 = vld [vmem:[#allocation8 + $0x128] sm:$0xff] }
 0x19c   :  { %11997 = vst [vmem:[#allocation42_spill] sm:$0xff] %v9598_v52  ;;  %11999 = vst [vmem:[#allocation43_spill] sm:$0xff] %v9603_v5  ;;  %v9608_v40 = vadd.f32 %v1748_v8, %v12002_v39  ;;  %3623 = vmatprep.mubr.bf16.mxu0 %v11922_v56  ;;  %v9613_v50 = vadd.f32 %v1789_v41, %v11975_v38  ;;  %3664 = vmatprep.mubr.bf16.mxu1 %v11922_v56  ;;  %v3726_v38 = vld [vmem:[#allocation8 + $0x160] sm:$0xff]  ;;  %v3699_v10 = vld [vmem:[#allocation8 + $0x88] sm:$0xff] }
 0x19d   :  { %v1750_v63 = vpop.f32.mrf.mxu0  ;;  %v1791_v1 = vpop.f32.mrf.mxu1  ;;  %v9694_v49 = vcombine.high %v3715_v62, %v3719_v7  ;;  %v3703_v27 = vld [vmem:[#allocation8 + $0xa8] sm:$0xff] }
 0x19e   :  { %12003 = vst [vmem:[#allocation44_spill] sm:$0xff] %v9608_v40  ;;  %12005 = vst [vmem:[#allocation45_spill] sm:$0xff] %v9613_v50  ;;  %3594 = vmatpush1.bf16.msra.mxu0 %v12006_v33  ;;  %3635 = vmatpush1.bf16.msra.mxu1 %v9343_v61  ;;  %v12013_v61 = vld [vmem:[#allocation53_spill] sm:$0xff]  ;;  %v3707_v33 = vld [vmem:[#allocation8 + $0xc8] sm:$0xff] }
 0x19f   :  { %v1751_v0 = vpop.f32.mrf.mxu0  ;;  %3595 = vmatprep.subr.bf16.mxu0 %v11978_v47  ;;  %v1792_v18 = vpop.f32.mrf.mxu1  ;;  %3636 = vmatprep.subr.bf16.mxu1 %v11979_v21  ;;  %v12008_v21 = vld [vmem:[#allocation47_spill] sm:$0xff]  ;;  %v3730_v47 = vld [vmem:[#allocation8 + $0x180] sm:$0xff]  ;;  %v3729_v50 = vld [vmem:[#allocation8 + $0x178] sm:$0xff] }
 0x1a0   :  { %v3706_v63 = vld [vmem:[#allocation8 + $0xc0] sm:$0xff]  ;;  %v3711_v0 = vld [vmem:[#allocation8 + $0xe8] sm:$0xff] }
 0x1a1   :  { %v3710_v1 = vld [vmem:[#allocation8 + $0xe0] sm:$0xff] }
 0x1a2   :  { %3596 = vmatpush1.bf16.msra.mxu0 %v11980_v45  ;;  %3637 = vmatpush1.bf16.msra.mxu1 %v12007_v57  ;;  %v12012_v45 = vld [vmem:[#allocation52_spill] sm:$0xff]  ;;  %v9701_v57 = vcombine.low %v3715_v62, %v3719_v7  ;;  %v3740_v62 = vld [vmem:[#allocation8 + $0x1d0] sm:$0xff] }
 0x1a3   :  { %3597 = vmatprep.subr.bf16.mxu0 %v11982_v3  ;;  %3638 = vmatprep.subr.bf16.mxu1 %v11983_v42  ;;  %v3723_v42 = vld [vmem:[#allocation8 + $0x148] sm:$0xff]  ;;  %v3744_v7 = vld [vmem:[#allocation8 + $0x1f0] sm:$0xff] }
 0x1a6   :  { %3598 = vmatpush1.bf16.msra.mxu0 %v11984_v14  ;;  %3639 = vmatpush1.bf16.msra.mxu1 %v11985_v2  ;;  %v3727_v2 = vld [vmem:[#allocation8 + $0x168] sm:$0xff] }
 0x1a7   :  { %3599 = vmatprep.subr.bf16.mxu0 %v11986_v22  ;;  %3640 = vmatprep.subr.bf16.mxu1 %v11987_v48  ;;  %v3722_v22 = vld [vmem:[#allocation8 + $0x140] sm:$0xff]  ;;  %v9689_v39 = vcombine.low %v3723_v42, %v3727_v2 }
 0x1a8   :  { %v9671_v35 = vcombine.high %v3722_v22, %v3726_v38 }
 0x1aa   :  { %3600 = vmatpush1.bf16.msra.mxu0 %v9383_v60  ;;  %3641 = vmatpush1.bf16.msra.mxu1 %v9387_v11  ;;  %v3734_v60 = vld [vmem:[#allocation8 + $0x1a0] sm:$0xff]  ;;  %v3731_v11 = vld [vmem:[#allocation8 + $0x188] sm:$0xff] }
 0x1ab   :  { %3601 = vmatprep.subr.bf16.mxu0 %v12008_v21  ;;  %3642 = vmatprep.subr.bf16.mxu1 %v11988_v25  ;;  %v9651_v14 = vcombine.high %v3730_v47, %v3734_v60  ;;  %v9662_v25 = vcombine.low %v3730_v47, %v3734_v60  ;;  %v9669_v34 = vcombine.low %v3731_v11, %v3735_v23  ;;  %v3690_v47 = vld [vmem:[#allocation8 + $0x40] sm:$0xff] }
 0x1ac   :  { %v9703_v21 = vcombine.high %v3706_v63, %v3710_v1  ;;  %v3694_v60 = vld [vmem:[#allocation8 + $0x60] sm:$0xff] }
 0x1ae   :  { %3602 = vmatpush1.bf16.msra.mxu0 %v12009_v17  ;;  %3643 = vmatpush1.bf16.msra.mxu1 %v12010_v6  ;;  %v9706_v17 = vcombine.high %v3707_v33, %v3711_v0  ;;  %v3698_v6 = vld [vmem:[#allocation8 + $0x80] sm:$0xff] }
 0x1af   :  { %3603 = vmatprep.subr.bf16.mxu0 %v9401_v15  ;;  %3644 = vmatprep.subr.bf16.mxu1 %v12011_v9  ;;  %v12014_v15 = vld [vmem:[#allocation54_spill] sm:$0xff]  ;;  %v3702_v9 = vld [vmem:[#allocation8 + $0xa0] sm:$0xff] }
 0x1b2   :  { %3604 = vmatpush1.bf16.msra.mxu0 %v12012_v45  ;;  %3645 = vmatpush1.bf16.msra.mxu1 %v9411_v54  ;;  %v9649_v54 = vcombine.low %v3739_v29, %v3743_v44  ;;  %v9709_v29 = vcombine.low %v3706_v63, %v3710_v1  ;;  %v9713_v44 = vcombine.low %v3707_v33, %v3711_v0  ;;  %v9751_v1 = vld [vmem:[#allocation10] sm:$0xff] }
 0x1b3   :  { %3605 = vmatprep.subr.bf16.mxu0 %v12013_v61  ;;  %3646 = vmatprep.subr.bf16.mxu1 %v9416_v43  ;;  %v9654_v43 = vcombine.high %v3731_v11, %v3735_v23  ;;  %v9715_v45 = vcombine.high %v3698_v6, %v3702_v9  ;;  %v9718_v61 = vcombine.high %v3699_v10, %v3703_v27  ;;  %v3691_v11 = vld [vmem:[#allocation8 + $0x48] sm:$0xff] }
 0x1b4   :  { %v3695_v23 = vld [vmem:[#allocation8 + $0x68] sm:$0xff]  ;;  %v9753_v33 = vcombine.high %v3740_v62, %v3744_v7 }
 0x1b6   :  { %3606 = vmatpush1.bf16.msra.mxu0 %v12014_v15  ;;  %3647 = vmatpush1.bf16.msra.mxu1 %v11990_v12  ;;  %v9721_v15 = vcombine.low %v3698_v6, %v3702_v9  ;;  %v3732_v6 = vld [vmem:[#allocation8 + $0x190] sm:$0xff] }
 0x1b7   :  { %4108 = vmatprep.subr.bf16.mxu0 %v9639_v24  ;;  %4149 = vmatprep.subr.bf16.mxu1 %v9642_v55  ;;  %v3736_v9 = vld [vmem:[#allocation8 + $0x1b0] sm:$0xff] }
 0x1b9   :  { %v1828_v3 = vpop.f32.mrf.mxu0  ;;  %3624 = vmatmul.mubr.bf16.vlgmr.msra.gmra.mxu0 %v9591_v37  ;;  %v1869_v12 = vpop.f32.mrf.mxu1  ;;  %3665 = vmatmul.mubr.bf16.vlgmr.msra.gmra.mxu1 %v9591_v37  ;;  %v9677_v37 = vcombine.high %v3723_v42, %v3727_v2  ;;  %v3682_v42 = vld [vmem:[#allocation8] sm:$0xff] }
 0x1ba   :  { %v9658_v48 = vadd.f32 %v1828_v3, %v9434_v13  ;;  %4109 = vmatpush1.bf16.msra.mxu0 %v9645_v19  ;;  %v9665_v4 = vadd.f32 %v1869_v12, %v9440_v31  ;;  %4150 = vmatpush1.bf16.msra.mxu1 %v9649_v54  ;;  %v3718_v31 = vld [vmem:[#allocation8 + $0x120] sm:$0xff]  ;;  %v9730_v3 = vcombine.high %v3691_v11, %v3695_v23  ;;  %v3683_v12 = vld [vmem:[#allocation8 + $0x8] sm:$0xff] }
 0x1bb   :  { %v1830_v30 = vpop.f32.mrf.mxu0  ;;  %4110 = vmatprep.subr.bf16.mxu0 %v9651_v14  ;;  %v1871_v36 = vpop.f32.mrf.mxu1  ;;  %4151 = vmatprep.subr.bf16.mxu1 %v9654_v43  ;;  %v9691_v41 = vcombine.high %v3714_v46, %v3718_v31  ;;  %v9697_v18 = vcombine.low %v3714_v46, %v3718_v31  ;;  %v3686_v2 = vld [vmem:[#allocation8 + $0x20] sm:$0xff]  ;;  %v9737_v46 = vcombine.low %v3691_v11, %v3695_v23  ;;  %v9764_v23 = vld [vmem:[#allocation5 + $0x18] sm:$0xf] }
 0x1bc   :  { %12015 = vst [vmem:[#allocation46_spill] sm:$0xff] %v9658_v48  ;;  %12016 = vst [vmem:[#allocation48_spill] sm:$0xff] %v9665_v4  ;;  %v9674_v13 = vadd.f32 %v1830_v30, %v9447_v32  ;;  %4140 = vmatprep.mubr.bf16.mxu0 %v11922_v56  ;;  %v9681_v51 = vadd.f32 %v1871_v36, %v9453_v28  ;;  %4181 = vmatprep.mubr.bf16.mxu1 %v11922_v56  ;;  %v3687_v30 = vld [vmem:[#allocation8 + $0x28] sm:$0xff]  ;;  %v3728_v4 = vld [vmem:[#allocation8 + $0x170] sm:$0xff] }
 0x1bd   :  { %v1832_v53 = vpop.f32.mrf.mxu0  ;;  %v1873_v8 = vpop.f32.mrf.mxu1  ;;  %v9685_v32 = vcombine.low %v3722_v22, %v3726_v38  ;;  %v9725_v22 = vcombine.low %v3699_v10, %v3703_v27  ;;  %v9727_v38 = vcombine.high %v3690_v47, %v3694_v60  ;;  %v9733_v36 = vcombine.low %v3690_v47, %v3694_v60  ;;  %v3733_v10 = vld [vmem:[#allocation8 + $0x198] sm:$0xff]  ;;  %v12019_v47 = vld [vmem:[#allocation26_spill] sm:$0xff] }
 0x1be   :  { %12017 = vst [vmem:[#allocation55_spill] sm:$0xff] %v9674_v13  ;;  %12018 = vst [vmem:[#allocation25_spill] sm:$0xff] %v9681_v51  ;;  %4111 = vmatpush1.bf16.msra.mxu0 %v9662_v25  ;;  %4152 = vmatpush1.bf16.msra.mxu1 %v9669_v34  ;;  %v9739_v31 = vcombine.high %v3682_v42, %v3686_v2  ;;  %v9742_v53 = vcombine.high %v3683_v12, %v3687_v30  ;;  %v3741_v8 = vld [vmem:[#allocation8 + $0x1d8] sm:$0xff]  ;;  %v12020_v60 = vsub.s32 0, %v12019_v47  ;;  %v3724_v13 = vld [vmem:[#allocation8 + $0x150] sm:$0xff] }
 0x1bf   :  { %v1833_v26 = vpop.f32.mrf.mxu0  ;;  %4112 = vmatprep.subr.bf16.mxu0 %v9671_v35  ;;  %v1874_v28 = vpop.f32.mrf.mxu1  ;;  %4153 = vmatprep.subr.bf16.mxu1 %v9677_v37  ;;  %v9749_v63 = vcombine.low %v3683_v12, %v3687_v30  ;;  %v3737_v27 = vld [vmem:[#allocation8 + $0x1b8] sm:$0xff]  ;;  %v9777_v51 = vcombine.high %v3732_v6, %v3736_v9  ;;  %v9807_v20 = vcombine.high %v3724_v13, %v3728_v4 }
 0x1c0   :  { %v3745_v26 = vld [vmem:[#allocation8 + $0x1f8] sm:$0xff]  ;;  %v9745_v28 = vcombine.low %v3682_v42, %v3686_v2  ;;  %v9762_v11 = vrot.slane %v9751_v1, %v12020_v60  ;;  %v9766_v42 = vcombine.low %v3740_v62, %v3744_v7  ;;  %v12021_v2 = vsub.s32 2, %v12019_v47 }
 0x1c1   :  { %v9756_v0 = vcombine.high %v3741_v8, %v3745_v26  ;;  %v9775_v30 = vcombine.low %v3741_v8, %v3745_v26  ;;  %v12022_v60 = vsub.s32 1, %v12019_v47  ;;  %v9785_v7 = vcombine.high %v3733_v10, %v3737_v27  ;;  %v3725_v26 = vld [vmem:[#allocation8 + $0x158] sm:$0xff]  ;;  %12030 = vst [vmem:[#allocation33_spill] sm:$0xff] %v9807_v20 }
 0x1c2   :  { %4113 = vmatpush1.bf16.msra.mxu0 %v9685_v32  ;;  %4154 = vmatpush1.bf16.msra.mxu1 %v9689_v39  ;;  %v9772_v12 = vrot.slane %v9751_v1, %v12021_v2  ;;  %v12025_v2 = vsub.s32 3, %v12019_v47 }
 0x1c3   :  { %4114 = vmatprep.subr.bf16.mxu0 %v9691_v41  ;;  %4155 = vmatprep.subr.bf16.mxu1 %v9694_v49  ;;  %v9783_v62 = vrot.slane %v9751_v1, %v12022_v60  ;;  %12024 = vst [vmem:[#allocation28_spill] sm:$0xff] %v9785_v7  ;;  %v9798_v60 = vcombine.low %v3732_v6, %v3736_v9  ;;  %v3716_v9 = vld [vmem:[#allocation8 + $0x110] sm:$0xff] }
 0x1c4   :  { %v9791_v8 = vrot.slane %v9751_v1, %v12025_v2  ;;  %v9805_v2 = vcombine.low %v3733_v10, %v3737_v27  ;;  %v9813_v6 = vcombine.high %v3725_v26, %v3729_v50  ;;  %v3717_v10 = vld [vmem:[#allocation8 + $0x118] sm:$0xff] }
 0x1c5   :  { %12023 = vst [vmem:[#allocation27_spill] sm:$0xff] %v9783_v62  ;;  %12028 = vst [vmem:[#allocation31_spill] sm:$0xff] %v9798_v60  ;;  %v3721_v27 = vld [vmem:[#allocation8 + $0x138] sm:$0xff] }
 0x1c6   :  { %4115 = vmatpush1.bf16.msra.mxu0 %v9697_v18  ;;  %4156 = vmatpush1.bf16.msra.mxu1 %v9701_v57  ;;  %12026 = vst [vmem:[#allocation29_spill] sm:$0xff] %v9791_v8  ;;  %12032 = vst [vmem:[#allocation47_spill] sm:$0xff] %v9813_v6 }
 0x1c7   :  { %4116 = vmatprep.subr.bf16.mxu0 %v9703_v21  ;;  %4157 = vmatprep.subr.bf16.mxu1 %v9706_v17 }
 0x1ca   :  { %4117 = vmatpush1.bf16.msra.mxu0 %v9709_v29  ;;  %4158 = vmatpush1.bf16.msra.mxu1 %v9713_v44 }
 0x1cb   :  { %4118 = vmatprep.subr.bf16.mxu0 %v9715_v45  ;;  %4159 = vmatprep.subr.bf16.mxu1 %v9718_v61 }
 0x1ce   :  { %4119 = vmatpush1.bf16.msra.mxu0 %v9721_v15  ;;  %4160 = vmatpush1.bf16.msra.mxu1 %v9725_v22 }
 0x1cf   :  { %4120 = vmatprep.subr.bf16.mxu0 %v9727_v38  ;;  %4161 = vmatprep.subr.bf16.mxu1 %v9730_v3 }
 0x1d2   :  { %4121 = vmatpush1.bf16.msra.mxu0 %v9733_v36  ;;  %4162 = vmatpush1.bf16.msra.mxu1 %v9737_v46 }
 0x1d3   :  { %4122 = vmatprep.subr.bf16.mxu0 %v9739_v31  ;;  %4163 = vmatprep.subr.bf16.mxu1 %v9742_v53 }
 0x1d6   :  { %4123 = vmatpush1.bf16.msra.mxu0 %v9745_v28  ;;  %4164 = vmatpush1.bf16.msra.mxu1 %v9749_v63 }
 0x1d7   :  { %4190 = vmatprep.subr.bf16.mxu0 %v9753_v33  ;;  %4231 = vmatprep.subr.bf16.mxu1 %v9756_v0 }
 0x1d9   :  { %v2345_v48 = vpop.f32.mrf.mxu0  ;;  %4141 = vmatmul.mubr.bf16.vlgmr.msra.gmra.mxu0 %v9764_v23  ;;  %v2386_v5 = vpop.f32.mrf.mxu1  ;;  %4182 = vmatmul.mubr.bf16.vlgmr.msra.gmra.mxu1 %v9764_v23 }
 0x1da   :  { %v9794_v40 = vadd.f32 %v2345_v48, %v9762_v11  ;;  %4191 = vmatpush1.bf16.msra.mxu0 %v9766_v42  ;;  %v9801_v52 = vadd.f32 %v2386_v5, %v9772_v12  ;;  %4232 = vmatpush1.bf16.msra.mxu1 %v9775_v30  ;;  %v3720_v5 = vld [vmem:[#allocation8 + $0x130] sm:$0xff] }
 0x1db   :  { %v2347_v58 = vpop.f32.mrf.mxu0  ;;  %4192 = vmatprep.subr.bf16.mxu0 %v9777_v51  ;;  %4233 = vmatprep.subr.bf16.mxu1 %v9785_v7  ;;  %v9825_v7 = vcombine.low %v3725_v26, %v3729_v50  ;;  %v9837_v50 = vcombine.low %v3717_v10, %v3721_v27 }
 0x1dc   :  { %12027 = vst [vmem:[#allocation30_spill] sm:$0xff] %v9794_v40  ;;  %12029 = vst [vmem:[#allocation32_spill] sm:$0xff] %v9801_v52  ;;  %v9810_v48 = vadd.f32 %v2347_v58, %v9783_v62  ;;  %v2388_v40 = vpop.f32.mrf.mxu1  ;;  %4222 = vmatprep.mubr.bf16.mxu0 %v11922_v56  ;;  %4263 = vmatprep.mubr.bf16.mxu1 %v11922_v56  ;;  %v9821_v58 = vcombine.low %v3724_v13, %v3728_v4 }
 0x1dd   :  { %v9817_v52 = vadd.f32 %v2388_v40, %v9791_v8  ;;  %v2349_v59 = vpop.f32.mrf.mxu0  ;;  %12035 = vst [vmem:[#allocation51_spill] sm:$0xff] %v9825_v7  ;;  %v9827_v62 = vcombine.high %v3716_v9, %v3720_v5  ;;  %v3709_v8 = vld [vmem:[#allocation8 + $0xd8] sm:$0xff]  ;;  %v9833_v4 = vcombine.low %v3716_v9, %v3720_v5  ;;  %12039 = vst [vmem:[#allocation26_spill] sm:$0xff] %v9837_v50 }
 0x1de   :  { %12031 = vst [vmem:[#allocation40_spill] sm:$0xff] %v9810_v48  ;;  %v2390_v16 = vpop.f32.mrf.mxu1  ;;  %4193 = vmatpush1.bf16.msra.mxu0 %v9798_v60  ;;  %12034 = vst [vmem:[#allocation50_spill] sm:$0xff] %v9821_v58  ;;  %4234 = vmatpush1.bf16.msra.mxu1 %v9805_v2  ;;  %v9830_v59 = vcombine.high %v3717_v10, %v3721_v27  ;;  %v3713_v60 = vld [vmem:[#allocation8 + $0xf8] sm:$0xff] }
 0x1df   :  { %12033 = vst [vmem:[#allocation49_spill] sm:$0xff] %v9817_v52  ;;  %v2350_v48 = vpop.f32.mrf.mxu0  ;;  %4194 = vmatprep.subr.bf16.mxu0 %v9807_v20  ;;  %12036 = vst [vmem:[#allocation52_spill] sm:$0xff] %v9827_v62  ;;  %4235 = vmatprep.subr.bf16.mxu1 %v9813_v6  ;;  %v3708_v52 = vld [vmem:[#allocation8 + $0xd0] sm:$0xff]  ;;  %v9842_v26 = vcombine.high %v3709_v8, %v3713_v60  ;;  %v3701_v6 = vld [vmem:[#allocation8 + $0x98] sm:$0xff]  ;;  %v9849_v5 = vcombine.low %v3709_v8, %v3713_v60 }
 0x1e0   :  { %v2391_v40 = vpop.f32.mrf.mxu1  ;;  %12037 = vst [vmem:[#allocation53_spill] sm:$0xff] %v9830_v59  ;;  %v3712_v16 = vld [vmem:[#allocation8 + $0xf0] sm:$0xff]  ;;  %12038 = vst [vmem:[#allocation54_spill] sm:$0xff] %v9833_v4  ;;  %v3705_v20 = vld [vmem:[#allocation8 + $0xb8] sm:$0xff] }
 0x1e1   :  { %v9839_v13 = vcombine.high %v3708_v52, %v3712_v16  ;;  %12041 = vst [vmem:[#allocation64_spill] sm:$0xff] %v9842_v26  ;;  %v3700_v48 = vld [vmem:[#allocation8 + $0x90] sm:$0xff]  ;;  %v9845_v9 = vcombine.low %v3708_v52, %v3712_v16  ;;  %v9854_v27 = vcombine.high %v3701_v6, %v3705_v20  ;;  %v9861_v8 = vcombine.low %v3701_v6, %v3705_v20 }
 0x1e2   :  { %4195 = vmatpush1.bf16.msra.mxu0 %v9821_v58  ;;  %4236 = vmatpush1.bf16.msra.mxu1 %v9825_v7  ;;  %v3704_v40 = vld [vmem:[#allocation8 + $0xb0] sm:$0xff]  ;;  %v3693_v7 = vld [vmem:[#allocation8 + $0x58] sm:$0xff] }
 0x1e3   :  { %4196 = vmatprep.subr.bf16.mxu0 %v9827_v62  ;;  %12040 = vst [vmem:[#allocation63_spill] sm:$0xff] %v9839_v13  ;;  %4237 = vmatprep.subr.bf16.mxu1 %v9830_v59  ;;  %v9851_v10 = vcombine.high %v3700_v48, %v3704_v40  ;;  %12042 = vst [vmem:[#allocation65_spill] sm:$0xff] %v9854_v27  ;;  %v3692_v59 = vld [vmem:[#allocation8 + $0x50] sm:$0xff]  ;;  %v3697_v58 = vld [vmem:[#allocation8 + $0x78] sm:$0xff]  ;;  %v9857_v52 = vcombine.low %v3700_v48, %v3704_v40 }
 0x1e4   :  { %v3696_v62 = vld [vmem:[#allocation8 + $0x70] sm:$0xff]  ;;  %v9866_v16 = vcombine.high %v3693_v7, %v3697_v58  ;;  %v9873_v20 = vcombine.low %v3693_v7, %v3697_v58  ;;  %v12045_v7 = vsub.s32 4, %v12019_v47 }
 0x1e5   :  { %v9863_v60 = vcombine.high %v3692_v59, %v3696_v62  ;;  %v9869_v48 = vcombine.low %v3692_v59, %v3696_v62  ;;  %v12046_v59 = vsub.s32 6, %v12019_v47 }
 0x1e6   :  { %4197 = vmatpush1.bf16.msra.mxu0 %v9833_v4  ;;  %4238 = vmatpush1.bf16.msra.mxu1 %v9837_v50  ;;  %v3685_v50 = vld [vmem:[#allocation8 + $0x18] sm:$0xff]  ;;  %v9892_v58 = vrot.slane %v9751_v1, %v12045_v7  ;;  %v12048_v7 = vsub.s32 7, %v12019_v47 }
 0x1e7   :  { %4198 = vmatprep.subr.bf16.mxu0 %v9839_v13  ;;  %4239 = vmatprep.subr.bf16.mxu1 %v9842_v26  ;;  %v3684_v26 = vld [vmem:[#allocation8 + $0x10] sm:$0xff]  ;;  %v3689_v4 = vld [vmem:[#allocation8 + $0x38] sm:$0xff] }
 0x1e8   :  { %v3688_v13 = vld [vmem:[#allocation8 + $0x30] sm:$0xff]  ;;  %v9878_v40 = vcombine.high %v3685_v50, %v3689_v4  ;;  %v9885_v62 = vcombine.low %v3685_v50, %v3689_v4  ;;  %v12047_v4 = vsub.s32 5, %v12019_v47 }
 0x1e9   :  { %v9875_v6 = vcombine.high %v3684_v26, %v3688_v13 }
 0x1ea   :  { %4199 = vmatpush1.bf16.msra.mxu0 %v9845_v9  ;;  %4240 = vmatpush1.bf16.msra.mxu1 %v9849_v5  ;;  %12044 = vst [vmem:[#allocation67_spill] sm:$0xff] %v9885_v62  ;;  %v9905_v50 = vrot.slane %v9751_v1, %v12047_v4 }
 0x1eb   :  { %4200 = vmatprep.subr.bf16.mxu0 %v9851_v10  ;;  %4241 = vmatprep.subr.bf16.mxu1 %v9854_v27  ;;  %v9881_v27 = vcombine.low %v3684_v26, %v3688_v13  ;;  %v9898_v13 = vrot.slane %v9751_v1, %v12046_v59 }
 0x1ed   :  { %12043 = vst [vmem:[#allocation66_spill] sm:$0xff] %v9881_v27 }
 0x1ee   :  { %4201 = vmatpush1.bf16.msra.mxu0 %v9857_v52  ;;  %4242 = vmatpush1.bf16.msra.mxu1 %v9861_v8 }
 0x1ef   :  { %4202 = vmatprep.subr.bf16.mxu0 %v9863_v60  ;;  %4243 = vmatprep.subr.bf16.mxu1 %v9866_v16 }
 0x1f2   :  { %4203 = vmatpush1.bf16.msra.mxu0 %v9869_v48  ;;  %4244 = vmatpush1.bf16.msra.mxu1 %v9873_v20 }
 0x1f3   :  { %4204 = vmatprep.subr.bf16.mxu0 %v9875_v6  ;;  %4245 = vmatprep.subr.bf16.mxu1 %v9878_v40 }
 0x1f6   :  { %4205 = vmatpush1.bf16.msra.mxu0 %v9881_v27  ;;  %4246 = vmatpush1.bf16.msra.mxu1 %v9885_v62  ;;  %v9911_v62 = vrot.slane %v9751_v1, %v12048_v7 }
 0x1f7   :  { %4707 = vmatprep.subr.bf16.mxu0 %v9639_v24  ;;  %4748 = vmatprep.subr.bf16.mxu1 %v9642_v55 }
 0x1f9   :  { %v2427_v26 = vpop.f32.mrf.mxu0  ;;  %4223 = vmatmul.mubr.bf16.vlgmr.msra.gmra.mxu0 %v9764_v23  ;;  %v2468_v27 = vpop.f32.mrf.mxu1  ;;  %4264 = vmatmul.mubr.bf16.vlgmr.msra.gmra.mxu1 %v9764_v23 }
 0x1fa   :  { %v9914_v59 = vadd.f32 %v2427_v26, %v9892_v58  ;;  %4708 = vmatpush1.bf16.msra.mxu0 %v9645_v19  ;;  %v9919_v24 = vadd.f32 %v2468_v27, %v9898_v13  ;;  %4749 = vmatpush1.bf16.msra.mxu1 %v9649_v54 }
 0x1fb   :  { %v2429_v55 = vpop.f32.mrf.mxu0  ;;  %4709 = vmatprep.subr.bf16.mxu0 %v9651_v14  ;;  %v2470_v1 = vpop.f32.mrf.mxu1  ;;  %4750 = vmatprep.subr.bf16.mxu1 %v9654_v43  ;;  %v4280_v43 = vld [vmem:[#allocation5 + $0x1c] sm:$0xf] }
 0x1fc   :  { %12049 = vst [vmem:[#allocation68_spill] sm:$0xff] %v9914_v59  ;;  %12050 = vst [vmem:[#allocation69_spill] sm:$0xff] %v9919_v24  ;;  %v9924_v47 = vadd.f32 %v2429_v55, %v9905_v50  ;;  %4739 = vmatprep.mubr.bf16.mxu0 %v11922_v56  ;;  %v9929_v23 = vadd.f32 %v2470_v1, %v9911_v62  ;;  %4780 = vmatprep.mubr.bf16.mxu1 %v11922_v56 }
 0x1fd   :  { %v2431_v19 = vpop.f32.mrf.mxu0  ;;  %v2472_v27 = vpop.f32.mrf.mxu1 }
 0x1fe   :  { %12051 = vst [vmem:[#allocation70_spill] sm:$0xff] %v9924_v47  ;;  %12052 = vst [vmem:[#allocation71_spill] sm:$0xff] %v9929_v23  ;;  %4710 = vmatpush1.bf16.msra.mxu0 %v9662_v25  ;;  %4751 = vmatpush1.bf16.msra.mxu1 %v9669_v34 }
 0x1ff   :  { %v2432_v54 = vpop.f32.mrf.mxu0  ;;  %4711 = vmatprep.subr.bf16.mxu0 %v9671_v35  ;;  %v2473_v14 = vpop.f32.mrf.mxu1  ;;  %4752 = vmatprep.subr.bf16.mxu1 %v9677_v37 }
 0x202   :  { %4712 = vmatpush1.bf16.msra.mxu0 %v9685_v32  ;;  %4753 = vmatpush1.bf16.msra.mxu1 %v9689_v39  ;;  %v12055_v39 = vld [vmem:[#allocation27_spill] sm:$0xff] }
 0x203   :  { %4713 = vmatprep.subr.bf16.mxu0 %v9691_v41  ;;  %4754 = vmatprep.subr.bf16.mxu1 %v9694_v49 }
 0x206   :  { %4714 = vmatpush1.bf16.msra.mxu0 %v9697_v18  ;;  %4755 = vmatpush1.bf16.msra.mxu1 %v9701_v57  ;;  %v12057_v18 = vld [vmem:[#allocation28_spill] sm:$0xff]  ;;  %v12058_v57 = vld [vmem:[#allocation29_spill] sm:$0xff] }
 0x207   :  { %4715 = vmatprep.subr.bf16.mxu0 %v9703_v21  ;;  %4756 = vmatprep.subr.bf16.mxu1 %v9706_v17 }
 0x20a   :  { %4716 = vmatpush1.bf16.msra.mxu0 %v9709_v29  ;;  %4757 = vmatpush1.bf16.msra.mxu1 %v9713_v44  ;;  %v12060_v44 = vld [vmem:[#allocation31_spill] sm:$0xff] }
 0x20b   :  { %4717 = vmatprep.subr.bf16.mxu0 %v9715_v45  ;;  %4758 = vmatprep.subr.bf16.mxu1 %v9718_v61  ;;  %v12061_v45 = vld [vmem:[#allocation33_spill] sm:$0xff] }
 0x20e   :  { %4718 = vmatpush1.bf16.msra.mxu0 %v9721_v15  ;;  %4759 = vmatpush1.bf16.msra.mxu1 %v9725_v22  ;;  %v12062_v15 = vld [vmem:[#allocation47_spill] sm:$0xff]  ;;  %v12063_v22 = vld [vmem:[#allocation50_spill] sm:$0xff] }
 0x20f   :  { %4719 = vmatprep.subr.bf16.mxu0 %v9727_v38  ;;  %4760 = vmatprep.subr.bf16.mxu1 %v9730_v3  ;;  %v12064_v38 = vld [vmem:[#allocation51_spill] sm:$0xff]  ;;  %v12065_v3 = vld [vmem:[#allocation52_spill] sm:$0xff] }
 0x212   :  { %4720 = vmatpush1.bf16.msra.mxu0 %v9733_v36  ;;  %4761 = vmatpush1.bf16.msra.mxu1 %v9737_v46  ;;  %v12066_v36 = vld [vmem:[#allocation53_spill] sm:$0xff]  ;;  %v12067_v46 = vld [vmem:[#allocation54_spill] sm:$0xff] }
 0x213   :  { %4721 = vmatprep.subr.bf16.mxu0 %v9739_v31  ;;  %4762 = vmatprep.subr.bf16.mxu1 %v9742_v53  ;;  %v12068_v31 = vld [vmem:[#allocation26_spill] sm:$0xff]  ;;  %v12069_v53 = vld [vmem:[#allocation63_spill] sm:$0xff] }
 0x216   :  { %4722 = vmatpush1.bf16.msra.mxu0 %v9745_v28  ;;  %4763 = vmatpush1.bf16.msra.mxu1 %v9749_v63  ;;  %v12070_v28 = vld [vmem:[#allocation64_spill] sm:$0xff]  ;;  %v12071_v63 = vld [vmem:[#allocation65_spill] sm:$0xff] }
 0x217   :  { %4789 = vmatprep.subr.bf16.mxu0 %v9753_v33  ;;  %4830 = vmatprep.subr.bf16.mxu1 %v9756_v0  ;;  %v12072_v33 = vld [vmem:[#allocation66_spill] sm:$0xff]  ;;  %v12073_v0 = vld [vmem:[#allocation67_spill] sm:$0xff] }
 0x219   :  { %v2944_v25 = vpop.f32.mrf.mxu0  ;;  %4740 = vmatmul.mubr.bf16.vlgmr.msra.gmra.mxu0 %v4280_v43  ;;  %v2985_v35 = vpop.f32.mrf.mxu1  ;;  %4781 = vmatmul.mubr.bf16.vlgmr.msra.gmra.mxu1 %v4280_v43 }
 0x21a   :  { %v9961_v34 = vadd.f32 %v2944_v25, %v9762_v11  ;;  %4790 = vmatpush1.bf16.msra.mxu0 %v9766_v42  ;;  %v9965_v37 = vadd.f32 %v2985_v35, %v9772_v12  ;;  %4831 = vmatpush1.bf16.msra.mxu1 %v9775_v30 }
 0x21b   :  { %v2946_v32 = vpop.f32.mrf.mxu0  ;;  %4791 = vmatprep.subr.bf16.mxu0 %v9777_v51  ;;  %v2987_v49 = vpop.f32.mrf.mxu1  ;;  %4832 = vmatprep.subr.bf16.mxu1 %v12057_v18 }
 0x21c   :  { %12053 = vst [vmem:[#allocation72_spill] sm:$0xff] %v9961_v34  ;;  %12054 = vst [vmem:[#allocation73_spill] sm:$0xff] %v9965_v37  ;;  %v9970_v41 = vadd.f32 %v2946_v32, %v12055_v39  ;;  %4821 = vmatprep.mubr.bf16.mxu0 %v11922_v56  ;;  %v9975_v21 = vadd.f32 %v2987_v49, %v12058_v57  ;;  %4862 = vmatprep.mubr.bf16.mxu1 %v11922_v56 }
 0x21d   :  { %v2948_v17 = vpop.f32.mrf.mxu0  ;;  %v2989_v29 = vpop.f32.mrf.mxu1 }
 0x21e   :  { %12056 = vst [vmem:[#allocation27_spill] sm:$0xff] %v9970_v41  ;;  %12059 = vst [vmem:[#allocation28_spill] sm:$0xff] %v9975_v21  ;;  %4792 = vmatpush1.bf16.msra.mxu0 %v12060_v44  ;;  %4833 = vmatpush1.bf16.msra.mxu1 %v9805_v2 }
 0x21f   :  { %v2949_v51 = vpop.f32.mrf.mxu0  ;;  %4793 = vmatprep.subr.bf16.mxu0 %v12061_v45  ;;  %v2990_v61 = vpop.f32.mrf.mxu1  ;;  %4834 = vmatprep.subr.bf16.mxu1 %v12062_v15 }
 0x222   :  { %4794 = vmatpush1.bf16.msra.mxu0 %v12063_v22  ;;  %4835 = vmatpush1.bf16.msra.mxu1 %v12064_v38 }
 0x223   :  { %4795 = vmatprep.subr.bf16.mxu0 %v12065_v3  ;;  %4836 = vmatprep.subr.bf16.mxu1 %v12066_v36 }
 0x226   :  { %4796 = vmatpush1.bf16.msra.mxu0 %v12067_v46  ;;  %4837 = vmatpush1.bf16.msra.mxu1 %v12068_v31 }
 0x227   :  { %4797 = vmatprep.subr.bf16.mxu0 %v12069_v53  ;;  %4838 = vmatprep.subr.bf16.mxu1 %v12070_v28 }
 0x22a   :  { %4798 = vmatpush1.bf16.msra.mxu0 %v9845_v9  ;;  %4839 = vmatpush1.bf16.msra.mxu1 %v9849_v5 }
 0x22b   :  { %4799 = vmatprep.subr.bf16.mxu0 %v9851_v10  ;;  %4840 = vmatprep.subr.bf16.mxu1 %v12071_v63 }
 0x22e   :  { %4800 = vmatpush1.bf16.msra.mxu0 %v9857_v52  ;;  %4841 = vmatpush1.bf16.msra.mxu1 %v9861_v8 }
 0x22f   :  { %4801 = vmatprep.subr.bf16.mxu0 %v9863_v60  ;;  %4842 = vmatprep.subr.bf16.mxu1 %v9866_v16 }
 0x232   :  { %4802 = vmatpush1.bf16.msra.mxu0 %v9869_v48  ;;  %4843 = vmatpush1.bf16.msra.mxu1 %v9873_v20 }
 0x233   :  { %4803 = vmatprep.subr.bf16.mxu0 %v9875_v6  ;;  %4844 = vmatprep.subr.bf16.mxu1 %v9878_v40 }
 0x236   :  { %4804 = vmatpush1.bf16.msra.mxu0 %v12072_v33  ;;  %4845 = vmatpush1.bf16.msra.mxu1 %v12073_v0 }
 0x239   :  { %v3026_v42 = vpop.f32.mrf.mxu0  ;;  %4822 = vmatmul.mubr.bf16.vlgmr.msra.gmra.mxu0 %v4280_v43  ;;  %v3067_v2 = vpop.f32.mrf.mxu1  ;;  %4863 = vmatmul.mubr.bf16.vlgmr.msra.gmra.mxu1 %v4280_v43 }
 0x23a   :  { %v10005_v30 = vadd.f32 %v3026_v42, %v9892_v58  ;;  %v10008_v9 = vadd.f32 %v3067_v2, %v9898_v13 }
 0x23b   :  { %v3028_v5 = vpop.f32.mrf.mxu0  ;;  %v3069_v52 = vpop.f32.mrf.mxu1 }
 0x23c   :  { %12074 = vst [vmem:[#allocation29_spill] sm:$0xff] %v10005_v30  ;;  %12075 = vst [vmem:[#allocation31_spill] sm:$0xff] %v10008_v9  ;;  %v10011_v10 = vadd.f32 %v3028_v5, %v9905_v50  ;;  %v10014_v8 = vadd.f32 %v3069_v52, %v9911_v62 }
 0x23d   :  { %v3030_v60 = vpop.f32.mrf.mxu0  ;;  %v3071_v16 = vpop.f32.mrf.mxu1 }
 0x23e   :  { %12076 = vst [vmem:[#allocation33_spill] sm:$0xff] %v10011_v10  ;;  %12077 = vst [vmem:[#allocation47_spill] sm:$0xff] %v10014_v8 }
 0x23f   :  { %v3031_v48 = vpop.f32.mrf.mxu0  ;;  %v3072_v20 = vpop.f32.mrf.mxu1 }
 0x259   :  { %v3543_v6 = vpop.f32.mrf.mxu0  ;;  %v3584_v4 = vpop.f32.mrf.mxu1 }
 0x25a   :  { %v10017_v40 = vadd.f32 %v3543_v6, %v9762_v11  ;;  %v10020_v26 = vadd.f32 %v3584_v4, %v9772_v12 }
 0x25b   :  { %v3545_v7 = vpop.f32.mrf.mxu0  ;;  %v3586_v1 = vpop.f32.mrf.mxu1 }
 0x25c   :  { %12078 = vst [vmem:[#allocation50_spill] sm:$0xff] %v10017_v40  ;;  %12079 = vst [vmem:[#allocation51_spill] sm:$0xff] %v10020_v26  ;;  %v10023_v55 = vadd.f32 %v3545_v7, %v12055_v39  ;;  %v10026_v19 = vadd.f32 %v3586_v1, %v12058_v57 }
 0x25d   :  { %v3547_v27 = vpop.f32.mrf.mxu0  ;;  %v3588_v54 = vpop.f32.mrf.mxu1 }
 0x25e   :  { %12080 = vst [vmem:[#allocation52_spill] sm:$0xff] %v10023_v55  ;;  %12081 = vst [vmem:[#allocation53_spill] sm:$0xff] %v10026_v19 }
 0x25f   :  { %v3548_v14 = vpop.f32.mrf.mxu0  ;;  %v3589_v43 = vpop.f32.mrf.mxu1 }
 0x279   :  { %v3625_v25 = vpop.f32.mrf.mxu0  ;;  %v3666_v32 = vpop.f32.mrf.mxu1 }
 0x27a   :  { %v10029_v35 = vadd.f32 %v3625_v25, %v9892_v58  ;;  %v10032_v49 = vadd.f32 %v3666_v32, %v9898_v13 }
 0x27b   :  { %v3627_v18 = vpop.f32.mrf.mxu0  ;;  %v3668_v29 = vpop.f32.mrf.mxu1 }
 0x27c   :  { %12082 = vst [vmem:[#allocation54_spill] sm:$0xff] %v10029_v35  ;;  %12083 = vst [vmem:[#allocation26_spill] sm:$0xff] %v10032_v49  ;;  %v10035_v17 = vadd.f32 %v3627_v18, %v9905_v50  ;;  %v10038_v44 = vadd.f32 %v3668_v29, %v9911_v62 }
 0x27d   :  { %v3629_v51 = vpop.f32.mrf.mxu0  ;;  %v3670_v45 = vpop.f32.mrf.mxu1 }
 0x27e   :  { %12084 = vst [vmem:[#allocation63_spill] sm:$0xff] %v10035_v17  ;;  %12085 = vst [vmem:[#allocation64_spill] sm:$0xff] %v10038_v44 }
 0x27f   :  { %v3630_v61 = vpop.f32.mrf.mxu0  ;;  %v3671_v15 = vpop.f32.mrf.mxu1 }
 0x280   :  { %8759 = shalt.err (!%p8756_p10)  }
 0x281   :  { %86 = dma.hbm_to_vmem [thread:$0]  %s11550_s3, 16384, %s84_s4, [#allocation4] }
 0x299   :  { %v4142_v22 = vpop.f32.mrf.mxu0  ;;  %v4183_v3 = vpop.f32.mrf.mxu1 }
 0x29a   :  { %v10044_v38 = vadd.f32 %v4142_v22, %v9762_v11  ;;  %v10047_v36 = vadd.f32 %v4183_v3, %v9772_v12 }
 0x29b   :  { %v4144_v46 = vpop.f32.mrf.mxu0  ;;  %v4185_v53 = vpop.f32.mrf.mxu1 }
 0x29c   :  { %12086 = vst [vmem:[#allocation65_spill] sm:$0xff] %v10044_v38  ;;  %12087 = vst [vmem:[#allocation66_spill] sm:$0xff] %v10047_v36  ;;  %v10050_v31 = vadd.f32 %v4144_v46, %v12055_v39  ;;  %v10053_v28 = vadd.f32 %v4185_v53, %v12058_v57 }
 0x29d   :  { %v4146_v63 = vpop.f32.mrf.mxu0  ;;  %v4187_v33 = vpop.f32.mrf.mxu1 }
 0x29e   :  { %12088 = vst [vmem:[#allocation67_spill] sm:$0xff] %v10050_v31  ;;  %12089 = vst [vmem:[#allocation74_spill] sm:$0xff] %v10053_v28 }
 0x29f   :  { %v4147_v0 = vpop.f32.mrf.mxu0  ;;  %v4188_v42 = vpop.f32.mrf.mxu1 }
 0x2b9   :  { %v4224_v2 = vpop.f32.mrf.mxu0  ;;  %v4265_v52 = vpop.f32.mrf.mxu1 }
 0x2ba   :  { %v10056_v5 = vadd.f32 %v4224_v2, %v9892_v58  ;;  %v10059_v60 = vadd.f32 %v4265_v52, %v9898_v13 }
 0x2bb   :  { %v4226_v16 = vpop.f32.mrf.mxu0  ;;  %v4267_v20 = vpop.f32.mrf.mxu1 }
 0x2bc   :  { %12090 = vst [vmem:[#allocation75_spill] sm:$0xff] %v10056_v5  ;;  %12091 = vst [vmem:[#allocation76_spill] sm:$0xff] %v10059_v60  ;;  %v10062_v48 = vadd.f32 %v4226_v16, %v9905_v50  ;;  %v10065_v6 = vadd.f32 %v4267_v20, %v9911_v62 }
 0x2bd   :  { %v4228_v4 = vpop.f32.mrf.mxu0  ;;  %v4269_v7 = vpop.f32.mrf.mxu1 }
 0x2be   :  { %12092 = vst [vmem:[#allocation77_spill] sm:$0xff] %v10062_v48  ;;  %12093 = vst [vmem:[#allocation78_spill] sm:$0xff] %v10065_v6 }
 0x2bf   :  { %v4229_v1 = vpop.f32.mrf.mxu0  ;;  %v4270_v27 = vpop.f32.mrf.mxu1 }
 0x2d9   :  { %v4741_v54 = vpop.f32.mrf.mxu0  ;;  %v4782_v43 = vpop.f32.mrf.mxu1 }
 0x2da   :  { %v10068_v14 = vadd.f32 %v4741_v54, %v9762_v11  ;;  %v10071_v25 = vadd.f32 %v4782_v43, %v9772_v12 }
 0x2db   :  { %v4743_v32 = vpop.f32.mrf.mxu0  ;;  %v4784_v29 = vpop.f32.mrf.mxu1 }
 0x2dc   :  { %12094 = vst [vmem:[#allocation79_spill] sm:$0xff] %v10068_v14  ;;  %12095 = vst [vmem:[#allocation80_spill] sm:$0xff] %v10071_v25  ;;  %v10074_v18 = vadd.f32 %v4743_v32, %v12055_v39  ;;  %v10077_v51 = vadd.f32 %v4784_v29, %v12058_v57 }
 0x2dd   :  { %v4745_v45 = vpop.f32.mrf.mxu0  ;;  %v4786_v61 = vpop.f32.mrf.mxu1 }
 0x2de   :  { %12096 = vst [vmem:[#allocation81_spill] sm:$0xff] %v10074_v18  ;;  %12097 = vst [vmem:[#allocation82_spill] sm:$0xff] %v10077_v51 }
 0x2df   :  { %v4746_v15 = vpop.f32.mrf.mxu0  ;;  %v4787_v22 = vpop.f32.mrf.mxu1 }
 0x2f9   :  { %v4823_v3 = vpop.f32.mrf.mxu0  ;;  %v4864_v46 = vpop.f32.mrf.mxu1 }
 0x2fa   :  { %v10080_v11 = vadd.f32 %v4823_v3, %v9892_v58  ;;  %v10083_v12 = vadd.f32 %v4864_v46, %v9898_v13 }
 0x2fb   :  { %v4825_v53 = vpop.f32.mrf.mxu0  ;;  %v4866_v63 = vpop.f32.mrf.mxu1 }
 0x2fc   :  { %12098 = vst [vmem:[#allocation83_spill] sm:$0xff] %v10080_v11  ;;  %12099 = vst [vmem:[#allocation84_spill] sm:$0xff] %v10083_v12  ;;  %v10086_v39 = vadd.f32 %v4825_v53, %v9905_v50  ;;  %v10089_v57 = vadd.f32 %v4866_v63, %v9911_v62 }
 0x2fd   :  { %v4827_v33 = vpop.f32.mrf.mxu0  ;;  %v4868_v0 = vpop.f32.mrf.mxu1 }
 0x2fe   :  { %12100 = vst [vmem:[#allocation85_spill] sm:$0xff] %v10086_v39  ;;  %12101 = vst [vmem:[#allocation86_spill] sm:$0xff] %v10089_v57 }
 0x2ff   :  { %v4828_v42 = vpop.f32.mrf.mxu0  ;;  %v4869_v2 = vpop.f32.mrf.mxu1 }
 0x300   :  { %8786 = dma.done.wait [#allocation4], 16384 }
 0x301   :  { %8787 = vsyncadd [#allocation4], 4294950912  ;;  %5118 = vmatprep.mubr.bf16.mxu0 %v11922_v56  ;;  %5365 = vmatprep.mubr.bf16.mxu1 %v11922_v56  ;;  %v4908_v58 = vld [vmem:[#allocation3 + $0x1c0] sm:$0xff]  ;;  %v5155_v52 = vld [vmem:[#allocation3 + $0x1c8] sm:$0xff]  ;;  %s8802_s25 = smov [#allocation13]  }
 0x302   :  { %v4909_v13 = vld [vmem:[#allocation3 + $0x1e0] sm:$0xff]  ;;  %v5156_v50 = vld [vmem:[#allocation3 + $0x1e8] sm:$0xff]  ;;  %s7638_s26 = sshll.u32 %s8802_s25, 4  ;;  %s7639_s26 = int_to_ptr.vmem [resolvable:$true] %s7638_s26 }
 0x303   :  { %v10093_v16 = vcombine.high %v4908_v58, %v4909_v13  ;;  %v10095_v20 = vcombine.low %v4908_v58, %v4909_v13  ;;  %v4906_v62 = vld [vmem:[#allocation3 + $0x180] sm:$0xff]  ;;  %v10097_v7 = vcombine.high %v5155_v52, %v5156_v50  ;;  %v10099_v1 = vcombine.low %v5155_v52, %v5156_v50  ;;  %v5153_v54 = vld [vmem:[#allocation3 + $0x188] sm:$0xff]  ;;  %s8760_s27 = scalar_lea.vmem %s7639_s26, 128  ;;  %p8765_p12 = scmp.lt.s32.totalorder %s7639_s26, %s7639_s26 }
 0x304   :  { %v4907_v4 = vld [vmem:[#allocation3 + $0x1a0] sm:$0xff]  ;;  %v5154_v43 = vld [vmem:[#allocation3 + $0x1a8] sm:$0xff]  ;;  %p8761_p11 = scmp.ne.s32.totalorder %s7639_s26, %s8760_s27  ;;  %p8766_p13 = scmp.lt.s32.totalorder %s8760_s27, %s8760_s27 }
 0x305   :  { %12102 = vst [vmem:[#allocation87_spill] sm:$0xff] %v10093_v16  ;;  %12103 = vst [vmem:[#allocation88_spill] sm:$0xff] %v10095_v20  ;;  %v10101_v27 = vcombine.high %v4906_v62, %v4907_v4  ;;  %v4904_v32 = vld [vmem:[#allocation3 + $0x140] sm:$0xff]  ;;  %5086 = vmatprep.subr.bf16.mxu0 %v10093_v16  ;;  %v10104_v29 = vcombine.high %v5153_v54, %v5154_v43  ;;  %v5151_v61 = vld [vmem:[#allocation3 + $0x148] sm:$0xff]  ;;  %5333 = vmatprep.subr.bf16.mxu1 %v10097_v7 }
 0x306   :  { %12104 = vst [vmem:[#allocation89_spill] sm:$0xff] %v10097_v7  ;;  %12105 = vst [vmem:[#allocation90_spill] sm:$0xff] %v10099_v1  ;;  %v4905_v45 = vld [vmem:[#allocation3 + $0x160] sm:$0xff]  ;;  %v5152_v15 = vld [vmem:[#allocation3 + $0x168] sm:$0xff]  ;;  %5087 = vmatpush1.bf16.msra.mxu0 %v10095_v20  ;;  %v10108_v22 = vcombine.low %v4906_v62, %v4907_v4  ;;  %5334 = vmatpush1.bf16.msra.mxu1 %v10099_v1  ;;  %v10112_v3 = vcombine.low %v5153_v54, %v5154_v43  ;;  %p8767_p0 = por %p8766_p13, %p8765_p12 }
 0x307   :  { %12106 = vst [vmem:[#allocation91_spill] sm:$0xff] %v10101_v27  ;;  %12107 = vst [vmem:[#allocation92_spill] sm:$0xff] %v10104_v29  ;;  %5088 = vmatprep.subr.bf16.mxu0 %v10101_v27  ;;  %v10114_v46 = vcombine.high %v4904_v32, %v4905_v45  ;;  %5335 = vmatprep.subr.bf16.mxu1 %v10104_v29  ;;  %v10117_v53 = vcombine.high %v5151_v61, %v5152_v15  ;;  %v4902_v63 = vld [vmem:[#allocation3 + $0x100] sm:$0xff]  ;;  %v5149_v0 = vld [vmem:[#allocation3 + $0x108] sm:$0xff] }
 0x308   :  { %12108 = vst [vmem:[#allocation93_spill] sm:$0xff] %v10108_v22  ;;  %12109 = vst [vmem:[#allocation94_spill] sm:$0xff] %v10112_v3  ;;  %v4903_v33 = vld [vmem:[#allocation3 + $0x120] sm:$0xff]  ;;  %v5150_v42 = vld [vmem:[#allocation3 + $0x128] sm:$0xff]  ;;  %v10120_v2 = vcombine.low %v4904_v32, %v4905_v45  ;;  %v10124_v58 = vcombine.low %v5151_v61, %v5152_v15  ;;  %p8768_p1 = pnand %p8767_p0, %p8761_p11 }
 0x309   :  { %12110 = vst [vmem:[#allocation95_spill] sm:$0xff] %v10114_v46  ;;  %12111 = vst [vmem:[#allocation96_spill] sm:$0xff] %v10117_v53  ;;  %v10126_v13 = vcombine.high %v4902_v63, %v4903_v33  ;;  %v10129_v52 = vcombine.high %v5149_v0, %v5150_v42  ;;  %v4900_v50 = vld [vmem:[#allocation3 + $0xc0] sm:$0xff]  ;;  %v5147_v4 = vld [vmem:[#allocation3 + $0xc8] sm:$0xff]  ;;  %v10132_v43 = vcombine.low %v4902_v63, %v4903_v33 }
 0x30a   :  { %5089 = vmatpush1.bf16.msra.mxu0 %v10108_v22  ;;  %12112 = vst [vmem:[#allocation97_spill] sm:$0xff] %v10120_v2  ;;  %5336 = vmatpush1.bf16.msra.mxu1 %v10112_v3  ;;  %12113 = vst [vmem:[#allocation98_spill] sm:$0xff] %v10124_v58  ;;  %v4901_v62 = vld [vmem:[#allocation3 + $0xe0] sm:$0xff]  ;;  %v5148_v54 = vld [vmem:[#allocation3 + $0xe8] sm:$0xff]  ;;  %v10136_v32 = vcombine.low %v5149_v0, %v5150_v42 }
 0x30b   :  { %5090 = vmatprep.subr.bf16.mxu0 %v10114_v46  ;;  %12114 = vst [vmem:[#allocation99_spill] sm:$0xff] %v10126_v13  ;;  %5337 = vmatprep.subr.bf16.mxu1 %v10117_v53  ;;  %12115 = vst [vmem:[#allocation100_spill] sm:$0xff] %v10129_v52  ;;  %v10138_v45 = vcombine.high %v4900_v50, %v4901_v62  ;;  %v10141_v61 = vcombine.high %v5147_v4, %v5148_v54  ;;  %v4898_v15 = vld [vmem:[#allocation3 + $0x80] sm:$0xff]  ;;  %v5145_v39 = vld [vmem:[#allocation3 + $0x88] sm:$0xff] }
 0x30c   :  { %12116 = vst [vmem:[#allocation101_spill] sm:$0xff] %v10132_v43  ;;  %12117 = vst [vmem:[#allocation102_spill] sm:$0xff] %v10136_v32  ;;  %v4899_v57 = vld [vmem:[#allocation3 + $0xa0] sm:$0xff]  ;;  %v5146_v12 = vld [vmem:[#allocation3 + $0xa8] sm:$0xff]  ;;  %v10144_v63 = vcombine.low %v4900_v50, %v4901_v62  ;;  %v10148_v33 = vcombine.low %v5147_v4, %v5148_v54 }
 0x30d   :  { %12118 = vst [vmem:[#allocation103_spill] sm:$0xff] %v10138_v45  ;;  %12119 = vst [vmem:[#allocation104_spill] sm:$0xff] %v10141_v61  ;;  %v10150_v0 = vcombine.high %v4898_v15, %v4899_v57  ;;  %v10153_v42 = vcombine.high %v5145_v39, %v5146_v12  ;;  %v4896_v11 = vld [vmem:[#allocation3 + $0x40] sm:$0xff]  ;;  %v5143_v18 = vld [vmem:[#allocation3 + $0x48] sm:$0xff]  ;;  %v10156_v50 = vcombine.low %v4898_v15, %v4899_v57 }
 0x30e   :  { %5091 = vmatpush1.bf16.msra.mxu0 %v10120_v2  ;;  %5338 = vmatpush1.bf16.msra.mxu1 %v10124_v58  ;;  %12120 = vst [vmem:[#allocation105_spill] sm:$0xff] %v10144_v63  ;;  %12121 = vst [vmem:[#allocation106_spill] sm:$0xff] %v10148_v33  ;;  %v4897_v51 = vld [vmem:[#allocation3 + $0x60] sm:$0xff]  ;;  %v5144_v25 = vld [vmem:[#allocation3 + $0x68] sm:$0xff]  ;;  %v10160_v62 = vcombine.low %v5145_v39, %v5146_v12 }
 0x30f   :  { %5092 = vmatprep.subr.bf16.mxu0 %v10126_v13  ;;  %5339 = vmatprep.subr.bf16.mxu1 %v10129_v52  ;;  %12122 = vst [vmem:[#allocation107_spill] sm:$0xff] %v10150_v0  ;;  %12123 = vst [vmem:[#allocation108_spill] sm:$0xff] %v10153_v42  ;;  %v10162_v4 = vcombine.high %v4896_v11, %v4897_v51  ;;  %v10165_v54 = vcombine.high %v5143_v18, %v5144_v25  ;;  %v4894_v14 = vld [vmem:[#allocation3] sm:$0xff]  ;;  %v5141_v48 = vld [vmem:[#allocation3 + $0x8] sm:$0xff] }
 0x310   :  { %12124 = vst [vmem:[#allocation109_spill] sm:$0xff] %v10156_v50  ;;  %12125 = vst [vmem:[#allocation110_spill] sm:$0xff] %v10160_v62  ;;  %v4895_v6 = vld [vmem:[#allocation3 + $0x20] sm:$0xff]  ;;  %v5142_v60 = vld [vmem:[#allocation3 + $0x28] sm:$0xff]  ;;  %v10168_v57 = vcombine.low %v4896_v11, %v4897_v51  ;;  %v10172_v12 = vcombine.low %v5143_v18, %v5144_v25 }
 0x311   :  { %12126 = vst [vmem:[#allocation111_spill] sm:$0xff] %v10162_v4  ;;  %12127 = vst [vmem:[#allocation112_spill] sm:$0xff] %v10165_v54  ;;  %v10174_v39 = vcombine.high %v4894_v14, %v4895_v6  ;;  %v10177_v15 = vcombine.high %v5141_v48, %v5142_v60  ;;  %v4924_v5 = vld [vmem:[#allocation3 + $0x3c0] sm:$0xff]  ;;  %v5171_v31 = vld [vmem:[#allocation3 + $0x3c8] sm:$0xff]  ;;  %v10180_v51 = vcombine.low %v4894_v14, %v4895_v6 }
 0x312   :  { %5093 = vmatpush1.bf16.msra.mxu0 %v10132_v43  ;;  %5340 = vmatpush1.bf16.msra.mxu1 %v10136_v32  ;;  %12128 = vst [vmem:[#allocation113_spill] sm:$0xff] %v10168_v57  ;;  %12129 = vst [vmem:[#allocation114_spill] sm:$0xff] %v10172_v12  ;;  %v4925_v28 = vld [vmem:[#allocation3 + $0x3e0] sm:$0xff]  ;;  %v5172_v36 = vld [vmem:[#allocation3 + $0x3e8] sm:$0xff]  ;;  %v10184_v25 = vcombine.low %v5141_v48, %v5142_v60 }
 0x313   :  { %5094 = vmatprep.subr.bf16.mxu0 %v10138_v45  ;;  %5341 = vmatprep.subr.bf16.mxu1 %v10141_v61  ;;  %12130 = vst [vmem:[#allocation115_spill] sm:$0xff] %v10174_v39  ;;  %12131 = vst [vmem:[#allocation116_spill] sm:$0xff] %v10177_v15  ;;  %v10186_v18 = vcombine.high %v4924_v5, %v4925_v28  ;;  %v10189_v11 = vcombine.high %v5171_v31, %v5172_v36  ;;  %v4922_v38 = vld [vmem:[#allocation3 + $0x380] sm:$0xff]  ;;  %v5169_v17 = vld [vmem:[#allocation3 + $0x388] sm:$0xff] }
 0x314   :  { %12132 = vst [vmem:[#allocation117_spill] sm:$0xff] %v10180_v51  ;;  %12133 = vst [vmem:[#allocation118_spill] sm:$0xff] %v10184_v25  ;;  %v4923_v44 = vld [vmem:[#allocation3 + $0x3a0] sm:$0xff]  ;;  %v5170_v49 = vld [vmem:[#allocation3 + $0x3a8] sm:$0xff]  ;;  %v10192_v6 = vcombine.low %v4924_v5, %v4925_v28  ;;  %v10196_v60 = vcombine.low %v5171_v31, %v5172_v36 }
 0x315   :  { %12134 = vst [vmem:[#allocation119_spill] sm:$0xff] %v10186_v18  ;;  %12135 = vst [vmem:[#allocation120_spill] sm:$0xff] %v10189_v11  ;;  %v10198_v48 = vcombine.high %v4922_v38, %v4923_v44  ;;  %v10201_v14 = vcombine.high %v5169_v17, %v5170_v49  ;;  %v4920_v35 = vld [vmem:[#allocation3 + $0x340] sm:$0xff]  ;;  %v5167_v55 = vld [vmem:[#allocation3 + $0x348] sm:$0xff]  ;;  %v10204_v28 = vcombine.low %v4922_v38, %v4923_v44 }
 0x316   :  { %5095 = vmatpush1.bf16.msra.mxu0 %v10144_v63  ;;  %5342 = vmatpush1.bf16.msra.mxu1 %v10148_v33  ;;  %12136 = vst [vmem:[#allocation121_spill] sm:$0xff] %v10192_v6  ;;  %12137 = vst [vmem:[#allocation122_spill] sm:$0xff] %v10196_v60  ;;  %v4921_v19 = vld [vmem:[#allocation3 + $0x360] sm:$0xff]  ;;  %v5168_v26 = vld [vmem:[#allocation3 + $0x368] sm:$0xff]  ;;  %v10208_v36 = vcombine.low %v5169_v17, %v5170_v49 }
 0x317   :  { %5096 = vmatprep.subr.bf16.mxu0 %v10150_v0  ;;  %5343 = vmatprep.subr.bf16.mxu1 %v10153_v42  ;;  %12138 = vst [vmem:[#allocation123_spill] sm:$0xff] %v10198_v48  ;;  %12139 = vst [vmem:[#allocation124_spill] sm:$0xff] %v10201_v14  ;;  %v10210_v31 = vcombine.high %v4920_v35, %v4921_v19  ;;  %v10213_v5 = vcombine.high %v5167_v55, %v5168_v26  ;;  %v4918_v40 = vld [vmem:[#allocation3 + $0x300] sm:$0xff]  ;;  %v5165_v10 = vld [vmem:[#allocation3 + $0x308] sm:$0xff] }
 0x318   :  { %12140 = vst [vmem:[#allocation125_spill] sm:$0xff] %v10204_v28  ;;  %12141 = vst [vmem:[#allocation126_spill] sm:$0xff] %v10208_v36  ;;  %v4919_v8 = vld [vmem:[#allocation3 + $0x320] sm:$0xff]  ;;  %v5166_v9 = vld [vmem:[#allocation3 + $0x328] sm:$0xff]  ;;  %v10216_v44 = vcombine.low %v4920_v35, %v4921_v19  ;;  %v10220_v49 = vcombine.low %v5167_v55, %v5168_v26 }
 0x319   :  { %12142 = vst [vmem:[#allocation127_spill] sm:$0xff] %v10210_v31  ;;  %12143 = vst [vmem:[#allocation128_spill] sm:$0xff] %v10213_v5  ;;  %v10222_v17 = vcombine.high %v4918_v40, %v4919_v8  ;;  %v10225_v38 = vcombine.high %v5165_v10, %v5166_v9  ;;  %v4916_v30 = vld [vmem:[#allocation3 + $0x2c0] sm:$0xff]  ;;  %v5163_v41 = vld [vmem:[#allocation3 + $0x2c8] sm:$0xff]  ;;  %v10228_v19 = vcombine.low %v4918_v40, %v4919_v8 }
 0x31a   :  { %5097 = vmatpush1.bf16.msra.mxu0 %v10156_v50  ;;  %5344 = vmatpush1.bf16.msra.mxu1 %v10160_v62  ;;  %12144 = vst [vmem:[#allocation129_spill] sm:$0xff] %v10216_v44  ;;  %12145 = vst [vmem:[#allocation130_spill] sm:$0xff] %v10220_v49  ;;  %v4917_v21 = vld [vmem:[#allocation3 + $0x2e0] sm:$0xff]  ;;  %v5164_v37 = vld [vmem:[#allocation3 + $0x2e8] sm:$0xff]  ;;  %v10232_v26 = vcombine.low %v5165_v10, %v5166_v9 }
 0x31b   :  { %5098 = vmatprep.subr.bf16.mxu0 %v10162_v4  ;;  %5345 = vmatprep.subr.bf16.mxu1 %v10165_v54  ;;  %12146 = vst [vmem:[#allocation131_spill] sm:$0xff] %v10222_v17  ;;  %12147 = vst [vmem:[#allocation132_spill] sm:$0xff] %v10225_v38  ;;  %v10234_v55 = vcombine.high %v4916_v30, %v4917_v21  ;;  %v10237_v35 = vcombine.high %v5163_v41, %v5164_v37  ;;  %v4914_v34 = vld [vmem:[#allocation3 + $0x280] sm:$0xff]  ;;  %v5161_v47 = vld [vmem:[#allocation3 + $0x288] sm:$0xff] }
 0x31c   :  { %12148 = vst [vmem:[#allocation133_spill] sm:$0xff] %v10228_v19  ;;  %12149 = vst [vmem:[#allocation134_spill] sm:$0xff] %v10232_v26  ;;  %v4915_v23 = vld [vmem:[#allocation3 + $0x2a0] sm:$0xff]  ;;  %v5162_v24 = vld [vmem:[#allocation3 + $0x2a8] sm:$0xff]  ;;  %v10240_v8 = vcombine.low %v4916_v30, %v4917_v21  ;;  %v10244_v9 = vcombine.low %v5163_v41, %v5164_v37 }
 0x31d   :  { %12150 = vst [vmem:[#allocation135_spill] sm:$0xff] %v10234_v55  ;;  %12151 = vst [vmem:[#allocation136_spill] sm:$0xff] %v10237_v35  ;;  %v10246_v10 = vcombine.high %v4914_v34, %v4915_v23  ;;  %v10249_v40 = vcombine.high %v5161_v47, %v5162_v24  ;;  %v4912_v59 = vld [vmem:[#allocation3 + $0x240] sm:$0xff]  ;;  %v10252_v21 = vcombine.low %v4914_v34, %v4915_v23 }
 0x31e   :  { %5099 = vmatpush1.bf16.msra.mxu0 %v10168_v57  ;;  %5346 = vmatpush1.bf16.msra.mxu1 %v10172_v12  ;;  %12152 = vst [vmem:[#allocation137_spill] sm:$0xff] %v10240_v8  ;;  %12153 = vst [vmem:[#allocation138_spill] sm:$0xff] %v10244_v9  ;;  %v10256_v37 = vcombine.low %v5161_v47, %v5162_v24 }
 0x31f   :  { %5100 = vmatprep.subr.bf16.mxu0 %v10174_v39  ;;  %5347 = vmatprep.subr.bf16.mxu1 %v10177_v15  ;;  %12154 = vst [vmem:[#allocation139_spill] sm:$0xff] %v10246_v10  ;;  %12155 = vst [vmem:[#allocation140_spill] sm:$0xff] %v10249_v40 }
 0x320   :  { %12156 = vst [vmem:[#allocation141_spill] sm:$0xff] %v10252_v21  ;;  %12157 = vst [vmem:[#allocation142_spill] sm:$0xff] %v10256_v37 }
 0x322   :  { %5101 = vmatpush1.bf16.msra.mxu0 %v10180_v51  ;;  %5348 = vmatpush1.bf16.msra.mxu1 %v10184_v25 }
 0x323   :  { %5102 = vmatprep.subr.bf16.mxu0 %v10186_v18  ;;  %5349 = vmatprep.subr.bf16.mxu1 %v10189_v11 }
 0x326   :  { %5103 = vmatpush2.bf16.msra.mxu0 %v10192_v6  ;;  %5350 = vmatpush2.bf16.msra.mxu1 %v10196_v60 }
 0x327   :  { %5104 = vmatprep.subr.bf16.mxu0 %v10198_v48  ;;  %5351 = vmatprep.subr.bf16.mxu1 %v10201_v14 }
 0x32a   :  { %5105 = vmatpush2.bf16.msra.mxu0 %v10204_v28  ;;  %5352 = vmatpush2.bf16.msra.mxu1 %v10208_v36 }
 0x32b   :  { %5106 = vmatprep.subr.bf16.mxu0 %v10210_v31  ;;  %5353 = vmatprep.subr.bf16.mxu1 %v10213_v5 }
 0x32e   :  { %5107 = vmatpush2.bf16.msra.mxu0 %v10216_v44  ;;  %5354 = vmatpush2.bf16.msra.mxu1 %v10220_v49  ;;  %v5160_v49 = vld [vmem:[#allocation3 + $0x268] sm:$0xff] }
 0x32f   :  { %5108 = vmatprep.subr.bf16.mxu0 %v10222_v17  ;;  %5355 = vmatprep.subr.bf16.mxu1 %v10225_v38  ;;  %v4913_v38 = vld [vmem:[#allocation3 + $0x260] sm:$0xff]  ;;  %v5159_v17 = vld [vmem:[#allocation3 + $0x248] sm:$0xff] }
 0x330   :  { %v10258_v41 = vcombine.high %v4912_v59, %v4913_v38  ;;  %v10261_v30 = vcombine.high %v5159_v17, %v5160_v49  ;;  %v10264_v23 = vcombine.low %v4912_v59, %v4913_v38  ;;  %v10268_v24 = vcombine.low %v5159_v17, %v5160_v49 }
 0x332   :  { %5109 = vmatpush2.bf16.msra.mxu0 %v10228_v19  ;;  %5356 = vmatpush2.bf16.msra.mxu1 %v10232_v26  ;;  %12158 = vst [vmem:[#allocation143_spill] sm:$0xff] %v10258_v41  ;;  %12159 = vst [vmem:[#allocation144_spill] sm:$0xff] %v10261_v30  ;;  %v5157_v26 = vld [vmem:[#allocation3 + $0x208] sm:$0xff] }
 0x333   :  { %5110 = vmatprep.subr.bf16.mxu0 %v10234_v55  ;;  %5357 = vmatprep.subr.bf16.mxu1 %v10237_v35  ;;  %v4910_v35 = vld [vmem:[#allocation3 + $0x200] sm:$0xff]  ;;  %v5158_v19 = vld [vmem:[#allocation3 + $0x228] sm:$0xff]  ;;  %12160 = vst [vmem:[#allocation145_spill] sm:$0xff] %v10264_v23  ;;  %12161 = vst [vmem:[#allocation146_spill] sm:$0xff] %v10268_v24 }
 0x334   :  { %v4911_v55 = vld [vmem:[#allocation3 + $0x220] sm:$0xff]  ;;  %v10273_v34 = vcombine.high %v5157_v26, %v5158_v19  ;;  %v10280_v49 = vcombine.low %v5157_v26, %v5158_v19 }
 0x335   :  { %v10270_v47 = vcombine.high %v4910_v35, %v4911_v55  ;;  %v10276_v59 = vcombine.low %v4910_v35, %v4911_v55 }
 0x336   :  { %5111 = vmatpush2.bf16.msra.mxu0 %v10240_v8  ;;  %5358 = vmatpush2.bf16.msra.mxu1 %v10244_v9  ;;  %12163 = vst [vmem:[#allocation148_spill] sm:$0xff] %v10273_v34  ;;  %v5639_v9 = vld [vmem:[#allocation3 + $0x1d8] sm:$0xff]  ;;  %12165 = vst [vmem:[#allocation150_spill] sm:$0xff] %v10280_v49 }
 0x337   :  { %5112 = vmatprep.subr.bf16.mxu0 %v10246_v10  ;;  %5359 = vmatprep.subr.bf16.mxu1 %v10249_v40  ;;  %12162 = vst [vmem:[#allocation147_spill] sm:$0xff] %v10270_v47  ;;  %v5402_v40 = vld [vmem:[#allocation3 + $0x1d0] sm:$0xff]  ;;  %v5640_v8 = vld [vmem:[#allocation3 + $0x1f8] sm:$0xff]  ;;  %12164 = vst [vmem:[#allocation149_spill] sm:$0xff] %v10276_v59 }
 0x338   :  { %v5403_v10 = vld [vmem:[#allocation3 + $0x1f0] sm:$0xff]  ;;  %v10285_v38 = vcombine.high %v5639_v9, %v5640_v8  ;;  %v10292_v19 = vcombine.low %v5639_v9, %v5640_v8 }
 0x339   :  { %v10282_v17 = vcombine.high %v5402_v40, %v5403_v10  ;;  %v10288_v55 = vcombine.low %v5402_v40, %v5403_v10 }
 0x33a   :  { %5113 = vmatpush2.bf16.msra.mxu0 %v10252_v21  ;;  %5360 = vmatpush2.bf16.msra.mxu1 %v10256_v37  ;;  %12167 = vst [vmem:[#allocation152_spill] sm:$0xff] %v10285_v38  ;;  %v5637_v37 = vld [vmem:[#allocation3 + $0x198] sm:$0xff]  ;;  %12169 = vst [vmem:[#allocation154_spill] sm:$0xff] %v10292_v19 }
 0x33b   :  { %5114 = vmatprep.subr.bf16.mxu0 %v10258_v41  ;;  %5361 = vmatprep.subr.bf16.mxu1 %v10261_v30  ;;  %12166 = vst [vmem:[#allocation151_spill] sm:$0xff] %v10282_v17  ;;  %v5400_v30 = vld [vmem:[#allocation3 + $0x190] sm:$0xff]  ;;  %v5638_v21 = vld [vmem:[#allocation3 + $0x1b8] sm:$0xff]  ;;  %12168 = vst [vmem:[#allocation153_spill] sm:$0xff] %v10288_v55 }
 0x33c   :  { %v5401_v41 = vld [vmem:[#allocation3 + $0x1b0] sm:$0xff]  ;;  %v10297_v35 = vcombine.high %v5637_v37, %v5638_v21  ;;  %v10306_v8 = vcombine.low %v5637_v37, %v5638_v21 }
 0x33d   :  { %v10294_v26 = vcombine.high %v5400_v30, %v5401_v41  ;;  %v10302_v10 = vcombine.low %v5400_v30, %v5401_v41 }
 0x33e   :  { %5115 = vmatpush2.bf16.msra.mxu0 %v10264_v23  ;;  %5362 = vmatpush2.bf16.msra.mxu1 %v10268_v24  ;;  %12171 = vst [vmem:[#allocation156_spill] sm:$0xff] %v10297_v35  ;;  %v5635_v24 = vld [vmem:[#allocation3 + $0x158] sm:$0xff]  ;;  %12173 = vst [vmem:[#allocation158_spill] sm:$0xff] %v10306_v8 }
 0x33f   :  { %5116 = vmatprep.subr.bf16.mxu0 %v10270_v47  ;;  %5363 = vmatprep.subr.bf16.mxu1 %v10273_v34  ;;  %12170 = vst [vmem:[#allocation155_spill] sm:$0xff] %v10294_v26  ;;  %v5398_v34 = vld [vmem:[#allocation3 + $0x150] sm:$0xff]  ;;  %12172 = vst [vmem:[#allocation157_spill] sm:$0xff] %v10302_v10  ;;  %v5632_v23 = vld [vmem:[#allocation3 + $0xf8] sm:$0xff] }
 0x340   :  { %v5399_v47 = vld [vmem:[#allocation3 + $0x170] sm:$0xff] }
 0x341   :  { %v10308_v9 = vcombine.high %v5398_v34, %v5399_v47  ;;  %v10316_v41 = vcombine.low %v5398_v34, %v5399_v47 }
 0x342   :  { %5117 = vmatpush2.bf16.msra.mxu0 %v10276_v59  ;;  %5364 = vmatpush2.bf16.msra.mxu1 %v10280_v49  ;;  %v5636_v59 = vld [vmem:[#allocation3 + $0x178] sm:$0xff] }
 0x343   :  { %5580 = vmatprep.subr.bf16.mxu0 %v10282_v17  ;;  %5817 = vmatprep.subr.bf16.mxu1 %v10285_v38  ;;  %12174 = vst [vmem:[#allocation159_spill] sm:$0xff] %v10308_v9  ;;  %v10311_v40 = vcombine.high %v5635_v24, %v5636_v59  ;;  %v5396_v38 = vld [vmem:[#allocation3 + $0x110] sm:$0xff]  ;;  %v5633_v49 = vld [vmem:[#allocation3 + $0x118] sm:$0xff]  ;;  %12176 = vst [vmem:[#allocation161_spill] sm:$0xff] %v10316_v41  ;;  %v10320_v21 = vcombine.low %v5635_v24, %v5636_v59 }
 0x344   :  { %v5397_v17 = vld [vmem:[#allocation3 + $0x130] sm:$0xff] }
 0x345   :  { %5119 = vmatmul.mubr.bf16.vlgmr.msra.gmra.mxu0 %v11922_v56  ;;  %5366 = vmatmul.mubr.bf16.vlgmr.msra.gmra.mxu1 %v11922_v56  ;;  %12175 = vst [vmem:[#allocation160_spill] sm:$0xff] %v10311_v40  ;;  %12177 = vst [vmem:[#allocation162_spill] sm:$0xff] %v10320_v21  ;;  %v10322_v37 = vcombine.high %v5396_v38, %v5397_v17  ;;  %v10328_v47 = vcombine.low %v5396_v38, %v5397_v17 }
 0x346   :  { %5581 = vmatpush1.bf16.msra.mxu0 %v10288_v55  ;;  %5818 = vmatpush1.bf16.msra.mxu1 %v10292_v19  ;;  %v5634_v55 = vld [vmem:[#allocation3 + $0x138] sm:$0xff] }
 0x347   :  { %5582 = vmatprep.subr.bf16.mxu0 %v10294_v26  ;;  %5819 = vmatprep.subr.bf16.mxu1 %v10297_v35  ;;  %12178 = vst [vmem:[#allocation163_spill] sm:$0xff] %v10322_v37  ;;  %v10325_v30 = vcombine.high %v5633_v49, %v5634_v55  ;;  %v5394_v35 = vld [vmem:[#allocation3 + $0xd0] sm:$0xff]  ;;  %v5631_v19 = vld [vmem:[#allocation3 + $0xd8] sm:$0xff]  ;;  %12180 = vst [vmem:[#allocation165_spill] sm:$0xff] %v10328_v47  ;;  %v10332_v24 = vcombine.low %v5633_v49, %v5634_v55 }
 0x348   :  { %5612 = vmatprep.mubr.bf16.mxu0 %v11922_v56  ;;  %5849 = vmatprep.mubr.bf16.mxu1 %v11922_v56  ;;  %v5395_v26 = vld [vmem:[#allocation3 + $0xf0] sm:$0xff]  ;;  %v10337_v59 = vcombine.high %v5631_v19, %v5632_v23  ;;  %v10344_v49 = vcombine.low %v5631_v19, %v5632_v23 }
 0x349   :  { %12179 = vst [vmem:[#allocation164_spill] sm:$0xff] %v10325_v30  ;;  %12181 = vst [vmem:[#allocation166_spill] sm:$0xff] %v10332_v24  ;;  %v10334_v34 = vcombine.high %v5394_v35, %v5395_v26  ;;  %v10340_v17 = vcombine.low %v5394_v35, %v5395_v26 }
 0x34a   :  { %5583 = vmatpush1.bf16.msra.mxu0 %v10302_v10  ;;  %5820 = vmatpush1.bf16.msra.mxu1 %v10306_v8  ;;  %12183 = vst [vmem:[#allocation168_spill] sm:$0xff] %v10337_v59  ;;  %v5629_v8 = vld [vmem:[#allocation3 + $0x98] sm:$0xff]  ;;  %12185 = vst [vmem:[#allocation170_spill] sm:$0xff] %v10344_v49 }
 0x34b   :  { %5584 = vmatprep.subr.bf16.mxu0 %v10308_v9  ;;  %5821 = vmatprep.subr.bf16.mxu1 %v10311_v40  ;;  %12182 = vst [vmem:[#allocation167_spill] sm:$0xff] %v10334_v34  ;;  %v5392_v40 = vld [vmem:[#allocation3 + $0x90] sm:$0xff]  ;;  %v5630_v10 = vld [vmem:[#allocation3 + $0xb8] sm:$0xff]  ;;  %12184 = vst [vmem:[#allocation169_spill] sm:$0xff] %v10340_v17 }
 0x34c   :  { %v5393_v9 = vld [vmem:[#allocation3 + $0xb0] sm:$0xff]  ;;  %v10349_v55 = vcombine.high %v5629_v8, %v5630_v10  ;;  %v10356_v23 = vcombine.low %v5629_v8, %v5630_v10 }
 0x34d   :  { %v10346_v38 = vcombine.high %v5392_v40, %v5393_v9  ;;  %v10352_v26 = vcombine.low %v5392_v40, %v5393_v9 }
 0x34e   :  { %5585 = vmatpush1.bf16.msra.mxu0 %v10316_v41  ;;  %5822 = vmatpush1.bf16.msra.mxu1 %v10320_v21  ;;  %12187 = vst [vmem:[#allocation172_spill] sm:$0xff] %v10349_v55  ;;  %v5627_v21 = vld [vmem:[#allocation3 + $0x58] sm:$0xff]  ;;  %12189 = vst [vmem:[#allocation174_spill] sm:$0xff] %v10356_v23 }
 0x34f   :  { %5586 = vmatprep.subr.bf16.mxu0 %v10322_v37  ;;  %5823 = vmatprep.subr.bf16.mxu1 %v10325_v30  ;;  %12186 = vst [vmem:[#allocation171_spill] sm:$0xff] %v10346_v38  ;;  %v5390_v30 = vld [vmem:[#allocation3 + $0x50] sm:$0xff]  ;;  %v5628_v41 = vld [vmem:[#allocation3 + $0x78] sm:$0xff]  ;;  %12188 = vst [vmem:[#allocation173_spill] sm:$0xff] %v10352_v26 }
 0x350   :  { %v5391_v37 = vld [vmem:[#allocation3 + $0x70] sm:$0xff]  ;;  %v10361_v35 = vcombine.high %v5627_v21, %v5628_v41  ;;  %v10368_v10 = vcombine.low %v5627_v21, %v5628_v41 }
 0x351   :  { %v10358_v19 = vcombine.high %v5390_v30, %v5391_v37  ;;  %v10364_v9 = vcombine.low %v5390_v30, %v5391_v37 }
 0x352   :  { %5587 = vmatpush1.bf16.msra.mxu0 %v10328_v47  ;;  %5824 = vmatpush1.bf16.msra.mxu1 %v10332_v24  ;;  %12191 = vst [vmem:[#allocation176_spill] sm:$0xff] %v10361_v35  ;;  %v5625_v24 = vld [vmem:[#allocation3 + $0x18] sm:$0xff]  ;;  %12193 = vst [vmem:[#allocation178_spill] sm:$0xff] %v10368_v10 }
 0x353   :  { %5588 = vmatprep.subr.bf16.mxu0 %v10334_v34  ;;  %5825 = vmatprep.subr.bf16.mxu1 %v10337_v59  ;;  %12190 = vst [vmem:[#allocation175_spill] sm:$0xff] %v10358_v19  ;;  %v5388_v59 = vld [vmem:[#allocation3 + $0x10] sm:$0xff]  ;;  %v5626_v47 = vld [vmem:[#allocation3 + $0x38] sm:$0xff]  ;;  %12192 = vst [vmem:[#allocation177_spill] sm:$0xff] %v10364_v9 }
 0x354   :  { %v5389_v34 = vld [vmem:[#allocation3 + $0x30] sm:$0xff]  ;;  %v10373_v40 = vcombine.high %v5625_v24, %v5626_v47  ;;  %v10380_v41 = vcombine.low %v5625_v24, %v5626_v47 }
 0x355   :  { %v10370_v8 = vcombine.high %v5388_v59, %v5389_v34  ;;  %v10376_v37 = vcombine.low %v5388_v59, %v5389_v34 }
 0x356   :  { %5589 = vmatpush1.bf16.msra.mxu0 %v10340_v17  ;;  %5826 = vmatpush1.bf16.msra.mxu1 %v10344_v49  ;;  %12195 = vst [vmem:[#allocation180_spill] sm:$0xff] %v10373_v40  ;;  %v5655_v49 = vld [vmem:[#allocation3 + $0x3d8] sm:$0xff]  ;;  %12197 = vst [vmem:[#allocation182_spill] sm:$0xff] %v10380_v41 }
 0x357   :  { %5590 = vmatprep.subr.bf16.mxu0 %v10346_v38  ;;  %5827 = vmatprep.subr.bf16.mxu1 %v10349_v55  ;;  %12194 = vst [vmem:[#allocation179_spill] sm:$0xff] %v10370_v8  ;;  %v5418_v55 = vld [vmem:[#allocation3 + $0x3d0] sm:$0xff]  ;;  %v5656_v17 = vld [vmem:[#allocation3 + $0x3f8] sm:$0xff]  ;;  %12196 = vst [vmem:[#allocation181_spill] sm:$0xff] %v10376_v37 }
 0x358   :  { %v5419_v38 = vld [vmem:[#allocation3 + $0x3f0] sm:$0xff]  ;;  %v10385_v30 = vcombine.high %v5655_v49, %v5656_v17  ;;  %v10392_v47 = vcombine.low %v5655_v49, %v5656_v17 }
 0x359   :  { %v10382_v21 = vcombine.high %v5418_v55, %v5419_v38  ;;  %v10388_v34 = vcombine.low %v5418_v55, %v5419_v38 }
 0x35a   :  { %5591 = vmatpush1.bf16.msra.mxu0 %v10352_v26  ;;  %5828 = vmatpush1.bf16.msra.mxu1 %v10356_v23  ;;  %12199 = vst [vmem:[#allocation184_spill] sm:$0xff] %v10385_v30  ;;  %v5653_v23 = vld [vmem:[#allocation3 + $0x398] sm:$0xff]  ;;  %12201 = vst [vmem:[#allocation186_spill] sm:$0xff] %v10392_v47 }
 0x35b   :  { %5592 = vmatprep.subr.bf16.mxu0 %v10358_v19  ;;  %5829 = vmatprep.subr.bf16.mxu1 %v10361_v35  ;;  %12198 = vst [vmem:[#allocation183_spill] sm:$0xff] %v10382_v21  ;;  %v5416_v35 = vld [vmem:[#allocation3 + $0x390] sm:$0xff]  ;;  %v5654_v26 = vld [vmem:[#allocation3 + $0x3b8] sm:$0xff]  ;;  %12200 = vst [vmem:[#allocation185_spill] sm:$0xff] %v10388_v34 }
 0x35c   :  { %v5417_v19 = vld [vmem:[#allocation3 + $0x3b0] sm:$0xff]  ;;  %v10397_v59 = vcombine.high %v5653_v23, %v5654_v26  ;;  %v10404_v17 = vcombine.low %v5653_v23, %v5654_v26 }
 0x35d   :  { %v10394_v24 = vcombine.high %v5416_v35, %v5417_v19  ;;  %v10400_v38 = vcombine.low %v5416_v35, %v5417_v19 }
 0x35e   :  { %5593 = vmatpush1.bf16.msra.mxu0 %v10364_v9  ;;  %5830 = vmatpush1.bf16.msra.mxu1 %v10368_v10  ;;  %12203 = vst [vmem:[#allocation188_spill] sm:$0xff] %v10397_v59  ;;  %v5651_v10 = vld [vmem:[#allocation3 + $0x358] sm:$0xff]  ;;  %12205 = vst [vmem:[#allocation190_spill] sm:$0xff] %v10404_v17 }
 0x35f   :  { %5594 = vmatprep.subr.bf16.mxu0 %v10370_v8  ;;  %5831 = vmatprep.subr.bf16.mxu1 %v10373_v40  ;;  %12202 = vst [vmem:[#allocation187_spill] sm:$0xff] %v10394_v24  ;;  %v5414_v40 = vld [vmem:[#allocation3 + $0x350] sm:$0xff]  ;;  %v5652_v9 = vld [vmem:[#allocation3 + $0x378] sm:$0xff]  ;;  %12204 = vst [vmem:[#allocation189_spill] sm:$0xff] %v10400_v38 }
 0x360   :  { %v5415_v8 = vld [vmem:[#allocation3 + $0x370] sm:$0xff]  ;;  %v10409_v55 = vcombine.high %v5651_v10, %v5652_v9  ;;  %v10416_v26 = vcombine.low %v5651_v10, %v5652_v9 }
 0x361   :  { %v10406_v49 = vcombine.high %v5414_v40, %v5415_v8  ;;  %v10412_v19 = vcombine.low %v5414_v40, %v5415_v8 }
 0x362   :  { %5595 = vmatpush1.bf16.msra.mxu0 %v10376_v37  ;;  %5832 = vmatpush1.bf16.msra.mxu1 %v10380_v41  ;;  %12207 = vst [vmem:[#allocation192_spill] sm:$0xff] %v10409_v55  ;;  %v5649_v41 = vld [vmem:[#allocation3 + $0x318] sm:$0xff]  ;;  %12209 = vst [vmem:[#allocation194_spill] sm:$0xff] %v10416_v26 }
 0x363   :  { %5596 = vmatprep.subr.bf16.mxu0 %v10382_v21  ;;  %5833 = vmatprep.subr.bf16.mxu1 %v10385_v30  ;;  %12206 = vst [vmem:[#allocation191_spill] sm:$0xff] %v10406_v49  ;;  %v5412_v30 = vld [vmem:[#allocation3 + $0x310] sm:$0xff]  ;;  %v5650_v37 = vld [vmem:[#allocation3 + $0x338] sm:$0xff]  ;;  %12208 = vst [vmem:[#allocation193_spill] sm:$0xff] %v10412_v19 }
 0x364   :  { %v5413_v21 = vld [vmem:[#allocation3 + $0x330] sm:$0xff]  ;;  %v10421_v35 = vcombine.high %v5649_v41, %v5650_v37  ;;  %v10428_v9 = vcombine.low %v5649_v41, %v5650_v37 }
 0x365   :  { %v10418_v23 = vcombine.high %v5412_v30, %v5413_v21  ;;  %v10424_v8 = vcombine.low %v5412_v30, %v5413_v21 }
 0x366   :  { %5597 = vmatpush2.bf16.msra.mxu0 %v10388_v34  ;;  %5834 = vmatpush2.bf16.msra.mxu1 %v10392_v47  ;;  %12211 = vst [vmem:[#allocation196_spill] sm:$0xff] %v10421_v35  ;;  %v5647_v47 = vld [vmem:[#allocation3 + $0x2d8] sm:$0xff]  ;;  %12213 = vst [vmem:[#allocation198_spill] sm:$0xff] %v10428_v9 }
 0x367   :  { %5598 = vmatprep.subr.bf16.mxu0 %v10394_v24  ;;  %5835 = vmatprep.subr.bf16.mxu1 %v10397_v59  ;;  %12210 = vst [vmem:[#allocation195_spill] sm:$0xff] %v10418_v23  ;;  %v5410_v59 = vld [vmem:[#allocation3 + $0x2d0] sm:$0xff]  ;;  %v5648_v34 = vld [vmem:[#allocation3 + $0x2f8] sm:$0xff]  ;;  %12212 = vst [vmem:[#allocation197_spill] sm:$0xff] %v10424_v8 }
 0x368   :  { %v5411_v24 = vld [vmem:[#allocation3 + $0x2f0] sm:$0xff]  ;;  %v10433_v40 = vcombine.high %v5647_v47, %v5648_v34  ;;  %v10440_v37 = vcombine.low %v5647_v47, %v5648_v34 }
 0x369   :  { %v10430_v10 = vcombine.high %v5410_v59, %v5411_v24  ;;  %v10436_v21 = vcombine.low %v5410_v59, %v5411_v24 }
 0x36a   :  { %5599 = vmatpush2.bf16.msra.mxu0 %v10400_v38  ;;  %5836 = vmatpush2.bf16.msra.mxu1 %v10404_v17  ;;  %12215 = vst [vmem:[#allocation200_spill] sm:$0xff] %v10433_v40  ;;  %v5645_v17 = vld [vmem:[#allocation3 + $0x298] sm:$0xff]  ;;  %12217 = vst [vmem:[#allocation202_spill] sm:$0xff] %v10440_v37 }
 0x36b   :  { %5600 = vmatprep.subr.bf16.mxu0 %v10406_v49  ;;  %5837 = vmatprep.subr.bf16.mxu1 %v10409_v55  ;;  %12214 = vst [vmem:[#allocation199_spill] sm:$0xff] %v10430_v10  ;;  %v5408_v55 = vld [vmem:[#allocation3 + $0x290] sm:$0xff]  ;;  %v5646_v38 = vld [vmem:[#allocation3 + $0x2b8] sm:$0xff]  ;;  %12216 = vst [vmem:[#allocation201_spill] sm:$0xff] %v10436_v21 }
 0x36c   :  { %v5409_v49 = vld [vmem:[#allocation3 + $0x2b0] sm:$0xff]  ;;  %v10445_v30 = vcombine.high %v5645_v17, %v5646_v38  ;;  %v10452_v34 = vcombine.low %v5645_v17, %v5646_v38 }
 0x36d   :  { %v10442_v41 = vcombine.high %v5408_v55, %v5409_v49  ;;  %v10448_v24 = vcombine.low %v5408_v55, %v5409_v49 }
 0x36e   :  { %5601 = vmatpush2.bf16.msra.mxu0 %v10412_v19  ;;  %5838 = vmatpush2.bf16.msra.mxu1 %v10416_v26  ;;  %12219 = vst [vmem:[#allocation204_spill] sm:$0xff] %v10445_v30  ;;  %v5643_v26 = vld [vmem:[#allocation3 + $0x258] sm:$0xff]  ;;  %12221 = vst [vmem:[#allocation206_spill] sm:$0xff] %v10452_v34 }
 0x36f   :  { %5602 = vmatprep.subr.bf16.mxu0 %v10418_v23  ;;  %5839 = vmatprep.subr.bf16.mxu1 %v10421_v35  ;;  %12218 = vst [vmem:[#allocation203_spill] sm:$0xff] %v10442_v41  ;;  %v5406_v35 = vld [vmem:[#allocation3 + $0x250] sm:$0xff]  ;;  %v5644_v19 = vld [vmem:[#allocation3 + $0x278] sm:$0xff]  ;;  %12220 = vst [vmem:[#allocation205_spill] sm:$0xff] %v10448_v24 }
 0x370   :  { %v5407_v23 = vld [vmem:[#allocation3 + $0x270] sm:$0xff]  ;;  %v10457_v59 = vcombine.high %v5643_v26, %v5644_v19  ;;  %v10464_v38 = vcombine.low %v5643_v26, %v5644_v19  ;;  %v12232_v26 = vld [vmem:[#allocation132_spill] sm:$0xff] }
 0x371   :  { %v10454_v47 = vcombine.high %v5406_v35, %v5407_v23  ;;  %v10460_v49 = vcombine.low %v5406_v35, %v5407_v23  ;;  %v12231_v19 = vld [vmem:[#allocation131_spill] sm:$0xff]  ;;  %v12233_v35 = vld [vmem:[#allocation133_spill] sm:$0xff] }
 0x372   :  { %5603 = vmatpush2.bf16.msra.mxu0 %v10424_v8  ;;  %5840 = vmatpush2.bf16.msra.mxu1 %v10428_v9  ;;  %12223 = vst [vmem:[#allocation208_spill] sm:$0xff] %v10457_v59  ;;  %v5641_v9 = vld [vmem:[#allocation3 + $0x218] sm:$0xff]  ;;  %12225 = vst [vmem:[#allocation210_spill] sm:$0xff] %v10464_v38 }
 0x373   :  { %5604 = vmatprep.subr.bf16.mxu0 %v10430_v10  ;;  %5841 = vmatprep.subr.bf16.mxu1 %v10433_v40  ;;  %12222 = vst [vmem:[#allocation207_spill] sm:$0xff] %v10454_v47  ;;  %v5404_v40 = vld [vmem:[#allocation3 + $0x210] sm:$0xff]  ;;  %v5642_v8 = vld [vmem:[#allocation3 + $0x238] sm:$0xff]  ;;  %12224 = vst [vmem:[#allocation209_spill] sm:$0xff] %v10460_v49 }
 0x374   :  { %v5405_v10 = vld [vmem:[#allocation3 + $0x230] sm:$0xff]  ;;  %v10469_v55 = vcombine.high %v5641_v9, %v5642_v8  ;;  %v10476_v23 = vcombine.low %v5641_v9, %v5642_v8  ;;  %v12234_v8 = vld [vmem:[#allocation134_spill] sm:$0xff] }
 0x375   :  { %v10466_v17 = vcombine.high %v5404_v40, %v5405_v10  ;;  %v12235_v9 = vld [vmem:[#allocation135_spill] sm:$0xff] }
 0x376   :  { %5605 = vmatpush2.bf16.msra.mxu0 %v10436_v21  ;;  %5842 = vmatpush2.bf16.msra.mxu1 %v10440_v37  ;;  %12227 = vst [vmem:[#allocation212_spill] sm:$0xff] %v10469_v55  ;;  %12229 = vst [vmem:[#allocation214_spill] sm:$0xff] %v10476_v23 }
 0x377   :  { %5606 = vmatprep.subr.bf16.mxu0 %v10442_v41  ;;  %5843 = vmatprep.subr.bf16.mxu1 %v10445_v30  ;;  %12226 = vst [vmem:[#allocation211_spill] sm:$0xff] %v10466_v17  ;;  %v10472_v30 = vcombine.low %v5404_v40, %v5405_v10  ;;  %v12236_v10 = vld [vmem:[#allocation136_spill] sm:$0xff]  ;;  %v12237_v40 = vld [vmem:[#allocation137_spill] sm:$0xff] }
 0x379   :  { %12228 = vst [vmem:[#allocation213_spill] sm:$0xff] %v10472_v30 }
 0x37a   :  { %5607 = vmatpush2.bf16.msra.mxu0 %v10448_v24  ;;  %5844 = vmatpush2.bf16.msra.mxu1 %v10452_v34 }
 0x37b   :  { %5608 = vmatprep.subr.bf16.mxu0 %v10454_v47  ;;  %5845 = vmatprep.subr.bf16.mxu1 %v10457_v59 }
 0x37e   :  { %5609 = vmatpush2.bf16.msra.mxu0 %v10460_v49  ;;  %5846 = vmatpush2.bf16.msra.mxu1 %v10464_v38 }
 0x37f   :  { %5610 = vmatprep.subr.bf16.mxu0 %v10466_v17  ;;  %5847 = vmatprep.subr.bf16.mxu1 %v10469_v55 }
 0x382   :  { %5611 = vmatpush2.bf16.msra.mxu0 %v10472_v30  ;;  %5848 = vmatpush2.bf16.msra.mxu1 %v10476_v23 }
 0x383   :  { %5895 = vmatprep.subr.bf16.mxu0 %v10093_v16  ;;  %5950 = vmatprep.subr.bf16.mxu1 %v10097_v7 }
 0x385   :  { %5613 = vmatmul.mubr.bf16.vlgmr.msra.gmra.mxu0 %v11922_v56  ;;  %5850 = vmatmul.mubr.bf16.vlgmr.msra.gmra.mxu1 %v11922_v56  ;;  %v12230_v56 = vld [vmem:[#allocation130_spill] sm:$0xff] }
 0x386   :  { %5896 = vmatpush1.bf16.msra.mxu0 %v10095_v20  ;;  %5951 = vmatpush1.bf16.msra.mxu1 %v10099_v1 }
 0x387   :  { %5897 = vmatprep.subr.bf16.mxu0 %v10101_v27  ;;  %5952 = vmatprep.subr.bf16.mxu1 %v10104_v29 }
 0x38a   :  { %5898 = vmatpush1.bf16.msra.mxu0 %v10108_v22  ;;  %5953 = vmatpush1.bf16.msra.mxu1 %v10112_v3 }
 0x38b   :  { %5899 = vmatprep.subr.bf16.mxu0 %v10114_v46  ;;  %5954 = vmatprep.subr.bf16.mxu1 %v10117_v53 }
 0x38e   :  { %5900 = vmatpush1.bf16.msra.mxu0 %v10120_v2  ;;  %5955 = vmatpush1.bf16.msra.mxu1 %v10124_v58 }
 0x38f   :  { %5901 = vmatprep.subr.bf16.mxu0 %v10126_v13  ;;  %5956 = vmatprep.subr.bf16.mxu1 %v10129_v52 }
 0x392   :  { %5902 = vmatpush1.bf16.msra.mxu0 %v10132_v43  ;;  %5957 = vmatpush1.bf16.msra.mxu1 %v10136_v32 }
 0x393   :  { %5903 = vmatprep.subr.bf16.mxu0 %v10138_v45  ;;  %5958 = vmatprep.subr.bf16.mxu1 %v10141_v61 }
 0x396   :  { %5904 = vmatpush1.bf16.msra.mxu0 %v10144_v63  ;;  %5959 = vmatpush1.bf16.msra.mxu1 %v10148_v33 }
 0x397   :  { %5905 = vmatprep.subr.bf16.mxu0 %v10150_v0  ;;  %5960 = vmatprep.subr.bf16.mxu1 %v10153_v42 }
 0x39a   :  { %5906 = vmatpush1.bf16.msra.mxu0 %v10156_v50  ;;  %5961 = vmatpush1.bf16.msra.mxu1 %v10160_v62 }
 0x39b   :  { %5907 = vmatprep.subr.bf16.mxu0 %v10162_v4  ;;  %5962 = vmatprep.subr.bf16.mxu1 %v10165_v54 }
 0x39e   :  { %5908 = vmatpush1.bf16.msra.mxu0 %v10168_v57  ;;  %5963 = vmatpush1.bf16.msra.mxu1 %v10172_v12 }
 0x39f   :  { %5909 = vmatprep.subr.bf16.mxu0 %v10174_v39  ;;  %5964 = vmatprep.subr.bf16.mxu1 %v10177_v15 }
 0x3a2   :  { %5910 = vmatpush1.bf16.msra.mxu0 %v10180_v51  ;;  %5965 = vmatpush1.bf16.msra.mxu1 %v10184_v25 }
 0x3a3   :  { %5911 = vmatprep.subr.bf16.mxu0 %v10186_v18  ;;  %5966 = vmatprep.subr.bf16.mxu1 %v10189_v11 }
 0x3a6   :  { %5912 = vmatpush2.bf16.msra.mxu0 %v10192_v6  ;;  %5967 = vmatpush2.bf16.msra.mxu1 %v10196_v60  ;;  %v12254_v60 = vld [vmem:[#allocation34_spill] sm:$0xff] }
 0x3a7   :  { %5913 = vmatprep.subr.bf16.mxu0 %v10198_v48  ;;  %5968 = vmatprep.subr.bf16.mxu1 %v10201_v14  ;;  %v12253_v48 = vld [vmem:[#allocation24_spill] sm:$0xff]  ;;  %v12255_v6 = vld [vmem:[#allocation38_spill] sm:$0xff] }
 0x3aa   :  { %5914 = vmatpush2.bf16.msra.mxu0 %v10204_v28  ;;  %5969 = vmatpush2.bf16.msra.mxu1 %v10208_v36 }
 0x3ab   :  { %5915 = vmatprep.subr.bf16.mxu0 %v10210_v31  ;;  %5970 = vmatprep.subr.bf16.mxu1 %v10213_v5  ;;  %v12238_v31 = vld [vmem:[#allocation138_spill] sm:$0xff]  ;;  %v12239_v5 = vld [vmem:[#allocation139_spill] sm:$0xff] }
 0x3ae   :  { %5916 = vmatpush2.bf16.msra.mxu0 %v10216_v44  ;;  %5971 = vmatpush2.bf16.msra.mxu1 %v12230_v56  ;;  %v12240_v44 = vld [vmem:[#allocation140_spill] sm:$0xff]  ;;  %v12241_v56 = vld [vmem:[#allocation141_spill] sm:$0xff] }
 0x3af   :  { %5917 = vmatprep.subr.bf16.mxu0 %v12231_v19  ;;  %5972 = vmatprep.subr.bf16.mxu1 %v12232_v26  ;;  %v12242_v19 = vld [vmem:[#allocation142_spill] sm:$0xff]  ;;  %v12243_v26 = vld [vmem:[#allocation143_spill] sm:$0xff] }
 0x3b2   :  { %5918 = vmatpush2.bf16.msra.mxu0 %v12233_v35  ;;  %5973 = vmatpush2.bf16.msra.mxu1 %v12234_v8  ;;  %v12244_v35 = vld [vmem:[#allocation144_spill] sm:$0xff]  ;;  %v12245_v8 = vld [vmem:[#allocation145_spill] sm:$0xff] }
 0x3b3   :  { %5919 = vmatprep.subr.bf16.mxu0 %v12235_v9  ;;  %5974 = vmatprep.subr.bf16.mxu1 %v12236_v10  ;;  %v12246_v9 = vld [vmem:[#allocation146_spill] sm:$0xff]  ;;  %v12247_v10 = vld [vmem:[#allocation147_spill] sm:$0xff] }
 0x3b6   :  { %5920 = vmatpush2.bf16.msra.mxu0 %v12237_v40  ;;  %5975 = vmatpush2.bf16.msra.mxu1 %v12238_v31  ;;  %v12248_v40 = vld [vmem:[#allocation148_spill] sm:$0xff]  ;;  %v12249_v31 = vld [vmem:[#allocation149_spill] sm:$0xff] }
 0x3b7   :  { %5921 = vmatprep.subr.bf16.mxu0 %v12239_v5  ;;  %5976 = vmatprep.subr.bf16.mxu1 %v12240_v44  ;;  %v12250_v5 = vld [vmem:[#allocation150_spill] sm:$0xff]  ;;  %v12251_v44 = vld [vmem:[#allocation151_spill] sm:$0xff] }
 0x3ba   :  { %5922 = vmatpush2.bf16.msra.mxu0 %v12241_v56  ;;  %5977 = vmatpush2.bf16.msra.mxu1 %v12242_v19  ;;  %v12252_v56 = vld [vmem:[#allocation152_spill] sm:$0xff] }
 0x3bb   :  { %5923 = vmatprep.subr.bf16.mxu0 %v12243_v26  ;;  %5978 = vmatprep.subr.bf16.mxu1 %v12244_v35 }
 0x3be   :  { %5924 = vmatpush2.bf16.msra.mxu0 %v12245_v8  ;;  %5979 = vmatpush2.bf16.msra.mxu1 %v12246_v9 }
 0x3bf   :  { %5925 = vmatprep.subr.bf16.mxu0 %v12247_v10  ;;  %5980 = vmatprep.subr.bf16.mxu1 %v12248_v40 }
 0x3c2   :  { %5926 = vmatpush2.bf16.msra.mxu0 %v12249_v31  ;;  %5981 = vmatpush2.bf16.msra.mxu1 %v12250_v5  ;;  %v12256_v5 = vld [vmem:[#allocation36_spill] sm:$0xff] }
 0x3c3   :  { %6005 = vmatprep.subr.bf16.mxu0 %v12251_v44  ;;  %6050 = vmatprep.subr.bf16.mxu1 %v12252_v56 }
 0x405   :  { %v5120_v19 = vpop.f32.mrf.mxu0  ;;  %v5367_v26 = vpop.f32.mrf.mxu1 }
 0x406   :  { %v5127_v10 = vadd.f32 %v5120_v19, %v12253_v48  ;;  %v5374_v40 = vadd.f32 %v5367_v26, %v12254_v60  ;;  %v12257_v26 = vld [vmem:[#allocation56_spill] sm:$0xff] }
 0x407   :  { %v5122_v36 = vpop.f32.mrf.mxu0  ;;  %v5369_v35 = vpop.f32.mrf.mxu1 }
 0x408   :  { %v5375_v31 = vadd.f32 %v5369_v35, %v12255_v6  ;;  %v8206_v11 = vmul.f32 -1.442695, %v5127_v10  ;;  %v5128_v18 = vadd.f32 %v5122_v36, %v12256_v5  ;;  %v8240_v44 = vmul.f32 -1.442695, %v5374_v40  ;;  %v12260_v10 = vld [vmem:[#allocation59_spill] sm:$0xff] }
 0x409   :  { %v5124_v28 = vpop.f32.mrf.mxu0  ;;  %v5371_v8 = vpop.f32.mrf.mxu1 }
 0x40a   :  { %v8241_v25 = vmul.f32 -1.442695, %v5375_v31  ;;  %8400 = vpow2.f32 %v8206_v11  ;;  %v8207_v56 = vmul.f32 -1.442695, %v5128_v18  ;;  %v12258_v11 = vld [vmem:[#allocation57_spill] sm:$0xff] }
 0x40b   :  { %v5125_v14 = vpop.f32.mrf.mxu0  ;;  %v5372_v9 = vpop.f32.mrf.mxu1  ;;  %8402 = vpow2.f32 %v8240_v44 }
 0x40c   :  { %8404 = vpow2.f32 %v8241_v25  ;;  %v12259_v25 = vld [vmem:[#allocation58_spill] sm:$0xff] }
 0x40d   :  { %8406 = vpow2.f32 %v8207_v56 }
 0x417   :  { %v8401_v28 = vpop.eup %8400 }
 0x418   :  { %v8403_v8 = vpop.eup %8402  ;;  %v5135_v9 = vadd.f32 1.0, %v8401_v28 }
 0x419   :  { %v8405_v14 = vpop.eup %8404  ;;  %v5382_v48 = vadd.f32 1.0, %v8403_v8 }
 0x41a   :  { %v8407_v51 = vpop.eup %8406  ;;  %v5383_v19 = vadd.f32 1.0, %v8405_v14  ;;  %8408 = vrcp.f32 %v5135_v9 }
 0x41b   :  { %v5136_v60 = vadd.f32 1.0, %v8407_v51  ;;  %8410 = vrcp.f32 %v5382_v48 }
 0x41c   :  { %8412 = vrcp.f32 %v5383_v19 }
 0x427   :  { %v8409_v48 = vpop.eup %8408 }
 0x428   :  { %v8411_v19 = vpop.eup %8410 }
 0x445   :  { %v5614_v6 = vpop.f32.mrf.mxu0  ;;  %v5851_v5 = vpop.f32.mrf.mxu1 }
 0x446   :  { %v5621_v36 = vadd.f32 %v5614_v6, %v12257_v26  ;;  %v5858_v18 = vadd.f32 %v5851_v5, %v12258_v11  ;;  %v8413_v6 = vpop.eup %8412  ;;  %v5872_v5 = vmul.f32 0.0, %v8411_v19 }
 0x447   :  { %v5616_v31 = vpop.f32.mrf.mxu0  ;;  %v5853_v56 = vpop.f32.mrf.mxu1 }
 0x448   :  { %8414 = vtanh.f32 %v5621_v36  ;;  %v5622_v44 = vadd.f32 %v5616_v31, %v12259_v25  ;;  %v8306_v35 = vmul.f32 -1.442695, %v5858_v18  ;;  %v5859_v40 = vadd.f32 %v5853_v56, %v12260_v10 }
 0x449   :  { %8416 = vrcp.f32 %v5136_v60  ;;  %v5618_v28 = vpop.f32.mrf.mxu0  ;;  %v5855_v51 = vpop.f32.mrf.mxu1  ;;  %v5873_v18 = vmul.f32 0.0, %v8413_v6 }
 0x44a   :  { %8418 = vtanh.f32 %v5622_v44  ;;  %v8307_v8 = vmul.f32 -1.442695, %v5859_v40 }
 0x44b   :  { %8420 = vpow2.f32 %v8306_v35  ;;  %v5619_v14 = vpop.f32.mrf.mxu0  ;;  %v5856_v9 = vpop.f32.mrf.mxu1 }
 0x44c   :  { %8422 = vpow2.f32 %v8307_v8 }
 0x455   :  { %v8415_v26 = vpop.eup %8414 }
 0x456   :  { %v8417_v36 = vpop.eup %8416  ;;  %v5874_v11 = vmul.f32 %v8415_v26, %v8409_v48  ;;  %v12261_v26 = vld [vmem:[#allocation153_spill] sm:$0xff] }
 0x457   :  { %v8419_v31 = vpop.eup %8418 }
 0x458   :  { %v8421_v60 = vpop.eup %8420  ;;  %v10557_v25 = vadd.f32 %v5874_v11, %v5872_v5  ;;  %v5875_v56 = vmul.f32 %v8419_v31, %v8417_v36  ;;  %v12262_v36 = vld [vmem:[#allocation154_spill] sm:$0xff]  ;;  %v12263_v5 = vld [vmem:[#allocation155_spill] sm:$0xff]  ;;  %v12264_v11 = vld [vmem:[#allocation156_spill] sm:$0xff] }
 0x459   :  { %v5866_v44 = vadd.f32 1.0, %v8421_v60  ;;  %v8423_v10 = vpop.eup %8422  ;;  %v12265_v31 = vld [vmem:[#allocation157_spill] sm:$0xff]  ;;  %v12266_v60 = vld [vmem:[#allocation158_spill] sm:$0xff] }
 0x45a   :  { %8424 = vtanh.f32 %v10557_v25  ;;  %v10560_v35 = vadd.f32 %v5875_v56, %v5873_v18  ;;  %v5867_v40 = vadd.f32 1.0, %v8423_v10  ;;  %v12267_v18 = vld [vmem:[#allocation159_spill] sm:$0xff]  ;;  %v12268_v56 = vld [vmem:[#allocation160_spill] sm:$0xff]  ;;  %v12270_v10 = vld [vmem:[#allocation162_spill] sm:$0xff] }
 0x45b   :  { %8426 = vrcp.f32 %v5866_v44  ;;  %v12269_v44 = vld [vmem:[#allocation161_spill] sm:$0xff] }
 0x45c   :  { %8428 = vtanh.f32 %v10560_v35 }
 0x45d   :  { %8430 = vrcp.f32 %v5867_v40  ;;  %v12271_v40 = vld [vmem:[#allocation163_spill] sm:$0xff] }
 0x467   :  { %v8425_v28 = vpop.eup %8424 }
 0x468   :  { %v8427_v51 = vpop.eup %8426 }
 0x469   :  { %v8429_v8 = vpop.eup %8428  ;;  %v5880_v9 = vmul.f32 %v8427_v51, %v8425_v28  ;;  %v12272_v28 = vld [vmem:[#allocation164_spill] sm:$0xff]  ;;  %v12273_v51 = vld [vmem:[#allocation165_spill] sm:$0xff] }
 0x46a   :  { %v8431_v14 = vpop.eup %8430 }
 0x46b   :  { %v5881_v48 = vmul.f32 %v8431_v14, %v8429_v8  ;;  %v10563_v6 = vpack.c.bf16 %v5880_v9, %v5880_v9  ;;  %v12274_v8 = vld [vmem:[#allocation166_spill] sm:$0xff]  ;;  %v12275_v14 = vld [vmem:[#allocation167_spill] sm:$0xff]  ;;  %v12276_v9 = vld [vmem:[#allocation168_spill] sm:$0xff] }
 0x46d   :  { %v5894_v19 = vpack.c.bf16 %v5881_v48, %v5881_v48  ;;  %v12277_v48 = vld [vmem:[#allocation169_spill] sm:$0xff] }
 0x46f   :  { %5927 = vmatprep.mubr.bf16.mxu0 %v5894_v19  ;;  %5982 = vmatprep.mubr.bf16.mxu1 %v5894_v19 }
 0x470   :  { %5928 = vmatmul.mubr.bf16.vlgmr.msra.gmra.mxu0 %v10563_v6  ;;  %5983 = vmatmul.mubr.bf16.vlgmr.msra.gmra.mxu1 %v10563_v6 }
 0x471   :  { %6006 = vmatpush1.bf16.msra.mxu0 %v12261_v26  ;;  %6051 = vmatpush1.bf16.msra.mxu1 %v12262_v36 }
 0x472   :  { %6037 = vmatprep.mubr.bf16.mxu0 %v5894_v19  ;;  %6082 = vmatprep.mubr.bf16.mxu1 %v5894_v19  ;;  %v12278_v19 = vld [vmem:[#allocation170_spill] sm:$0xff] }
 0x473   :  { %6007 = vmatprep.subr.bf16.mxu0 %v12263_v5  ;;  %6052 = vmatprep.subr.bf16.mxu1 %v12264_v11 }
 0x475   :  { %6008 = vmatpush1.bf16.msra.mxu0 %v12265_v31  ;;  %6053 = vmatpush1.bf16.msra.mxu1 %v12266_v60 }
 0x476   :  { %6009 = vmatprep.subr.bf16.mxu0 %v12267_v18  ;;  %6054 = vmatprep.subr.bf16.mxu1 %v12268_v56  ;;  %v12279_v56 = vld [vmem:[#allocation171_spill] sm:$0xff] }
 0x479   :  { %6010 = vmatpush1.bf16.msra.mxu0 %v12269_v44  ;;  %6055 = vmatpush1.bf16.msra.mxu1 %v12270_v10  ;;  %v12280_v44 = vld [vmem:[#allocation172_spill] sm:$0xff]  ;;  %v12281_v10 = vld [vmem:[#allocation173_spill] sm:$0xff] }
 0x47a   :  { %6011 = vmatprep.subr.bf16.mxu0 %v12271_v40  ;;  %6056 = vmatprep.subr.bf16.mxu1 %v12272_v28  ;;  %v12282_v40 = vld [vmem:[#allocation174_spill] sm:$0xff]  ;;  %v12283_v28 = vld [vmem:[#allocation175_spill] sm:$0xff] }
 0x47d   :  { %6012 = vmatpush1.bf16.msra.mxu0 %v12273_v51  ;;  %6057 = vmatpush1.bf16.msra.mxu1 %v12274_v8  ;;  %v12284_v51 = vld [vmem:[#allocation176_spill] sm:$0xff]  ;;  %v12285_v8 = vld [vmem:[#allocation177_spill] sm:$0xff] }
 0x47e   :  { %6013 = vmatprep.subr.bf16.mxu0 %v12275_v14  ;;  %6058 = vmatprep.subr.bf16.mxu1 %v12276_v9  ;;  %v12286_v14 = vld [vmem:[#allocation178_spill] sm:$0xff]  ;;  %v12287_v9 = vld [vmem:[#allocation179_spill] sm:$0xff] }
 0x481   :  { %6014 = vmatpush1.bf16.msra.mxu0 %v12277_v48  ;;  %6059 = vmatpush1.bf16.msra.mxu1 %v12278_v19  ;;  %v12288_v48 = vld [vmem:[#allocation180_spill] sm:$0xff]  ;;  %v12289_v19 = vld [vmem:[#allocation181_spill] sm:$0xff] }
 0x482   :  { %6015 = vmatprep.subr.bf16.mxu0 %v12279_v56  ;;  %6060 = vmatprep.subr.bf16.mxu1 %v12280_v44  ;;  %v12290_v56 = vld [vmem:[#allocation182_spill] sm:$0xff]  ;;  %v12291_v44 = vld [vmem:[#allocation183_spill] sm:$0xff] }
 0x485   :  { %6016 = vmatpush1.bf16.msra.mxu0 %v12281_v10  ;;  %6061 = vmatpush1.bf16.msra.mxu1 %v12282_v40  ;;  %v12292_v10 = vld [vmem:[#allocation184_spill] sm:$0xff]  ;;  %v12293_v40 = vld [vmem:[#allocation185_spill] sm:$0xff] }
 0x486   :  { %6017 = vmatprep.subr.bf16.mxu0 %v12283_v28  ;;  %6062 = vmatprep.subr.bf16.mxu1 %v12284_v51  ;;  %v12294_v28 = vld [vmem:[#allocation186_spill] sm:$0xff]  ;;  %v12295_v51 = vld [vmem:[#allocation187_spill] sm:$0xff] }
 0x489   :  { %6018 = vmatpush1.bf16.msra.mxu0 %v12285_v8  ;;  %6063 = vmatpush1.bf16.msra.mxu1 %v12286_v14  ;;  %v12296_v8 = vld [vmem:[#allocation188_spill] sm:$0xff]  ;;  %v12297_v14 = vld [vmem:[#allocation189_spill] sm:$0xff] }
 0x48a   :  { %6019 = vmatprep.subr.bf16.mxu0 %v12287_v9  ;;  %6064 = vmatprep.subr.bf16.mxu1 %v12288_v48  ;;  %v12298_v9 = vld [vmem:[#allocation190_spill] sm:$0xff]  ;;  %v12299_v48 = vld [vmem:[#allocation191_spill] sm:$0xff] }
 0x48d   :  { %6020 = vmatpush1.bf16.msra.mxu0 %v12289_v19  ;;  %6065 = vmatpush1.bf16.msra.mxu1 %v12290_v56  ;;  %v12300_v19 = vld [vmem:[#allocation192_spill] sm:$0xff]  ;;  %v12301_v56 = vld [vmem:[#allocation193_spill] sm:$0xff] }
 0x48e   :  { %6021 = vmatprep.subr.bf16.mxu0 %v12291_v44  ;;  %6066 = vmatprep.subr.bf16.mxu1 %v12292_v10  ;;  %v12302_v44 = vld [vmem:[#allocation194_spill] sm:$0xff]  ;;  %v12303_v10 = vld [vmem:[#allocation195_spill] sm:$0xff] }
 0x491   :  { %6022 = vmatpush2.bf16.msra.mxu0 %v12293_v40  ;;  %6067 = vmatpush2.bf16.msra.mxu1 %v12294_v28  ;;  %v12304_v40 = vld [vmem:[#allocation196_spill] sm:$0xff]  ;;  %v12305_v28 = vld [vmem:[#allocation197_spill] sm:$0xff] }
 0x492   :  { %6023 = vmatprep.subr.bf16.mxu0 %v12295_v51  ;;  %6068 = vmatprep.subr.bf16.mxu1 %v12296_v8  ;;  %v12306_v51 = vld [vmem:[#allocation198_spill] sm:$0xff]  ;;  %v12307_v8 = vld [vmem:[#allocation199_spill] sm:$0xff] }
 0x495   :  { %6024 = vmatpush2.bf16.msra.mxu0 %v12297_v14  ;;  %6069 = vmatpush2.bf16.msra.mxu1 %v12298_v9  ;;  %v12308_v14 = vld [vmem:[#allocation200_spill] sm:$0xff] }
 0x496   :  { %6025 = vmatprep.subr.bf16.mxu0 %v12299_v48  ;;  %6070 = vmatprep.subr.bf16.mxu1 %v12300_v19 }
 0x499   :  { %6026 = vmatpush2.bf16.msra.mxu0 %v12301_v56  ;;  %6071 = vmatpush2.bf16.msra.mxu1 %v12302_v44  ;;  %v12309_v56 = vld [vmem:[#allocation204_spill] sm:$0xff] }
 0x49a   :  { %6027 = vmatprep.subr.bf16.mxu0 %v12303_v10  ;;  %6072 = vmatprep.subr.bf16.mxu1 %v12304_v40 }
 0x49d   :  { %6028 = vmatpush2.bf16.msra.mxu0 %v12305_v28  ;;  %6073 = vmatpush2.bf16.msra.mxu1 %v12306_v51 }
 0x49e   :  { %6029 = vmatprep.subr.bf16.mxu0 %v12307_v8  ;;  %6074 = vmatprep.subr.bf16.mxu1 %v12308_v14 }
 0x4a1   :  { %6030 = vmatpush2.bf16.msra.mxu0 %v10436_v21  ;;  %6075 = vmatpush2.bf16.msra.mxu1 %v10440_v37 }
 0x4a2   :  { %6031 = vmatprep.subr.bf16.mxu0 %v10442_v41  ;;  %6076 = vmatprep.subr.bf16.mxu1 %v12309_v56 }
 0x4a5   :  { %6032 = vmatpush2.bf16.msra.mxu0 %v10448_v24  ;;  %6077 = vmatpush2.bf16.msra.mxu1 %v10452_v34 }
 0x4a6   :  { %6033 = vmatprep.subr.bf16.mxu0 %v10454_v47  ;;  %6078 = vmatprep.subr.bf16.mxu1 %v10457_v59 }
 0x4a9   :  { %6034 = vmatpush2.bf16.msra.mxu0 %v10460_v49  ;;  %6079 = vmatpush2.bf16.msra.mxu1 %v10464_v38 }
 0x4aa   :  { %6035 = vmatprep.subr.bf16.mxu0 %v10466_v17  ;;  %6080 = vmatprep.subr.bf16.mxu1 %v10469_v55 }
 0x4ad   :  { %6036 = vmatpush2.bf16.msra.mxu0 %v10472_v30  ;;  %6081 = vmatpush2.bf16.msra.mxu1 %v10476_v23 }
 0x4ae   :  { %6128 = vmatprep.subr.bf16.mxu0 %v10093_v16  ;;  %6183 = vmatprep.subr.bf16.mxu1 %v10097_v7 }
 0x4b0   :  { %6038 = vmatmul.mubr.bf16.vlgmr.msra.gmra.mxu0 %v10563_v6  ;;  %6083 = vmatmul.mubr.bf16.vlgmr.msra.gmra.mxu1 %v10563_v6  ;;  %v12310_v6 = vld [vmem:[#allocation117_spill] sm:$0xff] }
 0x4b1   :  { %6129 = vmatpush1.bf16.msra.mxu0 %v10095_v20  ;;  %6184 = vmatpush1.bf16.msra.mxu1 %v10099_v1 }
 0x4b2   :  { %6130 = vmatprep.subr.bf16.mxu0 %v10101_v27  ;;  %6185 = vmatprep.subr.bf16.mxu1 %v10104_v29 }
 0x4b5   :  { %6131 = vmatpush1.bf16.msra.mxu0 %v10108_v22  ;;  %6186 = vmatpush1.bf16.msra.mxu1 %v10112_v3 }
 0x4b6   :  { %6132 = vmatprep.subr.bf16.mxu0 %v10114_v46  ;;  %6187 = vmatprep.subr.bf16.mxu1 %v10117_v53 }
 0x4b9   :  { %6133 = vmatpush1.bf16.msra.mxu0 %v10120_v2  ;;  %6188 = vmatpush1.bf16.msra.mxu1 %v10124_v58 }
 0x4ba   :  { %6134 = vmatprep.subr.bf16.mxu0 %v10126_v13  ;;  %6189 = vmatprep.subr.bf16.mxu1 %v10129_v52 }
 0x4bd   :  { %6135 = vmatpush1.bf16.msra.mxu0 %v10132_v43  ;;  %6190 = vmatpush1.bf16.msra.mxu1 %v10136_v32  ;;  %v12347_v32 = vld [vmem:[#allocation61_spill] sm:$0xff]  ;;  %v12348_v43 = vld [vmem:[#allocation62_spill] sm:$0xff] }
 0x4be   :  { %6136 = vmatprep.subr.bf16.mxu0 %v10138_v45  ;;  %6191 = vmatprep.subr.bf16.mxu1 %v10141_v61  ;;  %v12346_v45 = vld [vmem:[#allocation60_spill] sm:$0xff] }
 0x4c1   :  { %6137 = vmatpush1.bf16.msra.mxu0 %v10144_v63  ;;  %6192 = vmatpush1.bf16.msra.mxu1 %v10148_v33 }
 0x4c2   :  { %6138 = vmatprep.subr.bf16.mxu0 %v10150_v0  ;;  %6193 = vmatprep.subr.bf16.mxu1 %v10153_v42  ;;  %v12311_v0 = vld [vmem:[#allocation118_spill] sm:$0xff]  ;;  %v12312_v42 = vld [vmem:[#allocation119_spill] sm:$0xff] }
 0x4c5   :  { %6139 = vmatpush1.bf16.msra.mxu0 %v10156_v50  ;;  %6194 = vmatpush1.bf16.msra.mxu1 %v10160_v62  ;;  %v12313_v50 = vld [vmem:[#allocation120_spill] sm:$0xff]  ;;  %v12314_v62 = vld [vmem:[#allocation121_spill] sm:$0xff] }
 0x4c6   :  { %6140 = vmatprep.subr.bf16.mxu0 %v10162_v4  ;;  %6195 = vmatprep.subr.bf16.mxu1 %v10165_v54  ;;  %v12315_v4 = vld [vmem:[#allocation122_spill] sm:$0xff]  ;;  %v12316_v54 = vld [vmem:[#allocation123_spill] sm:$0xff] }
 0x4c9   :  { %6141 = vmatpush1.bf16.msra.mxu0 %v10168_v57  ;;  %6196 = vmatpush1.bf16.msra.mxu1 %v10172_v12  ;;  %v12317_v57 = vld [vmem:[#allocation124_spill] sm:$0xff]  ;;  %v12318_v12 = vld [vmem:[#allocation125_spill] sm:$0xff] }
 0x4ca   :  { %6142 = vmatprep.subr.bf16.mxu0 %v10174_v39  ;;  %6197 = vmatprep.subr.bf16.mxu1 %v10177_v15  ;;  %v12319_v39 = vld [vmem:[#allocation126_spill] sm:$0xff]  ;;  %v12320_v15 = vld [vmem:[#allocation127_spill] sm:$0xff] }
 0x4cd   :  { %6143 = vmatpush1.bf16.msra.mxu0 %v12310_v6  ;;  %6198 = vmatpush1.bf16.msra.mxu1 %v12311_v0  ;;  %v12321_v6 = vld [vmem:[#allocation128_spill] sm:$0xff]  ;;  %v12322_v0 = vld [vmem:[#allocation129_spill] sm:$0xff] }
 0x4ce   :  { %6144 = vmatprep.subr.bf16.mxu0 %v12312_v42  ;;  %6199 = vmatprep.subr.bf16.mxu1 %v12313_v50  ;;  %v12323_v42 = vld [vmem:[#allocation130_spill] sm:$0xff]  ;;  %v12324_v50 = vld [vmem:[#allocation131_spill] sm:$0xff] }
 0x4d1   :  { %6145 = vmatpush2.bf16.msra.mxu0 %v12314_v62  ;;  %6200 = vmatpush2.bf16.msra.mxu1 %v12315_v4  ;;  %v12325_v62 = vld [vmem:[#allocation132_spill] sm:$0xff]  ;;  %v12326_v4 = vld [vmem:[#allocation133_spill] sm:$0xff] }
 0x4d2   :  { %6146 = vmatprep.subr.bf16.mxu0 %v12316_v54  ;;  %6201 = vmatprep.subr.bf16.mxu1 %v12317_v57  ;;  %v12327_v54 = vld [vmem:[#allocation134_spill] sm:$0xff]  ;;  %v12328_v57 = vld [vmem:[#allocation135_spill] sm:$0xff] }
 0x4d5   :  { %6147 = vmatpush2.bf16.msra.mxu0 %v12318_v12  ;;  %6202 = vmatpush2.bf16.msra.mxu1 %v12319_v39  ;;  %v12329_v12 = vld [vmem:[#allocation136_spill] sm:$0xff]  ;;  %v12330_v39 = vld [vmem:[#allocation137_spill] sm:$0xff] }
 0x4d6   :  { %6148 = vmatprep.subr.bf16.mxu0 %v12320_v15  ;;  %6203 = vmatprep.subr.bf16.mxu1 %v12321_v6  ;;  %v12331_v15 = vld [vmem:[#allocation138_spill] sm:$0xff]  ;;  %v12332_v6 = vld [vmem:[#allocation139_spill] sm:$0xff] }
 0x4d9   :  { %6149 = vmatpush2.bf16.msra.mxu0 %v12322_v0  ;;  %6204 = vmatpush2.bf16.msra.mxu1 %v12323_v42  ;;  %v12333_v0 = vld [vmem:[#allocation140_spill] sm:$0xff]  ;;  %v12334_v42 = vld [vmem:[#allocation141_spill] sm:$0xff] }
 0x4da   :  { %6150 = vmatprep.subr.bf16.mxu0 %v12324_v50  ;;  %6205 = vmatprep.subr.bf16.mxu1 %v12325_v62  ;;  %v12335_v50 = vld [vmem:[#allocation142_spill] sm:$0xff]  ;;  %v12336_v62 = vld [vmem:[#allocation143_spill] sm:$0xff] }
 0x4dd   :  { %6151 = vmatpush2.bf16.msra.mxu0 %v12326_v4  ;;  %6206 = vmatpush2.bf16.msra.mxu1 %v12327_v54  ;;  %v12337_v4 = vld [vmem:[#allocation144_spill] sm:$0xff]  ;;  %v12338_v54 = vld [vmem:[#allocation145_spill] sm:$0xff] }
 0x4de   :  { %6152 = vmatprep.subr.bf16.mxu0 %v12328_v57  ;;  %6207 = vmatprep.subr.bf16.mxu1 %v12329_v12  ;;  %v12339_v57 = vld [vmem:[#allocation146_spill] sm:$0xff]  ;;  %v12340_v12 = vld [vmem:[#allocation147_spill] sm:$0xff] }
 0x4e1   :  { %6153 = vmatpush2.bf16.msra.mxu0 %v12330_v39  ;;  %6208 = vmatpush2.bf16.msra.mxu1 %v12331_v15  ;;  %v12341_v39 = vld [vmem:[#allocation148_spill] sm:$0xff]  ;;  %v12342_v15 = vld [vmem:[#allocation149_spill] sm:$0xff] }
 0x4e2   :  { %6154 = vmatprep.subr.bf16.mxu0 %v12332_v6  ;;  %6209 = vmatprep.subr.bf16.mxu1 %v12333_v0  ;;  %v12343_v6 = vld [vmem:[#allocation150_spill] sm:$0xff]  ;;  %v12344_v0 = vld [vmem:[#allocation151_spill] sm:$0xff] }
 0x4e5   :  { %6155 = vmatpush2.bf16.msra.mxu0 %v12334_v42  ;;  %6210 = vmatpush2.bf16.msra.mxu1 %v12335_v50  ;;  %v12345_v42 = vld [vmem:[#allocation152_spill] sm:$0xff] }
 0x4e6   :  { %6156 = vmatprep.subr.bf16.mxu0 %v12336_v62  ;;  %6211 = vmatprep.subr.bf16.mxu1 %v12337_v4 }
 0x4e9   :  { %6157 = vmatpush2.bf16.msra.mxu0 %v12338_v54  ;;  %6212 = vmatpush2.bf16.msra.mxu1 %v12339_v57 }
 0x4ea   :  { %6158 = vmatprep.subr.bf16.mxu0 %v12340_v12  ;;  %6213 = vmatprep.subr.bf16.mxu1 %v12341_v39 }
 0x4ed   :  { %6159 = vmatpush2.bf16.msra.mxu0 %v12342_v15  ;;  %6214 = vmatpush2.bf16.msra.mxu1 %v12343_v6  ;;  %v12349_v6 = vld [vmem:[#allocation23_spill] sm:$0xff] }
 0x4ee   :  { %6238 = vmatprep.subr.bf16.mxu0 %v12344_v0  ;;  %6283 = vmatprep.subr.bf16.mxu1 %v12345_v42 }
 0x530   :  { %v5929_v50 = vpop.f32.mrf.mxu0  ;;  %v5984_v62 = vpop.f32.mrf.mxu1 }
 0x531   :  { %v5936_v12 = vadd.f32 %v5929_v50, %v12346_v45  ;;  %v5991_v39 = vadd.f32 %v5984_v62, %v12347_v32  ;;  %v12350_v62 = vld [vmem:[#allocation35_spill] sm:$0xff] }
 0x532   :  { %v5931_v33 = vpop.f32.mrf.mxu0  ;;  %v5986_v4 = vpop.f32.mrf.mxu1 }
 0x533   :  { %v5937_v15 = vadd.f32 %v5931_v33, %v12348_v43  ;;  %v8308_v52 = vmul.f32 -1.442695, %v5936_v12  ;;  %v5992_v13 = vadd.f32 %v5986_v4, %v12349_v6  ;;  %v8310_v0 = vmul.f32 -1.442695, %v5991_v39  ;;  %v12351_v12 = vld [vmem:[#allocation37_spill] sm:$0xff] }
 0x534   :  { %v5933_v63 = vpop.f32.mrf.mxu0  ;;  %v5988_v54 = vpop.f32.mrf.mxu1 }
 0x535   :  { %v8309_v58 = vmul.f32 -1.442695, %v5937_v15  ;;  %8432 = vpow2.f32 %v8308_v52  ;;  %v8311_v42 = vmul.f32 -1.442695, %v5992_v13  ;;  %v12353_v15 = vld [vmem:[#allocation41_spill] sm:$0xff] }
 0x536   :  { %v5934_v61 = vpop.f32.mrf.mxu0  ;;  %v5989_v57 = vpop.f32.mrf.mxu1  ;;  %8434 = vpow2.f32 %v8310_v0 }
 0x537   :  { %8436 = vpow2.f32 %v8309_v58 }
 0x538   :  { %8438 = vpow2.f32 %v8311_v42  ;;  %v12352_v42 = vld [vmem:[#allocation39_spill] sm:$0xff] }
 0x542   :  { %v8433_v63 = vpop.eup %8432 }
 0x543   :  { %v8435_v54 = vpop.eup %8434  ;;  %v5944_v57 = vadd.f32 1.0, %v8433_v63 }
 0x544   :  { %v8437_v61 = vpop.eup %8436  ;;  %v5999_v45 = vadd.f32 1.0, %v8435_v54 }
 0x545   :  { %v8439_v2 = vpop.eup %8438  ;;  %v5945_v50 = vadd.f32 1.0, %v8437_v61  ;;  %8440 = vrcp.f32 %v5944_v57 }
 0x546   :  { %v6000_v32 = vadd.f32 1.0, %v8439_v2  ;;  %8442 = vrcp.f32 %v5999_v45 }
 0x547   :  { %8444 = vrcp.f32 %v5945_v50 }
 0x552   :  { %v8441_v45 = vpop.eup %8440 }
 0x570   :  { %v6039_v43 = vpop.f32.mrf.mxu0  ;;  %v6084_v33 = vpop.f32.mrf.mxu1 }
 0x571   :  { %v6046_v4 = vadd.f32 %v6039_v43, %v12350_v62  ;;  %v6091_v52 = vadd.f32 %v6084_v33, %v12351_v12  ;;  %v8443_v43 = vpop.eup %8442 }
 0x572   :  { %v6041_v13 = vpop.f32.mrf.mxu0  ;;  %v6086_v58 = vpop.f32.mrf.mxu1 }
 0x573   :  { %8446 = vtanh.f32 %v6046_v4  ;;  %v8312_v0 = vmul.f32 -1.442695, %v6091_v52  ;;  %v6047_v39 = vadd.f32 %v6041_v13, %v12352_v42  ;;  %v6092_v6 = vadd.f32 %v6086_v58, %v12353_v15  ;;  %v8445_v50 = vpop.eup %8444 }
 0x574   :  { %8448 = vrcp.f32 %v6000_v32  ;;  %v6043_v63 = vpop.f32.mrf.mxu0  ;;  %v6088_v54 = vpop.f32.mrf.mxu1  ;;  %v6105_v4 = vmul.f32 %v8443_v43, %v10557_v25 }
 0x575   :  { %8450 = vpow2.f32 %v8312_v0  ;;  %v8313_v2 = vmul.f32 -1.442695, %v6092_v6 }
 0x576   :  { %8452 = vtanh.f32 %v6047_v39  ;;  %v6044_v61 = vpop.f32.mrf.mxu0  ;;  %v6089_v57 = vpop.f32.mrf.mxu1 }
 0x577   :  { %8454 = vpow2.f32 %v8313_v2 }
 0x580   :  { %v8447_v33 = vpop.eup %8446 }
 0x581   :  { %v8449_v62 = vpop.eup %8448  ;;  %v6107_v12 = vmul.f32 %v8447_v33, %v8441_v45  ;;  %v12356_v33 = vld [vmem:[#allocation162_spill] sm:$0xff] }
 0x582   :  { %v8451_v52 = vpop.eup %8450  ;;  %v6106_v0 = vmul.f32 %v8449_v62, %v10560_v35  ;;  %v12354_v35 = vld [vmem:[#allocation160_spill] sm:$0xff]  ;;  %v12357_v62 = vld [vmem:[#allocation163_spill] sm:$0xff] }
 0x583   :  { %v8453_v13 = vpop.eup %8452  ;;  %v10706_v58 = vadd.f32 %v6107_v12, %v6105_v4  ;;  %v6099_v32 = vadd.f32 1.0, %v8451_v52  ;;  %v12358_v4 = vld [vmem:[#allocation164_spill] sm:$0xff]  ;;  %v12359_v12 = vld [vmem:[#allocation165_spill] sm:$0xff]  ;;  %v12360_v52 = vld [vmem:[#allocation166_spill] sm:$0xff] }
 0x584   :  { %v8455_v42 = vpop.eup %8454  ;;  %v6108_v39 = vmul.f32 %v8453_v13, %v8445_v50  ;;  %v12355_v50 = vld [vmem:[#allocation161_spill] sm:$0xff]  ;;  %v12361_v13 = vld [vmem:[#allocation167_spill] sm:$0xff] }
 0x585   :  { %8456 = vtanh.f32 %v10706_v58  ;;  %v6100_v15 = vadd.f32 1.0, %v8455_v42  ;;  %v12363_v42 = vld [vmem:[#allocation169_spill] sm:$0xff] }
 0x586   :  { %8458 = vrcp.f32 %v6099_v32  ;;  %v10710_v6 = vadd.f32 %v6108_v39, %v6106_v0  ;;  %v12362_v32 = vld [vmem:[#allocation168_spill] sm:$0xff]  ;;  %v12364_v0 = vld [vmem:[#allocation170_spill] sm:$0xff]  ;;  %v12365_v39 = vld [vmem:[#allocation171_spill] sm:$0xff] }
 0x587   :  { %8460 = vrcp.f32 %v6100_v15  ;;  %v12366_v15 = vld [vmem:[#allocation172_spill] sm:$0xff] }
 0x588   :  { %8462 = vtanh.f32 %v10710_v6 }
 0x592   :  { %v8457_v25 = vpop.eup %8456 }
 0x593   :  { %v8459_v63 = vpop.eup %8458 }
 0x594   :  { %v8461_v54 = vpop.eup %8460  ;;  %v6113_v61 = vmul.f32 %v8459_v63, %v8457_v25  ;;  %v12367_v25 = vld [vmem:[#allocation173_spill] sm:$0xff]  ;;  %v12368_v63 = vld [vmem:[#allocation174_spill] sm:$0xff] }
 0x595   :  { %v8463_v2 = vpop.eup %8462 }
 0x596   :  { %v6114_v57 = vmul.f32 %v8463_v2, %v8461_v54  ;;  %v10713_v43 = vpack.c.bf16 %v6113_v61, %v6113_v61  ;;  %v12369_v54 = vld [vmem:[#allocation175_spill] sm:$0xff]  ;;  %v12370_v2 = vld [vmem:[#allocation176_spill] sm:$0xff]  ;;  %v12371_v61 = vld [vmem:[#allocation177_spill] sm:$0xff] }
 0x598   :  { %v6127_v45 = vpack.c.bf16 %v6114_v57, %v6114_v57  ;;  %v12372_v57 = vld [vmem:[#allocation178_spill] sm:$0xff] }
 0x59a   :  { %6160 = vmatprep.mubr.bf16.mxu0 %v6127_v45  ;;  %6215 = vmatprep.mubr.bf16.mxu1 %v6127_v45 }
 0x59b   :  { %6161 = vmatmul.mubr.bf16.vlgmr.msra.gmra.mxu0 %v10713_v43  ;;  %6216 = vmatmul.mubr.bf16.vlgmr.msra.gmra.mxu1 %v10713_v43 }
 0x59c   :  { %6239 = vmatpush1.bf16.msra.mxu0 %v12261_v26  ;;  %6284 = vmatpush1.bf16.msra.mxu1 %v12262_v36 }
 0x59d   :  { %6270 = vmatprep.mubr.bf16.mxu0 %v6127_v45  ;;  %6315 = vmatprep.mubr.bf16.mxu1 %v6127_v45  ;;  %v12373_v45 = vld [vmem:[#allocation179_spill] sm:$0xff] }
 0x59e   :  { %6240 = vmatprep.subr.bf16.mxu0 %v12263_v5  ;;  %6285 = vmatprep.subr.bf16.mxu1 %v12264_v11 }
 0x5a0   :  { %6241 = vmatpush1.bf16.msra.mxu0 %v12265_v31  ;;  %6286 = vmatpush1.bf16.msra.mxu1 %v12266_v60 }
 0x5a1   :  { %6242 = vmatprep.subr.bf16.mxu0 %v12267_v18  ;;  %6287 = vmatprep.subr.bf16.mxu1 %v12354_v35 }
 0x5a4   :  { %6243 = vmatpush1.bf16.msra.mxu0 %v12355_v50  ;;  %6288 = vmatpush1.bf16.msra.mxu1 %v12356_v33 }
 0x5a5   :  { %6244 = vmatprep.subr.bf16.mxu0 %v12357_v62  ;;  %6289 = vmatprep.subr.bf16.mxu1 %v12358_v4 }
 0x5a8   :  { %6245 = vmatpush1.bf16.msra.mxu0 %v12359_v12  ;;  %6290 = vmatpush1.bf16.msra.mxu1 %v12360_v52 }
 0x5a9   :  { %6246 = vmatprep.subr.bf16.mxu0 %v12361_v13  ;;  %6291 = vmatprep.subr.bf16.mxu1 %v12362_v32 }
 0x5ac   :  { %6247 = vmatpush1.bf16.msra.mxu0 %v12363_v42  ;;  %6292 = vmatpush1.bf16.msra.mxu1 %v12364_v0  ;;  %v12374_v42 = vld [vmem:[#allocation180_spill] sm:$0xff]  ;;  %v12375_v0 = vld [vmem:[#allocation181_spill] sm:$0xff] }
 0x5ad   :  { %6248 = vmatprep.subr.bf16.mxu0 %v12365_v39  ;;  %6293 = vmatprep.subr.bf16.mxu1 %v12366_v15  ;;  %v12376_v39 = vld [vmem:[#allocation182_spill] sm:$0xff]  ;;  %v12377_v15 = vld [vmem:[#allocation183_spill] sm:$0xff] }
 0x5b0   :  { %6249 = vmatpush1.bf16.msra.mxu0 %v12367_v25  ;;  %6294 = vmatpush1.bf16.msra.mxu1 %v12368_v63  ;;  %v12378_v25 = vld [vmem:[#allocation184_spill] sm:$0xff]  ;;  %v12379_v63 = vld [vmem:[#allocation185_spill] sm:$0xff] }
 0x5b1   :  { %6250 = vmatprep.subr.bf16.mxu0 %v12369_v54  ;;  %6295 = vmatprep.subr.bf16.mxu1 %v12370_v2  ;;  %v12380_v54 = vld [vmem:[#allocation186_spill] sm:$0xff]  ;;  %v12381_v2 = vld [vmem:[#allocation187_spill] sm:$0xff] }
 0x5b4   :  { %6251 = vmatpush1.bf16.msra.mxu0 %v12371_v61  ;;  %6296 = vmatpush1.bf16.msra.mxu1 %v12372_v57  ;;  %v12382_v61 = vld [vmem:[#allocation188_spill] sm:$0xff]  ;;  %v12383_v57 = vld [vmem:[#allocation189_spill] sm:$0xff] }
 0x5b5   :  { %6252 = vmatprep.subr.bf16.mxu0 %v12373_v45  ;;  %6297 = vmatprep.subr.bf16.mxu1 %v12374_v42 }
 0x5b8   :  { %6253 = vmatpush1.bf16.msra.mxu0 %v12375_v0  ;;  %6298 = vmatpush1.bf16.msra.mxu1 %v12376_v39  ;;  %v12384_v39 = vld [vmem:[#allocation193_spill] sm:$0xff] }
 0x5b9   :  { %6254 = vmatprep.subr.bf16.mxu0 %v12377_v15  ;;  %6299 = vmatprep.subr.bf16.mxu1 %v12378_v25 }
 0x5bc   :  { %6255 = vmatpush2.bf16.msra.mxu0 %v12379_v63  ;;  %6300 = vmatpush2.bf16.msra.mxu1 %v12380_v54 }
 0x5bd   :  { %6256 = vmatprep.subr.bf16.mxu0 %v12381_v2  ;;  %6301 = vmatprep.subr.bf16.mxu1 %v12382_v61 }
 0x5c0   :  { %6257 = vmatpush2.bf16.msra.mxu0 %v12383_v57  ;;  %6302 = vmatpush2.bf16.msra.mxu1 %v12298_v9 }
 0x5c1   :  { %6258 = vmatprep.subr.bf16.mxu0 %v12299_v48  ;;  %6303 = vmatprep.subr.bf16.mxu1 %v12300_v19 }
 0x5c4   :  { %6259 = vmatpush2.bf16.msra.mxu0 %v12384_v39  ;;  %6304 = vmatpush2.bf16.msra.mxu1 %v12302_v44 }
 0x5c5   :  { %6260 = vmatprep.subr.bf16.mxu0 %v12303_v10  ;;  %6305 = vmatprep.subr.bf16.mxu1 %v12304_v40 }
 0x5c8   :  { %6261 = vmatpush2.bf16.msra.mxu0 %v12305_v28  ;;  %6306 = vmatpush2.bf16.msra.mxu1 %v12306_v51 }
 0x5c9   :  { %6262 = vmatprep.subr.bf16.mxu0 %v12307_v8  ;;  %6307 = vmatprep.subr.bf16.mxu1 %v12308_v14 }
 0x5cc   :  { %6263 = vmatpush2.bf16.msra.mxu0 %v10436_v21  ;;  %6308 = vmatpush2.bf16.msra.mxu1 %v10440_v37 }
 0x5cd   :  { %6264 = vmatprep.subr.bf16.mxu0 %v10442_v41  ;;  %6309 = vmatprep.subr.bf16.mxu1 %v12309_v56 }
 0x5d0   :  { %6265 = vmatpush2.bf16.msra.mxu0 %v10448_v24  ;;  %6310 = vmatpush2.bf16.msra.mxu1 %v10452_v34 }
 0x5d1   :  { %6266 = vmatprep.subr.bf16.mxu0 %v10454_v47  ;;  %6311 = vmatprep.subr.bf16.mxu1 %v10457_v59 }
 0x5d4   :  { %6267 = vmatpush2.bf16.msra.mxu0 %v10460_v49  ;;  %6312 = vmatpush2.bf16.msra.mxu1 %v10464_v38  ;;  %v12442_v38 = vld [vmem:[#allocation43_spill] sm:$0xff]  ;;  %v12443_v49 = vld [vmem:[#allocation44_spill] sm:$0xff] }
 0x5d5   :  { %6268 = vmatprep.subr.bf16.mxu0 %v10466_v17  ;;  %6313 = vmatprep.subr.bf16.mxu1 %v10469_v55  ;;  %v12441_v17 = vld [vmem:[#allocation42_spill] sm:$0xff] }
 0x5d8   :  { %6269 = vmatpush2.bf16.msra.mxu0 %v10472_v30  ;;  %6314 = vmatpush2.bf16.msra.mxu1 %v10476_v23 }
 0x5d9   :  { %6361 = vmatprep.subr.bf16.mxu0 %v10093_v16  ;;  %6416 = vmatprep.subr.bf16.mxu1 %v10097_v7  ;;  %v12385_v7 = vld [vmem:[#allocation97_spill] sm:$0xff]  ;;  %v12386_v16 = vld [vmem:[#allocation98_spill] sm:$0xff] }
 0x5db   :  { %6271 = vmatmul.mubr.bf16.vlgmr.msra.gmra.mxu0 %v10713_v43  ;;  %6316 = vmatmul.mubr.bf16.vlgmr.msra.gmra.mxu1 %v10713_v43  ;;  %v12387_v43 = vld [vmem:[#allocation99_spill] sm:$0xff] }
 0x5dc   :  { %6362 = vmatpush1.bf16.msra.mxu0 %v10095_v20  ;;  %6417 = vmatpush1.bf16.msra.mxu1 %v10099_v1  ;;  %v12388_v20 = vld [vmem:[#allocation100_spill] sm:$0xff]  ;;  %v12389_v1 = vld [vmem:[#allocation101_spill] sm:$0xff] }
 0x5dd   :  { %6363 = vmatprep.subr.bf16.mxu0 %v10101_v27  ;;  %6418 = vmatprep.subr.bf16.mxu1 %v10104_v29  ;;  %v12390_v27 = vld [vmem:[#allocation102_spill] sm:$0xff]  ;;  %v12391_v29 = vld [vmem:[#allocation103_spill] sm:$0xff] }
 0x5e0   :  { %6364 = vmatpush1.bf16.msra.mxu0 %v10108_v22  ;;  %6419 = vmatpush1.bf16.msra.mxu1 %v10112_v3  ;;  %v12392_v22 = vld [vmem:[#allocation104_spill] sm:$0xff]  ;;  %v12393_v3 = vld [vmem:[#allocation105_spill] sm:$0xff] }
 0x5e1   :  { %6365 = vmatprep.subr.bf16.mxu0 %v10114_v46  ;;  %6420 = vmatprep.subr.bf16.mxu1 %v10117_v53  ;;  %v12394_v46 = vld [vmem:[#allocation106_spill] sm:$0xff]  ;;  %v12395_v53 = vld [vmem:[#allocation107_spill] sm:$0xff] }
 0x5e4   :  { %6366 = vmatpush1.bf16.msra.mxu0 %v12385_v7  ;;  %6421 = vmatpush1.bf16.msra.mxu1 %v12386_v16  ;;  %v12396_v7 = vld [vmem:[#allocation108_spill] sm:$0xff]  ;;  %v12397_v16 = vld [vmem:[#allocation109_spill] sm:$0xff] }
 0x5e5   :  { %6367 = vmatprep.subr.bf16.mxu0 %v12387_v43  ;;  %6422 = vmatprep.subr.bf16.mxu1 %v12388_v20  ;;  %v12398_v43 = vld [vmem:[#allocation110_spill] sm:$0xff]  ;;  %v12399_v20 = vld [vmem:[#allocation111_spill] sm:$0xff] }
 0x5e8   :  { %6368 = vmatpush1.bf16.msra.mxu0 %v12389_v1  ;;  %6423 = vmatpush1.bf16.msra.mxu1 %v12390_v27  ;;  %v12400_v1 = vld [vmem:[#allocation112_spill] sm:$0xff]  ;;  %v12401_v27 = vld [vmem:[#allocation113_spill] sm:$0xff] }
 0x5e9   :  { %6369 = vmatprep.subr.bf16.mxu0 %v12391_v29  ;;  %6424 = vmatprep.subr.bf16.mxu1 %v12392_v22  ;;  %v12402_v29 = vld [vmem:[#allocation114_spill] sm:$0xff]  ;;  %v12403_v22 = vld [vmem:[#allocation115_spill] sm:$0xff] }
 0x5ec   :  { %6370 = vmatpush1.bf16.msra.mxu0 %v12393_v3  ;;  %6425 = vmatpush1.bf16.msra.mxu1 %v12394_v46  ;;  %v12404_v3 = vld [vmem:[#allocation116_spill] sm:$0xff]  ;;  %v12405_v46 = vld [vmem:[#allocation117_spill] sm:$0xff] }
 0x5ed   :  { %6371 = vmatprep.subr.bf16.mxu0 %v12395_v53  ;;  %6426 = vmatprep.subr.bf16.mxu1 %v12396_v7  ;;  %v12406_v53 = vld [vmem:[#allocation118_spill] sm:$0xff]  ;;  %v12407_v7 = vld [vmem:[#allocation119_spill] sm:$0xff] }
 0x5f0   :  { %6372 = vmatpush1.bf16.msra.mxu0 %v12397_v16  ;;  %6427 = vmatpush1.bf16.msra.mxu1 %v12398_v43  ;;  %v12408_v16 = vld [vmem:[#allocation120_spill] sm:$0xff]  ;;  %v12409_v43 = vld [vmem:[#allocation121_spill] sm:$0xff] }
 0x5f1   :  { %6373 = vmatprep.subr.bf16.mxu0 %v12399_v20  ;;  %6428 = vmatprep.subr.bf16.mxu1 %v12400_v1  ;;  %v12410_v20 = vld [vmem:[#allocation122_spill] sm:$0xff]  ;;  %v12411_v1 = vld [vmem:[#allocation123_spill] sm:$0xff] }
 0x5f4   :  { %6374 = vmatpush1.bf16.msra.mxu0 %v12401_v27  ;;  %6429 = vmatpush1.bf16.msra.mxu1 %v12402_v29  ;;  %v12412_v27 = vld [vmem:[#allocation124_spill] sm:$0xff]  ;;  %v12413_v29 = vld [vmem:[#allocation125_spill] sm:$0xff] }
 0x5f5   :  { %6375 = vmatprep.subr.bf16.mxu0 %v12403_v22  ;;  %6430 = vmatprep.subr.bf16.mxu1 %v12404_v3  ;;  %v12414_v22 = vld [vmem:[#allocation126_spill] sm:$0xff]  ;;  %v12415_v3 = vld [vmem:[#allocation127_spill] sm:$0xff] }
 0x5f8   :  { %6376 = vmatpush1.bf16.msra.mxu0 %v12405_v46  ;;  %6431 = vmatpush1.bf16.msra.mxu1 %v12406_v53  ;;  %v12416_v46 = vld [vmem:[#allocation128_spill] sm:$0xff]  ;;  %v12417_v53 = vld [vmem:[#allocation129_spill] sm:$0xff] }
 0x5f9   :  { %6377 = vmatprep.subr.bf16.mxu0 %v12407_v7  ;;  %6432 = vmatprep.subr.bf16.mxu1 %v12408_v16  ;;  %v12418_v7 = vld [vmem:[#allocation130_spill] sm:$0xff]  ;;  %v12419_v16 = vld [vmem:[#allocation131_spill] sm:$0xff] }
 0x5fc   :  { %6378 = vmatpush2.bf16.msra.mxu0 %v12409_v43  ;;  %6433 = vmatpush2.bf16.msra.mxu1 %v12410_v20  ;;  %v12420_v43 = vld [vmem:[#allocation132_spill] sm:$0xff]  ;;  %v12421_v20 = vld [vmem:[#allocation133_spill] sm:$0xff] }
 0x5fd   :  { %6379 = vmatprep.subr.bf16.mxu0 %v12411_v1  ;;  %6434 = vmatprep.subr.bf16.mxu1 %v12412_v27  ;;  %v12422_v1 = vld [vmem:[#allocation134_spill] sm:$0xff]  ;;  %v12423_v27 = vld [vmem:[#allocation135_spill] sm:$0xff] }
 0x600   :  { %6380 = vmatpush2.bf16.msra.mxu0 %v12413_v29  ;;  %6435 = vmatpush2.bf16.msra.mxu1 %v12414_v22  ;;  %v12424_v29 = vld [vmem:[#allocation136_spill] sm:$0xff]  ;;  %v12425_v22 = vld [vmem:[#allocation137_spill] sm:$0xff] }
 0x601   :  { %6381 = vmatprep.subr.bf16.mxu0 %v12415_v3  ;;  %6436 = vmatprep.subr.bf16.mxu1 %v12416_v46  ;;  %v12426_v3 = vld [vmem:[#allocation138_spill] sm:$0xff]  ;;  %v12427_v46 = vld [vmem:[#allocation139_spill] sm:$0xff] }
 0x604   :  { %6382 = vmatpush2.bf16.msra.mxu0 %v12417_v53  ;;  %6437 = vmatpush2.bf16.msra.mxu1 %v12418_v7  ;;  %v12428_v53 = vld [vmem:[#allocation140_spill] sm:$0xff]  ;;  %v12429_v7 = vld [vmem:[#allocation141_spill] sm:$0xff] }
 0x605   :  { %6383 = vmatprep.subr.bf16.mxu0 %v12419_v16  ;;  %6438 = vmatprep.subr.bf16.mxu1 %v12420_v43  ;;  %v12430_v16 = vld [vmem:[#allocation142_spill] sm:$0xff]  ;;  %v12431_v43 = vld [vmem:[#allocation143_spill] sm:$0xff] }
 0x608   :  { %6384 = vmatpush2.bf16.msra.mxu0 %v12421_v20  ;;  %6439 = vmatpush2.bf16.msra.mxu1 %v12422_v1  ;;  %v12432_v20 = vld [vmem:[#allocation144_spill] sm:$0xff]  ;;  %v12433_v1 = vld [vmem:[#allocation145_spill] sm:$0xff] }
 0x609   :  { %6385 = vmatprep.subr.bf16.mxu0 %v12423_v27  ;;  %6440 = vmatprep.subr.bf16.mxu1 %v12424_v29  ;;  %v12434_v27 = vld [vmem:[#allocation146_spill] sm:$0xff]  ;;  %v12435_v29 = vld [vmem:[#allocation147_spill] sm:$0xff] }
 0x60c   :  { %6386 = vmatpush2.bf16.msra.mxu0 %v12425_v22  ;;  %6441 = vmatpush2.bf16.msra.mxu1 %v12426_v3  ;;  %v12436_v22 = vld [vmem:[#allocation148_spill] sm:$0xff]  ;;  %v12437_v3 = vld [vmem:[#allocation149_spill] sm:$0xff] }
 0x60d   :  { %6387 = vmatprep.subr.bf16.mxu0 %v12427_v46  ;;  %6442 = vmatprep.subr.bf16.mxu1 %v12428_v53  ;;  %v12438_v46 = vld [vmem:[#allocation150_spill] sm:$0xff]  ;;  %v12439_v53 = vld [vmem:[#allocation151_spill] sm:$0xff] }
 0x610   :  { %6388 = vmatpush2.bf16.msra.mxu0 %v12429_v7  ;;  %6443 = vmatpush2.bf16.msra.mxu1 %v12430_v16  ;;  %v12440_v7 = vld [vmem:[#allocation152_spill] sm:$0xff] }
 0x611   :  { %6389 = vmatprep.subr.bf16.mxu0 %v12431_v43  ;;  %6444 = vmatprep.subr.bf16.mxu1 %v12432_v20 }
 0x614   :  { %6390 = vmatpush2.bf16.msra.mxu0 %v12433_v1  ;;  %6445 = vmatpush2.bf16.msra.mxu1 %v12434_v27 }
 0x615   :  { %6391 = vmatprep.subr.bf16.mxu0 %v12435_v29  ;;  %6446 = vmatprep.subr.bf16.mxu1 %v12436_v22 }
 0x618   :  { %6392 = vmatpush2.bf16.msra.mxu0 %v12437_v3  ;;  %6447 = vmatpush2.bf16.msra.mxu1 %v12438_v46  ;;  %v12444_v46 = vld [vmem:[#allocation45_spill] sm:$0xff] }
 0x619   :  { %6471 = vmatprep.subr.bf16.mxu0 %v12439_v53  ;;  %6516 = vmatprep.subr.bf16.mxu1 %v12440_v7 }
 0x65b   :  { %v6162_v16 = vpop.f32.mrf.mxu0  ;;  %v6217_v43 = vpop.f32.mrf.mxu1 }
 0x65c   :  { %v6169_v29 = vadd.f32 %v6162_v16, %v12441_v17  ;;  %v6224_v22 = vadd.f32 %v6217_v43, %v12442_v38 }
 0x65d   :  { %v6164_v23 = vpop.f32.mrf.mxu0  ;;  %v6219_v20 = vpop.f32.mrf.mxu1 }
 0x65e   :  { %v6170_v3 = vadd.f32 %v6164_v23, %v12443_v49  ;;  %v8314_v59 = vmul.f32 -1.442695, %v6169_v29  ;;  %v6225_v47 = vadd.f32 %v6219_v20, %v12444_v46  ;;  %v8316_v53 = vmul.f32 -1.442695, %v6224_v22  ;;  %v12445_v20 = vld [vmem:[#allocation46_spill] sm:$0xff]  ;;  %v12448_v23 = vld [vmem:[#allocation25_spill] sm:$0xff] }
 0x65f   :  { %v6166_v30 = vpop.f32.mrf.mxu0  ;;  %v6221_v1 = vpop.f32.mrf.mxu1 }
 0x660   :  { %v8315_v34 = vmul.f32 -1.442695, %v6170_v3  ;;  %8464 = vpow2.f32 %v8314_v59  ;;  %v8317_v7 = vmul.f32 -1.442695, %v6225_v47  ;;  %v12446_v3 = vld [vmem:[#allocation48_spill] sm:$0xff]  ;;  %v12447_v47 = vld [vmem:[#allocation55_spill] sm:$0xff] }
 0x661   :  { %v6167_v55 = vpop.f32.mrf.mxu0  ;;  %v6222_v27 = vpop.f32.mrf.mxu1  ;;  %8466 = vpow2.f32 %v8316_v53 }
 0x662   :  { %8468 = vpow2.f32 %v8315_v34 }
 0x663   :  { %8470 = vpow2.f32 %v8317_v7 }
 0x66d   :  { %v8465_v30 = vpop.eup %8464 }
 0x66e   :  { %v8467_v1 = vpop.eup %8466  ;;  %v6177_v27 = vadd.f32 1.0, %v8465_v30 }
 0x66f   :  { %v8469_v55 = vpop.eup %8468  ;;  %v6232_v16 = vadd.f32 1.0, %v8467_v1 }
 0x670   :  { %v8471_v24 = vpop.eup %8470  ;;  %v6178_v17 = vadd.f32 1.0, %v8469_v55  ;;  %8472 = vrcp.f32 %v6177_v27 }
 0x671   :  { %v6233_v38 = vadd.f32 1.0, %v8471_v24  ;;  %8474 = vrcp.f32 %v6232_v16 }
 0x672   :  { %8476 = vrcp.f32 %v6178_v17 }
 0x67d   :  { %v8473_v16 = vpop.eup %8472 }
 0x69b   :  { %v6272_v49 = vpop.f32.mrf.mxu0  ;;  %v6317_v29 = vpop.f32.mrf.mxu1 }
 0x69c   :  { %v6279_v22 = vadd.f32 %v6272_v49, %v12445_v20  ;;  %v6324_v46 = vadd.f32 %v6317_v29, %v12446_v3  ;;  %v8475_v49 = vpop.eup %8474 }
 0x69d   :  { %v6274_v53 = vpop.f32.mrf.mxu0  ;;  %v6319_v34 = vpop.f32.mrf.mxu1 }
 0x69e   :  { %8478 = vtanh.f32 %v6279_v22  ;;  %v8318_v7 = vmul.f32 -1.442695, %v6324_v46  ;;  %v6280_v59 = vadd.f32 %v6274_v53, %v12447_v47  ;;  %v6325_v43 = vadd.f32 %v6319_v34, %v12448_v23  ;;  %v8477_v17 = vpop.eup %8476 }
 0x69f   :  { %8480 = vrcp.f32 %v6233_v38  ;;  %v6276_v30 = vpop.f32.mrf.mxu0  ;;  %v6321_v1 = vpop.f32.mrf.mxu1  ;;  %v6338_v22 = vmul.f32 %v8475_v49, %v10706_v58 }
 0x6a0   :  { %8482 = vpow2.f32 %v8318_v7  ;;  %v8319_v24 = vmul.f32 -1.442695, %v6325_v43 }
 0x6a1   :  { %8484 = vtanh.f32 %v6280_v59  ;;  %v6277_v55 = vpop.f32.mrf.mxu0  ;;  %v6322_v27 = vpop.f32.mrf.mxu1 }
 0x6a2   :  { %8486 = vpow2.f32 %v8319_v24 }
 0x6ab   :  { %v8479_v29 = vpop.eup %8478 }
 0x6ac   :  { %v8481_v20 = vpop.eup %8480  ;;  %v6340_v3 = vmul.f32 %v8479_v29, %v8473_v16  ;;  %v12451_v29 = vld [vmem:[#allocation171_spill] sm:$0xff] }
 0x6ad   :  { %v8483_v46 = vpop.eup %8482  ;;  %v6339_v7 = vmul.f32 %v8481_v20, %v10710_v6  ;;  %v12449_v6 = vld [vmem:[#allocation169_spill] sm:$0xff]  ;;  %v12452_v20 = vld [vmem:[#allocation172_spill] sm:$0xff] }
 0x6ae   :  { %v8485_v53 = vpop.eup %8484  ;;  %v10856_v34 = vadd.f32 %v6340_v3, %v6338_v22  ;;  %v6332_v38 = vadd.f32 1.0, %v8483_v46  ;;  %v12453_v22 = vld [vmem:[#allocation173_spill] sm:$0xff]  ;;  %v12454_v3 = vld [vmem:[#allocation174_spill] sm:$0xff]  ;;  %v12455_v46 = vld [vmem:[#allocation175_spill] sm:$0xff] }
 0x6af   :  { %v8487_v47 = vpop.eup %8486  ;;  %v6341_v59 = vmul.f32 %v8485_v53, %v8477_v17  ;;  %v12450_v17 = vld [vmem:[#allocation170_spill] sm:$0xff]  ;;  %v12456_v53 = vld [vmem:[#allocation176_spill] sm:$0xff] }
 0x6b0   :  { %8488 = vtanh.f32 %v10856_v34  ;;  %v6333_v23 = vadd.f32 1.0, %v8487_v47  ;;  %v12458_v47 = vld [vmem:[#allocation178_spill] sm:$0xff] }
 0x6b1   :  { %8490 = vrcp.f32 %v6332_v38  ;;  %v10860_v43 = vadd.f32 %v6341_v59, %v6339_v7  ;;  %v12457_v38 = vld [vmem:[#allocation177_spill] sm:$0xff]  ;;  %v12459_v7 = vld [vmem:[#allocation182_spill] sm:$0xff] }
 0x6b2   :  { %8492 = vrcp.f32 %v6333_v23  ;;  %v12460_v59 = vld [vmem:[#allocation205_spill] sm:$0xff]  ;;  %v12461_v23 = vld [vmem:[#allocation206_spill] sm:$0xff] }
 0x6b3   :  { %8494 = vtanh.f32 %v10860_v43 }
 0x6bd   :  { %v8489_v58 = vpop.eup %8488 }
 0x6be   :  { %v8491_v30 = vpop.eup %8490 }
 0x6bf   :  { %v8493_v1 = vpop.eup %8492  ;;  %v6346_v55 = vmul.f32 %v8491_v30, %v8489_v58  ;;  %v12462_v58 = vld [vmem:[#allocation207_spill] sm:$0xff]  ;;  %v12463_v30 = vld [vmem:[#allocation208_spill] sm:$0xff] }
 0x6c0   :  { %v8495_v24 = vpop.eup %8494 }
 0x6c1   :  { %v6347_v27 = vmul.f32 %v8495_v24, %v8493_v1  ;;  %v10863_v49 = vpack.c.bf16 %v6346_v55, %v6346_v55  ;;  %v12464_v1 = vld [vmem:[#allocation209_spill] sm:$0xff]  ;;  %v12465_v24 = vld [vmem:[#allocation210_spill] sm:$0xff]  ;;  %v12466_v55 = vld [vmem:[#allocation211_spill] sm:$0xff] }
 0x6c3   :  { %v6360_v16 = vpack.c.bf16 %v6347_v27, %v6347_v27  ;;  %v12467_v27 = vld [vmem:[#allocation212_spill] sm:$0xff] }
 0x6c5   :  { %6393 = vmatprep.mubr.bf16.mxu0 %v6360_v16  ;;  %6448 = vmatprep.mubr.bf16.mxu1 %v6360_v16 }
 0x6c6   :  { %6394 = vmatmul.mubr.bf16.vlgmr.msra.gmra.mxu0 %v10863_v49  ;;  %6449 = vmatmul.mubr.bf16.vlgmr.msra.gmra.mxu1 %v10863_v49 }
 0x6c7   :  { %6472 = vmatpush1.bf16.msra.mxu0 %v12261_v26  ;;  %6517 = vmatpush1.bf16.msra.mxu1 %v12262_v36 }
 0x6c8   :  { %6503 = vmatprep.mubr.bf16.mxu0 %v6360_v16  ;;  %6548 = vmatprep.mubr.bf16.mxu1 %v6360_v16  ;;  %v12468_v16 = vld [vmem:[#allocation213_spill] sm:$0xff] }
 0x6c9   :  { %6473 = vmatprep.subr.bf16.mxu0 %v12263_v5  ;;  %6518 = vmatprep.subr.bf16.mxu1 %v12264_v11 }
 0x6cb   :  { %6474 = vmatpush1.bf16.msra.mxu0 %v12265_v31  ;;  %6519 = vmatpush1.bf16.msra.mxu1 %v12266_v60 }
 0x6cc   :  { %6475 = vmatprep.subr.bf16.mxu0 %v12267_v18  ;;  %6520 = vmatprep.subr.bf16.mxu1 %v12354_v35 }
 0x6cf   :  { %6476 = vmatpush1.bf16.msra.mxu0 %v12355_v50  ;;  %6521 = vmatpush1.bf16.msra.mxu1 %v12356_v33 }
 0x6d0   :  { %6477 = vmatprep.subr.bf16.mxu0 %v12357_v62  ;;  %6522 = vmatprep.subr.bf16.mxu1 %v12358_v4 }
 0x6d3   :  { %6478 = vmatpush1.bf16.msra.mxu0 %v12359_v12  ;;  %6523 = vmatpush1.bf16.msra.mxu1 %v12360_v52 }
 0x6d4   :  { %6479 = vmatprep.subr.bf16.mxu0 %v12361_v13  ;;  %6524 = vmatprep.subr.bf16.mxu1 %v12362_v32 }
 0x6d7   :  { %6480 = vmatpush1.bf16.msra.mxu0 %v12449_v6  ;;  %6525 = vmatpush1.bf16.msra.mxu1 %v12450_v17 }
 0x6d8   :  { %6481 = vmatprep.subr.bf16.mxu0 %v12451_v29  ;;  %6526 = vmatprep.subr.bf16.mxu1 %v12452_v20 }
 0x6db   :  { %6482 = vmatpush1.bf16.msra.mxu0 %v12453_v22  ;;  %6527 = vmatpush1.bf16.msra.mxu1 %v12454_v3 }
 0x6dc   :  { %6483 = vmatprep.subr.bf16.mxu0 %v12455_v46  ;;  %6528 = vmatprep.subr.bf16.mxu1 %v12456_v53 }
 0x6df   :  { %6484 = vmatpush1.bf16.msra.mxu0 %v12457_v38  ;;  %6529 = vmatpush1.bf16.msra.mxu1 %v12458_v47 }
 0x6e0   :  { %6485 = vmatprep.subr.bf16.mxu0 %v12373_v45  ;;  %6530 = vmatprep.subr.bf16.mxu1 %v12374_v42 }
 0x6e3   :  { %6486 = vmatpush1.bf16.msra.mxu0 %v12375_v0  ;;  %6531 = vmatpush1.bf16.msra.mxu1 %v12459_v7 }
 0x6e4   :  { %6487 = vmatprep.subr.bf16.mxu0 %v12377_v15  ;;  %6532 = vmatprep.subr.bf16.mxu1 %v12378_v25 }
 0x6e7   :  { %6488 = vmatpush2.bf16.msra.mxu0 %v12379_v63  ;;  %6533 = vmatpush2.bf16.msra.mxu1 %v12380_v54 }
 0x6e8   :  { %6489 = vmatprep.subr.bf16.mxu0 %v12381_v2  ;;  %6534 = vmatprep.subr.bf16.mxu1 %v12382_v61 }
 0x6eb   :  { %6490 = vmatpush2.bf16.msra.mxu0 %v12383_v57  ;;  %6535 = vmatpush2.bf16.msra.mxu1 %v12298_v9 }
 0x6ec   :  { %6491 = vmatprep.subr.bf16.mxu0 %v12299_v48  ;;  %6536 = vmatprep.subr.bf16.mxu1 %v12300_v19 }
 0x6ef   :  { %6492 = vmatpush2.bf16.msra.mxu0 %v12384_v39  ;;  %6537 = vmatpush2.bf16.msra.mxu1 %v12302_v44 }
 0x6f0   :  { %6493 = vmatprep.subr.bf16.mxu0 %v12303_v10  ;;  %6538 = vmatprep.subr.bf16.mxu1 %v12304_v40 }
 0x6f3   :  { %6494 = vmatpush2.bf16.msra.mxu0 %v12305_v28  ;;  %6539 = vmatpush2.bf16.msra.mxu1 %v12306_v51  ;;  %v12538_v51 = vld [vmem:[#allocation40_spill] sm:$0xff] }
 0x6f4   :  { %6495 = vmatprep.subr.bf16.mxu0 %v12307_v8  ;;  %6540 = vmatprep.subr.bf16.mxu1 %v12308_v14  ;;  %v12536_v14 = vld [vmem:[#allocation30_spill] sm:$0xff]  ;;  %v12537_v8 = vld [vmem:[#allocation32_spill] sm:$0xff] }
 0x6f7   :  { %6496 = vmatpush2.bf16.msra.mxu0 %v10436_v21  ;;  %6541 = vmatpush2.bf16.msra.mxu1 %v10440_v37 }
 0x6f8   :  { %6497 = vmatprep.subr.bf16.mxu0 %v10442_v41  ;;  %6542 = vmatprep.subr.bf16.mxu1 %v12309_v56  ;;  %v12469_v41 = vld [vmem:[#allocation214_spill] sm:$0xff]  ;;  %v12470_v56 = vld [vmem:[#allocation87_spill] sm:$0xff] }
 0x6fb   :  { %6498 = vmatpush2.bf16.msra.mxu0 %v12460_v59  ;;  %6543 = vmatpush2.bf16.msra.mxu1 %v12461_v23  ;;  %v12471_v59 = vld [vmem:[#allocation89_spill] sm:$0xff] }
 0x6fc   :  { %6499 = vmatprep.subr.bf16.mxu0 %v12462_v58  ;;  %6544 = vmatprep.subr.bf16.mxu1 %v12463_v30  ;;  %v12472_v30 = vld [vmem:[#allocation88_spill] sm:$0xff]  ;;  %v12481_v58 = vld [vmem:[#allocation98_spill] sm:$0xff] }
 0x6ff   :  { %6500 = vmatpush2.bf16.msra.mxu0 %v12464_v1  ;;  %6545 = vmatpush2.bf16.msra.mxu1 %v12465_v24  ;;  %v12473_v1 = vld [vmem:[#allocation90_spill] sm:$0xff]  ;;  %v12474_v24 = vld [vmem:[#allocation91_spill] sm:$0xff] }
 0x700   :  { %6501 = vmatprep.subr.bf16.mxu0 %v12466_v55  ;;  %6546 = vmatprep.subr.bf16.mxu1 %v12467_v27  ;;  %v12475_v55 = vld [vmem:[#allocation92_spill] sm:$0xff]  ;;  %v12476_v27 = vld [vmem:[#allocation93_spill] sm:$0xff] }
 0x703   :  { %6502 = vmatpush2.bf16.msra.mxu0 %v12468_v16  ;;  %6547 = vmatpush2.bf16.msra.mxu1 %v12469_v41  ;;  %v12477_v16 = vld [vmem:[#allocation94_spill] sm:$0xff]  ;;  %v12478_v41 = vld [vmem:[#allocation95_spill] sm:$0xff] }
 0x704   :  { %6594 = vmatprep.subr.bf16.mxu0 %v12470_v56  ;;  %6649 = vmatprep.subr.bf16.mxu1 %v12471_v59  ;;  %v12479_v56 = vld [vmem:[#allocation96_spill] sm:$0xff]  ;;  %v12480_v59 = vld [vmem:[#allocation97_spill] sm:$0xff] }
 0x706   :  { %6504 = vmatmul.mubr.bf16.vlgmr.msra.gmra.mxu0 %v10863_v49  ;;  %6549 = vmatmul.mubr.bf16.vlgmr.msra.gmra.mxu1 %v10863_v49  ;;  %v12482_v49 = vld [vmem:[#allocation99_spill] sm:$0xff] }
 0x707   :  { %6595 = vmatpush1.bf16.msra.mxu0 %v12472_v30  ;;  %6650 = vmatpush1.bf16.msra.mxu1 %v12473_v1  ;;  %v12483_v30 = vld [vmem:[#allocation100_spill] sm:$0xff]  ;;  %v12484_v1 = vld [vmem:[#allocation101_spill] sm:$0xff] }
 0x708   :  { %6596 = vmatprep.subr.bf16.mxu0 %v12474_v24  ;;  %6651 = vmatprep.subr.bf16.mxu1 %v12475_v55  ;;  %v12485_v24 = vld [vmem:[#allocation102_spill] sm:$0xff]  ;;  %v12486_v55 = vld [vmem:[#allocation103_spill] sm:$0xff] }
 0x70b   :  { %6597 = vmatpush1.bf16.msra.mxu0 %v12476_v27  ;;  %6652 = vmatpush1.bf16.msra.mxu1 %v12477_v16  ;;  %v12487_v27 = vld [vmem:[#allocation104_spill] sm:$0xff]  ;;  %v12488_v16 = vld [vmem:[#allocation105_spill] sm:$0xff] }
 0x70c   :  { %6598 = vmatprep.subr.bf16.mxu0 %v12478_v41  ;;  %6653 = vmatprep.subr.bf16.mxu1 %v12479_v56  ;;  %v12489_v41 = vld [vmem:[#allocation106_spill] sm:$0xff]  ;;  %v12490_v56 = vld [vmem:[#allocation107_spill] sm:$0xff] }
 0x70f   :  { %6599 = vmatpush1.bf16.msra.mxu0 %v12480_v59  ;;  %6654 = vmatpush1.bf16.msra.mxu1 %v12481_v58  ;;  %v12491_v59 = vld [vmem:[#allocation108_spill] sm:$0xff]  ;;  %v12492_v58 = vld [vmem:[#allocation109_spill] sm:$0xff] }
 0x710   :  { %6600 = vmatprep.subr.bf16.mxu0 %v12482_v49  ;;  %6655 = vmatprep.subr.bf16.mxu1 %v12483_v30  ;;  %v12493_v49 = vld [vmem:[#allocation110_spill] sm:$0xff]  ;;  %v12494_v30 = vld [vmem:[#allocation111_spill] sm:$0xff] }
 0x713   :  { %6601 = vmatpush1.bf16.msra.mxu0 %v12484_v1  ;;  %6656 = vmatpush1.bf16.msra.mxu1 %v12485_v24  ;;  %v12495_v1 = vld [vmem:[#allocation112_spill] sm:$0xff]  ;;  %v12496_v24 = vld [vmem:[#allocation113_spill] sm:$0xff] }
 0x714   :  { %6602 = vmatprep.subr.bf16.mxu0 %v12486_v55  ;;  %6657 = vmatprep.subr.bf16.mxu1 %v12487_v27  ;;  %v12497_v55 = vld [vmem:[#allocation114_spill] sm:$0xff]  ;;  %v12498_v27 = vld [vmem:[#allocation115_spill] sm:$0xff] }
 0x717   :  { %6603 = vmatpush1.bf16.msra.mxu0 %v12488_v16  ;;  %6658 = vmatpush1.bf16.msra.mxu1 %v12489_v41  ;;  %v12499_v16 = vld [vmem:[#allocation116_spill] sm:$0xff]  ;;  %v12500_v41 = vld [vmem:[#allocation117_spill] sm:$0xff] }
 0x718   :  { %6604 = vmatprep.subr.bf16.mxu0 %v12490_v56  ;;  %6659 = vmatprep.subr.bf16.mxu1 %v12491_v59  ;;  %v12501_v56 = vld [vmem:[#allocation118_spill] sm:$0xff]  ;;  %v12502_v59 = vld [vmem:[#allocation119_spill] sm:$0xff] }
 0x71b   :  { %6605 = vmatpush1.bf16.msra.mxu0 %v12492_v58  ;;  %6660 = vmatpush1.bf16.msra.mxu1 %v12493_v49  ;;  %v12503_v58 = vld [vmem:[#allocation120_spill] sm:$0xff]  ;;  %v12504_v49 = vld [vmem:[#allocation121_spill] sm:$0xff] }
 0x71c   :  { %6606 = vmatprep.subr.bf16.mxu0 %v12494_v30  ;;  %6661 = vmatprep.subr.bf16.mxu1 %v12495_v1  ;;  %v12505_v30 = vld [vmem:[#allocation122_spill] sm:$0xff]  ;;  %v12506_v1 = vld [vmem:[#allocation123_spill] sm:$0xff] }
 0x71f   :  { %6607 = vmatpush1.bf16.msra.mxu0 %v12496_v24  ;;  %6662 = vmatpush1.bf16.msra.mxu1 %v12497_v55  ;;  %v12507_v24 = vld [vmem:[#allocation124_spill] sm:$0xff]  ;;  %v12508_v55 = vld [vmem:[#allocation125_spill] sm:$0xff] }
 0x720   :  { %6608 = vmatprep.subr.bf16.mxu0 %v12498_v27  ;;  %6663 = vmatprep.subr.bf16.mxu1 %v12499_v16  ;;  %v12509_v27 = vld [vmem:[#allocation126_spill] sm:$0xff]  ;;  %v12510_v16 = vld [vmem:[#allocation127_spill] sm:$0xff] }
 0x723   :  { %6609 = vmatpush1.bf16.msra.mxu0 %v12500_v41  ;;  %6664 = vmatpush1.bf16.msra.mxu1 %v12501_v56  ;;  %v12511_v41 = vld [vmem:[#allocation128_spill] sm:$0xff]  ;;  %v12512_v56 = vld [vmem:[#allocation129_spill] sm:$0xff] }
 0x724   :  { %6610 = vmatprep.subr.bf16.mxu0 %v12502_v59  ;;  %6665 = vmatprep.subr.bf16.mxu1 %v12503_v58  ;;  %v12513_v59 = vld [vmem:[#allocation130_spill] sm:$0xff]  ;;  %v12514_v58 = vld [vmem:[#allocation131_spill] sm:$0xff] }
 0x727   :  { %6611 = vmatpush2.bf16.msra.mxu0 %v12504_v49  ;;  %6666 = vmatpush2.bf16.msra.mxu1 %v12505_v30  ;;  %v12515_v49 = vld [vmem:[#allocation132_spill] sm:$0xff]  ;;  %v12516_v30 = vld [vmem:[#allocation133_spill] sm:$0xff] }
 0x728   :  { %6612 = vmatprep.subr.bf16.mxu0 %v12506_v1  ;;  %6667 = vmatprep.subr.bf16.mxu1 %v12507_v24  ;;  %v12517_v1 = vld [vmem:[#allocation134_spill] sm:$0xff]  ;;  %v12518_v24 = vld [vmem:[#allocation135_spill] sm:$0xff] }
 0x72b   :  { %6613 = vmatpush2.bf16.msra.mxu0 %v12508_v55  ;;  %6668 = vmatpush2.bf16.msra.mxu1 %v12509_v27  ;;  %v12519_v55 = vld [vmem:[#allocation136_spill] sm:$0xff]  ;;  %v12520_v27 = vld [vmem:[#allocation137_spill] sm:$0xff] }
 0x72c   :  { %6614 = vmatprep.subr.bf16.mxu0 %v12510_v16  ;;  %6669 = vmatprep.subr.bf16.mxu1 %v12511_v41  ;;  %v12521_v16 = vld [vmem:[#allocation138_spill] sm:$0xff]  ;;  %v12522_v41 = vld [vmem:[#allocation139_spill] sm:$0xff] }
 0x72f   :  { %6615 = vmatpush2.bf16.msra.mxu0 %v12512_v56  ;;  %6670 = vmatpush2.bf16.msra.mxu1 %v12513_v59  ;;  %v12523_v56 = vld [vmem:[#allocation140_spill] sm:$0xff]  ;;  %v12524_v59 = vld [vmem:[#allocation141_spill] sm:$0xff] }
 0x730   :  { %6616 = vmatprep.subr.bf16.mxu0 %v12514_v58  ;;  %6671 = vmatprep.subr.bf16.mxu1 %v12515_v49  ;;  %v12525_v58 = vld [vmem:[#allocation142_spill] sm:$0xff]  ;;  %v12526_v49 = vld [vmem:[#allocation143_spill] sm:$0xff] }
 0x733   :  { %6617 = vmatpush2.bf16.msra.mxu0 %v12516_v30  ;;  %6672 = vmatpush2.bf16.msra.mxu1 %v12517_v1  ;;  %v12527_v30 = vld [vmem:[#allocation144_spill] sm:$0xff]  ;;  %v12528_v1 = vld [vmem:[#allocation145_spill] sm:$0xff] }
 0x734   :  { %6618 = vmatprep.subr.bf16.mxu0 %v12518_v24  ;;  %6673 = vmatprep.subr.bf16.mxu1 %v12519_v55  ;;  %v12529_v24 = vld [vmem:[#allocation146_spill] sm:$0xff]  ;;  %v12530_v55 = vld [vmem:[#allocation147_spill] sm:$0xff] }
 0x737   :  { %6619 = vmatpush2.bf16.msra.mxu0 %v12520_v27  ;;  %6674 = vmatpush2.bf16.msra.mxu1 %v12521_v16  ;;  %v12531_v27 = vld [vmem:[#allocation148_spill] sm:$0xff]  ;;  %v12532_v16 = vld [vmem:[#allocation149_spill] sm:$0xff] }
 0x738   :  { %6620 = vmatprep.subr.bf16.mxu0 %v12522_v41  ;;  %6675 = vmatprep.subr.bf16.mxu1 %v12523_v56  ;;  %v12533_v41 = vld [vmem:[#allocation150_spill] sm:$0xff]  ;;  %v12534_v56 = vld [vmem:[#allocation151_spill] sm:$0xff] }
 0x73b   :  { %6621 = vmatpush2.bf16.msra.mxu0 %v12524_v59  ;;  %6676 = vmatpush2.bf16.msra.mxu1 %v12525_v58  ;;  %v12535_v59 = vld [vmem:[#allocation152_spill] sm:$0xff] }
 0x73c   :  { %6622 = vmatprep.subr.bf16.mxu0 %v12526_v49  ;;  %6677 = vmatprep.subr.bf16.mxu1 %v12527_v30 }
 0x73f   :  { %6623 = vmatpush2.bf16.msra.mxu0 %v12528_v1  ;;  %6678 = vmatpush2.bf16.msra.mxu1 %v12529_v24 }
 0x740   :  { %6624 = vmatprep.subr.bf16.mxu0 %v12530_v55  ;;  %6679 = vmatprep.subr.bf16.mxu1 %v12531_v27 }
 0x743   :  { %6625 = vmatpush2.bf16.msra.mxu0 %v12532_v16  ;;  %6680 = vmatpush2.bf16.msra.mxu1 %v12533_v41  ;;  %v12539_v41 = vld [vmem:[#allocation49_spill] sm:$0xff] }
 0x744   :  { %6704 = vmatprep.subr.bf16.mxu0 %v12534_v56  ;;  %6749 = vmatprep.subr.bf16.mxu1 %v12535_v59 }
 0x786   :  { %v6395_v58 = vpop.f32.mrf.mxu0  ;;  %v6450_v49 = vpop.f32.mrf.mxu1 }
 0x787   :  { %v6402_v55 = vadd.f32 %v6395_v58, %v12536_v14  ;;  %v6457_v27 = vadd.f32 %v6450_v49, %v12537_v8 }
 0x788   :  { %v6397_v23 = vpop.f32.mrf.mxu0  ;;  %v6452_v30 = vpop.f32.mrf.mxu1 }
 0x789   :  { %v6403_v16 = vadd.f32 %v6397_v23, %v12538_v51  ;;  %v8320_v28 = vmul.f32 -1.442695, %v6402_v55  ;;  %v6458_v40 = vadd.f32 %v6452_v30, %v12539_v41  ;;  %v8322_v56 = vmul.f32 -1.442695, %v6457_v27  ;;  %v12540_v41 = vld [vmem:[#allocation68_spill] sm:$0xff]  ;;  %v12541_v55 = vld [vmem:[#allocation69_spill] sm:$0xff] }
 0x78a   :  { %v6399_v37 = vpop.f32.mrf.mxu0  ;;  %v6454_v1 = vpop.f32.mrf.mxu1 }
 0x78b   :  { %v8321_v10 = vmul.f32 -1.442695, %v6403_v16  ;;  %8496 = vpow2.f32 %v8320_v28  ;;  %v8323_v59 = vmul.f32 -1.442695, %v6458_v40  ;;  %v12543_v16 = vld [vmem:[#allocation71_spill] sm:$0xff] }
 0x78c   :  { %v6400_v21 = vpop.f32.mrf.mxu0  ;;  %v6455_v24 = vpop.f32.mrf.mxu1  ;;  %8498 = vpow2.f32 %v8322_v56 }
 0x78d   :  { %8500 = vpow2.f32 %v8321_v10 }
 0x78e   :  { %8502 = vpow2.f32 %v8323_v59  ;;  %v12542_v59 = vld [vmem:[#allocation70_spill] sm:$0xff] }
 0x798   :  { %v8497_v37 = vpop.eup %8496 }
 0x799   :  { %v8499_v1 = vpop.eup %8498  ;;  %v6410_v24 = vadd.f32 1.0, %v8497_v37 }
 0x79a   :  { %v8501_v21 = vpop.eup %8500  ;;  %v6465_v14 = vadd.f32 1.0, %v8499_v1 }
 0x79b   :  { %v8503_v44 = vpop.eup %8502  ;;  %v6411_v58 = vadd.f32 1.0, %v8501_v21  ;;  %8504 = vrcp.f32 %v6410_v24 }
 0x79c   :  { %v6466_v8 = vadd.f32 1.0, %v8503_v44  ;;  %8506 = vrcp.f32 %v6465_v14 }
 0x79d   :  { %8508 = vrcp.f32 %v6411_v58 }
 0x7a8   :  { %v8505_v14 = vpop.eup %8504 }
 0x7c6   :  { %v6505_v51 = vpop.f32.mrf.mxu0  ;;  %v6550_v23 = vpop.f32.mrf.mxu1 }
 0x7c7   :  { %v6512_v30 = vadd.f32 %v6505_v51, %v12540_v41  ;;  %v6557_v28 = vadd.f32 %v6550_v23, %v12541_v55  ;;  %v8507_v51 = vpop.eup %8506 }
 0x7c8   :  { %v6507_v56 = vpop.f32.mrf.mxu0  ;;  %v6552_v10 = vpop.f32.mrf.mxu1 }
 0x7c9   :  { %8510 = vtanh.f32 %v6512_v30  ;;  %v8324_v40 = vmul.f32 -1.442695, %v6557_v28  ;;  %v6513_v27 = vadd.f32 %v6507_v56, %v12542_v59  ;;  %v6558_v49 = vadd.f32 %v6552_v10, %v12543_v16  ;;  %v8509_v58 = vpop.eup %8508 }
 0x7ca   :  { %8512 = vrcp.f32 %v6466_v8  ;;  %v6509_v37 = vpop.f32.mrf.mxu0  ;;  %v6554_v1 = vpop.f32.mrf.mxu1  ;;  %v6571_v30 = vmul.f32 %v8507_v51, %v10856_v34 }
 0x7cb   :  { %8514 = vpow2.f32 %v8324_v40  ;;  %v8325_v44 = vmul.f32 -1.442695, %v6558_v49 }
 0x7cc   :  { %8516 = vtanh.f32 %v6513_v27  ;;  %v6510_v21 = vpop.f32.mrf.mxu0  ;;  %v6555_v24 = vpop.f32.mrf.mxu1 }
 0x7cd   :  { %8518 = vpow2.f32 %v8325_v44 }
 0x7d6   :  { %v8511_v23 = vpop.eup %8510 }
 0x7d7   :  { %v8513_v41 = vpop.eup %8512  ;;  %v6573_v55 = vmul.f32 %v8511_v23, %v8505_v14  ;;  %v12546_v23 = vld [vmem:[#allocation196_spill] sm:$0xff] }
 0x7d8   :  { %v8515_v28 = vpop.eup %8514  ;;  %v6572_v40 = vmul.f32 %v8513_v41, %v10860_v43  ;;  %v12544_v43 = vld [vmem:[#allocation194_spill] sm:$0xff]  ;;  %v12547_v41 = vld [vmem:[#allocation197_spill] sm:$0xff] }
 0x7d9   :  { %v8517_v56 = vpop.eup %8516  ;;  %v11006_v10 = vadd.f32 %v6573_v55, %v6571_v30  ;;  %v6565_v8 = vadd.f32 1.0, %v8515_v28  ;;  %v12548_v30 = vld [vmem:[#allocation198_spill] sm:$0xff]  ;;  %v12549_v55 = vld [vmem:[#allocation199_spill] sm:$0xff]  ;;  %v12550_v28 = vld [vmem:[#allocation200_spill] sm:$0xff] }
 0x7da   :  { %v8519_v59 = vpop.eup %8518  ;;  %v6574_v27 = vmul.f32 %v8517_v56, %v8509_v58  ;;  %v12545_v58 = vld [vmem:[#allocation195_spill] sm:$0xff]  ;;  %v12551_v56 = vld [vmem:[#allocation201_spill] sm:$0xff] }
 0x7db   :  { %8520 = vtanh.f32 %v11006_v10  ;;  %v6566_v16 = vadd.f32 1.0, %v8519_v59  ;;  %v12553_v59 = vld [vmem:[#allocation203_spill] sm:$0xff] }
 0x7dc   :  { %8522 = vrcp.f32 %v6565_v8  ;;  %v11010_v49 = vadd.f32 %v6574_v27, %v6572_v40  ;;  %v12552_v8 = vld [vmem:[#allocation202_spill] sm:$0xff]  ;;  %v12554_v40 = vld [vmem:[#allocation204_spill] sm:$0xff]  ;;  %v12555_v27 = vld [vmem:[#allocation205_spill] sm:$0xff] }
 0x7dd   :  { %8524 = vrcp.f32 %v6566_v16  ;;  %v12556_v16 = vld [vmem:[#allocation206_spill] sm:$0xff] }
 0x7de   :  { %8526 = vtanh.f32 %v11010_v49 }
 0x7e8   :  { %v8521_v34 = vpop.eup %8520 }
 0x7e9   :  { %v8523_v37 = vpop.eup %8522 }
 0x7ea   :  { %v8525_v1 = vpop.eup %8524  ;;  %v6579_v21 = vmul.f32 %v8523_v37, %v8521_v34  ;;  %v12557_v34 = vld [vmem:[#allocation207_spill] sm:$0xff]  ;;  %v12558_v37 = vld [vmem:[#allocation208_spill] sm:$0xff] }
 0x7eb   :  { %v8527_v44 = vpop.eup %8526 }
 0x7ec   :  { %v6580_v24 = vmul.f32 %v8527_v44, %v8525_v1  ;;  %v11013_v51 = vpack.c.bf16 %v6579_v21, %v6579_v21  ;;  %v12559_v1 = vld [vmem:[#allocation209_spill] sm:$0xff]  ;;  %v12560_v44 = vld [vmem:[#allocation210_spill] sm:$0xff]  ;;  %v12561_v21 = vld [vmem:[#allocation211_spill] sm:$0xff] }
 0x7ee   :  { %v6593_v14 = vpack.c.bf16 %v6580_v24, %v6580_v24  ;;  %v12562_v24 = vld [vmem:[#allocation212_spill] sm:$0xff] }
 0x7f0   :  { %6626 = vmatprep.mubr.bf16.mxu0 %v6593_v14  ;;  %6681 = vmatprep.mubr.bf16.mxu1 %v6593_v14 }
 0x7f1   :  { %6627 = vmatmul.mubr.bf16.vlgmr.msra.gmra.mxu0 %v11013_v51  ;;  %6682 = vmatmul.mubr.bf16.vlgmr.msra.gmra.mxu1 %v11013_v51 }
 0x7f2   :  { %6705 = vmatpush1.bf16.msra.mxu0 %v12261_v26  ;;  %6750 = vmatpush1.bf16.msra.mxu1 %v12262_v36 }
 0x7f3   :  { %6736 = vmatprep.mubr.bf16.mxu0 %v6593_v14  ;;  %6781 = vmatprep.mubr.bf16.mxu1 %v6593_v14  ;;  %v12563_v14 = vld [vmem:[#allocation213_spill] sm:$0xff] }
 0x7f4   :  { %6706 = vmatprep.subr.bf16.mxu0 %v12263_v5  ;;  %6751 = vmatprep.subr.bf16.mxu1 %v12264_v11 }
 0x7f6   :  { %6707 = vmatpush1.bf16.msra.mxu0 %v12265_v31  ;;  %6752 = vmatpush1.bf16.msra.mxu1 %v12266_v60 }
 0x7f7   :  { %6708 = vmatprep.subr.bf16.mxu0 %v12267_v18  ;;  %6753 = vmatprep.subr.bf16.mxu1 %v12354_v35 }
 0x7fa   :  { %6709 = vmatpush1.bf16.msra.mxu0 %v12355_v50  ;;  %6754 = vmatpush1.bf16.msra.mxu1 %v12356_v33 }
 0x7fb   :  { %6710 = vmatprep.subr.bf16.mxu0 %v12357_v62  ;;  %6755 = vmatprep.subr.bf16.mxu1 %v12358_v4 }
 0x7fe   :  { %6711 = vmatpush1.bf16.msra.mxu0 %v12359_v12  ;;  %6756 = vmatpush1.bf16.msra.mxu1 %v12360_v52 }
 0x7ff   :  { %6712 = vmatprep.subr.bf16.mxu0 %v12361_v13  ;;  %6757 = vmatprep.subr.bf16.mxu1 %v12362_v32 }
 0x802   :  { %6713 = vmatpush1.bf16.msra.mxu0 %v12449_v6  ;;  %6758 = vmatpush1.bf16.msra.mxu1 %v12450_v17 }
 0x803   :  { %6714 = vmatprep.subr.bf16.mxu0 %v12451_v29  ;;  %6759 = vmatprep.subr.bf16.mxu1 %v12452_v20 }
 0x806   :  { %6715 = vmatpush1.bf16.msra.mxu0 %v12453_v22  ;;  %6760 = vmatpush1.bf16.msra.mxu1 %v12454_v3 }
 0x807   :  { %6716 = vmatprep.subr.bf16.mxu0 %v12455_v46  ;;  %6761 = vmatprep.subr.bf16.mxu1 %v12456_v53 }
 0x80a   :  { %6717 = vmatpush1.bf16.msra.mxu0 %v12457_v38  ;;  %6762 = vmatpush1.bf16.msra.mxu1 %v12458_v47 }
 0x80b   :  { %6718 = vmatprep.subr.bf16.mxu0 %v12373_v45  ;;  %6763 = vmatprep.subr.bf16.mxu1 %v12374_v42 }
 0x80e   :  { %6719 = vmatpush1.bf16.msra.mxu0 %v12375_v0  ;;  %6764 = vmatpush1.bf16.msra.mxu1 %v12459_v7 }
 0x80f   :  { %6720 = vmatprep.subr.bf16.mxu0 %v12377_v15  ;;  %6765 = vmatprep.subr.bf16.mxu1 %v12378_v25 }
 0x812   :  { %6721 = vmatpush2.bf16.msra.mxu0 %v12379_v63  ;;  %6766 = vmatpush2.bf16.msra.mxu1 %v12380_v54 }
 0x813   :  { %6722 = vmatprep.subr.bf16.mxu0 %v12381_v2  ;;  %6767 = vmatprep.subr.bf16.mxu1 %v12382_v61 }
 0x816   :  { %6723 = vmatpush2.bf16.msra.mxu0 %v12383_v57  ;;  %6768 = vmatpush2.bf16.msra.mxu1 %v12298_v9 }
 0x817   :  { %6724 = vmatprep.subr.bf16.mxu0 %v12299_v48  ;;  %6769 = vmatprep.subr.bf16.mxu1 %v12300_v19 }
 0x81a   :  { %6725 = vmatpush2.bf16.msra.mxu0 %v12384_v39  ;;  %6770 = vmatpush2.bf16.msra.mxu1 %v12544_v43 }
 0x81b   :  { %6726 = vmatprep.subr.bf16.mxu0 %v12545_v58  ;;  %6771 = vmatprep.subr.bf16.mxu1 %v12546_v23 }
 0x81e   :  { %6727 = vmatpush2.bf16.msra.mxu0 %v12547_v41  ;;  %6772 = vmatpush2.bf16.msra.mxu1 %v12548_v30  ;;  %v12633_v30 = vld [vmem:[#allocation27_spill] sm:$0xff] }
 0x81f   :  { %6728 = vmatprep.subr.bf16.mxu0 %v12549_v55  ;;  %6773 = vmatprep.subr.bf16.mxu1 %v12550_v28  ;;  %v12631_v28 = vld [vmem:[#allocation72_spill] sm:$0xff]  ;;  %v12632_v55 = vld [vmem:[#allocation73_spill] sm:$0xff] }
 0x822   :  { %6729 = vmatpush2.bf16.msra.mxu0 %v12551_v56  ;;  %6774 = vmatpush2.bf16.msra.mxu1 %v12552_v8 }
 0x823   :  { %6730 = vmatprep.subr.bf16.mxu0 %v12553_v59  ;;  %6775 = vmatprep.subr.bf16.mxu1 %v12554_v40  ;;  %v12564_v59 = vld [vmem:[#allocation214_spill] sm:$0xff]  ;;  %v12565_v40 = vld [vmem:[#allocation87_spill] sm:$0xff] }
 0x826   :  { %6731 = vmatpush2.bf16.msra.mxu0 %v12555_v27  ;;  %6776 = vmatpush2.bf16.msra.mxu1 %v12556_v16  ;;  %v12566_v27 = vld [vmem:[#allocation89_spill] sm:$0xff] }
 0x827   :  { %6732 = vmatprep.subr.bf16.mxu0 %v12557_v34  ;;  %6777 = vmatprep.subr.bf16.mxu1 %v12558_v37  ;;  %v12567_v37 = vld [vmem:[#allocation88_spill] sm:$0xff]  ;;  %v12576_v34 = vld [vmem:[#allocation98_spill] sm:$0xff] }
 0x82a   :  { %6733 = vmatpush2.bf16.msra.mxu0 %v12559_v1  ;;  %6778 = vmatpush2.bf16.msra.mxu1 %v12560_v44  ;;  %v12568_v1 = vld [vmem:[#allocation90_spill] sm:$0xff]  ;;  %v12569_v44 = vld [vmem:[#allocation91_spill] sm:$0xff] }
 0x82b   :  { %6734 = vmatprep.subr.bf16.mxu0 %v12561_v21  ;;  %6779 = vmatprep.subr.bf16.mxu1 %v12562_v24  ;;  %v12570_v21 = vld [vmem:[#allocation92_spill] sm:$0xff]  ;;  %v12571_v24 = vld [vmem:[#allocation93_spill] sm:$0xff] }
 0x82e   :  { %6735 = vmatpush2.bf16.msra.mxu0 %v12563_v14  ;;  %6780 = vmatpush2.bf16.msra.mxu1 %v12564_v59  ;;  %v12572_v14 = vld [vmem:[#allocation94_spill] sm:$0xff]  ;;  %v12573_v59 = vld [vmem:[#allocation95_spill] sm:$0xff] }
 0x82f   :  { %6827 = vmatprep.subr.bf16.mxu0 %v12565_v40  ;;  %6882 = vmatprep.subr.bf16.mxu1 %v12566_v27  ;;  %v12574_v40 = vld [vmem:[#allocation96_spill] sm:$0xff]  ;;  %v12575_v27 = vld [vmem:[#allocation97_spill] sm:$0xff] }
 0x831   :  { %6737 = vmatmul.mubr.bf16.vlgmr.msra.gmra.mxu0 %v11013_v51  ;;  %6782 = vmatmul.mubr.bf16.vlgmr.msra.gmra.mxu1 %v11013_v51  ;;  %v12577_v51 = vld [vmem:[#allocation99_spill] sm:$0xff] }
 0x832   :  { %6828 = vmatpush1.bf16.msra.mxu0 %v12567_v37  ;;  %6883 = vmatpush1.bf16.msra.mxu1 %v12568_v1  ;;  %v12578_v37 = vld [vmem:[#allocation100_spill] sm:$0xff]  ;;  %v12579_v1 = vld [vmem:[#allocation101_spill] sm:$0xff] }
 0x833   :  { %6829 = vmatprep.subr.bf16.mxu0 %v12569_v44  ;;  %6884 = vmatprep.subr.bf16.mxu1 %v12570_v21  ;;  %v12580_v44 = vld [vmem:[#allocation102_spill] sm:$0xff]  ;;  %v12581_v21 = vld [vmem:[#allocation103_spill] sm:$0xff] }
 0x836   :  { %6830 = vmatpush1.bf16.msra.mxu0 %v12571_v24  ;;  %6885 = vmatpush1.bf16.msra.mxu1 %v12572_v14  ;;  %v12582_v24 = vld [vmem:[#allocation104_spill] sm:$0xff]  ;;  %v12583_v14 = vld [vmem:[#allocation105_spill] sm:$0xff] }
 0x837   :  { %6831 = vmatprep.subr.bf16.mxu0 %v12573_v59  ;;  %6886 = vmatprep.subr.bf16.mxu1 %v12574_v40  ;;  %v12584_v59 = vld [vmem:[#allocation106_spill] sm:$0xff]  ;;  %v12585_v40 = vld [vmem:[#allocation107_spill] sm:$0xff] }
 0x83a   :  { %6832 = vmatpush1.bf16.msra.mxu0 %v12575_v27  ;;  %6887 = vmatpush1.bf16.msra.mxu1 %v12576_v34  ;;  %v12586_v27 = vld [vmem:[#allocation108_spill] sm:$0xff]  ;;  %v12587_v34 = vld [vmem:[#allocation109_spill] sm:$0xff] }
 0x83b   :  { %6833 = vmatprep.subr.bf16.mxu0 %v12577_v51  ;;  %6888 = vmatprep.subr.bf16.mxu1 %v12578_v37  ;;  %v12588_v51 = vld [vmem:[#allocation110_spill] sm:$0xff]  ;;  %v12589_v37 = vld [vmem:[#allocation111_spill] sm:$0xff] }
 0x83e   :  { %6834 = vmatpush1.bf16.msra.mxu0 %v12579_v1  ;;  %6889 = vmatpush1.bf16.msra.mxu1 %v12580_v44  ;;  %v12590_v1 = vld [vmem:[#allocation112_spill] sm:$0xff]  ;;  %v12591_v44 = vld [vmem:[#allocation113_spill] sm:$0xff] }
 0x83f   :  { %6835 = vmatprep.subr.bf16.mxu0 %v12581_v21  ;;  %6890 = vmatprep.subr.bf16.mxu1 %v12582_v24  ;;  %v12592_v21 = vld [vmem:[#allocation114_spill] sm:$0xff]  ;;  %v12593_v24 = vld [vmem:[#allocation115_spill] sm:$0xff] }
 0x842   :  { %6836 = vmatpush1.bf16.msra.mxu0 %v12583_v14  ;;  %6891 = vmatpush1.bf16.msra.mxu1 %v12584_v59  ;;  %v12594_v14 = vld [vmem:[#allocation116_spill] sm:$0xff]  ;;  %v12595_v59 = vld [vmem:[#allocation117_spill] sm:$0xff] }
 0x843   :  { %6837 = vmatprep.subr.bf16.mxu0 %v12585_v40  ;;  %6892 = vmatprep.subr.bf16.mxu1 %v12586_v27  ;;  %v12596_v40 = vld [vmem:[#allocation118_spill] sm:$0xff]  ;;  %v12597_v27 = vld [vmem:[#allocation119_spill] sm:$0xff] }
 0x846   :  { %6838 = vmatpush1.bf16.msra.mxu0 %v12587_v34  ;;  %6893 = vmatpush1.bf16.msra.mxu1 %v12588_v51  ;;  %v12598_v34 = vld [vmem:[#allocation120_spill] sm:$0xff]  ;;  %v12599_v51 = vld [vmem:[#allocation121_spill] sm:$0xff] }
 0x847   :  { %6839 = vmatprep.subr.bf16.mxu0 %v12589_v37  ;;  %6894 = vmatprep.subr.bf16.mxu1 %v12590_v1  ;;  %v12600_v37 = vld [vmem:[#allocation122_spill] sm:$0xff]  ;;  %v12601_v1 = vld [vmem:[#allocation123_spill] sm:$0xff] }
 0x84a   :  { %6840 = vmatpush1.bf16.msra.mxu0 %v12591_v44  ;;  %6895 = vmatpush1.bf16.msra.mxu1 %v12592_v21  ;;  %v12602_v44 = vld [vmem:[#allocation124_spill] sm:$0xff]  ;;  %v12603_v21 = vld [vmem:[#allocation125_spill] sm:$0xff] }
 0x84b   :  { %6841 = vmatprep.subr.bf16.mxu0 %v12593_v24  ;;  %6896 = vmatprep.subr.bf16.mxu1 %v12594_v14  ;;  %v12604_v24 = vld [vmem:[#allocation126_spill] sm:$0xff]  ;;  %v12605_v14 = vld [vmem:[#allocation127_spill] sm:$0xff] }
 0x84e   :  { %6842 = vmatpush1.bf16.msra.mxu0 %v12595_v59  ;;  %6897 = vmatpush1.bf16.msra.mxu1 %v12596_v40  ;;  %v12606_v59 = vld [vmem:[#allocation128_spill] sm:$0xff]  ;;  %v12607_v40 = vld [vmem:[#allocation129_spill] sm:$0xff] }
 0x84f   :  { %6843 = vmatprep.subr.bf16.mxu0 %v12597_v27  ;;  %6898 = vmatprep.subr.bf16.mxu1 %v12598_v34  ;;  %v12608_v27 = vld [vmem:[#allocation130_spill] sm:$0xff]  ;;  %v12609_v34 = vld [vmem:[#allocation131_spill] sm:$0xff] }
 0x852   :  { %6844 = vmatpush2.bf16.msra.mxu0 %v12599_v51  ;;  %6899 = vmatpush2.bf16.msra.mxu1 %v12600_v37  ;;  %v12610_v51 = vld [vmem:[#allocation132_spill] sm:$0xff]  ;;  %v12611_v37 = vld [vmem:[#allocation133_spill] sm:$0xff] }
 0x853   :  { %6845 = vmatprep.subr.bf16.mxu0 %v12601_v1  ;;  %6900 = vmatprep.subr.bf16.mxu1 %v12602_v44  ;;  %v12612_v1 = vld [vmem:[#allocation134_spill] sm:$0xff]  ;;  %v12613_v44 = vld [vmem:[#allocation135_spill] sm:$0xff] }
 0x856   :  { %6846 = vmatpush2.bf16.msra.mxu0 %v12603_v21  ;;  %6901 = vmatpush2.bf16.msra.mxu1 %v12604_v24  ;;  %v12614_v21 = vld [vmem:[#allocation136_spill] sm:$0xff]  ;;  %v12615_v24 = vld [vmem:[#allocation137_spill] sm:$0xff] }
 0x857   :  { %6847 = vmatprep.subr.bf16.mxu0 %v12605_v14  ;;  %6902 = vmatprep.subr.bf16.mxu1 %v12606_v59  ;;  %v12616_v14 = vld [vmem:[#allocation138_spill] sm:$0xff]  ;;  %v12617_v59 = vld [vmem:[#allocation139_spill] sm:$0xff] }
 0x85a   :  { %6848 = vmatpush2.bf16.msra.mxu0 %v12607_v40  ;;  %6903 = vmatpush2.bf16.msra.mxu1 %v12608_v27  ;;  %v12618_v40 = vld [vmem:[#allocation140_spill] sm:$0xff]  ;;  %v12619_v27 = vld [vmem:[#allocation141_spill] sm:$0xff] }
 0x85b   :  { %6849 = vmatprep.subr.bf16.mxu0 %v12609_v34  ;;  %6904 = vmatprep.subr.bf16.mxu1 %v12610_v51  ;;  %v12620_v34 = vld [vmem:[#allocation142_spill] sm:$0xff]  ;;  %v12621_v51 = vld [vmem:[#allocation143_spill] sm:$0xff] }
 0x85e   :  { %6850 = vmatpush2.bf16.msra.mxu0 %v12611_v37  ;;  %6905 = vmatpush2.bf16.msra.mxu1 %v12612_v1  ;;  %v12622_v37 = vld [vmem:[#allocation144_spill] sm:$0xff]  ;;  %v12623_v1 = vld [vmem:[#allocation145_spill] sm:$0xff] }
 0x85f   :  { %6851 = vmatprep.subr.bf16.mxu0 %v12613_v44  ;;  %6906 = vmatprep.subr.bf16.mxu1 %v12614_v21  ;;  %v12624_v44 = vld [vmem:[#allocation146_spill] sm:$0xff]  ;;  %v12625_v21 = vld [vmem:[#allocation147_spill] sm:$0xff] }
 0x862   :  { %6852 = vmatpush2.bf16.msra.mxu0 %v12615_v24  ;;  %6907 = vmatpush2.bf16.msra.mxu1 %v12616_v14  ;;  %v12626_v24 = vld [vmem:[#allocation148_spill] sm:$0xff]  ;;  %v12627_v14 = vld [vmem:[#allocation149_spill] sm:$0xff] }
 0x863   :  { %6853 = vmatprep.subr.bf16.mxu0 %v12617_v59  ;;  %6908 = vmatprep.subr.bf16.mxu1 %v12618_v40  ;;  %v12628_v59 = vld [vmem:[#allocation150_spill] sm:$0xff]  ;;  %v12629_v40 = vld [vmem:[#allocation151_spill] sm:$0xff] }
 0x866   :  { %6854 = vmatpush2.bf16.msra.mxu0 %v12619_v27  ;;  %6909 = vmatpush2.bf16.msra.mxu1 %v12620_v34  ;;  %v12630_v27 = vld [vmem:[#allocation152_spill] sm:$0xff] }
 0x867   :  { %6855 = vmatprep.subr.bf16.mxu0 %v12621_v51  ;;  %6910 = vmatprep.subr.bf16.mxu1 %v12622_v37 }
 0x86a   :  { %6856 = vmatpush2.bf16.msra.mxu0 %v12623_v1  ;;  %6911 = vmatpush2.bf16.msra.mxu1 %v12624_v44 }
 0x86b   :  { %6857 = vmatprep.subr.bf16.mxu0 %v12625_v21  ;;  %6912 = vmatprep.subr.bf16.mxu1 %v12626_v24 }
 0x86e   :  { %6858 = vmatpush2.bf16.msra.mxu0 %v12627_v14  ;;  %6913 = vmatpush2.bf16.msra.mxu1 %v12628_v59  ;;  %v12634_v59 = vld [vmem:[#allocation28_spill] sm:$0xff] }
 0x86f   :  { %6937 = vmatprep.subr.bf16.mxu0 %v12629_v40  ;;  %6982 = vmatprep.subr.bf16.mxu1 %v12630_v27 }
 0x8b1   :  { %v6628_v34 = vpop.f32.mrf.mxu0  ;;  %v6683_v51 = vpop.f32.mrf.mxu1 }
 0x8b2   :  { %v6635_v21 = vadd.f32 %v6628_v34, %v12631_v28  ;;  %v6690_v24 = vadd.f32 %v6683_v51, %v12632_v55 }
 0x8b3   :  { %v6630_v16 = vpop.f32.mrf.mxu0  ;;  %v6685_v37 = vpop.f32.mrf.mxu1 }
 0x8b4   :  { %v6636_v14 = vadd.f32 %v6630_v16, %v12633_v30  ;;  %v8326_v41 = vmul.f32 -1.442695, %v6635_v21  ;;  %v6691_v23 = vadd.f32 %v6685_v37, %v12634_v59  ;;  %v8328_v40 = vmul.f32 -1.442695, %v6690_v24  ;;  %v12635_v59 = vld [vmem:[#allocation29_spill] sm:$0xff]  ;;  %v12636_v21 = vld [vmem:[#allocation31_spill] sm:$0xff] }
 0x8b5   :  { %v6632_v8 = vpop.f32.mrf.mxu0  ;;  %v6687_v1 = vpop.f32.mrf.mxu1 }
 0x8b6   :  { %v8327_v58 = vmul.f32 -1.442695, %v6636_v14  ;;  %8528 = vpow2.f32 %v8326_v41  ;;  %v8329_v27 = vmul.f32 -1.442695, %v6691_v23  ;;  %v12638_v14 = vld [vmem:[#allocation47_spill] sm:$0xff] }
 0x8b7   :  { %v6633_v56 = vpop.f32.mrf.mxu0  ;;  %v6688_v44 = vpop.f32.mrf.mxu1  ;;  %8530 = vpow2.f32 %v8328_v40 }
 0x8b8   :  { %8532 = vpow2.f32 %v8327_v58 }
 0x8b9   :  { %8534 = vpow2.f32 %v8329_v27  ;;  %v12637_v27 = vld [vmem:[#allocation33_spill] sm:$0xff] }
 0x8c3   :  { %v8529_v8 = vpop.eup %8528 }
 0x8c4   :  { %v8531_v1 = vpop.eup %8530  ;;  %v6643_v44 = vadd.f32 1.0, %v8529_v8 }
 0x8c5   :  { %v8533_v56 = vpop.eup %8532  ;;  %v6698_v28 = vadd.f32 1.0, %v8531_v1 }
 0x8c6   :  { %v8535_v43 = vpop.eup %8534  ;;  %v6644_v34 = vadd.f32 1.0, %v8533_v56  ;;  %8536 = vrcp.f32 %v6643_v44 }
 0x8c7   :  { %v6699_v55 = vadd.f32 1.0, %v8535_v43  ;;  %8538 = vrcp.f32 %v6698_v28 }
 0x8c8   :  { %8540 = vrcp.f32 %v6644_v34 }
 0x8d3   :  { %v8537_v28 = vpop.eup %8536 }
 0x8f1   :  { %v6738_v30 = vpop.f32.mrf.mxu0  ;;  %v6783_v16 = vpop.f32.mrf.mxu1 }
 0x8f2   :  { %v6745_v37 = vadd.f32 %v6738_v30, %v12635_v59  ;;  %v6790_v41 = vadd.f32 %v6783_v16, %v12636_v21  ;;  %v8539_v30 = vpop.eup %8538 }
 0x8f3   :  { %v6740_v23 = vpop.f32.mrf.mxu0  ;;  %v6785_v58 = vpop.f32.mrf.mxu1 }
 0x8f4   :  { %8542 = vtanh.f32 %v6745_v37  ;;  %v8330_v40 = vmul.f32 -1.442695, %v6790_v41  ;;  %v6746_v24 = vadd.f32 %v6740_v23, %v12637_v27  ;;  %v6791_v51 = vadd.f32 %v6785_v58, %v12638_v14  ;;  %v8541_v34 = vpop.eup %8540 }
 0x8f5   :  { %8544 = vrcp.f32 %v6699_v55  ;;  %v6742_v8 = vpop.f32.mrf.mxu0  ;;  %v6787_v1 = vpop.f32.mrf.mxu1  ;;  %v6804_v37 = vmul.f32 %v8539_v30, %v11006_v10 }
 0x8f6   :  { %8546 = vpow2.f32 %v8330_v40  ;;  %v8331_v43 = vmul.f32 -1.442695, %v6791_v51 }
 0x8f7   :  { %8548 = vtanh.f32 %v6746_v24  ;;  %v6743_v56 = vpop.f32.mrf.mxu0  ;;  %v6788_v44 = vpop.f32.mrf.mxu1 }
 0x8f8   :  { %8550 = vpow2.f32 %v8331_v43 }
 0x901   :  { %v8543_v16 = vpop.eup %8542 }
 0x902   :  { %v8545_v59 = vpop.eup %8544  ;;  %v6806_v21 = vmul.f32 %v8543_v16, %v8537_v28  ;;  %v12641_v16 = vld [vmem:[#allocation196_spill] sm:$0xff] }
 0x903   :  { %v8547_v41 = vpop.eup %8546  ;;  %v6805_v40 = vmul.f32 %v8545_v59, %v11010_v49  ;;  %v12639_v49 = vld [vmem:[#allocation194_spill] sm:$0xff]  ;;  %v12642_v59 = vld [vmem:[#allocation197_spill] sm:$0xff] }
 0x904   :  { %v8549_v23 = vpop.eup %8548  ;;  %v11156_v58 = vadd.f32 %v6806_v21, %v6804_v37  ;;  %v6798_v55 = vadd.f32 1.0, %v8547_v41  ;;  %v12643_v37 = vld [vmem:[#allocation198_spill] sm:$0xff]  ;;  %v12644_v21 = vld [vmem:[#allocation199_spill] sm:$0xff]  ;;  %v12645_v41 = vld [vmem:[#allocation200_spill] sm:$0xff] }
 0x905   :  { %v8551_v27 = vpop.eup %8550  ;;  %v6807_v24 = vmul.f32 %v8549_v23, %v8541_v34  ;;  %v12640_v34 = vld [vmem:[#allocation195_spill] sm:$0xff]  ;;  %v12646_v23 = vld [vmem:[#allocation201_spill] sm:$0xff] }
 0x906   :  { %8552 = vtanh.f32 %v11156_v58  ;;  %v6799_v14 = vadd.f32 1.0, %v8551_v27  ;;  %v12648_v27 = vld [vmem:[#allocation203_spill] sm:$0xff] }
 0x907   :  { %8554 = vrcp.f32 %v6798_v55  ;;  %v11160_v51 = vadd.f32 %v6807_v24, %v6805_v40  ;;  %v12647_v55 = vld [vmem:[#allocation202_spill] sm:$0xff]  ;;  %v12649_v40 = vld [vmem:[#allocation204_spill] sm:$0xff]  ;;  %v12650_v24 = vld [vmem:[#allocation205_spill] sm:$0xff] }
 0x908   :  { %8556 = vrcp.f32 %v6799_v14  ;;  %v12651_v14 = vld [vmem:[#allocation206_spill] sm:$0xff] }
 0x909   :  { %8558 = vtanh.f32 %v11160_v51 }
 0x913   :  { %v8553_v10 = vpop.eup %8552 }
 0x914   :  { %v8555_v8 = vpop.eup %8554 }
 0x915   :  { %v8557_v1 = vpop.eup %8556  ;;  %v6812_v56 = vmul.f32 %v8555_v8, %v8553_v10  ;;  %v12652_v10 = vld [vmem:[#allocation207_spill] sm:$0xff]  ;;  %v12653_v8 = vld [vmem:[#allocation208_spill] sm:$0xff] }
 0x916   :  { %v8559_v43 = vpop.eup %8558 }
 0x917   :  { %v6813_v44 = vmul.f32 %v8559_v43, %v8557_v1  ;;  %v11163_v30 = vpack.c.bf16 %v6812_v56, %v6812_v56  ;;  %v12654_v1 = vld [vmem:[#allocation209_spill] sm:$0xff]  ;;  %v12655_v43 = vld [vmem:[#allocation210_spill] sm:$0xff]  ;;  %v12656_v56 = vld [vmem:[#allocation211_spill] sm:$0xff] }
 0x919   :  { %v6826_v28 = vpack.c.bf16 %v6813_v44, %v6813_v44  ;;  %v12657_v44 = vld [vmem:[#allocation212_spill] sm:$0xff] }
 0x91b   :  { %6859 = vmatprep.mubr.bf16.mxu0 %v6826_v28  ;;  %6914 = vmatprep.mubr.bf16.mxu1 %v6826_v28 }
 0x91c   :  { %6860 = vmatmul.mubr.bf16.vlgmr.msra.gmra.mxu0 %v11163_v30  ;;  %6915 = vmatmul.mubr.bf16.vlgmr.msra.gmra.mxu1 %v11163_v30 }
 0x91d   :  { %6938 = vmatpush1.bf16.msra.mxu0 %v12261_v26  ;;  %6983 = vmatpush1.bf16.msra.mxu1 %v12262_v36 }
 0x91e   :  { %6969 = vmatprep.mubr.bf16.mxu0 %v6826_v28  ;;  %7014 = vmatprep.mubr.bf16.mxu1 %v6826_v28  ;;  %v12658_v28 = vld [vmem:[#allocation213_spill] sm:$0xff] }
 0x91f   :  { %6939 = vmatprep.subr.bf16.mxu0 %v12263_v5  ;;  %6984 = vmatprep.subr.bf16.mxu1 %v12264_v11 }
 0x921   :  { %6940 = vmatpush1.bf16.msra.mxu0 %v12265_v31  ;;  %6985 = vmatpush1.bf16.msra.mxu1 %v12266_v60 }
 0x922   :  { %6941 = vmatprep.subr.bf16.mxu0 %v12267_v18  ;;  %6986 = vmatprep.subr.bf16.mxu1 %v12354_v35 }
 0x925   :  { %6942 = vmatpush1.bf16.msra.mxu0 %v12355_v50  ;;  %6987 = vmatpush1.bf16.msra.mxu1 %v12356_v33 }
 0x926   :  { %6943 = vmatprep.subr.bf16.mxu0 %v12357_v62  ;;  %6988 = vmatprep.subr.bf16.mxu1 %v12358_v4 }
 0x929   :  { %6944 = vmatpush1.bf16.msra.mxu0 %v12359_v12  ;;  %6989 = vmatpush1.bf16.msra.mxu1 %v12360_v52 }
 0x92a   :  { %6945 = vmatprep.subr.bf16.mxu0 %v12361_v13  ;;  %6990 = vmatprep.subr.bf16.mxu1 %v12362_v32 }
 0x92d   :  { %6946 = vmatpush1.bf16.msra.mxu0 %v12449_v6  ;;  %6991 = vmatpush1.bf16.msra.mxu1 %v12450_v17 }
 0x92e   :  { %6947 = vmatprep.subr.bf16.mxu0 %v12451_v29  ;;  %6992 = vmatprep.subr.bf16.mxu1 %v12452_v20 }
 0x931   :  { %6948 = vmatpush1.bf16.msra.mxu0 %v12453_v22  ;;  %6993 = vmatpush1.bf16.msra.mxu1 %v12454_v3 }
 0x932   :  { %6949 = vmatprep.subr.bf16.mxu0 %v12455_v46  ;;  %6994 = vmatprep.subr.bf16.mxu1 %v12456_v53 }
 0x935   :  { %6950 = vmatpush1.bf16.msra.mxu0 %v12457_v38  ;;  %6995 = vmatpush1.bf16.msra.mxu1 %v12458_v47 }
 0x936   :  { %6951 = vmatprep.subr.bf16.mxu0 %v12373_v45  ;;  %6996 = vmatprep.subr.bf16.mxu1 %v12374_v42 }
 0x939   :  { %6952 = vmatpush1.bf16.msra.mxu0 %v12375_v0  ;;  %6997 = vmatpush1.bf16.msra.mxu1 %v12459_v7 }
 0x93a   :  { %6953 = vmatprep.subr.bf16.mxu0 %v12377_v15  ;;  %6998 = vmatprep.subr.bf16.mxu1 %v12378_v25 }
 0x93d   :  { %6954 = vmatpush2.bf16.msra.mxu0 %v12379_v63  ;;  %6999 = vmatpush2.bf16.msra.mxu1 %v12380_v54 }
 0x93e   :  { %6955 = vmatprep.subr.bf16.mxu0 %v12381_v2  ;;  %7000 = vmatprep.subr.bf16.mxu1 %v12382_v61 }
 0x941   :  { %6956 = vmatpush2.bf16.msra.mxu0 %v12383_v57  ;;  %7001 = vmatpush2.bf16.msra.mxu1 %v12298_v9 }
 0x942   :  { %6957 = vmatprep.subr.bf16.mxu0 %v12299_v48  ;;  %7002 = vmatprep.subr.bf16.mxu1 %v12300_v19 }
 0x945   :  { %6958 = vmatpush2.bf16.msra.mxu0 %v12384_v39  ;;  %7003 = vmatpush2.bf16.msra.mxu1 %v12639_v49 }
 0x946   :  { %6959 = vmatprep.subr.bf16.mxu0 %v12640_v34  ;;  %7004 = vmatprep.subr.bf16.mxu1 %v12641_v16 }
 0x949   :  { %6960 = vmatpush2.bf16.msra.mxu0 %v12642_v59  ;;  %7005 = vmatpush2.bf16.msra.mxu1 %v12643_v37  ;;  %v12728_v37 = vld [vmem:[#allocation52_spill] sm:$0xff] }
 0x94a   :  { %6961 = vmatprep.subr.bf16.mxu0 %v12644_v21  ;;  %7006 = vmatprep.subr.bf16.mxu1 %v12645_v41  ;;  %v12726_v41 = vld [vmem:[#allocation50_spill] sm:$0xff]  ;;  %v12727_v21 = vld [vmem:[#allocation51_spill] sm:$0xff] }
 0x94d   :  { %6962 = vmatpush2.bf16.msra.mxu0 %v12646_v23  ;;  %7007 = vmatpush2.bf16.msra.mxu1 %v12647_v55 }
 0x94e   :  { %6963 = vmatprep.subr.bf16.mxu0 %v12648_v27  ;;  %7008 = vmatprep.subr.bf16.mxu1 %v12649_v40  ;;  %v12659_v27 = vld [vmem:[#allocation214_spill] sm:$0xff]  ;;  %v12660_v40 = vld [vmem:[#allocation87_spill] sm:$0xff] }
 0x951   :  { %6964 = vmatpush2.bf16.msra.mxu0 %v12650_v24  ;;  %7009 = vmatpush2.bf16.msra.mxu1 %v12651_v14  ;;  %v12661_v24 = vld [vmem:[#allocation89_spill] sm:$0xff] }
 0x952   :  { %6965 = vmatprep.subr.bf16.mxu0 %v12652_v10  ;;  %7010 = vmatprep.subr.bf16.mxu1 %v12653_v8  ;;  %v12662_v8 = vld [vmem:[#allocation88_spill] sm:$0xff]  ;;  %v12671_v10 = vld [vmem:[#allocation98_spill] sm:$0xff] }
 0x955   :  { %6966 = vmatpush2.bf16.msra.mxu0 %v12654_v1  ;;  %7011 = vmatpush2.bf16.msra.mxu1 %v12655_v43  ;;  %v12663_v1 = vld [vmem:[#allocation90_spill] sm:$0xff]  ;;  %v12664_v43 = vld [vmem:[#allocation91_spill] sm:$0xff] }
 0x956   :  { %6967 = vmatprep.subr.bf16.mxu0 %v12656_v56  ;;  %7012 = vmatprep.subr.bf16.mxu1 %v12657_v44  ;;  %v12665_v56 = vld [vmem:[#allocation92_spill] sm:$0xff]  ;;  %v12666_v44 = vld [vmem:[#allocation93_spill] sm:$0xff] }
 0x959   :  { %6968 = vmatpush2.bf16.msra.mxu0 %v12658_v28  ;;  %7013 = vmatpush2.bf16.msra.mxu1 %v12659_v27  ;;  %v12667_v28 = vld [vmem:[#allocation94_spill] sm:$0xff]  ;;  %v12668_v27 = vld [vmem:[#allocation95_spill] sm:$0xff] }
 0x95a   :  { %7060 = vmatprep.subr.bf16.mxu0 %v12660_v40  ;;  %7115 = vmatprep.subr.bf16.mxu1 %v12661_v24  ;;  %v12669_v40 = vld [vmem:[#allocation96_spill] sm:$0xff]  ;;  %v12670_v24 = vld [vmem:[#allocation97_spill] sm:$0xff] }
 0x95c   :  { %6970 = vmatmul.mubr.bf16.vlgmr.msra.gmra.mxu0 %v11163_v30  ;;  %7015 = vmatmul.mubr.bf16.vlgmr.msra.gmra.mxu1 %v11163_v30  ;;  %v12672_v30 = vld [vmem:[#allocation99_spill] sm:$0xff] }
 0x95d   :  { %7061 = vmatpush1.bf16.msra.mxu0 %v12662_v8  ;;  %7116 = vmatpush1.bf16.msra.mxu1 %v12663_v1  ;;  %v12673_v8 = vld [vmem:[#allocation100_spill] sm:$0xff]  ;;  %v12674_v1 = vld [vmem:[#allocation101_spill] sm:$0xff] }
 0x95e   :  { %7062 = vmatprep.subr.bf16.mxu0 %v12664_v43  ;;  %7117 = vmatprep.subr.bf16.mxu1 %v12665_v56  ;;  %v12675_v43 = vld [vmem:[#allocation102_spill] sm:$0xff]  ;;  %v12676_v56 = vld [vmem:[#allocation103_spill] sm:$0xff] }
 0x961   :  { %7063 = vmatpush1.bf16.msra.mxu0 %v12666_v44  ;;  %7118 = vmatpush1.bf16.msra.mxu1 %v12667_v28  ;;  %v12677_v44 = vld [vmem:[#allocation104_spill] sm:$0xff]  ;;  %v12678_v28 = vld [vmem:[#allocation105_spill] sm:$0xff] }
 0x962   :  { %7064 = vmatprep.subr.bf16.mxu0 %v12668_v27  ;;  %7119 = vmatprep.subr.bf16.mxu1 %v12669_v40  ;;  %v12679_v27 = vld [vmem:[#allocation106_spill] sm:$0xff]  ;;  %v12680_v40 = vld [vmem:[#allocation107_spill] sm:$0xff] }
 0x965   :  { %7065 = vmatpush1.bf16.msra.mxu0 %v12670_v24  ;;  %7120 = vmatpush1.bf16.msra.mxu1 %v12671_v10  ;;  %v12681_v24 = vld [vmem:[#allocation108_spill] sm:$0xff]  ;;  %v12682_v10 = vld [vmem:[#allocation109_spill] sm:$0xff] }
 0x966   :  { %7066 = vmatprep.subr.bf16.mxu0 %v12672_v30  ;;  %7121 = vmatprep.subr.bf16.mxu1 %v12673_v8  ;;  %v12683_v30 = vld [vmem:[#allocation110_spill] sm:$0xff]  ;;  %v12684_v8 = vld [vmem:[#allocation111_spill] sm:$0xff] }
 0x969   :  { %7067 = vmatpush1.bf16.msra.mxu0 %v12674_v1  ;;  %7122 = vmatpush1.bf16.msra.mxu1 %v12675_v43  ;;  %v12685_v1 = vld [vmem:[#allocation112_spill] sm:$0xff]  ;;  %v12686_v43 = vld [vmem:[#allocation113_spill] sm:$0xff] }
 0x96a   :  { %7068 = vmatprep.subr.bf16.mxu0 %v12676_v56  ;;  %7123 = vmatprep.subr.bf16.mxu1 %v12677_v44  ;;  %v12687_v56 = vld [vmem:[#allocation114_spill] sm:$0xff]  ;;  %v12688_v44 = vld [vmem:[#allocation115_spill] sm:$0xff] }
 0x96d   :  { %7069 = vmatpush1.bf16.msra.mxu0 %v12678_v28  ;;  %7124 = vmatpush1.bf16.msra.mxu1 %v12679_v27  ;;  %v12689_v28 = vld [vmem:[#allocation116_spill] sm:$0xff]  ;;  %v12690_v27 = vld [vmem:[#allocation117_spill] sm:$0xff] }
 0x96e   :  { %7070 = vmatprep.subr.bf16.mxu0 %v12680_v40  ;;  %7125 = vmatprep.subr.bf16.mxu1 %v12681_v24  ;;  %v12691_v40 = vld [vmem:[#allocation118_spill] sm:$0xff]  ;;  %v12692_v24 = vld [vmem:[#allocation119_spill] sm:$0xff] }
 0x971   :  { %7071 = vmatpush1.bf16.msra.mxu0 %v12682_v10  ;;  %7126 = vmatpush1.bf16.msra.mxu1 %v12683_v30  ;;  %v12693_v10 = vld [vmem:[#allocation120_spill] sm:$0xff]  ;;  %v12694_v30 = vld [vmem:[#allocation121_spill] sm:$0xff] }
 0x972   :  { %7072 = vmatprep.subr.bf16.mxu0 %v12684_v8  ;;  %7127 = vmatprep.subr.bf16.mxu1 %v12685_v1  ;;  %v12695_v8 = vld [vmem:[#allocation122_spill] sm:$0xff]  ;;  %v12696_v1 = vld [vmem:[#allocation123_spill] sm:$0xff] }
 0x975   :  { %7073 = vmatpush1.bf16.msra.mxu0 %v12686_v43  ;;  %7128 = vmatpush1.bf16.msra.mxu1 %v12687_v56  ;;  %v12697_v43 = vld [vmem:[#allocation124_spill] sm:$0xff]  ;;  %v12698_v56 = vld [vmem:[#allocation125_spill] sm:$0xff] }
 0x976   :  { %7074 = vmatprep.subr.bf16.mxu0 %v12688_v44  ;;  %7129 = vmatprep.subr.bf16.mxu1 %v12689_v28  ;;  %v12699_v44 = vld [vmem:[#allocation126_spill] sm:$0xff]  ;;  %v12700_v28 = vld [vmem:[#allocation127_spill] sm:$0xff] }
 0x979   :  { %7075 = vmatpush1.bf16.msra.mxu0 %v12690_v27  ;;  %7130 = vmatpush1.bf16.msra.mxu1 %v12691_v40  ;;  %v12701_v27 = vld [vmem:[#allocation128_spill] sm:$0xff]  ;;  %v12702_v40 = vld [vmem:[#allocation129_spill] sm:$0xff] }
 0x97a   :  { %7076 = vmatprep.subr.bf16.mxu0 %v12692_v24  ;;  %7131 = vmatprep.subr.bf16.mxu1 %v12693_v10  ;;  %v12703_v24 = vld [vmem:[#allocation130_spill] sm:$0xff]  ;;  %v12704_v10 = vld [vmem:[#allocation131_spill] sm:$0xff] }
 0x97d   :  { %7077 = vmatpush2.bf16.msra.mxu0 %v12694_v30  ;;  %7132 = vmatpush2.bf16.msra.mxu1 %v12695_v8  ;;  %v12705_v30 = vld [vmem:[#allocation132_spill] sm:$0xff]  ;;  %v12706_v8 = vld [vmem:[#allocation133_spill] sm:$0xff] }
 0x97e   :  { %7078 = vmatprep.subr.bf16.mxu0 %v12696_v1  ;;  %7133 = vmatprep.subr.bf16.mxu1 %v12697_v43  ;;  %v12707_v1 = vld [vmem:[#allocation134_spill] sm:$0xff]  ;;  %v12708_v43 = vld [vmem:[#allocation135_spill] sm:$0xff] }
 0x981   :  { %7079 = vmatpush2.bf16.msra.mxu0 %v12698_v56  ;;  %7134 = vmatpush2.bf16.msra.mxu1 %v12699_v44  ;;  %v12709_v56 = vld [vmem:[#allocation136_spill] sm:$0xff]  ;;  %v12710_v44 = vld [vmem:[#allocation137_spill] sm:$0xff] }
 0x982   :  { %7080 = vmatprep.subr.bf16.mxu0 %v12700_v28  ;;  %7135 = vmatprep.subr.bf16.mxu1 %v12701_v27  ;;  %v12711_v28 = vld [vmem:[#allocation138_spill] sm:$0xff]  ;;  %v12712_v27 = vld [vmem:[#allocation139_spill] sm:$0xff] }
 0x985   :  { %7081 = vmatpush2.bf16.msra.mxu0 %v12702_v40  ;;  %7136 = vmatpush2.bf16.msra.mxu1 %v12703_v24  ;;  %v12713_v40 = vld [vmem:[#allocation140_spill] sm:$0xff]  ;;  %v12714_v24 = vld [vmem:[#allocation141_spill] sm:$0xff] }
 0x986   :  { %7082 = vmatprep.subr.bf16.mxu0 %v12704_v10  ;;  %7137 = vmatprep.subr.bf16.mxu1 %v12705_v30  ;;  %v12715_v10 = vld [vmem:[#allocation142_spill] sm:$0xff]  ;;  %v12716_v30 = vld [vmem:[#allocation143_spill] sm:$0xff] }
 0x989   :  { %7083 = vmatpush2.bf16.msra.mxu0 %v12706_v8  ;;  %7138 = vmatpush2.bf16.msra.mxu1 %v12707_v1  ;;  %v12717_v8 = vld [vmem:[#allocation144_spill] sm:$0xff]  ;;  %v12718_v1 = vld [vmem:[#allocation145_spill] sm:$0xff] }
 0x98a   :  { %7084 = vmatprep.subr.bf16.mxu0 %v12708_v43  ;;  %7139 = vmatprep.subr.bf16.mxu1 %v12709_v56  ;;  %v12719_v43 = vld [vmem:[#allocation146_spill] sm:$0xff]  ;;  %v12720_v56 = vld [vmem:[#allocation147_spill] sm:$0xff] }
 0x98d   :  { %7085 = vmatpush2.bf16.msra.mxu0 %v12710_v44  ;;  %7140 = vmatpush2.bf16.msra.mxu1 %v12711_v28  ;;  %v12721_v44 = vld [vmem:[#allocation148_spill] sm:$0xff]  ;;  %v12722_v28 = vld [vmem:[#allocation149_spill] sm:$0xff] }
 0x98e   :  { %7086 = vmatprep.subr.bf16.mxu0 %v12712_v27  ;;  %7141 = vmatprep.subr.bf16.mxu1 %v12713_v40  ;;  %v12723_v27 = vld [vmem:[#allocation150_spill] sm:$0xff]  ;;  %v12724_v40 = vld [vmem:[#allocation151_spill] sm:$0xff] }
 0x991   :  { %7087 = vmatpush2.bf16.msra.mxu0 %v12714_v24  ;;  %7142 = vmatpush2.bf16.msra.mxu1 %v12715_v10  ;;  %v12725_v24 = vld [vmem:[#allocation152_spill] sm:$0xff] }
 0x992   :  { %7088 = vmatprep.subr.bf16.mxu0 %v12716_v30  ;;  %7143 = vmatprep.subr.bf16.mxu1 %v12717_v8 }
 0x995   :  { %7089 = vmatpush2.bf16.msra.mxu0 %v12718_v1  ;;  %7144 = vmatpush2.bf16.msra.mxu1 %v12719_v43 }
 0x996   :  { %7090 = vmatprep.subr.bf16.mxu0 %v12720_v56  ;;  %7145 = vmatprep.subr.bf16.mxu1 %v12721_v44 }
 0x999   :  { %7091 = vmatpush2.bf16.msra.mxu0 %v12722_v28  ;;  %7146 = vmatpush2.bf16.msra.mxu1 %v12723_v27  ;;  %v12729_v27 = vld [vmem:[#allocation53_spill] sm:$0xff] }
 0x99a   :  { %7170 = vmatprep.subr.bf16.mxu0 %v12724_v40  ;;  %7215 = vmatprep.subr.bf16.mxu1 %v12725_v24 }
 0x9dc   :  { %v6861_v10 = vpop.f32.mrf.mxu0  ;;  %v6916_v30 = vpop.f32.mrf.mxu1 }
 0x9dd   :  { %v6868_v56 = vadd.f32 %v6861_v10, %v12726_v41  ;;  %v6923_v44 = vadd.f32 %v6916_v30, %v12727_v21 }
 0x9de   :  { %v6863_v14 = vpop.f32.mrf.mxu0  ;;  %v6918_v8 = vpop.f32.mrf.mxu1 }
 0x9df   :  { %v6869_v28 = vadd.f32 %v6863_v14, %v12728_v37  ;;  %v8332_v59 = vmul.f32 -1.442695, %v6868_v56  ;;  %v6924_v16 = vadd.f32 %v6918_v8, %v12729_v27  ;;  %v8334_v40 = vmul.f32 -1.442695, %v6923_v44  ;;  %v12730_v27 = vld [vmem:[#allocation54_spill] sm:$0xff] }
 0x9e0   :  { %v6865_v55 = vpop.f32.mrf.mxu0  ;;  %v6920_v1 = vpop.f32.mrf.mxu1  ;;  %v12731_v56 = vld [vmem:[#allocation26_spill] sm:$0xff] }
 0x9e1   :  { %v8333_v34 = vmul.f32 -1.442695, %v6869_v28  ;;  %8560 = vpow2.f32 %v8332_v59  ;;  %v8335_v24 = vmul.f32 -1.442695, %v6924_v16  ;;  %v12733_v28 = vld [vmem:[#allocation64_spill] sm:$0xff] }
 0x9e2   :  { %v6866_v23 = vpop.f32.mrf.mxu0  ;;  %v6921_v43 = vpop.f32.mrf.mxu1  ;;  %8562 = vpow2.f32 %v8334_v40 }
 0x9e3   :  { %8564 = vpow2.f32 %v8333_v34 }
 0x9e4   :  { %8566 = vpow2.f32 %v8335_v24  ;;  %v12732_v24 = vld [vmem:[#allocation63_spill] sm:$0xff] }
 0x9ee   :  { %v8561_v55 = vpop.eup %8560 }
 0x9ef   :  { %v8563_v1 = vpop.eup %8562  ;;  %v6876_v43 = vadd.f32 1.0, %v8561_v55 }
 0x9f0   :  { %v8565_v23 = vpop.eup %8564  ;;  %v6931_v41 = vadd.f32 1.0, %v8563_v1 }
 0x9f1   :  { %v8567_v49 = vpop.eup %8566  ;;  %v6877_v10 = vadd.f32 1.0, %v8565_v23  ;;  %8568 = vrcp.f32 %v6876_v43 }
 0x9f2   :  { %v6932_v21 = vadd.f32 1.0, %v8567_v49  ;;  %8570 = vrcp.f32 %v6931_v41 }
 0x9f3   :  { %8572 = vrcp.f32 %v6877_v10 }
 0x9fe   :  { %v8569_v41 = vpop.eup %8568 }
 0xa1c   :  { %v6971_v37 = vpop.f32.mrf.mxu0  ;;  %v7016_v14 = vpop.f32.mrf.mxu1 }
 0xa1d   :  { %v6978_v8 = vadd.f32 %v6971_v37, %v12730_v27  ;;  %v7023_v59 = vadd.f32 %v7016_v14, %v12731_v56  ;;  %v8571_v37 = vpop.eup %8570 }
 0xa1e   :  { %v6973_v16 = vpop.f32.mrf.mxu0  ;;  %v7018_v34 = vpop.f32.mrf.mxu1 }
 0xa1f   :  { %8574 = vtanh.f32 %v6978_v8  ;;  %v8336_v40 = vmul.f32 -1.442695, %v7023_v59  ;;  %v6979_v44 = vadd.f32 %v6973_v16, %v12732_v24  ;;  %v7024_v30 = vadd.f32 %v7018_v34, %v12733_v28  ;;  %v8573_v10 = vpop.eup %8572 }
 0xa20   :  { %8576 = vrcp.f32 %v6932_v21  ;;  %v6975_v55 = vpop.f32.mrf.mxu0  ;;  %v7020_v1 = vpop.f32.mrf.mxu1  ;;  %v7037_v8 = vmul.f32 %v8571_v37, %v11156_v58 }
 0xa21   :  { %8578 = vpow2.f32 %v8336_v40  ;;  %v8337_v49 = vmul.f32 -1.442695, %v7024_v30 }
 0xa22   :  { %8580 = vtanh.f32 %v6979_v44  ;;  %v6976_v23 = vpop.f32.mrf.mxu0  ;;  %v7021_v43 = vpop.f32.mrf.mxu1 }
 0xa23   :  { %8582 = vpow2.f32 %v8337_v49 }
 0xa2c   :  { %v8575_v14 = vpop.eup %8574 }
 0xa2d   :  { %v8577_v27 = vpop.eup %8576  ;;  %v7039_v56 = vmul.f32 %v8575_v14, %v8569_v41  ;;  %v12736_v14 = vld [vmem:[#allocation196_spill] sm:$0xff] }
 0xa2e   :  { %v8579_v59 = vpop.eup %8578  ;;  %v7038_v40 = vmul.f32 %v8577_v27, %v11160_v51  ;;  %v12734_v51 = vld [vmem:[#allocation194_spill] sm:$0xff]  ;;  %v12737_v27 = vld [vmem:[#allocation197_spill] sm:$0xff] }
 0xa2f   :  { %v8581_v16 = vpop.eup %8580  ;;  %v11306_v34 = vadd.f32 %v7039_v56, %v7037_v8  ;;  %v7031_v21 = vadd.f32 1.0, %v8579_v59  ;;  %v12738_v8 = vld [vmem:[#allocation198_spill] sm:$0xff]  ;;  %v12739_v56 = vld [vmem:[#allocation199_spill] sm:$0xff]  ;;  %v12740_v59 = vld [vmem:[#allocation200_spill] sm:$0xff] }
 0xa30   :  { %v8583_v24 = vpop.eup %8582  ;;  %v7040_v44 = vmul.f32 %v8581_v16, %v8573_v10  ;;  %v12735_v10 = vld [vmem:[#allocation195_spill] sm:$0xff]  ;;  %v12741_v16 = vld [vmem:[#allocation201_spill] sm:$0xff] }
 0xa31   :  { %8584 = vtanh.f32 %v11306_v34  ;;  %v7032_v28 = vadd.f32 1.0, %v8583_v24  ;;  %v12743_v24 = vld [vmem:[#allocation203_spill] sm:$0xff] }
 0xa32   :  { %8586 = vrcp.f32 %v7031_v21  ;;  %v11310_v30 = vadd.f32 %v7040_v44, %v7038_v40  ;;  %v12742_v21 = vld [vmem:[#allocation202_spill] sm:$0xff]  ;;  %v12744_v40 = vld [vmem:[#allocation204_spill] sm:$0xff]  ;;  %v12745_v44 = vld [vmem:[#allocation205_spill] sm:$0xff] }
 0xa33   :  { %8588 = vrcp.f32 %v7032_v28  ;;  %v12746_v28 = vld [vmem:[#allocation206_spill] sm:$0xff] }
 0xa34   :  { %8590 = vtanh.f32 %v11310_v30 }
 0xa3e   :  { %v8585_v58 = vpop.eup %8584 }
 0xa3f   :  { %v8587_v55 = vpop.eup %8586 }
 0xa40   :  { %v8589_v1 = vpop.eup %8588  ;;  %v7045_v23 = vmul.f32 %v8587_v55, %v8585_v58  ;;  %v12747_v58 = vld [vmem:[#allocation207_spill] sm:$0xff]  ;;  %v12748_v55 = vld [vmem:[#allocation208_spill] sm:$0xff] }
 0xa41   :  { %v8591_v49 = vpop.eup %8590 }
 0xa42   :  { %v7046_v43 = vmul.f32 %v8591_v49, %v8589_v1  ;;  %v11313_v37 = vpack.c.bf16 %v7045_v23, %v7045_v23  ;;  %v12749_v1 = vld [vmem:[#allocation209_spill] sm:$0xff]  ;;  %v12750_v49 = vld [vmem:[#allocation210_spill] sm:$0xff]  ;;  %v12751_v23 = vld [vmem:[#allocation211_spill] sm:$0xff] }
 0xa44   :  { %v7059_v41 = vpack.c.bf16 %v7046_v43, %v7046_v43  ;;  %v12752_v43 = vld [vmem:[#allocation212_spill] sm:$0xff] }
 0xa46   :  { %7092 = vmatprep.mubr.bf16.mxu0 %v7059_v41  ;;  %7147 = vmatprep.mubr.bf16.mxu1 %v7059_v41 }
 0xa47   :  { %7093 = vmatmul.mubr.bf16.vlgmr.msra.gmra.mxu0 %v11313_v37  ;;  %7148 = vmatmul.mubr.bf16.vlgmr.msra.gmra.mxu1 %v11313_v37 }
 0xa48   :  { %7171 = vmatpush1.bf16.msra.mxu0 %v12261_v26  ;;  %7216 = vmatpush1.bf16.msra.mxu1 %v12262_v36 }
 0xa49   :  { %7202 = vmatprep.mubr.bf16.mxu0 %v7059_v41  ;;  %7247 = vmatprep.mubr.bf16.mxu1 %v7059_v41  ;;  %v12753_v41 = vld [vmem:[#allocation213_spill] sm:$0xff] }
 0xa4a   :  { %7172 = vmatprep.subr.bf16.mxu0 %v12263_v5  ;;  %7217 = vmatprep.subr.bf16.mxu1 %v12264_v11 }
 0xa4c   :  { %7173 = vmatpush1.bf16.msra.mxu0 %v12265_v31  ;;  %7218 = vmatpush1.bf16.msra.mxu1 %v12266_v60 }
 0xa4d   :  { %7174 = vmatprep.subr.bf16.mxu0 %v12267_v18  ;;  %7219 = vmatprep.subr.bf16.mxu1 %v12354_v35 }
 0xa50   :  { %7175 = vmatpush1.bf16.msra.mxu0 %v12355_v50  ;;  %7220 = vmatpush1.bf16.msra.mxu1 %v12356_v33 }
 0xa51   :  { %7176 = vmatprep.subr.bf16.mxu0 %v12357_v62  ;;  %7221 = vmatprep.subr.bf16.mxu1 %v12358_v4 }
 0xa54   :  { %7177 = vmatpush1.bf16.msra.mxu0 %v12359_v12  ;;  %7222 = vmatpush1.bf16.msra.mxu1 %v12360_v52 }
 0xa55   :  { %7178 = vmatprep.subr.bf16.mxu0 %v12361_v13  ;;  %7223 = vmatprep.subr.bf16.mxu1 %v12362_v32 }
 0xa58   :  { %7179 = vmatpush1.bf16.msra.mxu0 %v12449_v6  ;;  %7224 = vmatpush1.bf16.msra.mxu1 %v12450_v17 }
 0xa59   :  { %7180 = vmatprep.subr.bf16.mxu0 %v12451_v29  ;;  %7225 = vmatprep.subr.bf16.mxu1 %v12452_v20 }
 0xa5c   :  { %7181 = vmatpush1.bf16.msra.mxu0 %v12453_v22  ;;  %7226 = vmatpush1.bf16.msra.mxu1 %v12454_v3 }
 0xa5d   :  { %7182 = vmatprep.subr.bf16.mxu0 %v12455_v46  ;;  %7227 = vmatprep.subr.bf16.mxu1 %v12456_v53 }
 0xa60   :  { %7183 = vmatpush1.bf16.msra.mxu0 %v12457_v38  ;;  %7228 = vmatpush1.bf16.msra.mxu1 %v12458_v47 }
 0xa61   :  { %7184 = vmatprep.subr.bf16.mxu0 %v12373_v45  ;;  %7229 = vmatprep.subr.bf16.mxu1 %v12374_v42 }
 0xa64   :  { %7185 = vmatpush1.bf16.msra.mxu0 %v12375_v0  ;;  %7230 = vmatpush1.bf16.msra.mxu1 %v12459_v7 }
 0xa65   :  { %7186 = vmatprep.subr.bf16.mxu0 %v12377_v15  ;;  %7231 = vmatprep.subr.bf16.mxu1 %v12378_v25 }
 0xa68   :  { %7187 = vmatpush2.bf16.msra.mxu0 %v12379_v63  ;;  %7232 = vmatpush2.bf16.msra.mxu1 %v12380_v54 }
 0xa69   :  { %7188 = vmatprep.subr.bf16.mxu0 %v12381_v2  ;;  %7233 = vmatprep.subr.bf16.mxu1 %v12382_v61 }
 0xa6c   :  { %7189 = vmatpush2.bf16.msra.mxu0 %v12383_v57  ;;  %7234 = vmatpush2.bf16.msra.mxu1 %v12298_v9 }
 0xa6d   :  { %7190 = vmatprep.subr.bf16.mxu0 %v12299_v48  ;;  %7235 = vmatprep.subr.bf16.mxu1 %v12300_v19 }
 0xa70   :  { %7191 = vmatpush2.bf16.msra.mxu0 %v12384_v39  ;;  %7236 = vmatpush2.bf16.msra.mxu1 %v12734_v51 }
 0xa71   :  { %7192 = vmatprep.subr.bf16.mxu0 %v12735_v10  ;;  %7237 = vmatprep.subr.bf16.mxu1 %v12736_v14 }
 0xa74   :  { %7193 = vmatpush2.bf16.msra.mxu0 %v12737_v27  ;;  %7238 = vmatpush2.bf16.msra.mxu1 %v12738_v8  ;;  %v12823_v8 = vld [vmem:[#allocation67_spill] sm:$0xff] }
 0xa75   :  { %7194 = vmatprep.subr.bf16.mxu0 %v12739_v56  ;;  %7239 = vmatprep.subr.bf16.mxu1 %v12740_v59  ;;  %v12821_v59 = vld [vmem:[#allocation65_spill] sm:$0xff]  ;;  %v12822_v56 = vld [vmem:[#allocation66_spill] sm:$0xff] }
 0xa78   :  { %7195 = vmatpush2.bf16.msra.mxu0 %v12741_v16  ;;  %7240 = vmatpush2.bf16.msra.mxu1 %v12742_v21 }
 0xa79   :  { %7196 = vmatprep.subr.bf16.mxu0 %v12743_v24  ;;  %7241 = vmatprep.subr.bf16.mxu1 %v12744_v40  ;;  %v12754_v24 = vld [vmem:[#allocation214_spill] sm:$0xff]  ;;  %v12755_v40 = vld [vmem:[#allocation87_spill] sm:$0xff] }
 0xa7c   :  { %7197 = vmatpush2.bf16.msra.mxu0 %v12745_v44  ;;  %7242 = vmatpush2.bf16.msra.mxu1 %v12746_v28  ;;  %v12756_v44 = vld [vmem:[#allocation89_spill] sm:$0xff] }
 0xa7d   :  { %7198 = vmatprep.subr.bf16.mxu0 %v12747_v58  ;;  %7243 = vmatprep.subr.bf16.mxu1 %v12748_v55  ;;  %v12757_v55 = vld [vmem:[#allocation88_spill] sm:$0xff]  ;;  %v12766_v58 = vld [vmem:[#allocation98_spill] sm:$0xff] }
 0xa80   :  { %7199 = vmatpush2.bf16.msra.mxu0 %v12749_v1  ;;  %7244 = vmatpush2.bf16.msra.mxu1 %v12750_v49  ;;  %v12758_v1 = vld [vmem:[#allocation90_spill] sm:$0xff]  ;;  %v12759_v49 = vld [vmem:[#allocation91_spill] sm:$0xff] }
 0xa81   :  { %7200 = vmatprep.subr.bf16.mxu0 %v12751_v23  ;;  %7245 = vmatprep.subr.bf16.mxu1 %v12752_v43  ;;  %v12760_v23 = vld [vmem:[#allocation92_spill] sm:$0xff]  ;;  %v12761_v43 = vld [vmem:[#allocation93_spill] sm:$0xff] }
 0xa84   :  { %7201 = vmatpush2.bf16.msra.mxu0 %v12753_v41  ;;  %7246 = vmatpush2.bf16.msra.mxu1 %v12754_v24  ;;  %v12762_v41 = vld [vmem:[#allocation94_spill] sm:$0xff]  ;;  %v12763_v24 = vld [vmem:[#allocation95_spill] sm:$0xff] }
 0xa85   :  { %7293 = vmatprep.subr.bf16.mxu0 %v12755_v40  ;;  %7348 = vmatprep.subr.bf16.mxu1 %v12756_v44  ;;  %v12764_v40 = vld [vmem:[#allocation96_spill] sm:$0xff]  ;;  %v12765_v44 = vld [vmem:[#allocation97_spill] sm:$0xff] }
 0xa87   :  { %7203 = vmatmul.mubr.bf16.vlgmr.msra.gmra.mxu0 %v11313_v37  ;;  %7248 = vmatmul.mubr.bf16.vlgmr.msra.gmra.mxu1 %v11313_v37  ;;  %v12767_v37 = vld [vmem:[#allocation99_spill] sm:$0xff] }
 0xa88   :  { %7294 = vmatpush1.bf16.msra.mxu0 %v12757_v55  ;;  %7349 = vmatpush1.bf16.msra.mxu1 %v12758_v1  ;;  %v12768_v55 = vld [vmem:[#allocation100_spill] sm:$0xff]  ;;  %v12769_v1 = vld [vmem:[#allocation101_spill] sm:$0xff] }
 0xa89   :  { %7295 = vmatprep.subr.bf16.mxu0 %v12759_v49  ;;  %7350 = vmatprep.subr.bf16.mxu1 %v12760_v23  ;;  %v12770_v49 = vld [vmem:[#allocation102_spill] sm:$0xff]  ;;  %v12771_v23 = vld [vmem:[#allocation103_spill] sm:$0xff] }
 0xa8c   :  { %7296 = vmatpush1.bf16.msra.mxu0 %v12761_v43  ;;  %7351 = vmatpush1.bf16.msra.mxu1 %v12762_v41  ;;  %v12772_v43 = vld [vmem:[#allocation104_spill] sm:$0xff]  ;;  %v12773_v41 = vld [vmem:[#allocation105_spill] sm:$0xff] }
 0xa8d   :  { %7297 = vmatprep.subr.bf16.mxu0 %v12763_v24  ;;  %7352 = vmatprep.subr.bf16.mxu1 %v12764_v40  ;;  %v12774_v24 = vld [vmem:[#allocation106_spill] sm:$0xff]  ;;  %v12775_v40 = vld [vmem:[#allocation107_spill] sm:$0xff] }
 0xa90   :  { %7298 = vmatpush1.bf16.msra.mxu0 %v12765_v44  ;;  %7353 = vmatpush1.bf16.msra.mxu1 %v12766_v58  ;;  %v12776_v44 = vld [vmem:[#allocation108_spill] sm:$0xff]  ;;  %v12777_v58 = vld [vmem:[#allocation109_spill] sm:$0xff] }
 0xa91   :  { %7299 = vmatprep.subr.bf16.mxu0 %v12767_v37  ;;  %7354 = vmatprep.subr.bf16.mxu1 %v12768_v55  ;;  %v12778_v37 = vld [vmem:[#allocation110_spill] sm:$0xff]  ;;  %v12779_v55 = vld [vmem:[#allocation111_spill] sm:$0xff] }
 0xa94   :  { %7300 = vmatpush1.bf16.msra.mxu0 %v12769_v1  ;;  %7355 = vmatpush1.bf16.msra.mxu1 %v12770_v49  ;;  %v12780_v1 = vld [vmem:[#allocation112_spill] sm:$0xff]  ;;  %v12781_v49 = vld [vmem:[#allocation113_spill] sm:$0xff] }
 0xa95   :  { %7301 = vmatprep.subr.bf16.mxu0 %v12771_v23  ;;  %7356 = vmatprep.subr.bf16.mxu1 %v12772_v43  ;;  %v12782_v23 = vld [vmem:[#allocation114_spill] sm:$0xff]  ;;  %v12783_v43 = vld [vmem:[#allocation115_spill] sm:$0xff] }
 0xa98   :  { %7302 = vmatpush1.bf16.msra.mxu0 %v12773_v41  ;;  %7357 = vmatpush1.bf16.msra.mxu1 %v12774_v24  ;;  %v12784_v41 = vld [vmem:[#allocation116_spill] sm:$0xff]  ;;  %v12785_v24 = vld [vmem:[#allocation117_spill] sm:$0xff] }
 0xa99   :  { %7303 = vmatprep.subr.bf16.mxu0 %v12775_v40  ;;  %7358 = vmatprep.subr.bf16.mxu1 %v12776_v44  ;;  %v12786_v40 = vld [vmem:[#allocation118_spill] sm:$0xff]  ;;  %v12787_v44 = vld [vmem:[#allocation119_spill] sm:$0xff] }
 0xa9c   :  { %7304 = vmatpush1.bf16.msra.mxu0 %v12777_v58  ;;  %7359 = vmatpush1.bf16.msra.mxu1 %v12778_v37  ;;  %v12788_v58 = vld [vmem:[#allocation120_spill] sm:$0xff]  ;;  %v12789_v37 = vld [vmem:[#allocation121_spill] sm:$0xff] }
 0xa9d   :  { %7305 = vmatprep.subr.bf16.mxu0 %v12779_v55  ;;  %7360 = vmatprep.subr.bf16.mxu1 %v12780_v1  ;;  %v12790_v55 = vld [vmem:[#allocation122_spill] sm:$0xff]  ;;  %v12791_v1 = vld [vmem:[#allocation123_spill] sm:$0xff] }
 0xaa0   :  { %7306 = vmatpush1.bf16.msra.mxu0 %v12781_v49  ;;  %7361 = vmatpush1.bf16.msra.mxu1 %v12782_v23  ;;  %v12792_v49 = vld [vmem:[#allocation124_spill] sm:$0xff]  ;;  %v12793_v23 = vld [vmem:[#allocation125_spill] sm:$0xff] }
 0xaa1   :  { %7307 = vmatprep.subr.bf16.mxu0 %v12783_v43  ;;  %7362 = vmatprep.subr.bf16.mxu1 %v12784_v41  ;;  %v12794_v43 = vld [vmem:[#allocation126_spill] sm:$0xff]  ;;  %v12795_v41 = vld [vmem:[#allocation127_spill] sm:$0xff] }
 0xaa4   :  { %7308 = vmatpush1.bf16.msra.mxu0 %v12785_v24  ;;  %7363 = vmatpush1.bf16.msra.mxu1 %v12786_v40  ;;  %v12796_v24 = vld [vmem:[#allocation128_spill] sm:$0xff]  ;;  %v12797_v40 = vld [vmem:[#allocation129_spill] sm:$0xff] }
 0xaa5   :  { %7309 = vmatprep.subr.bf16.mxu0 %v12787_v44  ;;  %7364 = vmatprep.subr.bf16.mxu1 %v12788_v58  ;;  %v12798_v44 = vld [vmem:[#allocation130_spill] sm:$0xff]  ;;  %v12799_v58 = vld [vmem:[#allocation131_spill] sm:$0xff] }
 0xaa8   :  { %7310 = vmatpush2.bf16.msra.mxu0 %v12789_v37  ;;  %7365 = vmatpush2.bf16.msra.mxu1 %v12790_v55  ;;  %v12800_v37 = vld [vmem:[#allocation132_spill] sm:$0xff]  ;;  %v12801_v55 = vld [vmem:[#allocation133_spill] sm:$0xff] }
 0xaa9   :  { %7311 = vmatprep.subr.bf16.mxu0 %v12791_v1  ;;  %7366 = vmatprep.subr.bf16.mxu1 %v12792_v49  ;;  %v12802_v1 = vld [vmem:[#allocation134_spill] sm:$0xff]  ;;  %v12803_v49 = vld [vmem:[#allocation135_spill] sm:$0xff] }
 0xaac   :  { %7312 = vmatpush2.bf16.msra.mxu0 %v12793_v23  ;;  %7367 = vmatpush2.bf16.msra.mxu1 %v12794_v43  ;;  %v12804_v23 = vld [vmem:[#allocation136_spill] sm:$0xff]  ;;  %v12805_v43 = vld [vmem:[#allocation137_spill] sm:$0xff] }
 0xaad   :  { %7313 = vmatprep.subr.bf16.mxu0 %v12795_v41  ;;  %7368 = vmatprep.subr.bf16.mxu1 %v12796_v24  ;;  %v12806_v41 = vld [vmem:[#allocation138_spill] sm:$0xff]  ;;  %v12807_v24 = vld [vmem:[#allocation139_spill] sm:$0xff] }
 0xab0   :  { %7314 = vmatpush2.bf16.msra.mxu0 %v12797_v40  ;;  %7369 = vmatpush2.bf16.msra.mxu1 %v12798_v44  ;;  %v12808_v40 = vld [vmem:[#allocation140_spill] sm:$0xff]  ;;  %v12809_v44 = vld [vmem:[#allocation141_spill] sm:$0xff] }
 0xab1   :  { %7315 = vmatprep.subr.bf16.mxu0 %v12799_v58  ;;  %7370 = vmatprep.subr.bf16.mxu1 %v12800_v37  ;;  %v12810_v58 = vld [vmem:[#allocation142_spill] sm:$0xff]  ;;  %v12811_v37 = vld [vmem:[#allocation143_spill] sm:$0xff] }
 0xab4   :  { %7316 = vmatpush2.bf16.msra.mxu0 %v12801_v55  ;;  %7371 = vmatpush2.bf16.msra.mxu1 %v12802_v1  ;;  %v12812_v55 = vld [vmem:[#allocation144_spill] sm:$0xff]  ;;  %v12813_v1 = vld [vmem:[#allocation145_spill] sm:$0xff] }
 0xab5   :  { %7317 = vmatprep.subr.bf16.mxu0 %v12803_v49  ;;  %7372 = vmatprep.subr.bf16.mxu1 %v12804_v23  ;;  %v12814_v49 = vld [vmem:[#allocation146_spill] sm:$0xff]  ;;  %v12815_v23 = vld [vmem:[#allocation147_spill] sm:$0xff] }
 0xab8   :  { %7318 = vmatpush2.bf16.msra.mxu0 %v12805_v43  ;;  %7373 = vmatpush2.bf16.msra.mxu1 %v12806_v41  ;;  %v12816_v43 = vld [vmem:[#allocation148_spill] sm:$0xff]  ;;  %v12817_v41 = vld [vmem:[#allocation149_spill] sm:$0xff] }
 0xab9   :  { %7319 = vmatprep.subr.bf16.mxu0 %v12807_v24  ;;  %7374 = vmatprep.subr.bf16.mxu1 %v12808_v40  ;;  %v12818_v24 = vld [vmem:[#allocation150_spill] sm:$0xff]  ;;  %v12819_v40 = vld [vmem:[#allocation151_spill] sm:$0xff] }
 0xabc   :  { %7320 = vmatpush2.bf16.msra.mxu0 %v12809_v44  ;;  %7375 = vmatpush2.bf16.msra.mxu1 %v12810_v58  ;;  %v12820_v44 = vld [vmem:[#allocation152_spill] sm:$0xff] }
 0xabd   :  { %7321 = vmatprep.subr.bf16.mxu0 %v12811_v37  ;;  %7376 = vmatprep.subr.bf16.mxu1 %v12812_v55 }
 0xac0   :  { %7322 = vmatpush2.bf16.msra.mxu0 %v12813_v1  ;;  %7377 = vmatpush2.bf16.msra.mxu1 %v12814_v49 }
 0xac1   :  { %7323 = vmatprep.subr.bf16.mxu0 %v12815_v23  ;;  %7378 = vmatprep.subr.bf16.mxu1 %v12816_v43 }
 0xac4   :  { %7324 = vmatpush2.bf16.msra.mxu0 %v12817_v41  ;;  %7379 = vmatpush2.bf16.msra.mxu1 %v12818_v24  ;;  %v12824_v24 = vld [vmem:[#allocation74_spill] sm:$0xff] }
 0xac5   :  { %7403 = vmatprep.subr.bf16.mxu0 %v12819_v40  ;;  %7448 = vmatprep.subr.bf16.mxu1 %v12820_v44 }
 0xb07   :  { %v7094_v58 = vpop.f32.mrf.mxu0  ;;  %v7149_v37 = vpop.f32.mrf.mxu1 }
 0xb08   :  { %v7101_v23 = vadd.f32 %v7094_v58, %v12821_v59  ;;  %v7156_v43 = vadd.f32 %v7149_v37, %v12822_v56  ;;  %v12825_v37 = vld [vmem:[#allocation75_spill] sm:$0xff] }
 0xb09   :  { %v7096_v28 = vpop.f32.mrf.mxu0  ;;  %v7151_v55 = vpop.f32.mrf.mxu1 }
 0xb0a   :  { %v7102_v41 = vadd.f32 %v7096_v28, %v12823_v8  ;;  %v8338_v27 = vmul.f32 -1.442695, %v7101_v23  ;;  %v7157_v14 = vadd.f32 %v7151_v55, %v12824_v24  ;;  %v8340_v40 = vmul.f32 -1.442695, %v7156_v43  ;;  %v12826_v23 = vld [vmem:[#allocation76_spill] sm:$0xff] }
 0xb0b   :  { %v7098_v21 = vpop.f32.mrf.mxu0  ;;  %v7153_v1 = vpop.f32.mrf.mxu1 }
 0xb0c   :  { %v8339_v10 = vmul.f32 -1.442695, %v7102_v41  ;;  %8592 = vpow2.f32 %v8338_v27  ;;  %v8341_v44 = vmul.f32 -1.442695, %v7157_v14  ;;  %v12827_v41 = vld [vmem:[#allocation77_spill] sm:$0xff] }
 0xb0d   :  { %v7099_v16 = vpop.f32.mrf.mxu0  ;;  %v7154_v49 = vpop.f32.mrf.mxu1  ;;  %8594 = vpow2.f32 %v8340_v40  ;;  %v12828_v40 = vld [vmem:[#allocation78_spill] sm:$0xff] }
 0xb0e   :  { %8596 = vpow2.f32 %v8339_v10 }
 0xb0f   :  { %8598 = vpow2.f32 %v8341_v44 }
 0xb19   :  { %v8593_v21 = vpop.eup %8592 }
 0xb1a   :  { %v8595_v1 = vpop.eup %8594  ;;  %v7109_v49 = vadd.f32 1.0, %v8593_v21 }
 0xb1b   :  { %v8597_v16 = vpop.eup %8596  ;;  %v7164_v59 = vadd.f32 1.0, %v8595_v1 }
 0xb1c   :  { %v8599_v51 = vpop.eup %8598  ;;  %v7110_v58 = vadd.f32 1.0, %v8597_v16  ;;  %8600 = vrcp.f32 %v7109_v49 }
 0xb1d   :  { %v7165_v56 = vadd.f32 1.0, %v8599_v51  ;;  %8602 = vrcp.f32 %v7164_v59 }
 0xb1e   :  { %8604 = vrcp.f32 %v7110_v58 }
 0xb29   :  { %v8601_v59 = vpop.eup %8600 }
 0xb47   :  { %v7204_v8 = vpop.f32.mrf.mxu0  ;;  %v7249_v28 = vpop.f32.mrf.mxu1 }
 0xb48   :  { %v7211_v55 = vadd.f32 %v7204_v8, %v12825_v37  ;;  %v7256_v27 = vadd.f32 %v7249_v28, %v12826_v23  ;;  %v8603_v8 = vpop.eup %8602 }
 0xb49   :  { %v7206_v14 = vpop.f32.mrf.mxu0  ;;  %v7251_v10 = vpop.f32.mrf.mxu1 }
 0xb4a   :  { %8606 = vtanh.f32 %v7211_v55  ;;  %v8342_v43 = vmul.f32 -1.442695, %v7256_v27  ;;  %v7212_v24 = vadd.f32 %v7206_v14, %v12827_v41  ;;  %v7257_v44 = vadd.f32 %v7251_v10, %v12828_v40  ;;  %v8605_v58 = vpop.eup %8604 }
 0xb4b   :  { %8608 = vrcp.f32 %v7165_v56  ;;  %v7208_v21 = vpop.f32.mrf.mxu0  ;;  %v7253_v1 = vpop.f32.mrf.mxu1  ;;  %v7270_v55 = vmul.f32 %v8603_v8, %v11306_v34 }
 0xb4c   :  { %8610 = vpow2.f32 %v8342_v43  ;;  %v8343_v51 = vmul.f32 -1.442695, %v7257_v44 }
 0xb4d   :  { %8612 = vtanh.f32 %v7212_v24  ;;  %v7209_v16 = vpop.f32.mrf.mxu0  ;;  %v7254_v49 = vpop.f32.mrf.mxu1 }
 0xb4e   :  { %8614 = vpow2.f32 %v8343_v51 }
 0xb57   :  { %v8607_v28 = vpop.eup %8606 }
 0xb58   :  { %v8609_v37 = vpop.eup %8608  ;;  %v7272_v23 = vmul.f32 %v8607_v28, %v8601_v59  ;;  %v7533_v28 = vld [vmem:[#allocation11 + $0xa0] sm:$0xff] }
 0xb59   :  { %v8611_v27 = vpop.eup %8610  ;;  %v7271_v43 = vmul.f32 %v8609_v37, %v11310_v30  ;;  %v7534_v30 = vld [vmem:[#allocation11 + $0xa8] sm:$0xff]  ;;  %v7517_v37 = vld [vmem:[#allocation11 + $0x20] sm:$0xff] }
 0xb5a   :  { %v8613_v14 = vpop.eup %8612  ;;  %v11456_v10 = vadd.f32 %v7272_v23, %v7270_v55  ;;  %v7264_v56 = vadd.f32 1.0, %v8611_v27  ;;  %v7532_v55 = vld [vmem:[#allocation11 + $0x98] sm:$0xff]  ;;  %v7531_v27 = vld [vmem:[#allocation11 + $0x90] sm:$0xff] }
 0xb5b   :  { %v8615_v41 = vpop.eup %8614  ;;  %v7273_v24 = vmul.f32 %v8613_v14, %v8605_v58  ;;  %v7518_v58 = vld [vmem:[#allocation11 + $0x28] sm:$0xff]  ;;  %v7516_v23 = vld [vmem:[#allocation11 + $0x18] sm:$0xff]  ;;  %v7515_v14 = vld [vmem:[#allocation11 + $0x10] sm:$0xff] }
 0xb5c   :  { %8616 = vtanh.f32 %v11456_v10  ;;  %v7265_v40 = vadd.f32 1.0, %v8615_v41  ;;  %v7514_v41 = vld [vmem:[#allocation11 + $0x8] sm:$0xff] }
 0xb5d   :  { %8618 = vrcp.f32 %v7264_v56  ;;  %v11460_v44 = vadd.f32 %v7273_v24, %v7271_v43  ;;  %v7530_v56 = vld [vmem:[#allocation11 + $0x88] sm:$0xff]  ;;  %v7529_v43 = vld [vmem:[#allocation11 + $0x80] sm:$0xff] }
 0xb5e   :  { %8620 = vrcp.f32 %v7265_v40  ;;  %v7513_v24 = vld [vmem:[#allocation11] sm:$0xff] }
 0xb5f   :  { %8622 = vtanh.f32 %v11460_v44 }
 0xb69   :  { %v8617_v34 = vpop.eup %8616 }
 0xb6a   :  { %v8619_v21 = vpop.eup %8618 }
 0xb6b   :  { %v8621_v1 = vpop.eup %8620  ;;  %v7278_v16 = vmul.f32 %v8619_v21, %v8617_v34 }
 0xb6c   :  { %v8623_v51 = vpop.eup %8622 }
 0xb6d   :  { %v7279_v49 = vmul.f32 %v8623_v51, %v8621_v1  ;;  %v11463_v8 = vpack.c.bf16 %v7278_v16, %v7278_v16 }
 0xb6f   :  { %v7292_v59 = vpack.c.bf16 %v7279_v49, %v7279_v49 }
 0xb71   :  { %7325 = vmatprep.mubr.bf16.mxu0 %v7292_v59  ;;  %7380 = vmatprep.mubr.bf16.mxu1 %v7292_v59 }
 0xb72   :  { %7326 = vmatmul.mubr.bf16.vlgmr.msra.gmra.mxu0 %v11463_v8  ;;  %7381 = vmatmul.mubr.bf16.vlgmr.msra.gmra.mxu1 %v11463_v8 }
 0xb73   :  { %7404 = vmatpush1.bf16.msra.mxu0 %v12261_v26  ;;  %7449 = vmatpush1.bf16.msra.mxu1 %v12262_v36  ;;  %v12829_v26 = vld [vmem:[#allocation194_spill] sm:$0xff]  ;;  %v12830_v36 = vld [vmem:[#allocation195_spill] sm:$0xff] }
 0xb74   :  { %7435 = vmatprep.mubr.bf16.mxu0 %v7292_v59  ;;  %7480 = vmatprep.mubr.bf16.mxu1 %v7292_v59 }
 0xb75   :  { %7405 = vmatprep.subr.bf16.mxu0 %v12263_v5  ;;  %7450 = vmatprep.subr.bf16.mxu1 %v12264_v11  ;;  %v12831_v5 = vld [vmem:[#allocation196_spill] sm:$0xff]  ;;  %v12832_v11 = vld [vmem:[#allocation197_spill] sm:$0xff] }
 0xb77   :  { %7406 = vmatpush1.bf16.msra.mxu0 %v12265_v31  ;;  %7451 = vmatpush1.bf16.msra.mxu1 %v12266_v60  ;;  %v12833_v31 = vld [vmem:[#allocation198_spill] sm:$0xff]  ;;  %v12834_v60 = vld [vmem:[#allocation199_spill] sm:$0xff] }
 0xb78   :  { %7407 = vmatprep.subr.bf16.mxu0 %v12267_v18  ;;  %7452 = vmatprep.subr.bf16.mxu1 %v12354_v35  ;;  %v12835_v18 = vld [vmem:[#allocation200_spill] sm:$0xff] }
 0xb79   :  { %v12839_v35 = vld [vmem:[#allocation204_spill] sm:$0xff] }
 0xb7b   :  { %7408 = vmatpush1.bf16.msra.mxu0 %v12355_v50  ;;  %7453 = vmatpush1.bf16.msra.mxu1 %v12356_v33  ;;  %v12840_v50 = vld [vmem:[#allocation205_spill] sm:$0xff]  ;;  %v12841_v33 = vld [vmem:[#allocation206_spill] sm:$0xff] }
 0xb7c   :  { %7409 = vmatprep.subr.bf16.mxu0 %v12357_v62  ;;  %7454 = vmatprep.subr.bf16.mxu1 %v12358_v4  ;;  %v12842_v62 = vld [vmem:[#allocation207_spill] sm:$0xff]  ;;  %v12843_v4 = vld [vmem:[#allocation208_spill] sm:$0xff] }
 0xb7f   :  { %7410 = vmatpush1.bf16.msra.mxu0 %v12359_v12  ;;  %7455 = vmatpush1.bf16.msra.mxu1 %v12360_v52  ;;  %v12844_v12 = vld [vmem:[#allocation209_spill] sm:$0xff]  ;;  %v12845_v52 = vld [vmem:[#allocation210_spill] sm:$0xff] }
 0xb80   :  { %7411 = vmatprep.subr.bf16.mxu0 %v12361_v13  ;;  %7456 = vmatprep.subr.bf16.mxu1 %v12362_v32  ;;  %v12846_v13 = vld [vmem:[#allocation211_spill] sm:$0xff]  ;;  %v12847_v32 = vld [vmem:[#allocation212_spill] sm:$0xff] }
 0xb83   :  { %7412 = vmatpush1.bf16.msra.mxu0 %v12449_v6  ;;  %7457 = vmatpush1.bf16.msra.mxu1 %v12450_v17  ;;  %v7524_v6 = vld [vmem:[#allocation11 + $0x58] sm:$0xff]  ;;  %v7539_v17 = vld [vmem:[#allocation11 + $0xd0] sm:$0xff] }
 0xb84   :  { %7413 = vmatprep.subr.bf16.mxu0 %v12451_v29  ;;  %7458 = vmatprep.subr.bf16.mxu1 %v12452_v20  ;;  %v7523_v29 = vld [vmem:[#allocation11 + $0x50] sm:$0xff]  ;;  %v7538_v20 = vld [vmem:[#allocation11 + $0xc8] sm:$0xff] }
 0xb87   :  { %7414 = vmatpush1.bf16.msra.mxu0 %v12453_v22  ;;  %7459 = vmatpush1.bf16.msra.mxu1 %v12454_v3  ;;  %v7522_v22 = vld [vmem:[#allocation11 + $0x48] sm:$0xff]  ;;  %v7537_v3 = vld [vmem:[#allocation11 + $0xc0] sm:$0xff] }
 0xb88   :  { %7415 = vmatprep.subr.bf16.mxu0 %v12455_v46  ;;  %7460 = vmatprep.subr.bf16.mxu1 %v12456_v53  ;;  %v7521_v46 = vld [vmem:[#allocation11 + $0x40] sm:$0xff]  ;;  %v7536_v53 = vld [vmem:[#allocation11 + $0xb8] sm:$0xff] }
 0xb8b   :  { %7416 = vmatpush1.bf16.msra.mxu0 %v12457_v38  ;;  %7461 = vmatpush1.bf16.msra.mxu1 %v12458_v47  ;;  %v7520_v38 = vld [vmem:[#allocation11 + $0x38] sm:$0xff]  ;;  %v7535_v47 = vld [vmem:[#allocation11 + $0xb0] sm:$0xff] }
 0xb8c   :  { %7417 = vmatprep.subr.bf16.mxu0 %v12373_v45  ;;  %7462 = vmatprep.subr.bf16.mxu1 %v12374_v42  ;;  %v12848_v42 = vld [vmem:[#allocation213_spill] sm:$0xff] }
 0xb8d   :  { %v7540_v45 = vld [vmem:[#allocation11 + $0xd8] sm:$0xff] }
 0xb8f   :  { %7418 = vmatpush1.bf16.msra.mxu0 %v12375_v0  ;;  %7463 = vmatpush1.bf16.msra.mxu1 %v12459_v7  ;;  %v12849_v0 = vld [vmem:[#allocation214_spill] sm:$0xff]  ;;  %v7519_v7 = vld [vmem:[#allocation11 + $0x30] sm:$0xff] }
 0xb90   :  { %7419 = vmatprep.subr.bf16.mxu0 %v12377_v15  ;;  %7464 = vmatprep.subr.bf16.mxu1 %v12378_v25  ;;  %v7528_v15 = vld [vmem:[#allocation11 + $0x78] sm:$0xff]  ;;  %v7543_v25 = vld [vmem:[#allocation11 + $0xf0] sm:$0xff] }
 0xb93   :  { %7420 = vmatpush2.bf16.msra.mxu0 %v12379_v63  ;;  %7465 = vmatpush2.bf16.msra.mxu1 %v12380_v54  ;;  %v7527_v63 = vld [vmem:[#allocation11 + $0x70] sm:$0xff]  ;;  %v7542_v54 = vld [vmem:[#allocation11 + $0xe8] sm:$0xff] }
 0xb94   :  { %7421 = vmatprep.subr.bf16.mxu0 %v12381_v2  ;;  %7466 = vmatprep.subr.bf16.mxu1 %v12382_v61  ;;  %v7526_v2 = vld [vmem:[#allocation11 + $0x68] sm:$0xff]  ;;  %v7541_v61 = vld [vmem:[#allocation11 + $0xe0] sm:$0xff] }
 0xb97   :  { %7422 = vmatpush2.bf16.msra.mxu0 %v12383_v57  ;;  %7467 = vmatpush2.bf16.msra.mxu1 %v12298_v9  ;;  %v12836_v9 = vld [vmem:[#allocation201_spill] sm:$0xff]  ;;  %v7525_v57 = vld [vmem:[#allocation11 + $0x60] sm:$0xff] }
 0xb98   :  { %7423 = vmatprep.subr.bf16.mxu0 %v12299_v48  ;;  %7468 = vmatprep.subr.bf16.mxu1 %v12300_v19  ;;  %v12837_v48 = vld [vmem:[#allocation202_spill] sm:$0xff]  ;;  %v12838_v19 = vld [vmem:[#allocation203_spill] sm:$0xff] }
 0xb9b   :  { %7424 = vmatpush2.bf16.msra.mxu0 %v12384_v39  ;;  %7469 = vmatpush2.bf16.msra.mxu1 %v12829_v26  ;;  %v7544_v39 = vld [vmem:[#allocation11 + $0xf8] sm:$0xff] }
 0xb9c   :  { %7425 = vmatprep.subr.bf16.mxu0 %v12830_v36  ;;  %7470 = vmatprep.subr.bf16.mxu1 %v12831_v5  ;;  %v12851_v36 = vld [vmem:[#allocation80_spill] sm:$0xff] }
 0xb9f   :  { %7426 = vmatpush2.bf16.msra.mxu0 %v12832_v11  ;;  %7471 = vmatpush2.bf16.msra.mxu1 %v12833_v31  ;;  %v12852_v11 = vld [vmem:[#allocation81_spill] sm:$0xff] }
 0xba0   :  { %7427 = vmatprep.subr.bf16.mxu0 %v12834_v60  ;;  %7472 = vmatprep.subr.bf16.mxu1 %v12835_v18  ;;  %v12853_v18 = vld [vmem:[#allocation82_spill] sm:$0xff] }
 0xba3   :  { %7428 = vmatpush2.bf16.msra.mxu0 %v12836_v9  ;;  %7473 = vmatpush2.bf16.msra.mxu1 %v12837_v48 }
 0xba4   :  { %7429 = vmatprep.subr.bf16.mxu0 %v12838_v19  ;;  %7474 = vmatprep.subr.bf16.mxu1 %v12839_v35 }
 0xba7   :  { %7430 = vmatpush2.bf16.msra.mxu0 %v12840_v50  ;;  %7475 = vmatpush2.bf16.msra.mxu1 %v12841_v33 }
 0xba8   :  { %7431 = vmatprep.subr.bf16.mxu0 %v12842_v62  ;;  %7476 = vmatprep.subr.bf16.mxu1 %v12843_v4 }
 0xbab   :  { %7432 = vmatpush2.bf16.msra.mxu0 %v12844_v12  ;;  %7477 = vmatpush2.bf16.msra.mxu1 %v12845_v52 }
 0xbac   :  { %7433 = vmatprep.subr.bf16.mxu0 %v12846_v13  ;;  %7478 = vmatprep.subr.bf16.mxu1 %v12847_v32 }
 0xbaf   :  { %7434 = vmatpush2.bf16.msra.mxu0 %v12848_v42  ;;  %7479 = vmatpush2.bf16.msra.mxu1 %v12849_v0 }
 0xbb0   :  { %8352 = vmatprep.subr.mxu0 %v7544_v39  ;;  %v12854_v39 = vld [vmem:[#allocation83_spill] sm:$0xff] }
 0xbb2   :  { %7436 = vmatmul.mubr.bf16.vlgmr.msra.gmra.mxu0 %v11463_v8  ;;  %7481 = vmatmul.mubr.bf16.vlgmr.msra.gmra.mxu1 %v11463_v8  ;;  %v12850_v8 = vld [vmem:[#allocation79_spill] sm:$0xff] }
 0xbb3   :  { %8353 = vmatpush3.msra.mxu0 %v7528_v15 }
 0xbb4   :  { %8354 = vmatprep.subr.mxu0 %v7543_v25  ;;  %v12855_v25 = vld [vmem:[#allocation84_spill] sm:$0xff] }
 0xbb5   :  { %8355 = vmatpush3.msra.mxu0 %v7527_v63 }
 0xbb6   :  { %8356 = vmatprep.subr.mxu0 %v7542_v54 }
 0xbb7   :  { %8357 = vmatpush3.msra.mxu0 %v7526_v2 }
 0xbb8   :  { %8358 = vmatprep.subr.mxu0 %v7541_v61 }
 0xbb9   :  { %8359 = vmatpush3.msra.mxu0 %v7525_v57  ;;  %v12856_v57 = vld [vmem:[#allocation85_spill] sm:$0xff] }
 0xbba   :  { %8360 = vmatprep.subr.mxu0 %v7540_v45 }
 0xbbb   :  { %8361 = vmatpush3.msra.mxu0 %v7524_v6  ;;  %v12857_v6 = vld [vmem:[#allocation86_spill] sm:$0xff] }
 0xbbc   :  { %8362 = vmatprep.subr.mxu0 %v7539_v17 }
 0xbbd   :  { %8363 = vmatpush3.msra.mxu0 %v7523_v29 }
 0xbbe   :  { %8364 = vmatprep.subr.mxu0 %v7538_v20 }
 0xbbf   :  { %8365 = vmatpush3.msra.mxu0 %v7522_v22 }
 0xbc0   :  { %8366 = vmatprep.subr.mxu0 %v7537_v3 }
 0xbc1   :  { %8367 = vmatpush3.msra.mxu0 %v7521_v46 }
 0xbc2   :  { %8368 = vmatprep.subr.mxu0 %v7536_v53 }
 0xbc3   :  { %8369 = vmatpush3.msra.mxu0 %v7520_v38 }
 0xbc4   :  { %8370 = vmatprep.subr.mxu0 %v7535_v47 }
 0xbc5   :  { %8371 = vmatpush3.msra.mxu0 %v7519_v7 }
 0xbc6   :  { %8372 = vmatprep.subr.mxu0 %v7534_v30 }
 0xbc7   :  { %8373 = vmatpush3.msra.mxu0 %v7518_v58 }
 0xbc8   :  { %8374 = vmatprep.subr.mxu0 %v7533_v28 }
 0xbc9   :  { %8375 = vmatpush3.msra.mxu0 %v7517_v37 }
 0xbca   :  { %8376 = vmatprep.subr.mxu0 %v7532_v55 }
 0xbcb   :  { %8377 = vmatpush3.msra.mxu0 %v7516_v23 }
 0xbcc   :  { %8378 = vmatprep.subr.mxu0 %v7531_v27 }
 0xbcd   :  { %8379 = vmatpush3.msra.mxu0 %v7515_v14 }
 0xbce   :  { %8380 = vmatprep.subr.mxu0 %v7530_v56 }
 0xbcf   :  { %8381 = vmatpush3.msra.mxu0 %v7514_v41 }
 0xbd0   :  { %8382 = vmatprep.subr.mxu0 %v7529_v43 }
 0xbd1   :  { %8383 = vmatpush3.msra.mxu0 %v7513_v24 }
 0xc32   :  { %v7327_v40 = vpop.f32.mrf.mxu0  ;;  %v7382_v34 = vpop.f32.mrf.mxu1 }
 0xc33   :  { %v7334_v26 = vadd.f32 %v7327_v40, %v12850_v8  ;;  %v7389_v5 = vadd.f32 %v7382_v34, %v12851_v36 }
 0xc34   :  { %v7329_v21 = vpop.f32.mrf.mxu0  ;;  %v7384_v1 = vpop.f32.mrf.mxu1 }
 0xc35   :  { %v7335_v31 = vadd.f32 %v7329_v21, %v12852_v11  ;;  %v8344_v60 = vmul.f32 -1.442695, %v7334_v26  ;;  %v7390_v9 = vadd.f32 %v7384_v1, %v12853_v18  ;;  %v8346_v48 = vmul.f32 -1.442695, %v7389_v5 }
 0xc36   :  { %v7331_v51 = vpop.f32.mrf.mxu0  ;;  %v7386_v16 = vpop.f32.mrf.mxu1 }
 0xc37   :  { %v8345_v19 = vmul.f32 -1.442695, %v7335_v31  ;;  %8624 = vpow2.f32 %v8344_v60  ;;  %v8347_v35 = vmul.f32 -1.442695, %v7390_v9 }
 0xc38   :  { %v7332_v49 = vpop.f32.mrf.mxu0  ;;  %v7387_v59 = vpop.f32.mrf.mxu1  ;;  %8626 = vpow2.f32 %v8346_v48 }
 0xc39   :  { %8628 = vpow2.f32 %v8345_v19 }
 0xc3a   :  { %8630 = vpow2.f32 %v8347_v35 }
 0xc44   :  { %v8625_v50 = vpop.eup %8624 }
 0xc45   :  { %v8627_v33 = vpop.eup %8626  ;;  %v7342_v4 = vadd.f32 1.0, %v8625_v50 }
 0xc46   :  { %v8629_v62 = vpop.eup %8628  ;;  %v7397_v52 = vadd.f32 1.0, %v8627_v33 }
 0xc47   :  { %v8631_v12 = vpop.eup %8630  ;;  %v7343_v13 = vadd.f32 1.0, %v8629_v62  ;;  %8632 = vrcp.f32 %v7342_v4 }
 0xc48   :  { %v7398_v32 = vadd.f32 1.0, %v8631_v12  ;;  %8634 = vrcp.f32 %v7397_v52 }
 0xc49   :  { %8636 = vrcp.f32 %v7343_v13 }
 0xc54   :  { %v8633_v53 = vpop.eup %8632 }
 0xc55   :  { %v8635_v38 = vpop.eup %8634 }
 0xc56   :  { %v8637_v47 = vpop.eup %8636  ;;  %v7503_v58 = vmul.f32 %v8635_v38, %v11456_v10 }
 0xc72   :  { %v7437_v42 = vpop.f32.mrf.mxu0  ;;  %v7482_v0 = vpop.f32.mrf.mxu1 }
 0xc73   :  { %v7444_v15 = vadd.f32 %v7437_v42, %v12854_v39  ;;  %v7489_v63 = vadd.f32 %v7482_v0, %v12855_v25 }
 0xc74   :  { %v7439_v54 = vpop.f32.mrf.mxu0  ;;  %v7484_v2 = vpop.f32.mrf.mxu1 }
 0xc75   :  { %8638 = vtanh.f32 %v7444_v15  ;;  %v8348_v61 = vmul.f32 -1.442695, %v7489_v63  ;;  %v7445_v45 = vadd.f32 %v7439_v54, %v12856_v57  ;;  %v7490_v17 = vadd.f32 %v7484_v2, %v12857_v6 }
 0xc76   :  { %8640 = vrcp.f32 %v7398_v32  ;;  %v7441_v29 = vpop.f32.mrf.mxu0  ;;  %v7486_v20 = vpop.f32.mrf.mxu1 }
 0xc77   :  { %8642 = vpow2.f32 %v8348_v61  ;;  %v8349_v22 = vmul.f32 -1.442695, %v7490_v17 }
 0xc78   :  { %8644 = vtanh.f32 %v7445_v45  ;;  %v7442_v3 = vpop.f32.mrf.mxu0  ;;  %v7487_v46 = vpop.f32.mrf.mxu1 }
 0xc79   :  { %8646 = vpow2.f32 %v8349_v22 }
 0xc82   :  { %v8639_v7 = vpop.eup %8638 }
 0xc83   :  { %v8641_v30 = vpop.eup %8640  ;;  %v7505_v28 = vmul.f32 %v8639_v7, %v8633_v53 }
 0xc84   :  { %v8643_v37 = vpop.eup %8642  ;;  %v7504_v56 = vmul.f32 %v8641_v30, %v11460_v44  ;;  %v8350_v44 = vld [vmem:[%s11552_s5] ss:$0 sm:$0xff] }
 0xc85   :  { %v8645_v55 = vpop.eup %8644  ;;  %v7507_v23 = vadd.f32 %v7505_v28, %v7503_v58  ;;  %v7497_v27 = vadd.f32 1.0, %v8643_v37 }
 0xc86   :  { %v8647_v14 = vpop.eup %8646  ;;  %v7506_v41 = vmul.f32 %v8645_v55, %v8637_v47 }
 0xc87   :  { %8648 = vtanh.f32 %v7507_v23  ;;  %v7498_v43 = vadd.f32 1.0, %v8647_v14 }
 0xc88   :  { %8650 = vrcp.f32 %v7497_v27  ;;  %v7508_v24 = vadd.f32 %v7506_v41, %v7504_v56 }
 0xc89   :  { %8652 = vrcp.f32 %v7498_v43 }
 0xc8a   :  { %8654 = vtanh.f32 %v7508_v24 }
 0xc94   :  { %v8649_v40 = vpop.eup %8648 }
 0xc95   :  { %v8651_v34 = vpop.eup %8650 }
 0xc96   :  { %v8653_v21 = vpop.eup %8652  ;;  %v7511_v51 = vmul.f32 %v8651_v34, %v8649_v40 }
 0xc97   :  { %v8655_v1 = vpop.eup %8654 }
 0xc98   :  { %v7512_v10 = vmul.f32 %v8655_v1, %v8653_v21 }
 0xc9a   :  { %7616 = vmatprep.mubr.f32.mxu0 %v7512_v10 }
 0xc9b   :  { %7617 = vmatmul.mubr.f32.vlgmr.msra.gmra.mxu0 %v7511_v51 }
 0xd5b   :  { %v8384_v16 = vpop.f32.mrf.mxu0 }
 0xd5d   :  { %v8385_v49 = vpop.f32.mrf.mxu0 }
 0xd5e   :  { %v8386_v59 = vadd.f32 %v8385_v49, %v8384_v16 }
 0xd60   :  { %v7619_v8 = vadd.f32 %v8386_v59, %v8350_v44 }
 0xd62   :  { %7622 = vmax.xlane.f32.xlu0 %v7619_v8 }
 0xdeb   :  { %v7623_v26 = vpop.xlane.xlu0 %7622 }
 0xdec   :  { %v7624_v36 = vsub.f32 %v7619_v8, %v7623_v26 }
 0xdee   :  { %v7625_v5 = vmul.f32 1.442695, %v7624_v36 }
 0xdf0   :  { %8656 = vpow2.f32 %v7625_v5 }
 0xdfd   :  { %v8657_v11 = vpop.eup %8656 }
 0xdfe   :  { %7627 = vadd.xlane.f32.xlu0 %v8657_v11 }
 0xe87   :  { %v7628_v31 = vpop.xlane.xlu0 %7627 }
 0xe88   :  { %8658 = vrcp.f32 %v7628_v31 }
 0xe95   :  { %v8659_v60 = vpop.eup %8658 }
 0xe96   :  { %v7630_v18 = vmul.f32 %v8659_v60, %v8657_v11 }
 0xe98   :  { %7631 = vst [vmem:[#allocation13] sm:$0xff] %v7630_v18 }
 0xe99   :  { %8771 = shalt.err (!%p8768_p1)
}
 0xe9a   :  { %7641 = dma.vmem_to_hbm [thread:$0]  %s7639_s26, 128, %s11553_s6, [#allocation7]  }
 0xe9b   :  { %8788 = dma.done.wait [#allocation7], 128  }
 0xe9c   :  { %8789 = vsyncadd [#allocation7], 4294967168 }
 0xe9d   :  { %7645 = vsyncpa [#allocation6], 1 }
 0xe9e   :  { %7646 = vsyncpa [#allocation9], 1 }
 0xe9f   :  { %7647 = vsyncpa [#allocation12], 1 }
 0xea0   :  { %7648 = vsyncpa [#allocation7], 1 }
 0xea1   :  { %7649 = vsyncmov [#allocation4] }
 0xea4   :  { %s7650_s29 = vpop.sfrf %7649 }
 0xea5   :  { %p8351_p2 = scmp.ne.s32.totalorder %s7650_s29, 0 }
 0xea7   :  { %7654 = shalt.err (%p8351_p2)  }

</bundles_post_ra>
